<compile_context>
chip_gen: v5e
topology: v5e:2x2
jax: 0.10.0
libtpu: 0.0.40
codegen_flags: <defaults>
</compile_context>

<pallas_src>
import jax
import jax.numpy as jnp
from jax.experimental import pallas as pl
from jax.experimental.pallas import tpu as pltpu

D_IN = 8 * 8        # 64
D1 = 256
D2 = 512
D3 = 1024
D_OUT = 64 * 64     # 4096
TN = 1024           # layer-4 output tile width (lane-dense, multiple of 128)


def mlp_sr_kernel(x_ref, w1_ref, b1_ref, w2_ref, b2_ref,
                  w3_ref, b3_ref, w4_ref, b4_ref, out_ref):
    # Layers 1-3: tiny (~5 MFLOPs), recomputed every grid step so the grid axis
    # can be split across TensorCores without an init guard.
    x = x_ref[...].astype(jnp.bfloat16)
    h = jnp.dot(x, w1_ref[...], preferred_element_type=jnp.float32) + b1_ref[...]
    h = jnp.maximum(h, 0.0)
    h = jnp.dot(h.astype(jnp.bfloat16), w2_ref[...],
                preferred_element_type=jnp.float32) + b2_ref[...]
    h = jnp.maximum(h, 0.0)
    h = jnp.dot(h.astype(jnp.bfloat16), w3_ref[...],
                preferred_element_type=jnp.float32) + b3_ref[...]
    h = jnp.maximum(h, 0.0)
    # Layer 4: one TN-wide output tile per grid step, streamed W4 tile.
    logits = jnp.dot(h.astype(jnp.bfloat16), w4_ref[...],
                     preferred_element_type=jnp.float32) + b4_ref[...]
    out_ref[...] = jax.nn.sigmoid(logits)


def mlp_sr_forward(x_nchw, params):
    """x_nchw: (B, 1, 8, 8) float32 -> (B, 1, 64, 64) float32."""
    w1, b1, w2, b2, w3, b3, w4, b4 = params
    B = x_nchw.shape[0]
    x = x_nchw.reshape(-1, D_IN).astype(jnp.float32)          # x.view(-1, 8*8)
    pad_b = -(-B // 8) * 8                                     # round batch up to x8 sublanes
    x_pad = jnp.pad(x, ((0, pad_b - B), (0, 0)))

    resident = lambda shape: pl.BlockSpec(shape, lambda j: (0, 0))

    out_pad = pl.pallas_call(
        mlp_sr_kernel,
        out_shape=jax.ShapeDtypeStruct((pad_b, D_OUT), jnp.float32),
        grid=(D_OUT // TN,),
        in_specs=[
            resident((pad_b, D_IN)),                           # x       (resident)
            resident((D_IN, D1)), resident((1, D1)),           # w1, b1  (resident)
            resident((D1, D2)), resident((1, D2)),             # w2, b2  (resident)
            resident((D2, D3)), resident((1, D3)),             # w3, b3  (resident)
            pl.BlockSpec((D3, TN), lambda j: (0, j)),          # w4 tile (streamed)
            pl.BlockSpec((1, TN), lambda j: (0, j)),           # b4 tile (streamed)
        ],
        out_specs=pl.BlockSpec((pad_b, TN), lambda j: (0, j)),
        compiler_params=pltpu.CompilerParams(
            dimension_semantics=("parallel",),                 # lets v7x split W4 stream across TCs
            vmem_limit_bytes=32 << 20,                         # fits v7x's 64 MiB physical VMEM
        ),
    )(x_pad, w1, b1, w2, b2, w3, b3, w4, b4)

    return out_pad[:B].reshape(B, 1, 64, 64)


def init_params(key):
    """Deterministic synthetic parameters matching nn.Linear shapes (stored transposed).

    Weights are stored bf16 (HBM-bandwidth win); biases stay f32.
    """
    dims = [(D_IN, D1), (D1, D2), (D2, D3), (D3, D_OUT)]
    params = []
    for din, dout in dims:
        kw, kb, key = jax.random.split(key, 3)
        scale = 1.0 / jnp.sqrt(jnp.float32(din))
        w = jax.random.uniform(kw, (din, dout), jnp.float32, -scale, scale)
        b = jax.random.uniform(kb, (1, dout), jnp.float32, -scale, scale)
        params.extend([w.astype(jnp.bfloat16), b])
    return params


if __name__ == "__main__":
    key = jax.random.PRNGKey(0)
    kx, kp = jax.random.split(key)
    params = init_params(kp)

    # Small FashionMNIST-like input at 8x8 resolution, NCHW.
    x = jax.random.normal(kx, (2, 1, 8, 8), jnp.float32)

    out = mlp_sr_forward(x, params)
    out = jax.block_until_ready(out)
    assert out.shape == (2, 1, 64, 64), out.shape
    assert bool(jnp.all((out >= 0.0) & (out <= 1.0)))  # sigmoid range sanity check
    print("KERNEL_OK")
</pallas_src>

<mosaic_0001>
module attributes {stable_mosaic.version = 11 : i64} {
  func.func @mlp_sr_kernel(%arg0: i32, %arg1: memref<8x64xf32, #tpu.memory_space<vmem>>, %arg2: memref<64x256xbf16, #tpu.memory_space<vmem>>, %arg3: memref<1x256xf32, #tpu.memory_space<vmem>>, %arg4: memref<256x512xbf16, #tpu.memory_space<vmem>>, %arg5: memref<1x512xf32, #tpu.memory_space<vmem>>, %arg6: memref<512x1024xbf16, #tpu.memory_space<vmem>>, %arg7: memref<1x1024xf32, #tpu.memory_space<vmem>>, %arg8: memref<1024x1024xbf16, #tpu.memory_space<vmem>>, %arg9: memref<1x1024xf32, #tpu.memory_space<vmem>>, %arg10: memref<8x1024xf32, #tpu.memory_space<vmem>>) attributes {dimension_semantics = [#tpu.dimension_semantics<parallel>], iteration_bounds = array<i64: 4>, scalar_prefetch = 0 : i64, scratch_operands = 0 : i64, tpu.core_type = #tpu.core_type<tc>, window_params = [{pipeline_mode = #tpu.pipeline_mode<synchronous>, transform_indices = @transform_0, window_bounds = array<i64: 8, 64>}, {pipeline_mode = #tpu.pipeline_mode<synchronous>, transform_indices = @transform_1, window_bounds = array<i64: 64, 256>}, {pipeline_mode = #tpu.pipeline_mode<synchronous>, transform_indices = @transform_2, window_bounds = array<i64: 1, 256>}, {pipeline_mode = #tpu.pipeline_mode<synchronous>, transform_indices = @transform_3, window_bounds = array<i64: 256, 512>}, {pipeline_mode = #tpu.pipeline_mode<synchronous>, transform_indices = @transform_4, window_bounds = array<i64: 1, 512>}, {pipeline_mode = #tpu.pipeline_mode<synchronous>, transform_indices = @transform_5, window_bounds = array<i64: 512, 1024>}, {pipeline_mode = #tpu.pipeline_mode<synchronous>, transform_indices = @transform_6, window_bounds = array<i64: 1, 1024>}, {transform_indices = @transform_7, window_bounds = array<i64: 1024, 1024>}, {transform_indices = @transform_8, window_bounds = array<i64: 1, 1024>}, {transform_indices = @transform_9, window_bounds = array<i64: 8, 1024>}]} {
    %c0 = arith.constant 0 : index
    %c0_0 = arith.constant 0 : index
    %0 = vector.load %arg1[%c0, %c0_0] : memref<8x64xf32, #tpu.memory_space<vmem>>, vector<8x64xf32>
    %1 = arith.truncf %0 : vector<8x64xf32> to vector<8x64xbf16>
    %c0_1 = arith.constant 0 : index
    %c0_2 = arith.constant 0 : index
    %2 = vector.load %arg2[%c0_1, %c0_2] : memref<64x256xbf16, #tpu.memory_space<vmem>>, vector<64x256xbf16>
    %cst = arith.constant dense<0.000000e+00> : vector<8x256xf32>
    %3 = tpu.matmul %1, %2, %cst {dimension_numbers = #tpu.dot_dimension_numbers<[1], [0], [0], [1], [0, 0, 1, 1], [], []>} : vector<8x64xbf16>, vector<64x256xbf16>, vector<8x256xf32> -> vector<8x256xf32>
    %c0_3 = arith.constant 0 : index
    %c0_4 = arith.constant 0 : index
    %4 = vector.load %arg3[%c0_3, %c0_4] : memref<1x256xf32, #tpu.memory_space<vmem>>, vector<1x256xf32>
    %5 = vector.broadcast %4 : vector<1x256xf32> to vector<8x256xf32>
    %6 = arith.addf %3, %5 : vector<8x256xf32>
    %cst_5 = arith.constant 0.000000e+00 : f32
    %7 = vector.broadcast %cst_5 : f32 to vector<8x256xf32>
    %8 = arith.maximumf %6, %7 : vector<8x256xf32>
    %9 = arith.truncf %8 : vector<8x256xf32> to vector<8x256xbf16>
    %c0_6 = arith.constant 0 : index
    %c0_7 = arith.constant 0 : index
    %10 = vector.load %arg4[%c0_6, %c0_7] : memref<256x512xbf16, #tpu.memory_space<vmem>>, vector<256x512xbf16>
    %cst_8 = arith.constant dense<0.000000e+00> : vector<8x512xf32>
    %11 = tpu.matmul %9, %10, %cst_8 {dimension_numbers = #tpu.dot_dimension_numbers<[1], [0], [0], [1], [0, 0, 1, 1], [], []>} : vector<8x256xbf16>, vector<256x512xbf16>, vector<8x512xf32> -> vector<8x512xf32>
    %c0_9 = arith.constant 0 : index
    %c0_10 = arith.constant 0 : index
    %12 = vector.load %arg5[%c0_9, %c0_10] : memref<1x512xf32, #tpu.memory_space<vmem>>, vector<1x512xf32>
    %13 = vector.broadcast %12 : vector<1x512xf32> to vector<8x512xf32>
    %14 = arith.addf %11, %13 : vector<8x512xf32>
    %cst_11 = arith.constant 0.000000e+00 : f32
    %15 = vector.broadcast %cst_11 : f32 to vector<8x512xf32>
    %16 = arith.maximumf %14, %15 : vector<8x512xf32>
    %17 = arith.truncf %16 : vector<8x512xf32> to vector<8x512xbf16>
    %c0_12 = arith.constant 0 : index
    %c0_13 = arith.constant 0 : index
    %18 = vector.load %arg6[%c0_12, %c0_13] : memref<512x1024xbf16, #tpu.memory_space<vmem>>, vector<512x1024xbf16>
    %cst_14 = arith.constant dense<0.000000e+00> : vector<8x1024xf32>
    %19 = tpu.matmul %17, %18, %cst_14 {dimension_numbers = #tpu.dot_dimension_numbers<[1], [0], [0], [1], [0, 0, 1, 1], [], []>} : vector<8x512xbf16>, vector<512x1024xbf16>, vector<8x1024xf32> -> vector<8x1024xf32>
    %c0_15 = arith.constant 0 : index
    %c0_16 = arith.constant 0 : index
    %20 = vector.load %arg7[%c0_15, %c0_16] : memref<1x1024xf32, #tpu.memory_space<vmem>>, vector<1x1024xf32>
    %21 = vector.broadcast %20 : vector<1x1024xf32> to vector<8x1024xf32>
    %22 = arith.addf %19, %21 : vector<8x1024xf32>
    %cst_17 = arith.constant 0.000000e+00 : f32
    %23 = vector.broadcast %cst_17 : f32 to vector<8x1024xf32>
    %24 = arith.maximumf %22, %23 : vector<8x1024xf32>
    %25 = arith.truncf %24 : vector<8x1024xf32> to vector<8x1024xbf16>
    %c0_18 = arith.constant 0 : index
    %c0_19 = arith.constant 0 : index
    %26 = vector.load %arg8[%c0_18, %c0_19] : memref<1024x1024xbf16, #tpu.memory_space<vmem>>, vector<1024x1024xbf16>
    %cst_20 = arith.constant dense<0.000000e+00> : vector<8x1024xf32>
    %27 = tpu.matmul %25, %26, %cst_20 {dimension_numbers = #tpu.dot_dimension_numbers<[1], [0], [0], [1], [0, 0, 1, 1], [], []>} : vector<8x1024xbf16>, vector<1024x1024xbf16>, vector<8x1024xf32> -> vector<8x1024xf32>
    %c0_21 = arith.constant 0 : index
    %c0_22 = arith.constant 0 : index
    %28 = vector.load %arg9[%c0_21, %c0_22] : memref<1x1024xf32, #tpu.memory_space<vmem>>, vector<1x1024xf32>
    %29 = vector.broadcast %28 : vector<1x1024xf32> to vector<8x1024xf32>
    %30 = arith.addf %27, %29 : vector<8x1024xf32>
    %31 = arith.negf %30 : vector<8x1024xf32>
    %32 = math.exp %31 : vector<8x1024xf32>
    %cst_23 = arith.constant 1.000000e+00 : f32
    %33 = vector.broadcast %cst_23 : f32 to vector<8x1024xf32>
    %34 = arith.addf %33, %32 : vector<8x1024xf32>
    %35 = arith.divf %33, %34 : vector<8x1024xf32>
    %c0_24 = arith.constant 0 : index
    %c0_25 = arith.constant 0 : index
    %36 = vector.load %arg10[%c0_24, %c0_25] : memref<8x1024xf32, #tpu.memory_space<vmem>>, vector<8x1024xf32>
    tpu.vector_store %arg10[%c0_24, %c0_25], %35 {strides = array<i32>} : memref<8x1024xf32, #tpu.memory_space<vmem>>, vector<8x1024xf32>,
    return
  }
  func.func @transform_0(%arg0: i32) -> (i32, i32) {
    %c0_i32 = arith.constant 0 : i32
    %c0_i32_0 = arith.constant 0 : i32
    %c0_i32_1 = arith.constant 0 : i32
    return %c0_i32, %c0_i32_0 : i32, i32
  }
  func.func @transform_1(%arg0: i32) -> (i32, i32) {
    %c0_i32 = arith.constant 0 : i32
    %c0_i32_0 = arith.constant 0 : i32
    %c0_i32_1 = arith.constant 0 : i32
    return %c0_i32, %c0_i32_0 : i32, i32
  }
  func.func @transform_2(%arg0: i32) -> (i32, i32) {
    %c0_i32 = arith.constant 0 : i32
    %c0_i32_0 = arith.constant 0 : i32
    %c0_i32_1 = arith.constant 0 : i32
    return %c0_i32, %c0_i32_0 : i32, i32
  }
  func.func @transform_3(%arg0: i32) -> (i32, i32) {
    %c0_i32 = arith.constant 0 : i32
    %c0_i32_0 = arith.constant 0 : i32
    %c0_i32_1 = arith.constant 0 : i32
    return %c0_i32, %c0_i32_0 : i32, i32
  }
  func.func @transform_4(%arg0: i32) -> (i32, i32) {
    %c0_i32 = arith.constant 0 : i32
    %c0_i32_0 = arith.constant 0 : i32
    %c0_i32_1 = arith.constant 0 : i32
    return %c0_i32, %c0_i32_0 : i32, i32
  }
  func.func @transform_5(%arg0: i32) -> (i32, i32) {
    %c0_i32 = arith.constant 0 : i32
    %c0_i32_0 = arith.constant 0 : i32
    %c0_i32_1 = arith.constant 0 : i32
    return %c0_i32, %c0_i32_0 : i32, i32
  }
  func.func @transform_6(%arg0: i32) -> (i32, i32) {
    %c0_i32 = arith.constant 0 : i32
    %c0_i32_0 = arith.constant 0 : i32
    %c0_i32_1 = arith.constant 0 : i32
    return %c0_i32, %c0_i32_0 : i32, i32
  }
  func.func @transform_7(%arg0: i32) -> (i32, i32) {
    %c0_i32 = arith.constant 0 : i32
    %c0_i32_0 = arith.constant 0 : i32
    return %c0_i32, %arg0 : i32, i32
  }
  func.func @transform_8(%arg0: i32) -> (i32, i32) {
    %c0_i32 = arith.constant 0 : i32
    %c0_i32_0 = arith.constant 0 : i32
    return %c0_i32, %arg0 : i32, i32
  }
  func.func @transform_9(%arg0: i32) -> (i32, i32) {
    %c0_i32 = arith.constant 0 : i32
    %c0_i32_0 = arith.constant 0 : i32
    return %c0_i32, %arg0 : i32, i32
  }
}

</mosaic_0001>

<bundles_post_ra>
// kernel: tpu_custom_call.1
= control target key start
LH: loop header
LB: loop body
LE: loop exit
PB: predicated region body
PF: predicated region fallthrough
CT: control target
= control target key end

     0   :  { %s13785_s0 = inlined_call_operand.hbm [shape: f32[8,64], index: 0, kind: input, shape index: {}]   ;;  %s13786_s1 = inlined_call_operand.hbm [shape: bf16[64,256], index: 1, kind: input, shape index: {}]   ;;  %s13787_s2 = inlined_call_operand.hbm [shape: f32[1,256], index: 2, kind: input, shape index: {}]   ;;  %s13788_s3 = inlined_call_operand.hbm [shape: bf16[256,512], index: 3, kind: input, shape index: {}]   ;;  %s13789_s4 = inlined_call_operand.hbm [shape: f32[1,512], index: 4, kind: input, shape index: {}]   ;;  %s13790_s5 = inlined_call_operand.hbm [shape: bf16[512,1024], index: 5, kind: input, shape index: {}]   ;;  %s13791_s6 = inlined_call_operand.hbm [shape: f32[1,1024], index: 6, kind: input, shape index: {}]   ;;  %s13792_s7 = inlined_call_operand.hbm [shape: bf16[1024,4096], index: 7, kind: input, shape index: {}]   ;;  %s13793_s8 = inlined_call_operand.hbm [shape: f32[1,4096], index: 8, kind: input, shape index: {}]   ;;  %s13794_s9 = inlined_call_operand.hbm [shape: f32[8,4096], index: 9, kind: output, shape index: {}]  }
   0x1   :  { %13803 = sst [smem:[#allocation28_spill]] %s13785_s0 }
   0x2   :  { %13804 = sst [smem:[#allocation29_spill]] %s13786_s1 }
   0x3   :  { %13805 = sst [smem:[#allocation30_spill]] %s13788_s3 }
   0x4   :  { %13806 = sst [smem:[#allocation31_spill]] %s13790_s5 }
   0x5   :  { %14 = vsyncpa [#allocation3], 0 }
   0x6   :  { %15 = vsyncpa [#allocation6], 0 }
   0x7   :  { %16 = vsyncpa [#allocation9], 0 }
   0x8   :  { %17 = vsyncpa [#allocation12], 0 }
   0x9   :  { %18 = vsyncpa [#allocation15], 0 }
   0xa   :  { %20 = vsyncpa [#allocation15 + $0x1], 0 }
   0xb   :  { %21 = vsyncpa [#allocation4], 0 }
   0xc   :  { %23 = vsyncpa [#allocation4 + $0x1], 0  ;;  %s12167_s30 = smov 0   ;;  %s12169_s10 = smov 0  }
   0xd   :  { %s12171_s11 = smov 0   ;;  %s12173_s12 = smov 0  }
   0xe LB: > { %13807 = sst [smem:[#allocation24_spill]] %s12089_s30  ;;  %s12191_s16 = sadd.s32 4294967295, %s12101_s12   ;;  %s12101_s12 = sphi %s12173_s12, %s13839_s12   ;;  %s12097_s11 = sphi %s12171_s11, %s13843_s11   ;;  %s12093_s10 = sphi %s12169_s10, %s13842_s10   ;;  %s12089_s30 = sphi %s12167_s30, %s13841_s30  }
   0xf   : > { %s13808_s1 = sld [smem:[#allocation29_spill]]  ;;  %p7342_p0 = scmp.ge.s32.totalorder %s12101_s12, 1 }
  0x10   : > { %p13801_p1 = scmp.eq.s32.totalorder %s12191_s16, 0  ;;  %p259_p2 = scmp.lt.s32.totalorder %s12101_s12, 5 }
  0x11   : > { %s12103_s18 = smov [#allocation5]   ;;  %s13810_s3 = sld [smem:[#allocation30_spill]] }
  0x12   : > { %p12196_p3 = pnand %p7342_p0, %p259_p2  ;;  %s284_s19 = sshll.u32 %s12103_s18, 4  ;;  %s285_s19 = int_to_ptr.vmem [resolvable:$true] %s284_s19 }
  0x13   : > { %s12104_s24 = smov [#allocation8]   ;;  %s12105_s26 = smov 128  }
  0x14   : > { %p11618_p4 = pneg %p12196_p3  ;;  %s310_s25 = sshll.u32 %s12104_s24, 4  ;;  %s311_s25 = int_to_ptr.vmem [resolvable:$true] %s310_s25 }
  0x15   : > { %s282_s15 = sshll.u32 %s13808_s1, 4  ;;  %s12106_s27 = smov 8   ;;  %s283_s15 = int_to_ptr.hbm [resolvable:$true] %s282_s15 }
  0x16   : > { %p12207_p5 = pnand %p11618_p4, %p13801_p1  ;;  %s12107_s28 = smov 256  }
  0x17   : > { %s308_s22 = sshll.u32 %s13810_s3, 4  ;;  %s12108_s29 = smov 16   ;;  %s309_s22 = int_to_ptr.hbm [resolvable:$true] %s308_s22 }
  0x18   : > { %11624 = dma.hbm_to_vmem [thread:$0]  (!%p12207_p5), %s283_s15, 1024, %s285_s19, [#allocation6], %s12105_s26, %s12105_s26, %s12106_s27  }
  0x19   : > { %11630 = dma.hbm_to_vmem [thread:$0]  (!%p12207_p5), %s309_s22, 8192, %s311_s25, [#allocation9], %s12107_s28, %s12107_s28, %s12108_s29  }
  0x1a   : > { %s13812_s5 = sld [smem:[#allocation31_spill]]  ;;  %s12109_s20 = smov [#allocation11]  }
  0x1b   : > { %s336_s15 = sshll.u32 %s12109_s20, 4  ;;  %s13795_s19 = smov 512   ;;  %s337_s15 = int_to_ptr.vmem [resolvable:$true] %s336_s15 }
  0x1c   : > { %s13796_s21 = smov 32   ;;  %s7341_s22 = sadd.s32 4294967294, %s12101_s12  }
  0x1d   : > { %s12225_s24 = sadd.s32 1, %s12101_s12   ;;  %s183_s25 = sadd.s32 1, %s12097_s11 }
  0x1e   : > { %13813 = sst [smem:[#allocation25_spill]] %s12225_s24  ;;  %s180_s26 = ssub.s32 %s12101_s12, %s12225_s24 }
  0x1f   : > { %p190_p6 = scmp.ne.s32.totalorder %s12097_s11, %s12093_s10  ;;  %p181_p7 = scmp.eq.s32.totalorder %s180_s26, 0 }
  0x20   : > { %s334_s18 = sshll.u32 %s13812_s5, 4  ;;  %p191_p8 = scmp.eq.s32.totalorder %s12101_s12, 0  ;;  %s335_s18 = int_to_ptr.hbm [resolvable:$true] %s334_s18 }
  0x21   : > { %11636 = dma.hbm_to_vmem [thread:$0]  (!%p12207_p5), %s335_s18, 32768, %s337_s15, [#allocation12], %s13795_s19, %s13795_s19, %s13796_s21  }
  0x22   : > { %p196_p9 = scmp.ne.s32.totalorder %s12093_s10, %s12089_s30  ;;  %p246_p10 = scmp.eq.s32.totalorder %s12191_s16, 3 }
  0x23   : > { %s12237_s27 = scalar_select %p181_p7, %s12097_s11, %s183_s25  }
  0x24   : > { %p12239_p11 = por %p191_p8, %p190_p6  ;;  %p12245_p12 = por %p13801_p1, %p196_p9 }
  0x25   : > { %13814 = sst [smem:[#allocation26_spill]] %s12237_s27  ;;  %p12249_p13 = por %p246_p10, %p190_p6 }
  0x26   : > { %p252_p0 = scmp.eq.s32.totalorder %s7341_s22, 3  ;;  %p11658_p2 = scmp.lt.s32.totalorder %s12101_s12, 4 }
  0x27   : > { %s362_s14 = sand.u32 1, %s12101_s12   ;;  %s13799_s20 = sand.u32 1, %s12097_s11  }
  0x28   : > { %p12255_p4 = por %p252_p0, %p196_p9  ;;  %s10742_s15 = sshll.u32 %s12101_s12, 5 }
  0x29   : > { %s7351_s25 = sshll.u32 %s13799_s20, 12  ;;  %s371_s21 = scalar_lea.hbm %s13792_s7, %s10742_s15 }
  0x2a   : > { %s13818_s18 = scalar_select %p12255_p4, 1, 0 }
  0x2b   : > { %s372_s1 = sshll.u32 %s371_s21, 4  ;;  %s366_s3 = scalar_lea.vmem [#allocation14], %s7351_s25  ;;  %s373_s1 = int_to_ptr.hbm [resolvable:$true] %s372_s1 }
  0x2c   : > { %13819 = sst [smem:[#allocation27_spill]] %s13818_s18  ;;  %s374_s5 = sshll.u32 %s366_s3, 4  ;;  %s375_s5 = int_to_ptr.vmem [resolvable:$true] %s374_s5 }
  0x2d   : > { %p12268_p6 = pnand %p11658_p2, %p12239_p11  ;;  %s13821_s0 = sld [smem:[#allocation28_spill]] }
  0x2e   : > { %s12275_s18 = scalar_lea.sflag [#allocation15], %s362_s14  ;;  %s11839_s19 = sshra.s32 %s373_s1, 4  ;;  %s11840_s19 = int_to_ptr.hbm [resolvable:$true] %s11839_s19 }
  0x2f   : > { %s11841_s21 = scalar_lea.hbm %s11840_s19, 4096  ;;  %p11843_p8 = pneg %p12268_p6 }
  0x30   : > { %p11842_p7 = scmp.ne.s32.totalorder %s11840_s19, %s11841_s21  ;;  %s11846_s24 = scalar_lea.hbm %s13792_s7, 16384 }
  0x31   : > { %p11847_p11 = scmp.lt.s32.totalorder %s11840_s19, %s13792_s7  ;;  %p11848_p0 = scmp.lt.s32.totalorder %s11846_s24, %s11841_s21 }
  0x32   : > { %p11844_p9 = pnand %p11843_p8, %p11842_p7 }
  0x33   : > { %s271_s20 = sshll.u32 %s13821_s0, 4  ;;  %p11849_p2 = por %p11848_p0, %p11847_p11  ;;  %s272_s20 = int_to_ptr.hbm [resolvable:$true] %s271_s20 }
  0x34   : > { %p11845_p10 = pneg %p11844_p9 }
  0x36   : > { %p11850_p1 = pnand %p11849_p2, %p11845_p10 }
  0x38   : > { %11853 = shalt.err (!%p11850_p1)
}
  0x39   : > { %s12112_s14 = smov 2048   ;;  %s13822_s25 = smov 32  }
  0x3a   : > { %s13823_s26 = smov 512   ;;  %s297_s28 = sshll.u32 %s13787_s2, 4  ;;  %s298_s28 = int_to_ptr.hbm [resolvable:$true] %s297_s28 }
  0x3b   : > { %11643 = dma.hbm_to_vmem [thread:$0]  (!%p12268_p6), %s373_s1, 65536, %s375_s5, %s12275_s18, %s12112_s14, %s13823_s26, %s13822_s25  }
  0x3c   : > { %s12113_s30 = smov [#allocation2]   ;;  %s12114_s21 = smov [#allocation7]  }
  0x3d   : > { %s273_s19 = sshll.u32 %s12113_s30, 4  ;;  %s299_s24 = sshll.u32 %s12114_s21, 4  ;;  %s274_s19 = int_to_ptr.vmem [resolvable:$true] %s273_s19  ;;  %s300_s24 = int_to_ptr.vmem [resolvable:$true] %s299_s24 }
  0x3e   : > { %11621 = dma.hbm_to_vmem [thread:$0]  (!%p12207_p5), %s272_s20, 128, %s274_s19, [#allocation3]  }
  0x3f   : > { %s323_s1 = sshll.u32 %s13789_s4, 4  ;;  %s349_s30 = sshll.u32 %s13791_s6, 4  ;;  %s324_s1 = int_to_ptr.hbm [resolvable:$true] %s323_s1  ;;  %s350_s30 = int_to_ptr.hbm [resolvable:$true] %s349_s30 }
  0x40   : > { %11627 = dma.hbm_to_vmem [thread:$0]  (!%p12207_p5), %s298_s28, 32, %s300_s24, [#allocation6]  }
  0x41   : > { %s12115_s14 = smov [#allocation10]   ;;  %s12116_s20 = smov [#allocation13]  }
  0x42   : > { %s325_s25 = sshll.u32 %s12115_s14, 4  ;;  %s351_s26 = sshll.u32 %s12116_s20, 4  ;;  %s326_s25 = int_to_ptr.vmem [resolvable:$true] %s325_s25  ;;  %s352_s26 = int_to_ptr.vmem [resolvable:$true] %s351_s26 }
  0x43   : > { %11633 = dma.hbm_to_vmem [thread:$0]  (!%p12207_p5), %s324_s1, 64, %s326_s25, [#allocation9]  }
  0x44   : > { %s13824_s3 = sand.u32 1, %s12097_s11   ;;  %s7355_s21 = sshll.u32 %s12101_s12, 3 }
  0x45   : > { %s7354_s19 = sshll.u32 %s13824_s3, 3  ;;  %s392_s0 = scalar_lea.hbm %s13793_s8, %s7355_s21 }
  0x46   : > { %11639 = dma.hbm_to_vmem [thread:$0]  (!%p12207_p5), %s350_s30, 128, %s352_s26, [#allocation12]  }
  0x47   : > { %s388_s28 = scalar_lea.vmem [#allocation16], %s7354_s19  ;;  %s394_s5 = sshll.u32 %s392_s0, 4  ;;  %s395_s5 = int_to_ptr.hbm [resolvable:$true] %s394_s5 }
  0x48   : > { %s396_s24 = sshll.u32 %s388_s28, 4  ;;  %s11989_s14 = sshra.s32 %s395_s5, 4  ;;  %s397_s24 = int_to_ptr.vmem [resolvable:$true] %s396_s24  ;;  %s11990_s14 = int_to_ptr.hbm [resolvable:$true] %s11989_s14 }
  0x49   : > { %s11991_s1 = scalar_lea.hbm %s11990_s14, 8  ;;  %s11996_s25 = scalar_lea.hbm %s13793_s8, 32 }
  0x4a   : > { %p11992_p1 = scmp.ne.s32.totalorder %s11990_s14, %s11991_s1  ;;  %p11997_p5 = scmp.lt.s32.totalorder %s11990_s14, %s13793_s8 }
  0x4b   : > { %p11998_p10 = scmp.lt.s32.totalorder %s11996_s25, %s11991_s1 }
  0x4c   : > { %p11994_p7 = pnand %p11992_p1, %p11843_p8 }
  0x4d   : > { %p11999_p11 = por %p11998_p10, %p11997_p5 }
  0x4e   : > { %p11995_p9 = pneg %p11994_p7 }
  0x50   : > { %p12000_p0 = pnand %p11999_p11, %p11995_p9 }
  0x52   : > { %12003 = shalt.err (!%p12000_p0)
}
  0x53   : > { %11646 = dma.hbm_to_vmem [thread:$0]  (!%p12268_p6), %s395_s5, 128, %s397_s24, %s12275_s18  }
  0x54   : > { %405 = sbr.rel (%p12196_p3) target bundleno = 1331 (0x533), region = 56  ;;  %p13825_p8 = scmp.eq.s32.totalorder (!%p12196_p3), %s12191_s16, 0 }
  0x59   : > { %12064 = dma.done.wait (%p13825_p8), [#allocation3], 128   ;;  %p13826_p2 = pmov %p13825_p8 }
  0x5b   : > { %12066 = vsyncadd (%p13826_p2), [#allocation3], 4294967168  ;;  %p13827_p1 = pmov %p13826_p2 }
  0x5d   : > { %12068 = dma.done.wait (%p13827_p1), [#allocation6], 1056   ;;  %p13828_p7 = pmov %p13827_p1 }
  0x5e   : > { %p13829_p9 = pmov %p13827_p1 }
  0x5f   : > { %12070 = vsyncadd (%p13828_p7), [#allocation6], 4294966240 }
  0x60   : > { %12072 = dma.done.wait (%p13829_p9), [#allocation9], 8256   ;;  %p13830_p6 = pmov %p13827_p1 }
  0x61   : > { %p13831_p3 = pmov %p13827_p1 }
  0x62   : > { %12074 = vsyncadd (%p13830_p6), [#allocation9], 4294959040 }
  0x63   : > { %12076 = dma.done.wait (%p13831_p3), [#allocation12], 32896   ;;  %p13832_p5 = pmov %p13827_p1 }
  0x64   : > { %s442_s17 = sand.u32 1, %s12191_s16   ;;  %s12348_s18 = sand.u32 1, %s12093_s10  }
  0x65   : > { %12078 = vsyncadd (%p13832_p5), [#allocation12], 4294934400  ;;  %s7364_s22 = sshll.u32 %s12348_s18, 12  ;;  %s443_s3 = scalar_lea.sflag [#allocation15], %s442_s17 }
  0x66   : > { %s12351_s19 = scalar_lea.vmem [#allocation14], %s7364_s22 }
  0x67   : > { %12080 = dma.done.wait (%p12245_p12), %s443_s3, 65664  }
  0x68   : > { %12082 = vsyncadd (%p12245_p12), %s443_s3, 4294901632  ;;  %v7393_v0 = vld [vmem:[#allocation5 + $0x30] sm:$0xf]  ;;  %v10750_v1 = vld [vmem:[#allocation5 + $0x34] sm:$0xf0]  ;;  %vm557_vm0 = vcmask 523264  }
  0x69   : > { %v10749_v2 = vld [vmem:[#allocation5 + $0x34] sm:$0xf]  ;;  %v7394_v3 = vor.u32 %v10750_v1, %v7393_v0  ;;  %v7395_v4 = vld [vmem:[#allocation5 + $0x38] sm:$0xf0]  ;;  %v7385_v5 = vld [vmem:[#allocation5 + $0x20] sm:$0xf] }
  0x6a   : > { %v10748_v6 = vld [vmem:[#allocation5 + $0x24] sm:$0xf0]  ;;  %v7398_v7 = vor.u32 %v10749_v2, %v7395_v4  ;;  %v10747_v8 = vld [vmem:[#allocation5 + $0x24] sm:$0xf]  ;;  %v7387_v9 = vld [vmem:[#allocation5 + $0x28] sm:$0xf0] }
  0x6b   : > { %565 = vmatpush.bf16.msra.mxu0 %v7394_v3  ;;  %v7386_v10 = vor.u32 %v10748_v6, %v7385_v5  ;;  %v7390_v11 = vor.u32 %v10747_v8, %v7387_v9  ;;  %v7377_v12 = vld [vmem:[#allocation5 + $0x10] sm:$0xf]  ;;  %v10746_v13 = vld [vmem:[#allocation5 + $0x14] sm:$0xf0]  ;;  %v10745_v14 = vld [vmem:[#allocation5 + $0x14] sm:$0xf] }
  0x6c   : > { %578 = vmatpush.bf16.msra.mxu1 %v7398_v7  ;;  %v7379_v15 = vld [vmem:[#allocation5 + $0x18] sm:$0xf0]  ;;  %v7515_v16 = vld [vmem:[#allocation8 + $0xe0] sm:$0xf]  ;;  %v10781_v18 = vld [vmem:[#allocation8 + $0xec] sm:$0xf0]  ;;  %v7378_v21 = vor.u32 %v10746_v13, %v7377_v12 }
  0x6d   : > { %v7369_v17 = vld [vmem:[#allocation5] sm:$0xf]  ;;  %v10813_v20 = vld [vmem:[#allocation8 + $0x1ec] sm:$0xf0]  ;;  %v10744_v22 = vld [vmem:[#allocation5 + $0x4] sm:$0xf0]  ;;  %v7516_v25 = vor.u32 %v10781_v18, %v7515_v16  ;;  %v7382_v27 = vor.u32 %v10745_v14, %v7379_v15 }
  0x6e   : > { %v7643_v19 = vld [vmem:[#allocation8 + $0x1e0] sm:$0xf]  ;;  %v7371_v24 = vld [vmem:[#allocation5 + $0x8] sm:$0xf0]  ;;  %v10779_v28 = vld [vmem:[#allocation8 + $0xe4] sm:$0xf]  ;;  %v7370_v39 = vor.u32 %v10744_v22, %v7369_v17 }
  0x6f   : > { %566 = vmatpush.bf16.msra.mxu0 %v7386_v10  ;;  %v10743_v23 = vld [vmem:[#allocation5 + $0x4] sm:$0xf]  ;;  %v7644_v26 = vor.u32 %v10813_v20, %v7643_v19  ;;  %v10777_v30 = vld [vmem:[#allocation8 + $0xcc] sm:$0xf0]  ;;  %985 = vmatpush.bf16.msra.mxu2 %v7516_v25  ;;  %v7517_v31 = vld [vmem:[#allocation8 + $0xf0] sm:$0xf0] }
  0x70   : > { %579 = vmatpush.bf16.msra.mxu1 %v7390_v11  ;;  %v7499_v29 = vld [vmem:[#allocation8 + $0xc0] sm:$0xf]  ;;  %v10809_v34 = vld [vmem:[#allocation8 + $0x1cc] sm:$0xf0]  ;;  %v501_v35 = vld [vmem:[#allocation2] sm:$0xff]  ;;  %v7374_v43 = vor.u32 %v10743_v23, %v7371_v24  ;;  %v7520_v44 = vor.u32 %v10779_v28, %v7517_v31  ;;  %s7365_s29 = sshll.u32 %s12348_s18, 3 }
  0x71   : > { %998 = vmatpush.bf16.msra.mxu3 %v7644_v26  ;;  %v7500_v32 = vor.u32 %v10777_v30, %v7499_v29  ;;  %v7627_v33 = vld [vmem:[#allocation8 + $0x1c0] sm:$0xf]  ;;  %v10811_v36 = vld [vmem:[#allocation8 + $0x1e4] sm:$0xf]  ;;  %v7645_v37 = vld [vmem:[#allocation8 + $0x1f0] sm:$0xf0]  ;;  %v502_v51 = vpack.c.bf16 %v501_v35, %v501_v35 }
  0x72   : > { %v7628_v38 = vor.u32 %v10809_v34, %v7627_v33  ;;  %v7483_v40 = vld [vmem:[#allocation8 + $0xa0] sm:$0xf]  ;;  %v10773_v41 = vld [vmem:[#allocation8 + $0xac] sm:$0xf0]  ;;  %v7648_v46 = vor.u32 %v10811_v36, %v7645_v37  ;;  %v10775_v47 = vld [vmem:[#allocation8 + $0xc4] sm:$0xf] }
  0x73   : > { %567 = vmatpush.bf16.msra.mxu0 %v7378_v21  ;;  %v7611_v42 = vld [vmem:[#allocation8 + $0x1a0] sm:$0xf]  ;;  %v10805_v45 = vld [vmem:[#allocation8 + $0x1ac] sm:$0xf0]  ;;  %986 = vmatpush.bf16.msra.mxu2 %v7500_v32  ;;  %v7501_v48 = vld [vmem:[#allocation8 + $0xd0] sm:$0xf0]  ;;  %v7484_v50 = vor.u32 %v10773_v41, %v7483_v40 }
  0x74   : > { %580 = vmatpush.bf16.msra.mxu1 %v7382_v27  ;;  %v10807_v49 = vld [vmem:[#allocation8 + $0x1c4] sm:$0xf]  ;;  %v7629_v52 = vld [vmem:[#allocation8 + $0x1d0] sm:$0xf0]  ;;  %v7612_v53 = vor.u32 %v10805_v45, %v7611_v42  ;;  %v7467_v54 = vld [vmem:[#allocation8 + $0x80] sm:$0xf]  ;;  %v7504_v58 = vor.u32 %v10775_v47, %v7501_v48 }
  0x75   : > { %999 = vmatpush.bf16.msra.mxu3 %v7628_v38  ;;  %v10769_v55 = vld [vmem:[#allocation8 + $0x8c] sm:$0xf0]  ;;  %v7595_v56 = vld [vmem:[#allocation8 + $0x180] sm:$0xf]  ;;  %v7632_v59 = vor.u32 %v10807_v49, %v7629_v52  ;;  %v10771_v60 = vld [vmem:[#allocation8 + $0xa4] sm:$0xf] }
  0x76   : > { %v10801_v57 = vld [vmem:[#allocation8 + $0x18c] sm:$0xf0]  ;;  %v7485_v61 = vld [vmem:[#allocation8 + $0xb0] sm:$0xf0]  ;;  %v10803_v62 = vld [vmem:[#allocation8 + $0x1a4] sm:$0xf]  ;;  %v7468_v63 = vor.u32 %v10769_v55, %v7467_v54 }
  0x77   : > { %568 = vmatpush.bf16.msra.mxu0 %v7370_v39  ;;  %987 = vmatpush.bf16.msra.mxu2 %v7484_v50  ;;  %v7613_v0 = vld [vmem:[#allocation8 + $0x1b0] sm:$0xf0]  ;;  %v7596_v1 = vor.u32 %v10801_v57, %v7595_v56  ;;  %v7451_v2 = vld [vmem:[#allocation8 + $0x60] sm:$0xf]  ;;  %v10765_v3 = vld [vmem:[#allocation8 + $0x6c] sm:$0xf0]  ;;  %v7488_v6 = vor.u32 %v10771_v60, %v7485_v61 }
  0x78   : > { %581 = vmatpush.bf16.msra.mxu1 %v7374_v43  ;;  %v7579_v4 = vld [vmem:[#allocation8 + $0x160] sm:$0xf]  ;;  %v10797_v5 = vld [vmem:[#allocation8 + $0x16c] sm:$0xf0]  ;;  %v7616_v7 = vor.u32 %v10803_v62, %v7613_v0  ;;  %v10767_v8 = vld [vmem:[#allocation8 + $0x84] sm:$0xf]  ;;  %v7452_v11 = vor.u32 %v10765_v3, %v7451_v2 }
  0x79   : > { %1000 = vmatpush.bf16.msra.mxu3 %v7612_v53  ;;  %v7469_v9 = vld [vmem:[#allocation8 + $0x90] sm:$0xf0]  ;;  %v10799_v10 = vld [vmem:[#allocation8 + $0x184] sm:$0xf]  ;;  %v7580_v13 = vor.u32 %v10797_v5, %v7579_v4  ;;  %v7435_v14 = vld [vmem:[#allocation8 + $0x40] sm:$0xf] }
  0x7a   : > { %7399 = vmatmul.msk.bf16.vlgmr.msra.gmra.mxu0 %vm557_vm0, %v502_v51  ;;  %v7597_v12 = vld [vmem:[#allocation8 + $0x190] sm:$0xf0]  ;;  %v10761_v15 = vld [vmem:[#allocation8 + $0x4c] sm:$0xf0]  ;;  %v7563_v16 = vld [vmem:[#allocation8 + $0x140] sm:$0xf]  ;;  %v7472_v18 = vor.u32 %v10767_v8, %v7469_v9 }
  0x7b   : > { %1011 = vmatpush.bf16.msrb.mxu0 %v7520_v44  ;;  %7400 = vmatmul.msk.bf16.vlgmr.msra.gmra.mxu1 %vm557_vm0, %v502_v51  ;;  %v10793_v17 = vld [vmem:[#allocation8 + $0x14c] sm:$0xf0]  ;;  %v7600_v19 = vor.u32 %v10799_v10, %v7597_v12  ;;  %v10763_v20 = vld [vmem:[#allocation8 + $0x64] sm:$0xf]  ;;  %v7453_v21 = vld [vmem:[#allocation8 + $0x70] sm:$0xf0]  ;;  %v7436_v23 = vor.u32 %v10761_v15, %v7435_v14 }
  0x7c   : > { %1024 = vmatpush.bf16.msrb.mxu1 %v7648_v46  ;;  %988 = vmatpush.bf16.msra.mxu2 %v7468_v63  ;;  %v10795_v22 = vld [vmem:[#allocation8 + $0x164] sm:$0xf]  ;;  %v7581_v24 = vld [vmem:[#allocation8 + $0x170] sm:$0xf0]  ;;  %v7564_v25 = vor.u32 %v10793_v17, %v7563_v16  ;;  %v7419_v26 = vld [vmem:[#allocation8 + $0x20] sm:$0xf]  ;;  %v7456_v30 = vor.u32 %v10763_v20, %v7453_v21 }
  0x7d   : > { %1001 = vmatpush.bf16.msra.mxu3 %v7596_v1  ;;  %v10757_v27 = vld [vmem:[#allocation8 + $0x2c] sm:$0xf0]  ;;  %v7547_v28 = vld [vmem:[#allocation8 + $0x120] sm:$0xf]  ;;  %v10759_v31 = vld [vmem:[#allocation8 + $0x44] sm:$0xf]  ;;  %v7584_v32 = vor.u32 %v10795_v22, %v7581_v24 }
  0x7e   : > { %v10789_v29 = vld [vmem:[#allocation8 + $0x12c] sm:$0xf0]  ;;  %v7437_v33 = vld [vmem:[#allocation8 + $0x50] sm:$0xf0]  ;;  %v10791_v34 = vld [vmem:[#allocation8 + $0x144] sm:$0xf]  ;;  %v7420_v36 = vor.u32 %v10757_v27, %v7419_v26 }
  0x7f   : > { %1012 = vmatpush.bf16.msrb.mxu0 %v7504_v58  ;;  %v7565_v35 = vld [vmem:[#allocation8 + $0x150] sm:$0xf0]  ;;  %v7548_v37 = vor.u32 %v10789_v29, %v7547_v28  ;;  %v7403_v38 = vld [vmem:[#allocation8] sm:$0xf]  ;;  %v10753_v39 = vld [vmem:[#allocation8 + $0xc] sm:$0xf0]  ;;  %v7440_v44 = vor.u32 %v10759_v31, %v7437_v33 }
  0x80   : > { %1025 = vmatpush.bf16.msrb.mxu1 %v7632_v59  ;;  %989 = vmatpush.bf16.msra.mxu2 %v7452_v11  ;;  %v7531_v40 = vld [vmem:[#allocation8 + $0x100] sm:$0xf]  ;;  %v10785_v41 = vld [vmem:[#allocation8 + $0x10c] sm:$0xf0]  ;;  %v7523_v42 = vld [vmem:[#allocation8 + $0xe8] sm:$0xf]  ;;  %v7568_v47 = vor.u32 %v10791_v34, %v7565_v35  ;;  %v7404_v50 = vor.u32 %v10753_v39, %v7403_v38 }
  0x81   : > { %1002 = vmatpush.bf16.msra.mxu3 %v7580_v13  ;;  %v10782_v43 = vld [vmem:[#allocation8 + $0xf4] sm:$0xf0]  ;;  %v7651_v45 = vld [vmem:[#allocation8 + $0x1e8] sm:$0xf]  ;;  %v10755_v48 = vld [vmem:[#allocation8 + $0x24] sm:$0xf]  ;;  %v7532_v53 = vor.u32 %v10785_v41, %v7531_v40 }
  0x82   : > { %v10814_v46 = vld [vmem:[#allocation8 + $0x1f4] sm:$0xf0]  ;;  %v7421_v49 = vld [vmem:[#allocation8 + $0x30] sm:$0xf0]  ;;  %v10787_v51 = vld [vmem:[#allocation8 + $0x124] sm:$0xf]  ;;  %v7524_v54 = vor.u32 %v10782_v43, %v7523_v42 }
  0x83   : > { %1013 = vmatpush.bf16.msrb.mxu0 %v7488_v6  ;;  %v7549_v52 = vld [vmem:[#allocation8 + $0x130] sm:$0xf0]  ;;  %v7652_v55 = vor.u32 %v10814_v46, %v7651_v45  ;;  %v7507_v56 = vld [vmem:[#allocation8 + $0xc8] sm:$0xf]  ;;  %v10778_v57 = vld [vmem:[#allocation8 + $0xd4] sm:$0xf0]  ;;  %v7424_v58 = vor.u32 %v10755_v48, %v7421_v49 }
  0x84   : > { %1026 = vmatpush.bf16.msrb.mxu1 %v7616_v7  ;;  %990 = vmatpush.bf16.msra.mxu2 %v7436_v23  ;;  %v7635_v59 = vld [vmem:[#allocation8 + $0x1c8] sm:$0xf]  ;;  %v10810_v60 = vld [vmem:[#allocation8 + $0x1d4] sm:$0xf0]  ;;  %v7552_v61 = vor.u32 %v10787_v51, %v7549_v52  ;;  %v10751_v62 = vld [vmem:[#allocation8 + $0x4] sm:$0xf]  ;;  %v7508_v4 = vor.u32 %v10778_v57, %v7507_v56 }
  0x85   : > { %1003 = vmatpush.bf16.msra.mxu3 %v7564_v25  ;;  %v7405_v63 = vld [vmem:[#allocation8 + $0x10] sm:$0xf0]  ;;  %v10783_v0 = vld [vmem:[#allocation8 + $0x104] sm:$0xf]  ;;  %v10780_v2 = vld [vmem:[#allocation8 + $0xec] sm:$0xf]  ;;  %v7636_v7 = vor.u32 %v10810_v60, %v7635_v59 }
  0x86   : > { %v7533_v1 = vld [vmem:[#allocation8 + $0x110] sm:$0xf0]  ;;  %v7525_v3 = vld [vmem:[#allocation8 + $0xf8] sm:$0xf0]  ;;  %v10812_v5 = vld [vmem:[#allocation8 + $0x1ec] sm:$0xf]  ;;  %v7408_v8 = vor.u32 %v10751_v62, %v7405_v63 }
  0x87   : > { %1014 = vmatpush.bf16.msrb.mxu0 %v7472_v18  ;;  %v7653_v6 = vld [vmem:[#allocation8 + $0x1f8] sm:$0xf0]  ;;  %v7536_v9 = vor.u32 %v10783_v0, %v7533_v1  ;;  %v7528_v10 = vor.u32 %v10780_v2, %v7525_v3  ;;  %v10776_v12 = vld [vmem:[#allocation8 + $0xcc] sm:$0xf]  ;;  %v7491_v18 = vld [vmem:[#allocation8 + $0xa8] sm:$0xf] }
  0x88   : > { %1027 = vmatpush.bf16.msrb.mxu1 %v7600_v19  ;;  %991 = vmatpush.bf16.msra.mxu2 %v7420_v36  ;;  %v7656_v11 = vor.u32 %v10812_v5, %v7653_v6  ;;  %v7509_v13 = vld [vmem:[#allocation8 + $0xd8] sm:$0xf0]  ;;  %v10808_v14 = vld [vmem:[#allocation8 + $0x1cc] sm:$0xf]  ;;  %v10774_v19 = vld [vmem:[#allocation8 + $0xb4] sm:$0xf0] }
  0x89   : > { %1004 = vmatpush.bf16.msra.mxu3 %v7548_v37  ;;  %v7637_v15 = vld [vmem:[#allocation8 + $0x1d8] sm:$0xf0]  ;;  %v7512_v16 = vor.u32 %v10776_v12, %v7509_v13  ;;  %v7619_v20 = vld [vmem:[#allocation8 + $0x1a8] sm:$0xf]  ;;  %v7492_v21 = vor.u32 %v10774_v19, %v7491_v18  ;;  %v10806_v22 = vld [vmem:[#allocation8 + $0x1b4] sm:$0xf0] }
  0x8a   : > { %v7640_v17 = vor.u32 %v10808_v14, %v7637_v15  ;;  %v10772_v23 = vld [vmem:[#allocation8 + $0xac] sm:$0xf]  ;;  %v7493_v24 = vld [vmem:[#allocation8 + $0xb8] sm:$0xf0]  ;;  %v7620_v25 = vor.u32 %v10806_v22, %v7619_v20  ;;  %v10770_v31 = vld [vmem:[#allocation8 + $0x94] sm:$0xf0] }
  0x8b   : > { %1015 = vmatpush.bf16.msrb.mxu0 %v7456_v30  ;;  %v7496_v26 = vor.u32 %v10772_v23, %v7493_v24  ;;  %v10804_v27 = vld [vmem:[#allocation8 + $0x1ac] sm:$0xf]  ;;  %v7621_v28 = vld [vmem:[#allocation8 + $0x1b8] sm:$0xf0]  ;;  %v7475_v30 = vld [vmem:[#allocation8 + $0x88] sm:$0xf] }
  0x8c   : > { %1028 = vmatpush.bf16.msrb.mxu1 %v7584_v32  ;;  %992 = vmatpush.bf16.msra.mxu2 %v7404_v50  ;;  %v7624_v29 = vor.u32 %v10804_v27, %v7621_v28  ;;  %v7603_v32 = vld [vmem:[#allocation8 + $0x188] sm:$0xf]  ;;  %v7476_v33 = vor.u32 %v10770_v31, %v7475_v30  ;;  %v10802_v34 = vld [vmem:[#allocation8 + $0x194] sm:$0xf0]  ;;  %v10768_v35 = vld [vmem:[#allocation8 + $0x8c] sm:$0xf] }
  0x8d   : > { %1005 = vmatpush.bf16.msra.mxu3 %v7532_v53  ;;  %v7477_v36 = vld [vmem:[#allocation8 + $0x98] sm:$0xf0]  ;;  %v7604_v37 = vor.u32 %v10802_v34, %v7603_v32  ;;  %v10800_v39 = vld [vmem:[#allocation8 + $0x18c] sm:$0xf]  ;;  %v7459_v42 = vld [vmem:[#allocation8 + $0x68] sm:$0xf] }
  0x8e   : > { %v7480_v38 = vor.u32 %v10768_v35, %v7477_v36  ;;  %v7605_v40 = vld [vmem:[#allocation8 + $0x198] sm:$0xf0]  ;;  %v10766_v43 = vld [vmem:[#allocation8 + $0x74] sm:$0xf0]  ;;  %v10796_v51 = vld [vmem:[#allocation8 + $0x16c] sm:$0xf] }
  0x8f   : > { %1016 = vmatpush.bf16.msrb.mxu0 %v7440_v44  ;;  %v7608_v41 = vor.u32 %v10800_v39, %v7605_v40  ;;  %v7587_v44 = vld [vmem:[#allocation8 + $0x168] sm:$0xf]  ;;  %v7460_v45 = vor.u32 %v10766_v43, %v7459_v42  ;;  %v10798_v46 = vld [vmem:[#allocation8 + $0x174] sm:$0xf0]  ;;  %v7461_v48 = vld [vmem:[#allocation8 + $0x78] sm:$0xf0] }
  0x90   : > { %1029 = vmatpush.bf16.msrb.mxu1 %v7568_v47  ;;  %1037 = vmatpush.bf16.msrb.mxu2 %v7524_v54  ;;  %v10764_v47 = vld [vmem:[#allocation8 + $0x6c] sm:$0xf]  ;;  %v7588_v49 = vor.u32 %v10798_v46, %v7587_v44  ;;  %v7589_v52 = vld [vmem:[#allocation8 + $0x178] sm:$0xf0]  ;;  %v7443_v54 = vld [vmem:[#allocation8 + $0x48] sm:$0xf] }
  0x91   : > { %1050 = vmatpush.bf16.msrb.mxu3 %v7652_v55  ;;  %v7464_v50 = vor.u32 %v10764_v47, %v7461_v48  ;;  %v7592_v53 = vor.u32 %v10796_v51, %v7589_v52  ;;  %v10762_v55 = vld [vmem:[#allocation8 + $0x54] sm:$0xf0]  ;;  %v7571_v56 = vld [vmem:[#allocation8 + $0x148] sm:$0xf]  ;;  %v10760_v59 = vld [vmem:[#allocation8 + $0x4c] sm:$0xf] }
  0x92   : > { %v7444_v57 = vor.u32 %v10762_v55, %v7443_v54  ;;  %v7445_v60 = vld [vmem:[#allocation8 + $0x58] sm:$0xf0]  ;;  %v10792_v63 = vld [vmem:[#allocation8 + $0x14c] sm:$0xf]  ;;  %v7427_v1 = vld [vmem:[#allocation8 + $0x28] sm:$0xf] }
  0x93   : > { %1017 = vmatpush.bf16.msrb.mxu0 %v7424_v58  ;;  %v10794_v58 = vld [vmem:[#allocation8 + $0x154] sm:$0xf0]  ;;  %v7448_v62 = vor.u32 %v10760_v59, %v7445_v60  ;;  %v7573_v0 = vld [vmem:[#allocation8 + $0x158] sm:$0xf0]  ;;  %v7411_v13 = vld [vmem:[#allocation8 + $0x8] sm:$0xf] }
  0x94   : > { %1030 = vmatpush.bf16.msrb.mxu1 %v7552_v61  ;;  %1038 = vmatpush.bf16.msrb.mxu2 %v7508_v4  ;;  %v7572_v61 = vor.u32 %v10794_v58, %v7571_v56  ;;  %v7576_v2 = vor.u32 %v10792_v63, %v7573_v0  ;;  %v10758_v3 = vld [vmem:[#allocation8 + $0x34] sm:$0xf0]  ;;  %v7555_v4 = vld [vmem:[#allocation8 + $0x128] sm:$0xf]  ;;  %v7557_v12 = vld [vmem:[#allocation8 + $0x138] sm:$0xf0] }
  0x95   : > { %1051 = vmatpush.bf16.msrb.mxu3 %v7636_v7  ;;  %v10790_v5 = vld [vmem:[#allocation8 + $0x134] sm:$0xf0]  ;;  %v7428_v6 = vor.u32 %v10758_v3, %v7427_v1  ;;  %v10756_v7 = vld [vmem:[#allocation8 + $0x2c] sm:$0xf]  ;;  %v7413_v19 = vld [vmem:[#allocation8 + $0x18] sm:$0xf0] }
  0x96   : > { %v10754_v14 = vld [vmem:[#allocation8 + $0x14] sm:$0xf0]  ;;  %v10752_v18 = vld [vmem:[#allocation8 + $0xc] sm:$0xf]  ;;  %v8139_v32 = vld [vmem:[#allocation11 + $0x3c0] sm:$0xf] }
  0x97   : > { %1018 = vmatpush.bf16.msrb.mxu0 %v7408_v8  ;;  %v7429_v8 = vld [vmem:[#allocation8 + $0x38] sm:$0xf0]  ;;  %v10784_v20 = vld [vmem:[#allocation8 + $0x10c] sm:$0xf]  ;;  %v7412_v22 = vor.u32 %v10754_v14, %v7411_v13  ;;  %v7416_v24 = vor.u32 %v10752_v18, %v7413_v19  ;;  %v7883_v34 = vld [vmem:[#allocation11 + $0x1c0] sm:$0xf] }
  0x98   : > { %1031 = vmatpush.bf16.msrb.mxu1 %v7536_v9  ;;  %1039 = vmatpush.bf16.msrb.mxu2 %v7492_v21  ;;  %v10788_v9 = vld [vmem:[#allocation8 + $0x12c] sm:$0xf]  ;;  %v7541_v21 = vld [vmem:[#allocation8 + $0x118] sm:$0xf0]  ;;  %v10875_v36 = vld [vmem:[#allocation11 + $0x1dc] sm:$0xf0] }
  0x99   : > { %1052 = vmatpush.bf16.msrb.mxu3 %v7620_v25  ;;  %v7560_v15 = vor.u32 %v10788_v9, %v7557_v12  ;;  %v7544_v25 = vor.u32 %v10784_v20, %v7541_v21  ;;  %v8395_v40 = vld [vmem:[#allocation11 + $0x5c0] sm:$0xf]  ;;  %v7884_v47 = vor.u32 %v10875_v36, %v7883_v34  ;;  %s12798_s21 = scalar_lea.vmem [#allocation16], %s7365_s29  ;;  %s7366_s28 = sshll.u32 %s12348_s18, 6 }
  0x9a   : > { %v10931_v46 = vld [vmem:[#allocation11 + $0x39c] sm:$0xf0]  ;;  %s13226_s24 = scalar_lea.vmem [#allocation17], %s7366_s28  ;;  %s11583_s27 = sshll.u32 %s12191_s16, 6 }
  0x9b   : > { %1063 = vmatpush.bf16.msra.mxu0 %v7528_v10  ;;  %v7556_v10 = vor.u32 %v10790_v5, %v7555_v4  ;;  %v8619_v52 = vld [vmem:[#allocation11 + $0x780] sm:$0xf]  ;;  %s7177_s5 = scalar_lea.hbm %s13794_s9, %s11583_s27  ;;  %s7179_s14 = sshll.u32 %s13226_s24, 4  ;;  %s7180_s14 = int_to_ptr.vmem [resolvable:$true] %s7179_s14 }
  0x9c   : > { %1076 = vmatpush.bf16.msra.mxu1 %v7656_v11  ;;  %1040 = vmatpush.bf16.msrb.mxu2 %v7476_v33  ;;  %v7432_v11 = vor.u32 %v10756_v7, %v7429_v8  ;;  %v10939_v33 = vld [vmem:[#allocation11 + $0x3dc] sm:$0xf0]  ;;  %s7181_s1 = sshll.u32 %s7177_s5, 4  ;;  %s7166_s16 = scalar_lea.sflag [#allocation4], %s12348_s18  ;;  %s7182_s1 = int_to_ptr.hbm [resolvable:$true] %s7181_s1 }
  0x9d   : > { %1053 = vmatpush.bf16.msrb.mxu3 %v7604_v37  ;;  %v8651_v37 = vld [vmem:[#allocation11 + $0x7c0] sm:$0xf]  ;;  %v8140_v44 = vor.u32 %v10939_v33, %v8139_v32  ;;  %s12033_s23 = sshra.s32 %s7182_s1, 4  ;;  %s12039_s26 = scalar_lea.hbm %s13794_s9, 256  ;;  %s12034_s23 = int_to_ptr.hbm [resolvable:$true] %s12033_s23 }
  0x9e   : > { %v11059_v54 = vld [vmem:[#allocation11 + $0x79c] sm:$0xf0]  ;;  %s12035_s30 = scalar_lea.hbm %s12034_s23, 64  ;;  %p12040_p0 = scmp.lt.s32.totalorder %s12034_s23, %s13794_s9 }
  0x9f   : > { %1064 = vmatpush.bf16.msra.mxu0 %v7512_v16  ;;  %v7539_v16 = vld [vmem:[#allocation8 + $0x108] sm:$0xf]  ;;  %v8363_v55 = vld [vmem:[#allocation11 + $0x580] sm:$0xf]  ;;  %v8620_v1 = vor.u32 %v11059_v54, %v8619_v52  ;;  %p12036_p12 = scmp.ne.s32.totalorder %s12034_s23, %s12035_s30  ;;  %p12041_p8 = scmp.lt.s32.totalorder %s12039_s26, %s12035_s30 }
  0xa0   : > { %1077 = vmatpush.bf16.msra.mxu1 %v7640_v17  ;;  %1041 = vmatpush.bf16.msrb.mxu2 %v7460_v45  ;;  %v10786_v17 = vld [vmem:[#allocation8 + $0x114] sm:$0xf0]  ;;  %v8107_v45 = vld [vmem:[#allocation11 + $0x380] sm:$0xf] }
  0xa1   : > { %1054 = vmatpush.bf16.msrb.mxu3 %v7588_v49  ;;  %v7540_v23 = vor.u32 %v10786_v17, %v7539_v16  ;;  %v7851_v49 = vld [vmem:[#allocation11 + $0x180] sm:$0xf]  ;;  %v8108_v59 = vor.u32 %v10931_v46, %v8107_v45  ;;  %p12037_p10 = pnand %p12036_p12, %p12249_p13  ;;  %p12042_p2 = por %p12041_p8, %p12040_p0 }
  0xa2   : > { %v10995_v56 = vld [vmem:[#allocation11 + $0x59c] sm:$0xf0] }
  0xa3   : > { %1065 = vmatpush.bf16.msra.mxu0 %v7496_v26  ;;  %v511_v26 = vld [vmem:[#allocation7] sm:$0x3]  ;;  %v8075_v60 = vld [vmem:[#allocation11 + $0x340] sm:$0xf]  ;;  %v8364_v3 = vor.u32 %v10995_v56, %v8363_v55  ;;  %p12038_p11 = pneg %p12037_p10 }
  0xa4   : > { %1078 = vmatpush.bf16.msra.mxu1 %v7624_v29  ;;  %1042 = vmatpush.bf16.msrb.mxu2 %v7444_v57  ;;  %v513_v27 = vperm.slane %v511_v26, 0  ;;  %v514_v28 = vperm.slane %v511_v26, 1  ;;  %v7819_v63 = vld [vmem:[#allocation11 + $0x140] sm:$0xf] }
  0xa5   : > { %1055 = vmatpush.bf16.msrb.mxu3 %v7572_v61  ;;  %v10923_v61 = vld [vmem:[#allocation11 + $0x35c] sm:$0xf0]  ;;  %p12043_p1 = pnand %p12042_p2, %p12038_p11 }
  0xa6   : > { %v10859_v0 = vld [vmem:[#allocation11 + $0x15c] sm:$0xf0]  ;;  %v8076_v7 = vor.u32 %v10923_v61, %v8075_v60 }
  0xa7   : > { %1066 = vmatpush.bf16.msra.mxu0 %v7480_v38  ;;  %v11067_v38 = vld [vmem:[#allocation11 + $0x7dc] sm:$0xf0] }
  0xa8   : > { %1079 = vmatpush.bf16.msra.mxu1 %v7608_v41  ;;  %1043 = vmatpush.bf16.msrb.mxu2 %v7428_v6  ;;  %v11003_v41 = vld [vmem:[#allocation11 + $0x5dc] sm:$0xf0]  ;;  %v8652_v51 = vor.u32 %v11067_v38, %v8651_v37 }
  0xa9   : > { %1056 = vmatpush.bf16.msrb.mxu3 %v7556_v10  ;;  %v11051_v4 = vld [vmem:[#allocation11 + $0x75c] sm:$0xf0]  ;;  %v7820_v10 = vor.u32 %v10859_v0, %v7819_v63  ;;  %v8141_v0 = vld [vmem:[#allocation11 + $0x3e0] sm:$0xf0] }
  0xaa   : > { %v8331_v5 = vld [vmem:[#allocation11 + $0x540] sm:$0xf] }
  0xab   : > { %1067 = vmatpush.bf16.msra.mxu0 %v7464_v50  ;;  %v10867_v50 = vld [vmem:[#allocation11 + $0x19c] sm:$0xf0] }
  0xac   : > { %1080 = vmatpush.bf16.msra.mxu1 %v7592_v53  ;;  %1044 = vmatpush.bf16.msrb.mxu2 %v7412_v22  ;;  %v8396_v53 = vor.u32 %v11003_v41, %v8395_v40  ;;  %v10987_v6 = vld [vmem:[#allocation11 + $0x55c] sm:$0xf0] }
  0xad   : > { %1057 = vmatpush.bf16.msrb.mxu3 %v7540_v23  ;;  %v8043_v8 = vld [vmem:[#allocation11 + $0x300] sm:$0xf] }
  0xae   : > { %v10915_v9 = vld [vmem:[#allocation11 + $0x31c] sm:$0xf0] }
  0xaf   : > { %1068 = vmatpush.bf16.msra.mxu0 %v7448_v62  ;;  %v7852_v62 = vor.u32 %v10867_v50, %v7851_v49  ;;  %v10851_v12 = vld [vmem:[#allocation11 + $0x11c] sm:$0xf0]  ;;  %v8044_v19 = vor.u32 %v10915_v9, %v8043_v8  ;;  %v8653_v8 = vld [vmem:[#allocation11 + $0x7e0] sm:$0xf0] }
  0xb0   : > { %1081 = vmatpush.bf16.msra.mxu1 %v7576_v2  ;;  %v8587_v2 = vld [vmem:[#allocation11 + $0x740] sm:$0xf] }
  0xb1   : > { %v8588_v13 = vor.u32 %v11051_v4, %v8587_v2  ;;  %v8555_v14 = vld [vmem:[#allocation11 + $0x700] sm:$0xf]  ;;  %v7885_v2 = vld [vmem:[#allocation11 + $0x1e0] sm:$0xf0] }
  0xb2   : > { %v11043_v16 = vld [vmem:[#allocation11 + $0x71c] sm:$0xf0] }
  0xb3   : > { %1069 = vmatpush.bf16.msra.mxu0 %v7432_v11  ;;  %v7787_v11 = vld [vmem:[#allocation11 + $0x100] sm:$0xf] }
  0xb4   : > { %1082 = vmatpush.bf16.msra.mxu1 %v7560_v15  ;;  %v8332_v15 = vor.u32 %v10987_v6, %v8331_v5  ;;  %v8299_v17 = vld [vmem:[#allocation11 + $0x500] sm:$0xf]  ;;  %v7788_v22 = vor.u32 %v10851_v12, %v7787_v11  ;;  %v8109_v12 = vld [vmem:[#allocation11 + $0x3a0] sm:$0xf0] }
  0xb5   : > { %v10979_v18 = vld [vmem:[#allocation11 + $0x51c] sm:$0xf0] }
  0xb6   : > { %v8011_v20 = vld [vmem:[#allocation11 + $0x2c0] sm:$0xf] }
  0xb7   : > { %1070 = vmatpush.bf16.msra.mxu0 %v7416_v24  ;;  %v10907_v21 = vld [vmem:[#allocation11 + $0x2dc] sm:$0xf0] }
  0xb8   : > { %1083 = vmatpush.bf16.msra.mxu1 %v7544_v25  ;;  %v7755_v23 = vld [vmem:[#allocation11 + $0xc0] sm:$0xf]  ;;  %v8556_v25 = vor.u32 %v11043_v16, %v8555_v14  ;;  %v7853_v14 = vld [vmem:[#allocation11 + $0x1a0] sm:$0xf0] }
  0xb9   : > { %v10843_v24 = vld [vmem:[#allocation11 + $0xdc] sm:$0xf0] }
  0xba   : > { %v8523_v26 = vld [vmem:[#allocation11 + $0x6c0] sm:$0xf]  ;;  %v7756_v34 = vor.u32 %v10843_v24, %v7755_v23  ;;  %v10911_v24 = vld [vmem:[#allocation11 + $0x304] sm:$0xf] }
  0xbb   : > { %v7979_v32 = vld [vmem:[#allocation11 + $0x280] sm:$0xf] }
  0xbc   : > { %v10899_v33 = vld [vmem:[#allocation11 + $0x29c] sm:$0xf0] }
  0xbd   : > { %v10835_v36 = vld [vmem:[#allocation11 + $0x9c] sm:$0xf0] }
  0xbe   : > { %v8491_v38 = vld [vmem:[#allocation11 + $0x680] sm:$0xf] }
  0xbf   : > { %v11027_v40 = vld [vmem:[#allocation11 + $0x69c] sm:$0xf0] }
  0xc0   : > { %v8235_v41 = vld [vmem:[#allocation11 + $0x480] sm:$0xf] }
  0xc1   : > { %v7947_v45 = vld [vmem:[#allocation11 + $0x240] sm:$0xf] }
  0xc2   : > { %v10891_v46 = vld [vmem:[#allocation11 + $0x25c] sm:$0xf0] }
  0xc3   : > { %v7691_v49 = vld [vmem:[#allocation11 + $0x40] sm:$0xf]  ;;  %v7948_v56 = vor.u32 %v10891_v46, %v7947_v45  ;;  %v7757_v45 = vld [vmem:[#allocation11 + $0xe0] sm:$0xf0] }
  0xc4   : > { %v10827_v50 = vld [vmem:[#allocation11 + $0x5c] sm:$0xf0]  ;;  %v10999_v46 = vld [vmem:[#allocation11 + $0x5c4] sm:$0xf] }
  0xc5   : > { %v8459_v52 = vld [vmem:[#allocation11 + $0x640] sm:$0xf] }
  0xc6   : > { %v8203_v54 = vld [vmem:[#allocation11 + $0x440] sm:$0xf] }
  0xc7   : > { %v10955_v55 = vld [vmem:[#allocation11 + $0x45c] sm:$0xf0] }
  0xc8   : > { %v7659_v60 = vld [vmem:[#allocation11] sm:$0xf]  ;;  %v8204_v63 = vor.u32 %v10955_v55, %v8203_v54  ;;  %v8589_v54 = vld [vmem:[#allocation11 + $0x760] sm:$0xf0] }
  0xc9   : > { %v10819_v61 = vld [vmem:[#allocation11 + $0x1c] sm:$0xf0] }
  0xca   : > { %v11011_v4 = vld [vmem:[#allocation11 + $0x61c] sm:$0xf0]  ;;  %v7660_v6 = vor.u32 %v10819_v61, %v7659_v60  ;;  %v10879_v61 = vld [vmem:[#allocation11 + $0x204] sm:$0xf] }
  0xf7   : > { %v570_v29 = vpop.f32.mrf.mxu0 }
  0xf8   : > { %v571_v30 = vadd.f32 %v570_v29, %v513_v27  ;;  %v583_v31 = vpop.f32.mrf.mxu1  ;;  %v8300_v27 = vor.u32 %v10979_v18, %v8299_v17  ;;  %v8267_v29 = vld [vmem:[#allocation11 + $0x4c0] sm:$0xf]  ;;  %v10919_v18 = vld [vmem:[#allocation11 + $0x344] sm:$0xf] }
  0xf9   : > { %v584_v35 = vadd.f32 %v583_v31, %v514_v28  ;;  %v11035_v28 = vld [vmem:[#allocation11 + $0x6dc] sm:$0xf0]  ;;  %v8012_v31 = vor.u32 %v10907_v21, %v8011_v20  ;;  %v8077_v20 = vld [vmem:[#allocation11 + $0x360] sm:$0xf0] }
  0xfa   : > { %v587_v39 = vmax.f32 %v571_v30, 0.0  ;;  %v10971_v30 = vld [vmem:[#allocation11 + $0x4dc] sm:$0xf0]  ;;  %v8524_v37 = vor.u32 %v11035_v28, %v8523_v26  ;;  %v10855_v21 = vld [vmem:[#allocation11 + $0x144] sm:$0xf]  ;;  %v8080_v23 = vor.u32 %v10919_v18, %v8077_v20 }
  0xfb   : > { %v588_v42 = vmax.f32 %v584_v35, 0.0  ;;  %v7723_v35 = vld [vmem:[#allocation11 + $0x80] sm:$0xf]  ;;  %v8045_v26 = vld [vmem:[#allocation11 + $0x320] sm:$0xf0] }
  0xfc   : > { %v12359_v43 = vpack.c.bf16 %v587_v39, %v587_v39  ;;  %v8268_v39 = vor.u32 %v10971_v30, %v8267_v29  ;;  %v7789_v28 = vld [vmem:[#allocation11 + $0x120] sm:$0xf0]  ;;  %v8048_v29 = vor.u32 %v10911_v24, %v8045_v26 }
  0xfd   : > { %v12361_v48 = vpack.c.bf16 %v588_v42, %v588_v42  ;;  %v10963_v42 = vld [vmem:[#allocation11 + $0x49c] sm:$0xf0]  ;;  %v11023_v18 = vld [vmem:[#allocation11 + $0x684] sm:$0xf] }
  0xfe   : > { %993 = vmatmul.bf16.vlgmr.msra.gmra.mxu2 %v12359_v43  ;;  %1019 = vmatmul.bf16.vlgmr.msrb.gmra.mxu0 %v12359_v43  ;;  %v11015_v24 = vld [vmem:[#allocation11 + $0x644] sm:$0xf] }
  0xff   : > { %1006 = vmatmul.bf16.vlgmr.msra.gmra.mxu3 %v12361_v48  ;;  %1032 = vmatmul.bf16.vlgmr.msrb.gmra.mxu1 %v12361_v48  ;;  %v572_v57 = vpop.f32.mrf.mxu0 }
 0x100   : > { %v585_v58 = vpop.f32.mrf.mxu1  ;;  %2664 = vmatpush.bf16.msra.mxu3 %v8140_v44  ;;  %2651 = vmatpush.bf16.msra.mxu2 %v7884_v47  ;;  %v7980_v44 = vor.u32 %v10899_v33, %v7979_v32  ;;  %v7724_v47 = vor.u32 %v10835_v36, %v7723_v35  ;;  %v10883_v57 = vld [vmem:[#allocation11 + $0x21c] sm:$0xf0]  ;;  %v8013_v32 = vld [vmem:[#allocation11 + $0x2e0] sm:$0xf0] }
 0x101   : > { %2690 = vmatpush.bf16.msrb.mxu1 %v8652_v51  ;;  %2677 = vmatpush.bf16.msrb.mxu0 %v8396_v53  ;;  %v8492_v51 = vor.u32 %v11027_v40, %v8491_v38  ;;  %v11019_v53 = vld [vmem:[#allocation11 + $0x65c] sm:$0xf0]  ;;  %v7692_v58 = vor.u32 %v10827_v50, %v7691_v49  ;;  %v7981_v35 = vld [vmem:[#allocation11 + $0x2a0] sm:$0xf0] }
 0x102   : > { %v11055_v36 = vld [vmem:[#allocation11 + $0x784] sm:$0xf]  ;;  %v10947_v40 = vld [vmem:[#allocation11 + $0x41c] sm:$0xf0] }
 0x103   : > { %v8621_v38 = vld [vmem:[#allocation11 + $0x7a0] sm:$0xf0] }
 0x104   : > { %2665 = vmatpush.bf16.msra.mxu3 %v8108_v59  ;;  %2652 = vmatpush.bf16.msra.mxu2 %v7852_v62  ;;  %v10935_v59 = vld [vmem:[#allocation11 + $0x3c4] sm:$0xf]  ;;  %v8460_v62 = vor.u32 %v11019_v53, %v8459_v52 }
 0x105   : > { %2691 = vmatpush.bf16.msrb.mxu1 %v8620_v1  ;;  %2678 = vmatpush.bf16.msrb.mxu0 %v8364_v3  ;;  %v10871_v1 = vld [vmem:[#allocation11 + $0x1c4] sm:$0xf]  ;;  %v8427_v3 = vld [vmem:[#allocation11 + $0x600] sm:$0xf]  ;;  %v8144_v9 = vor.u32 %v10935_v59, %v8141_v0 }
 0x106   : > { %v7888_v11 = vor.u32 %v10871_v1, %v7885_v2  ;;  %v8397_v49 = vld [vmem:[#allocation11 + $0x5e0] sm:$0xf0] }
 0x107   : > { %v8400_v50 = vor.u32 %v10999_v46, %v8397_v49  ;;  %v7949_v52 = vld [vmem:[#allocation11 + $0x260] sm:$0xf0]  ;;  %v10940_v49 = vld [vmem:[#allocation11 + $0x3e4] sm:$0xf0] }
 0x108   : > { %2666 = vmatpush.bf16.msra.mxu3 %v8076_v7  ;;  %2653 = vmatpush.bf16.msra.mxu2 %v7820_v10  ;;  %v11063_v7 = vld [vmem:[#allocation11 + $0x7c4] sm:$0xf] }
 0x109   : > { %2692 = vmatpush.bf16.msrb.mxu1 %v8588_v13  ;;  %2679 = vmatpush.bf16.msrb.mxu0 %v8332_v15  ;;  %v10927_v10 = vld [vmem:[#allocation11 + $0x384] sm:$0xf]  ;;  %v8428_v15 = vor.u32 %v11011_v4, %v8427_v3  ;;  %v8656_v16 = vor.u32 %v11063_v7, %v8653_v8 }
 0x10a   : > { %v10863_v13 = vld [vmem:[#allocation11 + $0x184] sm:$0xf]  ;;  %v8112_v17 = vor.u32 %v10927_v10, %v8109_v12 }
 0x10b   : > { %v8365_v59 = vld [vmem:[#allocation11 + $0x5a0] sm:$0xf0] }
 0x10c   : > { %2667 = vmatpush.bf16.msra.mxu3 %v8044_v19  ;;  %2654 = vmatpush.bf16.msra.mxu2 %v7788_v22  ;;  %v7856_v19 = vor.u32 %v10863_v13, %v7853_v14  ;;  %v7821_v22 = vld [vmem:[#allocation11 + $0x160] sm:$0xf0] }
 0x10d   : > { %2693 = vmatpush.bf16.msrb.mxu1 %v8556_v25  ;;  %2680 = vmatpush.bf16.msrb.mxu0 %v8300_v27  ;;  %v7824_v25 = vor.u32 %v10855_v21, %v7821_v22  ;;  %v10847_v27 = vld [vmem:[#allocation11 + $0x104] sm:$0xf] }
 0x10e   : > { %1045 = vmatmul.bf16.vlgmr.msrb.gmra.mxu2 %v12359_v43  ;;  %1071 = vmatmul.bf16.vlgmr.msra.gmra.mxu0 %v12359_v43  ;;  %v8236_v43 = vor.u32 %v10963_v42, %v8235_v41  ;;  %v7792_v30 = vor.u32 %v10847_v27, %v7789_v28  ;;  %v8624_v41 = vor.u32 %v11055_v36, %v8621_v38  ;;  %v11039_v0 = vld [vmem:[#allocation11 + $0x704] sm:$0xf]  ;;  %v12371_v36 = vld [vmem:[#allocation10] sm:$0xf] }
 0x10f   : > { %1058 = vmatmul.bf16.vlgmr.msrb.gmra.mxu3 %v12361_v48  ;;  %1084 = vmatmul.bf16.vlgmr.msra.gmra.mxu1 %v12361_v48  ;;  %v7915_v48 = vld [vmem:[#allocation11 + $0x200] sm:$0xf]  ;;  %v8557_v1 = vld [vmem:[#allocation11 + $0x720] sm:$0xf0]  ;;  %v657_v46 = vperm.slane %v12371_v36, 0 }
 0x110   : > { %2668 = vmatpush.bf16.msra.mxu3 %v8012_v31  ;;  %2655 = vmatpush.bf16.msra.mxu2 %v7756_v34  ;;  %v7916_v5 = vor.u32 %v10883_v57, %v7915_v48  ;;  %v10903_v31 = vld [vmem:[#allocation11 + $0x2c4] sm:$0xf]  ;;  %v8560_v2 = vor.u32 %v11039_v0, %v8557_v1  ;;  %v10924_v0 = vld [vmem:[#allocation11 + $0x364] sm:$0xf0] }
 0x111   : > { %2694 = vmatpush.bf16.msrb.mxu1 %v8524_v37  ;;  %2681 = vmatpush.bf16.msrb.mxu0 %v8268_v39  ;;  %v8016_v33 = vor.u32 %v10903_v31, %v8013_v32  ;;  %v10895_v34 = vld [vmem:[#allocation11 + $0x284] sm:$0xf]  ;;  %v8171_v39 = vld [vmem:[#allocation11 + $0x400] sm:$0xf] }
 0x112   : > { %v7984_v37 = vor.u32 %v10895_v34, %v7981_v35  ;;  %v8172_v42 = vor.u32 %v10947_v40, %v8171_v39  ;;  %v7725_v48 = vld [vmem:[#allocation11 + $0xa0] sm:$0xf0]  ;;  %v658_v39 = vperm.slane %v12371_v36, 1 }
 0x113   : > { %v10991_v57 = vld [vmem:[#allocation11 + $0x584] sm:$0xf] }
 0x114   : > { %2669 = vmatpush.bf16.msra.mxu3 %v7980_v44  ;;  %2656 = vmatpush.bf16.msra.mxu2 %v7724_v47  ;;  %v10839_v44 = vld [vmem:[#allocation11 + $0xc4] sm:$0xf]  ;;  %v8368_v60 = vor.u32 %v10991_v57, %v8365_v59  ;;  %v7891_v59 = vld [vmem:[#allocation11 + $0x1c8] sm:$0xf] }
 0x115   : > { %2695 = vmatpush.bf16.msrb.mxu1 %v8492_v51  ;;  %2682 = vmatpush.bf16.msrb.mxu0 %v8236_v43  ;;  %v7760_v47 = vor.u32 %v10839_v44, %v7757_v45  ;;  %v10887_v51 = vld [vmem:[#allocation11 + $0x244] sm:$0xf] }
 0x116   : > { %v11047_v43 = vld [vmem:[#allocation11 + $0x744] sm:$0xf]  ;;  %v7952_v53 = vor.u32 %v10887_v51, %v7949_v52 }
 0x117   : > { %v8592_v55 = vor.u32 %v11047_v43, %v8589_v54  ;;  %v10823_v3 = vld [vmem:[#allocation11 + $0x44] sm:$0xf] }
 0x118   : > { %2670 = vmatpush.bf16.msra.mxu3 %v7948_v56  ;;  %2657 = vmatpush.bf16.msra.mxu2 %v7692_v58  ;;  %v10831_v56 = vld [vmem:[#allocation11 + $0x84] sm:$0xf] }
 0x119   : > { %2696 = vmatpush.bf16.msrb.mxu1 %v8460_v62  ;;  %2683 = vmatpush.bf16.msrb.mxu0 %v8204_v63  ;;  %v7728_v58 = vor.u32 %v10831_v56, %v7725_v48  ;;  %v7917_v62 = vld [vmem:[#allocation11 + $0x220] sm:$0xf0]  ;;  %v10932_v56 = vld [vmem:[#allocation11 + $0x3a4] sm:$0xf0] }
 0x11a   : > { %v7920_v63 = vor.u32 %v10879_v61, %v7917_v62  ;;  %v7693_v4 = vld [vmem:[#allocation11 + $0x60] sm:$0xf0] }
 0x11b   : > { %v8333_v7 = vld [vmem:[#allocation11 + $0x560] sm:$0xf0] }
 0x11c   : > { %2671 = vmatpush.bf16.msra.mxu3 %v7916_v5  ;;  %2658 = vmatpush.bf16.msra.mxu2 %v7660_v6  ;;  %v7696_v5 = vor.u32 %v10823_v3, %v7693_v4  ;;  %v10983_v6 = vld [vmem:[#allocation11 + $0x544] sm:$0xf]  ;;  %v660_v3 = vperm.slane %v12371_v36, 3  ;;  %v7859_v4 = vld [vmem:[#allocation11 + $0x188] sm:$0xf] }
 0x11d   : > { %2697 = vmatpush.bf16.msrb.mxu1 %v8428_v15  ;;  %2684 = vmatpush.bf16.msrb.mxu0 %v8172_v42  ;;  %v8336_v8 = vor.u32 %v10983_v6, %v8333_v7  ;;  %v8525_v10 = vld [vmem:[#allocation11 + $0x6e0] sm:$0xf0] }
 0x11e   : > { %v10815_v12 = vld [vmem:[#allocation11 + $0x4] sm:$0xf] }
 0x11f   : > { %v7661_v13 = vld [vmem:[#allocation11 + $0x20] sm:$0xf0] }
 0x120   : > { %2716 = vmatpush.bf16.msrb.mxu3 %v8144_v9  ;;  %2703 = vmatpush.bf16.msrb.mxu2 %v7888_v11  ;;  %v11031_v9 = vld [vmem:[#allocation11 + $0x6c4] sm:$0xf]  ;;  %v7664_v15 = vor.u32 %v10815_v12, %v7661_v13 }
 0x121   : > { %2742 = vmatpush.bf16.msra.mxu1 %v8656_v16  ;;  %2729 = vmatpush.bf16.msra.mxu0 %v8400_v50  ;;  %v8528_v11 = vor.u32 %v11031_v9, %v8525_v10  ;;  %v10975_v14 = vld [vmem:[#allocation11 + $0x504] sm:$0xf]  ;;  %v8051_v9 = vld [vmem:[#allocation11 + $0x308] sm:$0xf] }
 0x122   : > { %v8301_v16 = vld [vmem:[#allocation11 + $0x520] sm:$0xf0]  ;;  %v10916_v10 = vld [vmem:[#allocation11 + $0x324] sm:$0xf0] }
 0x123   : > { %v10967_v21 = vld [vmem:[#allocation11 + $0x4c4] sm:$0xf] }
 0x124   : > { %2717 = vmatpush.bf16.msrb.mxu3 %v8112_v17  ;;  %2704 = vmatpush.bf16.msrb.mxu2 %v7856_v19  ;;  %v8304_v17 = vor.u32 %v10975_v14, %v8301_v16  ;;  %v8493_v19 = vld [vmem:[#allocation11 + $0x6a0] sm:$0xf0]  ;;  %v10860_v16 = vld [vmem:[#allocation11 + $0x164] sm:$0xf0] }
 0x125   : > { %2743 = vmatpush.bf16.msra.mxu1 %v8624_v41  ;;  %2730 = vmatpush.bf16.msra.mxu0 %v8368_v60  ;;  %v8496_v20 = vor.u32 %v11023_v18, %v8493_v19  ;;  %v8269_v22 = vld [vmem:[#allocation11 + $0x4e0] sm:$0xf0]  ;;  %v10876_v60 = vld [vmem:[#allocation11 + $0x1e4] sm:$0xf0]  ;;  %v659_v18 = vperm.slane %v12371_v36, 2 }
 0x126   : > { %v10959_v27 = vld [vmem:[#allocation11 + $0x484] sm:$0xf]  ;;  %v7892_v1 = vor.u32 %v10876_v60, %v7891_v59  ;;  %v8019_v19 = vld [vmem:[#allocation11 + $0x2c8] sm:$0xf] }
 0x127   : > { %v8237_v28 = vld [vmem:[#allocation11 + $0x4a0] sm:$0xf0]  ;;  %v8627_v36 = vld [vmem:[#allocation11 + $0x788] sm:$0xf] }
 0x128   : > { %2718 = vmatpush.bf16.msrb.mxu3 %v8080_v23  ;;  %2705 = vmatpush.bf16.msrb.mxu2 %v7824_v25  ;;  %v8272_v23 = vor.u32 %v10967_v21, %v8269_v22  ;;  %v8461_v25 = vld [vmem:[#allocation11 + $0x660] sm:$0xf0]  ;;  %v10908_v21 = vld [vmem:[#allocation11 + $0x2e4] sm:$0xf0] }
 0x129   : > { %2744 = vmatpush.bf16.msra.mxu1 %v8592_v55  ;;  %2731 = vmatpush.bf16.msra.mxu0 %v8336_v8  ;;  %v8464_v26 = vor.u32 %v11015_v24, %v8461_v25  ;;  %v8429_v31 = vld [vmem:[#allocation11 + $0x620] sm:$0xf0]  ;;  %v8115_v55 = vld [vmem:[#allocation11 + $0x388] sm:$0xf] }
 0x12a   : > { %v8205_v34 = vld [vmem:[#allocation11 + $0x460] sm:$0xf0]  ;;  %v8116_v61 = vor.u32 %v10932_v56, %v8115_v55  ;;  %v8659_v22 = vld [vmem:[#allocation11 + $0x7c8] sm:$0xf] }
 0x12b   : > { %v8173_v38 = vld [vmem:[#allocation11 + $0x420] sm:$0xf0]  ;;  %v8371_v59 = vld [vmem:[#allocation11 + $0x588] sm:$0xf] }
 0x12c   : > { %2719 = vmatpush.bf16.msrb.mxu3 %v8048_v29  ;;  %2706 = vmatpush.bf16.msrb.mxu2 %v7792_v30  ;;  %v8240_v29 = vor.u32 %v10959_v27, %v8237_v28  ;;  %v11007_v30 = vld [vmem:[#allocation11 + $0x604] sm:$0xf]  ;;  %v10852_v27 = vld [vmem:[#allocation11 + $0x124] sm:$0xf0] }
 0x12d   : > { %2745 = vmatpush.bf16.msra.mxu1 %v8560_v2  ;;  %2732 = vmatpush.bf16.msra.mxu0 %v8304_v17  ;;  %v8432_v32 = vor.u32 %v11007_v30, %v8429_v31  ;;  %v8052_v17 = vor.u32 %v10916_v10, %v8051_v9  ;;  %v7987_v31 = vld [vmem:[#allocation11 + $0x288] sm:$0xf]  ;;  %v8149_v9 = vld [vmem:[#allocation11 + $0x3e8] sm:$0xf0] }
 0x12e   : > { %v10996_v60 = vld [vmem:[#allocation11 + $0x5a4] sm:$0xf0] }
 0x12f   : > { %v7699_v10 = vld [vmem:[#allocation11 + $0x48] sm:$0xf] }
 0x130   : > { %2720 = vmatpush.bf16.msrb.mxu3 %v8016_v33  ;;  %2707 = vmatpush.bf16.msrb.mxu2 %v7760_v47  ;;  %v10951_v33 = vld [vmem:[#allocation11 + $0x444] sm:$0xf]  ;;  %v8147_v47 = vld [vmem:[#allocation11 + $0x3c8] sm:$0xf] }
 0x131   : > { %2746 = vmatpush.bf16.msra.mxu1 %v8528_v11  ;;  %2733 = vmatpush.bf16.msra.mxu0 %v8272_v23  ;;  %v8208_v35 = vor.u32 %v10951_v33, %v8205_v34  ;;  %v8148_v52 = vor.u32 %v10940_v49, %v8147_v47  ;;  %v11068_v23 = vld [vmem:[#allocation11 + $0x7e4] sm:$0xf0] }
 0x132   : > { %v8660_v30 = vor.u32 %v11068_v23, %v8659_v22  ;;  %v8117_v22 = vld [vmem:[#allocation11 + $0x3a8] sm:$0xf0]  ;;  %v7667_v23 = vld [vmem:[#allocation11 + $0x8] sm:$0xf] }
 0x134   : > { %2721 = vmatpush.bf16.msrb.mxu3 %v7984_v37  ;;  %2708 = vmatpush.bf16.msrb.mxu2 %v7728_v58  ;;  %v10943_v37 = vld [vmem:[#allocation11 + $0x404] sm:$0xf] }
 0x135   : > { %2747 = vmatpush.bf16.msra.mxu1 %v8496_v20  ;;  %2734 = vmatpush.bf16.msra.mxu0 %v8240_v29  ;;  %v8176_v40 = vor.u32 %v10943_v37, %v8173_v38  ;;  %v8020_v29 = vor.u32 %v10908_v21, %v8019_v19  ;;  %v11060_v37 = vld [vmem:[#allocation11 + $0x7a4] sm:$0xf0]  ;;  %v10928_v21 = vld [vmem:[#allocation11 + $0x38c] sm:$0xf] }
 0x136   : > { %v8628_v49 = vor.u32 %v11060_v37, %v8627_v36  ;;  %v10920_v36 = vld [vmem:[#allocation11 + $0x34c] sm:$0xf] }
 0x137   : > { %v8085_v37 = vld [vmem:[#allocation11 + $0x368] sm:$0xf0] }
 0x138   : > { %2722 = vmatpush.bf16.msrb.mxu3 %v7952_v53  ;;  %2709 = vmatpush.bf16.msrb.mxu2 %v7696_v5  ;;  %v10868_v5 = vld [vmem:[#allocation11 + $0x1a4] sm:$0xf0] }
 0x139   : > { %2748 = vmatpush.bf16.msra.mxu1 %v8464_v26  ;;  %2735 = vmatpush.bf16.msra.mxu0 %v8208_v35  ;;  %v7860_v12 = vor.u32 %v10868_v5, %v7859_v4  ;;  %v7795_v26 = vld [vmem:[#allocation11 + $0x108] sm:$0xf] }
 0x13a   : > { %v10900_v35 = vld [vmem:[#allocation11 + $0x2a4] sm:$0xf0] }
 0x13b   : > { %v7988_v47 = vor.u32 %v10900_v35, %v7987_v31  ;;  %v8563_v4 = vld [vmem:[#allocation11 + $0x708] sm:$0xf] }
 0x13c   : > { %2723 = vmatpush.bf16.msrb.mxu3 %v7920_v63  ;;  %2710 = vmatpush.bf16.msrb.mxu2 %v7664_v15  ;;  %v8083_v63 = vld [vmem:[#allocation11 + $0x348] sm:$0xf] }
 0x13d   : > { %2749 = vmatpush.bf16.msra.mxu1 %v8432_v32  ;;  %2736 = vmatpush.bf16.msra.mxu0 %v8176_v40  ;;  %v8084_v7 = vor.u32 %v10924_v0, %v8083_v63  ;;  %v7827_v15 = vld [vmem:[#allocation11 + $0x148] sm:$0xf] }
 0x13e   : > { %v7828_v24 = vor.u32 %v10860_v16, %v7827_v15  ;;  %v7763_v40 = vld [vmem:[#allocation11 + $0xc8] sm:$0xf] }
 0x13f   : > { %v7923_v0 = vld [vmem:[#allocation11 + $0x208] sm:$0xf] }
 0x140   : > { %v11044_v5 = vld [vmem:[#allocation11 + $0x724] sm:$0xf0] }
 0x141   : > { %v8564_v15 = vor.u32 %v11044_v5, %v8563_v4  ;;  %v8499_v31 = vld [vmem:[#allocation11 + $0x688] sm:$0xf] }
 0x142   : > { %v8211_v4 = vld [vmem:[#allocation11 + $0x448] sm:$0xf] }
 0x143   : > { %v10956_v5 = vld [vmem:[#allocation11 + $0x464] sm:$0xf0] }
 0x17b   : > { %v1020_v41 = vpop.f32.mrf.mxu0 }
 0x17c   : > { %v1021_v42 = vadd.f32 %v1020_v41, %v658_v39  ;;  %v1033_v44 = vpop.f32.mrf.mxu1  ;;  %v7796_v39 = vor.u32 %v10852_v27, %v7795_v26  ;;  %v10980_v26 = vld [vmem:[#allocation11 + $0x524] sm:$0xf0] }
 0x17e   : > { %v1034_v45 = vadd.f32 %v1033_v44, %v1021_v42  ;;  %v10844_v44 = vld [vmem:[#allocation11 + $0xe4] sm:$0xf0] }
 0x17f   : > { %v7764_v55 = vor.u32 %v10844_v44, %v7763_v40  ;;  %v10972_v40 = vld [vmem:[#allocation11 + $0x4e4] sm:$0xf0]  ;;  %v7861_v44 = vld [vmem:[#allocation11 + $0x1a8] sm:$0xf0] }
 0x180   : > { %v1090_v50 = vmax.f32 %v1034_v45, 0.0  ;;  %v8403_v45 = vld [vmem:[#allocation11 + $0x5c8] sm:$0xf] }
 0x181   : > { %v994_v51 = vpop.f32.mrf.mxu2 }
 0x182   : > { %v12375_v43 = vpack.c.bf16 %v1090_v50, %v1090_v50  ;;  %v995_v53 = vadd.f32 %v994_v51, %v657_v46  ;;  %v1007_v54 = vpop.f32.mrf.mxu3  ;;  %v11004_v46 = vld [vmem:[#allocation11 + $0x5e4] sm:$0xf0] }
 0x183   : > { %v1022_v48 = vpop.f32.mrf.mxu0  ;;  %v7955_v50 = vld [vmem:[#allocation11 + $0x248] sm:$0xf]  ;;  %v8404_v56 = vor.u32 %v11004_v46, %v8403_v45  ;;  %v8088_v45 = vor.u32 %v10920_v36, %v8085_v37  ;;  %v8373_v36 = vld [vmem:[#allocation11 + $0x5a8] sm:$0xf0] }
 0x184   : > { %v1008_v57 = vadd.f32 %v1007_v54, %v995_v53  ;;  %v1035_v58 = vpop.f32.mrf.mxu1  ;;  %2672 = vmatmul.bf16.vlgmr.msra.gmra.mxu3 %v12375_v43  ;;  %v10892_v51 = vld [vmem:[#allocation11 + $0x264] sm:$0xf0] }
 0x185   : > { %2768 = vmatpush.bf16.msra.mxu3 %v8148_v52  ;;  %v8595_v53 = vld [vmem:[#allocation11 + $0x748] sm:$0xf] }
 0x186   : > { %v1089_v62 = vmax.f32 %v1008_v57, 0.0  ;;  %v11052_v54 = vld [vmem:[#allocation11 + $0x764] sm:$0xf0] }
 0x187   : > { %v7731_v48 = vld [vmem:[#allocation11 + $0x88] sm:$0xf]  ;;  %v8596_v63 = vor.u32 %v11052_v54, %v8595_v53 }
 0x188   : > { %v12378_v2 = vpack.c.bf16 %v1089_v62, %v1089_v62  ;;  %v10836_v58 = vld [vmem:[#allocation11 + $0xa4] sm:$0xf0]  ;;  %v7956_v62 = vor.u32 %v10892_v51, %v7955_v50  ;;  %v10912_v50 = vld [vmem:[#allocation11 + $0x30c] sm:$0xf] }
 0x189   : > { %2769 = vmatpush.bf16.msra.mxu3 %v8116_v61  ;;  %v996_v6 = vpop.f32.mrf.mxu2  ;;  %v8467_v46 = vld [vmem:[#allocation11 + $0x648] sm:$0xf]  ;;  %v8053_v51 = vld [vmem:[#allocation11 + $0x328] sm:$0xf0] }
 0x18a   : > { %v1009_v8 = vpop.f32.mrf.mxu3  ;;  %2659 = vmatmul.bf16.vlgmr.msra.gmra.mxu2 %v12378_v2  ;;  %v7732_v6 = vor.u32 %v10836_v58, %v7731_v48  ;;  %v8243_v53 = vld [vmem:[#allocation11 + $0x488] sm:$0xf]  ;;  %v7829_v48 = vld [vmem:[#allocation11 + $0x168] sm:$0xf0]  ;;  %v8056_v58 = vor.u32 %v10912_v50, %v8053_v51 }
 0x18b   : > { %2755 = vmatpush.bf16.msra.mxu2 %v7892_v1  ;;  %v1072_v11 = vpop.f32.mrf.mxu0  ;;  %v10936_v8 = vld [vmem:[#allocation11 + $0x3cc] sm:$0xf]  ;;  %v10964_v54 = vld [vmem:[#allocation11 + $0x4a4] sm:$0xf0] }
 0x18c   : > { %v1073_v13 = vadd.f32 %v1072_v11, %v660_v3  ;;  %v1085_v14 = vpop.f32.mrf.mxu1  ;;  %v10884_v3 = vld [vmem:[#allocation11 + $0x224] sm:$0xf0]  ;;  %v8152_v16 = vor.u32 %v10936_v8, %v8149_v9  ;;  %v7797_v8 = vld [vmem:[#allocation11 + $0x128] sm:$0xf0] }
 0x18d   : > { %2770 = vmatpush.bf16.msra.mxu3 %v8084_v7  ;;  %v8372_v7 = vor.u32 %v10996_v60, %v8371_v59  ;;  %v10828_v11 = vld [vmem:[#allocation11 + $0x64] sm:$0xf0]  ;;  %v7701_v50 = vld [vmem:[#allocation11 + $0x68] sm:$0xf0] }
 0x18e   : > { %v1086_v20 = vadd.f32 %v1085_v14, %v1073_v13  ;;  %v10988_v13 = vld [vmem:[#allocation11 + $0x564] sm:$0xf0]  ;;  %v7924_v14 = vor.u32 %v10884_v3, %v7923_v0  ;;  %v7700_v19 = vor.u32 %v10828_v11, %v7699_v10  ;;  %v11064_v0 = vld [vmem:[#allocation11 + $0x7cc] sm:$0xf] }
 0x18f   : > { %2756 = vmatpush.bf16.msra.mxu2 %v7860_v12  ;;  %v8339_v12 = vld [vmem:[#allocation11 + $0x548] sm:$0xf]  ;;  %v10896_v11 = vld [vmem:[#allocation11 + $0x28c] sm:$0xf] }
 0x190   : > { %v1092_v25 = vmax.f32 %v1086_v20, 0.0  ;;  %v8340_v20 = vor.u32 %v10988_v13, %v8339_v12  ;;  %v8435_v59 = vld [vmem:[#allocation11 + $0x608] sm:$0xf]  ;;  %v8212_v12 = vor.u32 %v10956_v5, %v8211_v4  ;;  %v7989_v13 = vld [vmem:[#allocation11 + $0x2a8] sm:$0xf0] }
 0x191   : > { %2771 = vmatpush.bf16.msra.mxu3 %v8052_v17  ;;  %v1046_v28 = vpop.f32.mrf.mxu2  ;;  %v8531_v17 = vld [vmem:[#allocation11 + $0x6c8] sm:$0xf]  ;;  %v10984_v51 = vld [vmem:[#allocation11 + $0x54c] sm:$0xf]  ;;  %v7899_v4 = vld [vmem:[#allocation11 + $0x1d0] sm:$0xf] }
 0x192   : > { %v12383_v32 = vpack.c.bf16 %v1092_v25, %v1092_v25  ;;  %v1047_v33 = vadd.f32 %v1046_v28, %v659_v18  ;;  %v1059_v34 = vpop.f32.mrf.mxu3  ;;  %v11036_v18 = vld [vmem:[#allocation11 + $0x6e4] sm:$0xf0]  ;;  %v10872_v28 = vld [vmem:[#allocation11 + $0x1cc] sm:$0xf]  ;;  %v10877_v5 = vld [vmem:[#allocation11 + $0x1ec] sm:$0xf0] }
 0x193   : > { %2757 = vmatpush.bf16.msra.mxu2 %v7828_v24  ;;  %v1074_v38 = vpop.f32.mrf.mxu0  ;;  %v10820_v24 = vld [vmem:[#allocation11 + $0x24] sm:$0xf0]  ;;  %v8532_v27 = vor.u32 %v11036_v18, %v8531_v17 }
 0x194   : > { %v1060_v41 = vadd.f32 %v1059_v34, %v1047_v33  ;;  %v1087_v42 = vpop.f32.mrf.mxu1  ;;  %2698 = vmatmul.bf16.vlgmr.msrb.gmra.mxu1 %v12383_v32  ;;  %2724 = vmatmul.bf16.vlgmr.msrb.gmra.mxu3 %v12375_v43  ;;  %v8307_v25 = vld [vmem:[#allocation11 + $0x508] sm:$0xf]  ;;  %v7668_v34 = vor.u32 %v10820_v24, %v7667_v23  ;;  %v7992_v23 = vor.u32 %v10896_v11, %v7989_v13  ;;  %v8091_v11 = vld [vmem:[#allocation11 + $0x350] sm:$0xf] }
 0x195   : > { %2772 = vmatpush.bf16.msra.mxu3 %v8020_v29  ;;  %2794 = vmatpush.bf16.msrb.mxu1 %v8660_v30  ;;  %v7893_v29 = vld [vmem:[#allocation11 + $0x1e8] sm:$0xf0]  ;;  %v8120_v30 = vor.u32 %v10928_v21, %v8117_v22  ;;  %v11028_v33 = vld [vmem:[#allocation11 + $0x6a4] sm:$0xf0]  ;;  %v8308_v35 = vor.u32 %v10980_v26, %v8307_v25  ;;  %v7900_v13 = vor.u32 %v10877_v5, %v7899_v4 }
 0x196   : > { %v1091_v52 = vmax.f32 %v1060_v41, 0.0  ;;  %v7896_v38 = vor.u32 %v10872_v28, %v7893_v29  ;;  %v8500_v41 = vor.u32 %v11028_v33, %v8499_v31  ;;  %v10864_v42 = vld [vmem:[#allocation11 + $0x18c] sm:$0xf]  ;;  %v11012_v60 = vld [vmem:[#allocation11 + $0x624] sm:$0xf0] }
 0x197   : > { %2758 = vmatpush.bf16.msra.mxu2 %v7796_v39  ;;  %v8275_v39 = vld [vmem:[#allocation11 + $0x4c8] sm:$0xf]  ;;  %v11000_v21 = vld [vmem:[#allocation11 + $0x5cc] sm:$0xf] }
 0x198   : > { %v12387_v57 = vpack.c.bf16 %v1091_v52, %v1091_v52  ;;  %v7864_v52 = vor.u32 %v10864_v42, %v7861_v44  ;;  %v8179_v17 = vld [vmem:[#allocation11 + $0x408] sm:$0xf]  ;;  %v8405_v22 = vld [vmem:[#allocation11 + $0x5e8] sm:$0xf0] }
 0x199   : > { %2773 = vmatpush.bf16.msra.mxu3 %v7988_v47  ;;  %2795 = vmatpush.bf16.msrb.mxu1 %v8628_v49  ;;  %v1048_v61 = vpop.f32.mrf.mxu2  ;;  %v11020_v47 = vld [vmem:[#allocation11 + $0x664] sm:$0xf0]  ;;  %v8276_v49 = vor.u32 %v10972_v40, %v8275_v39  ;;  %v10888_v25 = vld [vmem:[#allocation11 + $0x24c] sm:$0xf]  ;;  %v8408_v31 = vor.u32 %v11000_v21, %v8405_v22 }
 0x19a   : > { %v1061_v1 = vpop.f32.mrf.mxu3  ;;  %2685 = vmatmul.bf16.vlgmr.msrb.gmra.mxu0 %v12387_v57  ;;  %2711 = vmatmul.bf16.vlgmr.msrb.gmra.mxu2 %v12378_v2  ;;  %v10904_v61 = vld [vmem:[#allocation11 + $0x2cc] sm:$0xf]  ;;  %v10948_v18 = vld [vmem:[#allocation11 + $0x424] sm:$0xf0] }
 0x19b   : > { %2759 = vmatpush.bf16.msra.mxu2 %v7764_v55  ;;  %2781 = vmatpush.bf16.msrb.mxu0 %v8404_v56  ;;  %v8468_v55 = vor.u32 %v11020_v47, %v8467_v46  ;;  %v10856_v56 = vld [vmem:[#allocation11 + $0x14c] sm:$0xf]  ;;  %v8180_v26 = vor.u32 %v10948_v18, %v8179_v17  ;;  %v8155_v46 = vld [vmem:[#allocation11 + $0x3d0] sm:$0xf] }
 0x19c   : > { %v8661_v1 = vld [vmem:[#allocation11 + $0x7e8] sm:$0xf0]  ;;  %v7832_v3 = vor.u32 %v10856_v56, %v7829_v48  ;;  %v10941_v47 = vld [vmem:[#allocation11 + $0x3ec] sm:$0xf0] }
 0x19d   : > { %2774 = vmatpush.bf16.msra.mxu3 %v7956_v62  ;;  %2796 = vmatpush.bf16.msrb.mxu1 %v8596_v63  ;;  %v8244_v62 = vor.u32 %v10964_v54, %v8243_v53  ;;  %v8021_v63 = vld [vmem:[#allocation11 + $0x2e8] sm:$0xf0]  ;;  %v8664_v10 = vor.u32 %v11064_v0, %v8661_v1  ;;  %v7867_v17 = vld [vmem:[#allocation11 + $0x190] sm:$0xf] }
 0x19e   : > { %v8024_v9 = vor.u32 %v10904_v61, %v8021_v63  ;;  %v11048_v28 = vld [vmem:[#allocation11 + $0x74c] sm:$0xf]  ;;  %v10933_v61 = vld [vmem:[#allocation11 + $0x3ac] sm:$0xf0] }
 0x19f   : > { %2760 = vmatpush.bf16.msra.mxu2 %v7732_v6  ;;  %2782 = vmatpush.bf16.msrb.mxu0 %v8372_v7  ;;  %v8436_v6 = vor.u32 %v11012_v60, %v8435_v59  ;;  %v10848_v7 = vld [vmem:[#allocation11 + $0x10c] sm:$0xf]  ;;  %v8123_v60 = vld [vmem:[#allocation11 + $0x390] sm:$0xf] }
 0x1a0   : > { %v8597_v29 = vld [vmem:[#allocation11 + $0x768] sm:$0xf0]  ;;  %v10869_v18 = vld [vmem:[#allocation11 + $0x1ac] sm:$0xf0] }
 0x1a1   : > { %2775 = vmatpush.bf16.msra.mxu3 %v7924_v14  ;;  %2797 = vmatpush.bf16.msrb.mxu1 %v8564_v15  ;;  %v11056_v14 = vld [vmem:[#allocation11 + $0x78c] sm:$0xf] }
 0x1a2   : > { %v8629_v15 = vld [vmem:[#allocation11 + $0x7a8] sm:$0xf0] }
 0x1a3   : > { %2761 = vmatpush.bf16.msra.mxu2 %v7700_v19  ;;  %2783 = vmatpush.bf16.msrb.mxu0 %v8340_v20  ;;  %v10840_v19 = vld [vmem:[#allocation11 + $0xcc] sm:$0xf]  ;;  %v8632_v24 = vor.u32 %v11056_v14, %v8629_v15 }
 0x1a4   : > { %2750 = vmatmul.bf16.vlgmr.msra.gmra.mxu1 %v12383_v32  ;;  %2776 = vmatmul.bf16.vlgmr.msra.gmra.mxu3 %v12375_v43  ;;  %v7765_v20 = vld [vmem:[#allocation11 + $0xe8] sm:$0xf0] }
 0x1a5   : > { %2820 = vmatpush.bf16.msrb.mxu3 %v8152_v16  ;;  %2798 = vmatpush.bf16.msrb.mxu1 %v8532_v27  ;;  %v7800_v16 = vor.u32 %v10848_v7, %v7797_v8  ;;  %v7957_v27 = vld [vmem:[#allocation11 + $0x268] sm:$0xf0] }
 0x1a6   : > { %v10832_v33 = vld [vmem:[#allocation11 + $0x8c] sm:$0xf]  ;;  %v7960_v37 = vor.u32 %v10888_v25, %v7957_v27  ;;  %v7868_v25 = vor.u32 %v10869_v18, %v7867_v17  ;;  %v11045_v17 = vld [vmem:[#allocation11 + $0x72c] sm:$0xf0] }
 0x1a7   : > { %2762 = vmatpush.bf16.msra.mxu2 %v7668_v34  ;;  %2784 = vmatpush.bf16.msrb.mxu0 %v8308_v35  ;;  %v7733_v34 = vld [vmem:[#allocation11 + $0xa8] sm:$0xf0] }
 0x1a8   : > { %v10992_v35 = vld [vmem:[#allocation11 + $0x58c] sm:$0xf]  ;;  %v7736_v44 = vor.u32 %v10832_v33, %v7733_v34 }
 0x1a9   : > { %2821 = vmatpush.bf16.msrb.mxu3 %v8120_v30  ;;  %2799 = vmatpush.bf16.msrb.mxu1 %v8500_v41  ;;  %v7768_v30 = vor.u32 %v10840_v19, %v7765_v20  ;;  %v10880_v39 = vld [vmem:[#allocation11 + $0x20c] sm:$0xf] }
 0x1aa   : > { %2737 = vmatmul.bf16.vlgmr.msra.gmra.mxu0 %v12387_v57  ;;  %2763 = vmatmul.bf16.vlgmr.msra.gmra.mxu2 %v12378_v2  ;;  %v7925_v40 = vld [vmem:[#allocation11 + $0x228] sm:$0xf0] }
 0x1ab   : > { %2807 = vmatpush.bf16.msrb.mxu2 %v7896_v38  ;;  %2785 = vmatpush.bf16.msrb.mxu0 %v8276_v49  ;;  %v8600_v38 = vor.u32 %v11048_v28, %v8597_v29  ;;  %v11040_v41 = vld [vmem:[#allocation11 + $0x70c] sm:$0xf]  ;;  %v7928_v53 = vor.u32 %v10880_v39, %v7925_v40  ;;  %v7835_v29 = vld [vmem:[#allocation11 + $0x150] sm:$0xf] }
 0x1ac   : > { %v8565_v42 = vld [vmem:[#allocation11 + $0x728] sm:$0xf0]  ;;  %v11069_v39 = vld [vmem:[#allocation11 + $0x7ec] sm:$0xf0] }
 0x1ad   : > { %2822 = vmatpush.bf16.msrb.mxu3 %v8088_v45  ;;  %2800 = vmatpush.bf16.msrb.mxu1 %v8468_v55  ;;  %v8376_v45 = vor.u32 %v10992_v35, %v8373_v36  ;;  %v10824_v49 = vld [vmem:[#allocation11 + $0x4c] sm:$0xf]  ;;  %v8568_v54 = vor.u32 %v11040_v41, %v8565_v42  ;;  %v8156_v55 = vor.u32 %v10941_v47, %v8155_v46  ;;  %v8027_v35 = vld [vmem:[#allocation11 + $0x2d0] sm:$0xf] }
 0x1ae   : > { %v11032_v56 = vld [vmem:[#allocation11 + $0x6cc] sm:$0xf]  ;;  %v10853_v46 = vld [vmem:[#allocation11 + $0x12c] sm:$0xf0] }
 0x1af   : > { %2808 = vmatpush.bf16.msrb.mxu2 %v7864_v52  ;;  %2786 = vmatpush.bf16.msrb.mxu0 %v8244_v62  ;;  %v8341_v52 = vld [vmem:[#allocation11 + $0x568] sm:$0xf0] }
 0x1b0   : > { %v8533_v48 = vld [vmem:[#allocation11 + $0x6e8] sm:$0xf0]  ;;  %v8344_v59 = vor.u32 %v10984_v51, %v8341_v52  ;;  %v10901_v52 = vld [vmem:[#allocation11 + $0x2ac] sm:$0xf0] }
 0x1b1   : > { %2823 = vmatpush.bf16.msrb.mxu3 %v8056_v58  ;;  %2801 = vmatpush.bf16.msrb.mxu1 %v8436_v6  ;;  %v7704_v58 = vor.u32 %v10824_v49, %v7701_v50  ;;  %v10816_v62 = vld [vmem:[#allocation11 + $0xc] sm:$0xf]  ;;  %v8124_v6 = vor.u32 %v10933_v61, %v8123_v60  ;;  %v7995_v50 = vld [vmem:[#allocation11 + $0x290] sm:$0xf] }
 0x1b2   : > { %v7669_v63 = vld [vmem:[#allocation11 + $0x28] sm:$0xf0]  ;;  %v8411_v60 = vld [vmem:[#allocation11 + $0x5d0] sm:$0xf] }
 0x1b3   : > { %2809 = vmatpush.bf16.msrb.mxu2 %v7832_v3  ;;  %2787 = vmatpush.bf16.msrb.mxu0 %v8212_v12  ;;  %v10976_v0 = vld [vmem:[#allocation11 + $0x50c] sm:$0xf]  ;;  %v8536_v3 = vor.u32 %v11032_v56, %v8533_v48  ;;  %v10925_v12 = vld [vmem:[#allocation11 + $0x36c] sm:$0xf0] }
 0x1b4   : > { %2802 = vmatmul.bf16.vlgmr.msrb.gmra.mxu1 %v12383_v32  ;;  %v8309_v1 = vld [vmem:[#allocation11 + $0x528] sm:$0xf0]  ;;  %v8092_v19 = vor.u32 %v10925_v12, %v8091_v11  ;;  %v11005_v61 = vld [vmem:[#allocation11 + $0x5ec] sm:$0xf0] }
 0x1b5   : > { %2824 = vmatpush.bf16.msrb.mxu3 %v8024_v9  ;;  %2846 = vmatpush.bf16.msra.mxu1 %v8664_v10  ;;  %v11024_v7 = vld [vmem:[#allocation11 + $0x68c] sm:$0xf]  ;;  %v7672_v9 = vor.u32 %v10816_v62, %v7669_v63  ;;  %v8312_v10 = vor.u32 %v10976_v0, %v8309_v1  ;;  %v7996_v62 = vor.u32 %v10901_v52, %v7995_v50  ;;  %v7963_v1 = vld [vmem:[#allocation11 + $0x250] sm:$0xf]  ;;  %v10921_v50 = vld [vmem:[#allocation11 + $0x354] sm:$0xf] }
 0x1b6   : > { %v8501_v8 = vld [vmem:[#allocation11 + $0x6a8] sm:$0xf0]  ;;  %v8412_v5 = vor.u32 %v11005_v61, %v8411_v60  ;;  %v10997_v11 = vld [vmem:[#allocation11 + $0x5ac] sm:$0xf0]  ;;  %v8093_v52 = vld [vmem:[#allocation11 + $0x370] sm:$0xf0] }
 0x1b7   : > { %2810 = vmatpush.bf16.msrb.mxu2 %v7800_v16  ;;  %2788 = vmatpush.bf16.msrb.mxu0 %v8180_v26  ;;  %v10968_v14 = vld [vmem:[#allocation11 + $0x4cc] sm:$0xf]  ;;  %v8504_v16 = vor.u32 %v11024_v7, %v8501_v8  ;;  %v11053_v7 = vld [vmem:[#allocation11 + $0x76c] sm:$0xf0] }
 0x1b8   : > { %v8277_v15 = vld [vmem:[#allocation11 + $0x4e8] sm:$0xf0]  ;;  %v7739_v8 = vld [vmem:[#allocation11 + $0x90] sm:$0xf] }
 0x1b9   : > { %2825 = vmatpush.bf16.msrb.mxu3 %v7992_v23  ;;  %2847 = vmatpush.bf16.msra.mxu1 %v8632_v24  ;;  %v11016_v20 = vld [vmem:[#allocation11 + $0x64c] sm:$0xf]  ;;  %v8280_v22 = vor.u32 %v10968_v14, %v8277_v15  ;;  %v8059_v23 = vld [vmem:[#allocation11 + $0x310] sm:$0xf] }
 0x1ba   : > { %2789 = vmatmul.bf16.vlgmr.msrb.gmra.mxu0 %v12387_v57  ;;  %v8469_v21 = vld [vmem:[#allocation11 + $0x668] sm:$0xf0]  ;;  %v10917_v24 = vld [vmem:[#allocation11 + $0x32c] sm:$0xf0] }
 0x1bb   : > { %2811 = vmatpush.bf16.msrb.mxu2 %v7768_v30  ;;  %2833 = vmatpush.bf16.msra.mxu0 %v8408_v31  ;;  %v10960_v26 = vld [vmem:[#allocation11 + $0x48c] sm:$0xf]  ;;  %v8472_v28 = vor.u32 %v11016_v20, %v8469_v21  ;;  %v10861_v30 = vld [vmem:[#allocation11 + $0x16c] sm:$0xf0]  ;;  %v8060_v31 = vor.u32 %v10917_v24, %v8059_v23  ;;  %v10937_v20 = vld [vmem:[#allocation11 + $0x3d4] sm:$0xf] }
 0x1bc   : > { %v8245_v27 = vld [vmem:[#allocation11 + $0x4a8] sm:$0xf0]  ;;  %v7836_v40 = vor.u32 %v10861_v30, %v7835_v29  ;;  %v10885_v15 = vld [vmem:[#allocation11 + $0x22c] sm:$0xf0]  ;;  %v8157_v21 = vld [vmem:[#allocation11 + $0x3f0] sm:$0xf0] }
 0x1bd   : > { %2826 = vmatpush.bf16.msrb.mxu3 %v7960_v37  ;;  %2848 = vmatpush.bf16.msra.mxu1 %v8600_v38  ;;  %v11008_v33 = vld [vmem:[#allocation11 + $0x60c] sm:$0xf]  ;;  %v8248_v36 = vor.u32 %v10960_v26, %v8245_v27  ;;  %v10909_v37 = vld [vmem:[#allocation11 + $0x2ec] sm:$0xf0] }
 0x1be   : > { %v8437_v34 = vld [vmem:[#allocation11 + $0x628] sm:$0xf0]  ;;  %v8667_v38 = vld [vmem:[#allocation11 + $0x7d0] sm:$0xf]  ;;  %v8028_v47 = vor.u32 %v10909_v37, %v8027_v35  ;;  %v8125_v35 = vld [vmem:[#allocation11 + $0x3b0] sm:$0xf0] }
 0x1bf   : > { %2812 = vmatpush.bf16.msrb.mxu2 %v7736_v44  ;;  %2834 = vmatpush.bf16.msra.mxu0 %v8376_v45  ;;  %v10952_v41 = vld [vmem:[#allocation11 + $0x44c] sm:$0xf]  ;;  %v8440_v44 = vor.u32 %v11008_v33, %v8437_v34  ;;  %v7803_v45 = vld [vmem:[#allocation11 + $0x110] sm:$0xf]  ;;  %v8668_v49 = vor.u32 %v11069_v39, %v8667_v38  ;;  %v10929_v34 = vld [vmem:[#allocation11 + $0x394] sm:$0xf] }
 0x1c0   : > { %v8213_v42 = vld [vmem:[#allocation11 + $0x468] sm:$0xf0]  ;;  %v10829_v23 = vld [vmem:[#allocation11 + $0x6c] sm:$0xf0] }
 0x1c1   : > { %2827 = vmatpush.bf16.msrb.mxu3 %v7928_v53  ;;  %2849 = vmatpush.bf16.msra.mxu1 %v8568_v54  ;;  %v8216_v51 = vor.u32 %v10952_v41, %v8213_v42  ;;  %v8635_v53 = vld [vmem:[#allocation11 + $0x790] sm:$0xf]  ;;  %v10944_v56 = vld [vmem:[#allocation11 + $0x40c] sm:$0xf]  ;;  %v7901_v41 = vld [vmem:[#allocation11 + $0x1f0] sm:$0xf0] }
 0x1c2   : > { %v11061_v54 = vld [vmem:[#allocation11 + $0x7ac] sm:$0xf0]  ;;  %v8181_v48 = vld [vmem:[#allocation11 + $0x428] sm:$0xf0] }
 0x1c3   : > { %2813 = vmatpush.bf16.msrb.mxu2 %v7704_v58  ;;  %2835 = vmatpush.bf16.msra.mxu0 %v8344_v59  ;;  %v7771_v58 = vld [vmem:[#allocation11 + $0xd0] sm:$0xf]  ;;  %v8636_v63 = vor.u32 %v11061_v54, %v8635_v53  ;;  %v8184_v0 = vor.u32 %v10944_v56, %v8181_v48  ;;  %v7869_v56 = vld [vmem:[#allocation11 + $0x1b0] sm:$0xf0] }
 0x1c4   : > { %2828 = vmatmul.bf16.vlgmr.msrb.gmra.mxu3 %v12375_v43  ;;  %v10845_v59 = vld [vmem:[#allocation11 + $0xec] sm:$0xf0] }
 0x1c5   : > { %2872 = vmatpush.bf16.msra.mxu3 %v8156_v55  ;;  %2850 = vmatpush.bf16.msra.mxu1 %v8536_v3  ;;  %v7804_v55 = vor.u32 %v10853_v46, %v7803_v45  ;;  %v10893_v3 = vld [vmem:[#allocation11 + $0x26c] sm:$0xf0]  ;;  %v7772_v4 = vor.u32 %v10845_v59, %v7771_v58  ;;  %v8096_v58 = vor.u32 %v10921_v50, %v8093_v52  ;;  %v8381_v50 = vld [vmem:[#allocation11 + $0x5b0] sm:$0xf0] }
 0x1c6   : > { %v7964_v12 = vor.u32 %v10893_v3, %v7963_v1  ;;  %v8347_v24 = vld [vmem:[#allocation11 + $0x550] sm:$0xf]  ;;  %v10881_v52 = vld [vmem:[#allocation11 + $0x214] sm:$0xf] }
 0x1c7   : > { %2814 = vmatpush.bf16.msrb.mxu2 %v7672_v9  ;;  %2836 = vmatpush.bf16.msra.mxu0 %v8312_v10  ;;  %v10837_v9 = vld [vmem:[#allocation11 + $0xac] sm:$0xf0] }
 0x1c8   : > { %v8379_v10 = vld [vmem:[#allocation11 + $0x590] sm:$0xf]  ;;  %v7740_v18 = vor.u32 %v10837_v9, %v7739_v8 }
 0x1c9   : > { %2873 = vmatpush.bf16.msra.mxu3 %v8124_v6  ;;  %2851 = vmatpush.bf16.msra.mxu1 %v8504_v16  ;;  %v8603_v6 = vld [vmem:[#allocation11 + $0x750] sm:$0xf] }
 0x1ca   : > { %2815 = vmatmul.bf16.vlgmr.msrb.gmra.mxu2 %v12378_v2  ;;  %v8604_v14 = vor.u32 %v11053_v7, %v8603_v6  ;;  %v8571_v16 = vld [vmem:[#allocation11 + $0x710] sm:$0xf] }
 0x1cb   : > { %2859 = vmatpush.bf16.msra.mxu2 %v7900_v13  ;;  %2837 = vmatpush.bf16.msra.mxu0 %v8280_v22  ;;  %v7931_v13 = vld [vmem:[#allocation11 + $0x210] sm:$0xf]  ;;  %v8572_v27 = vor.u32 %v11045_v17, %v8571_v16 }
 0x1cc   : > { %v7707_v22 = vld [vmem:[#allocation11 + $0x50] sm:$0xf]  ;;  %v7932_v26 = vor.u32 %v10885_v15, %v7931_v13  ;;  %v8669_v15 = vld [vmem:[#allocation11 + $0x7f0] sm:$0xf0] }
 0x1cd   : > { %2874 = vmatpush.bf16.msra.mxu3 %v8092_v19  ;;  %2852 = vmatpush.bf16.msra.mxu1 %v8472_v28  ;;  %v8380_v19 = vor.u32 %v10997_v11, %v8379_v10  ;;  %v8160_v28 = vor.u32 %v10937_v20, %v8157_v21  ;;  %v8539_v29 = vld [vmem:[#allocation11 + $0x6d0] sm:$0xf]  ;;  %v10905_v11 = vld [vmem:[#allocation11 + $0x2d4] sm:$0xf] }
 0x1ce   : > { %v11037_v30 = vld [vmem:[#allocation11 + $0x6ec] sm:$0xf0] }
 0x1cf   : > { %2860 = vmatpush.bf16.msra.mxu2 %v7868_v25  ;;  %2838 = vmatpush.bf16.msra.mxu0 %v8248_v36  ;;  %v10989_v25 = vld [vmem:[#allocation11 + $0x56c] sm:$0xf0]  ;;  %v8540_v42 = vor.u32 %v11037_v30, %v8539_v29 }
 0x1d0   : > { %v8348_v33 = vor.u32 %v10989_v25, %v8347_v24  ;;  %v7675_v36 = vld [vmem:[#allocation11 + $0x10] sm:$0xf]  ;;  %v7997_v24 = vld [vmem:[#allocation11 + $0x2b0] sm:$0xf0] }
 0x1d1   : > { %2875 = vmatpush.bf16.msra.mxu3 %v8060_v31  ;;  %2853 = vmatpush.bf16.msra.mxu1 %v8440_v44  ;;  %v7708_v31 = vor.u32 %v10829_v23, %v7707_v22  ;;  %v10821_v37 = vld [vmem:[#allocation11 + $0x2c] sm:$0xf0]  ;;  %v8128_v44 = vor.u32 %v10929_v34, %v8125_v35  ;;  %v10897_v23 = vld [vmem:[#allocation11 + $0x294] sm:$0xf] }
 0x1d2   : > { %v8315_v38 = vld [vmem:[#allocation11 + $0x510] sm:$0xf]  ;;  %v7676_v45 = vor.u32 %v10821_v37, %v7675_v36  ;;  %v11001_v34 = vld [vmem:[#allocation11 + $0x5d4] sm:$0xf]  ;;  %v8000_v36 = vor.u32 %v10897_v23, %v7997_v24  ;;  %v8099_v23 = vld [vmem:[#allocation11 + $0x358] sm:$0xf] }
 0x1d3   : > { %2861 = vmatpush.bf16.msra.mxu2 %v7836_v40  ;;  %2839 = vmatpush.bf16.msra.mxu0 %v8216_v51  ;;  %v10981_v39 = vld [vmem:[#allocation11 + $0x52c] sm:$0xf0]  ;;  %v10873_v40 = vld [vmem:[#allocation11 + $0x1d4] sm:$0xf] }
 0x1d4   : > { %2854 = vmatmul.bf16.vlgmr.msra.gmra.mxu1 %v12383_v32  ;;  %v8316_v46 = vor.u32 %v10981_v39, %v8315_v38  ;;  %v7904_v51 = vor.u32 %v10873_v40, %v7901_v41  ;;  %v8283_v53 = vld [vmem:[#allocation11 + $0x4d0] sm:$0xf]  ;;  %v8413_v35 = vld [vmem:[#allocation11 + $0x5f0] sm:$0xf0] }
 0x1d5   : > { %2876 = vmatpush.bf16.msra.mxu3 %v8028_v47  ;;  %2898 = vmatpush.bf16.msrb.mxu1 %v8668_v49  ;;  %v8507_v47 = vld [vmem:[#allocation11 + $0x690] sm:$0xf]  ;;  %v10889_v40 = vld [vmem:[#allocation11 + $0x254] sm:$0xf] }
 0x1d6   : > { %v11029_v49 = vld [vmem:[#allocation11 + $0x6ac] sm:$0xf0]  ;;  %v7965_v41 = vld [vmem:[#allocation11 + $0x270] sm:$0xf0] }
 0x1d7   : > { %2862 = vmatpush.bf16.msra.mxu2 %v7804_v55  ;;  %2840 = vmatpush.bf16.msra.mxu0 %v8184_v0  ;;  %v10973_v54 = vld [vmem:[#allocation11 + $0x4ec] sm:$0xf0]  ;;  %v10865_v55 = vld [vmem:[#allocation11 + $0x194] sm:$0xf]  ;;  %v8508_v48 = vor.u32 %v11029_v49, %v8507_v47 }
 0x1d8   : > { %v8284_v59 = vor.u32 %v10973_v54, %v8283_v53  ;;  %v8475_v60 = vld [vmem:[#allocation11 + $0x650] sm:$0xf]  ;;  %v8061_v0 = vld [vmem:[#allocation11 + $0x330] sm:$0xf0] }
 0x1d9   : > { %2877 = vmatpush.bf16.msra.mxu3 %v7996_v62  ;;  %2899 = vmatpush.bf16.msrb.mxu1 %v8636_v63  ;;  %v11021_v61 = vld [vmem:[#allocation11 + $0x66c] sm:$0xf0]  ;;  %v10913_v62 = vld [vmem:[#allocation11 + $0x314] sm:$0xf]  ;;  %v7872_v63 = vor.u32 %v10865_v55, %v7869_v56 }
 0x1da   : > { %2841 = vmatmul.bf16.vlgmr.msra.gmra.mxu0 %v12387_v57  ;;  %v8251_v1 = vld [vmem:[#allocation11 + $0x490] sm:$0xf]  ;;  %v8476_v6 = vor.u32 %v11021_v61, %v8475_v60  ;;  %v8064_v8 = vor.u32 %v10913_v62, %v8061_v0  ;;  %v7741_v47 = vld [vmem:[#allocation11 + $0xb0] sm:$0xf0]  ;;  %v10942_v60 = vld [vmem:[#allocation11 + $0x3f4] sm:$0xf0] }
 0x1db   : > { %2863 = vmatpush.bf16.msra.mxu2 %v7772_v4  ;;  %2885 = vmatpush.bf16.msrb.mxu0 %v8412_v5  ;;  %v10965_v3 = vld [vmem:[#allocation11 + $0x4ac] sm:$0xf0]  ;;  %v10857_v4 = vld [vmem:[#allocation11 + $0x154] sm:$0xf] }
 0x1dc   : > { %v7837_v5 = vld [vmem:[#allocation11 + $0x170] sm:$0xf0]  ;;  %v8443_v7 = vld [vmem:[#allocation11 + $0x610] sm:$0xf]  ;;  %v8252_v9 = vor.u32 %v10965_v3, %v8251_v1 }
 0x1dd   : > { %2878 = vmatpush.bf16.msra.mxu3 %v7964_v12  ;;  %2900 = vmatpush.bf16.msrb.mxu1 %v8604_v14  ;;  %v11013_v10 = vld [vmem:[#allocation11 + $0x62c] sm:$0xf0]  ;;  %v8029_v12 = vld [vmem:[#allocation11 + $0x2f0] sm:$0xf0]  ;;  %v7840_v13 = vor.u32 %v10857_v4, %v7837_v5 }
 0x1de   : > { %v11065_v14 = vld [vmem:[#allocation11 + $0x7d4] sm:$0xf]  ;;  %v8219_v16 = vld [vmem:[#allocation11 + $0x450] sm:$0xf]  ;;  %v8444_v20 = vor.u32 %v11013_v10, %v8443_v7  ;;  %v8032_v21 = vor.u32 %v10905_v11, %v8029_v12  ;;  %v10934_v10 = vld [vmem:[#allocation11 + $0x3b4] sm:$0xf0] }
 0x1df   : > { %2864 = vmatpush.bf16.msra.mxu2 %v7740_v18  ;;  %2886 = vmatpush.bf16.msrb.mxu0 %v8380_v19  ;;  %v10957_v17 = vld [vmem:[#allocation11 + $0x46c] sm:$0xf0]  ;;  %v10849_v18 = vld [vmem:[#allocation11 + $0x114] sm:$0xf]  ;;  %v8672_v22 = vor.u32 %v11065_v14, %v8669_v15  ;;  %v7907_v15 = vld [vmem:[#allocation11 + $0x1d8] sm:$0xf] }
 0x1e0   : > { %v7805_v19 = vld [vmem:[#allocation11 + $0x130] sm:$0xf0]  ;;  %v8220_v25 = vor.u32 %v10957_v17, %v8219_v16  ;;  %v8187_v29 = vld [vmem:[#allocation11 + $0x410] sm:$0xf]  ;;  %v10878_v16 = vld [vmem:[#allocation11 + $0x1f4] sm:$0xf0] }
 0x1e1   : > { %2879 = vmatpush.bf16.msra.mxu3 %v7932_v26  ;;  %2901 = vmatpush.bf16.msrb.mxu1 %v8572_v27  ;;  %v7808_v26 = vor.u32 %v10849_v18, %v7805_v19  ;;  %v11057_v27 = vld [vmem:[#allocation11 + $0x794] sm:$0xf]  ;;  %v10949_v30 = vld [vmem:[#allocation11 + $0x42c] sm:$0xf0]  ;;  %v7908_v24 = vor.u32 %v10878_v16, %v7907_v15 }
 0x1e2   : > { %v8188_v38 = vor.u32 %v10949_v30, %v8187_v29  ;;  %v10993_v49 = vld [vmem:[#allocation11 + $0x594] sm:$0xf]  ;;  %v10870_v29 = vld [vmem:[#allocation11 + $0x1b4] sm:$0xf0] }
 0x1e3   : > { %2865 = vmatpush.bf16.msra.mxu2 %v7708_v31  ;;  %2887 = vmatpush.bf16.msrb.mxu0 %v8348_v33  ;;  %v10841_v31 = vld [vmem:[#allocation11 + $0xd4] sm:$0xf] }
 0x1e4   : > { %2880 = vmatmul.bf16.vlgmr.msra.gmra.mxu3 %v12375_v43  ;;  %v7773_v33 = vld [vmem:[#allocation11 + $0xf0] sm:$0xf0] }
 0x1e5   : > { %2924 = vmatpush.bf16.msrb.mxu3 %v8160_v28  ;;  %2902 = vmatpush.bf16.msrb.mxu1 %v8540_v42  ;;  %v8637_v28 = vld [vmem:[#allocation11 + $0x7b0] sm:$0xf0]  ;;  %v7776_v39 = vor.u32 %v10841_v31, %v7773_v33 }
 0x1e6   : > { %v8640_v37 = vor.u32 %v11057_v27, %v8637_v28  ;;  %v11049_v42 = vld [vmem:[#allocation11 + $0x754] sm:$0xf]  ;;  %v7875_v28 = vld [vmem:[#allocation11 + $0x198] sm:$0xf] }
 0x1e7   : > { %2866 = vmatpush.bf16.msra.mxu2 %v7676_v45  ;;  %2888 = vmatpush.bf16.msrb.mxu0 %v8316_v46  ;;  %v8605_v45 = vld [vmem:[#allocation11 + $0x770] sm:$0xf0] }
 0x1e8   : > { %v10833_v46 = vld [vmem:[#allocation11 + $0x94] sm:$0xf]  ;;  %v8608_v53 = vor.u32 %v11049_v42, %v8605_v45  ;;  %v10862_v42 = vld [vmem:[#allocation11 + $0x174] sm:$0xf0] }
 0x1e9   : > { %2925 = vmatpush.bf16.msrb.mxu3 %v8128_v44  ;;  %2903 = vmatpush.bf16.msrb.mxu1 %v8508_v48  ;;  %v8416_v44 = vor.u32 %v11001_v34, %v8413_v35  ;;  %v7744_v54 = vor.u32 %v10833_v46, %v7741_v47  ;;  %v7933_v55 = vld [vmem:[#allocation11 + $0x230] sm:$0xf0] }
 0x1ea   : > { %2867 = vmatmul.bf16.vlgmr.msra.gmra.mxu2 %v12378_v2  ;;  %v11041_v56 = vld [vmem:[#allocation11 + $0x714] sm:$0xf]  ;;  %v7936_v1 = vor.u32 %v10881_v52, %v7933_v55 }
 0x1eb   : > { %2911 = vmatpush.bf16.msrb.mxu2 %v7904_v51  ;;  %2889 = vmatpush.bf16.msrb.mxu0 %v8284_v59  ;;  %v7968_v51 = vor.u32 %v10889_v40, %v7965_v41  ;;  %v8573_v48 = vld [vmem:[#allocation11 + $0x730] sm:$0xf0]  ;;  %v8163_v59 = vld [vmem:[#allocation11 + $0x3d8] sm:$0xf] }
 0x1ec   : > { %v10825_v61 = vld [vmem:[#allocation11 + $0x54] sm:$0xf]  ;;  %v8576_v3 = vor.u32 %v11041_v56, %v8573_v48  ;;  %v8164_v4 = vor.u32 %v10942_v60, %v8163_v59  ;;  %v7843_v41 = vld [vmem:[#allocation11 + $0x158] sm:$0xf] }
 0x1ed   : > { %2926 = vmatpush.bf16.msrb.mxu3 %v8096_v58  ;;  %2904 = vmatpush.bf16.msrb.mxu1 %v8476_v6  ;;  %v8384_v58 = vor.u32 %v10993_v49, %v8381_v50  ;;  %v7709_v62 = vld [vmem:[#allocation11 + $0x70] sm:$0xf0]  ;;  %v8035_v50 = vld [vmem:[#allocation11 + $0x2d8] sm:$0xf]  ;;  %v7844_v52 = vor.u32 %v10862_v42, %v7843_v41  ;;  %v10938_v41 = vld [vmem:[#allocation11 + $0x3dc] sm:$0xf] }
 0x1ee   : > { %v8349_v0 = vld [vmem:[#allocation11 + $0x570] sm:$0xf0]  ;;  %v7712_v7 = vor.u32 %v10825_v61, %v7709_v62  ;;  %v7811_v48 = vld [vmem:[#allocation11 + $0x118] sm:$0xf]  ;;  %v8165_v42 = vld [vmem:[#allocation11 + $0x3f8] sm:$0xf0] }
 0x1ef   : > { %2912 = vmatpush.bf16.msrb.mxu2 %v7872_v63  ;;  %2890 = vmatpush.bf16.msrb.mxu0 %v8252_v9  ;;  %v10985_v63 = vld [vmem:[#allocation11 + $0x554] sm:$0xf]  ;;  %v8131_v9 = vld [vmem:[#allocation11 + $0x398] sm:$0xf] }
 0x1f0   : > { %v11033_v5 = vld [vmem:[#allocation11 + $0x6d4] sm:$0xf]  ;;  %v8132_v18 = vor.u32 %v10934_v10, %v8131_v9  ;;  %v7779_v9 = vld [vmem:[#allocation11 + $0xd8] sm:$0xf] }
 0x1f1   : > { %2927 = vmatpush.bf16.msrb.mxu3 %v8064_v8  ;;  %2905 = vmatpush.bf16.msrb.mxu1 %v8444_v20  ;;  %v8541_v6 = vld [vmem:[#allocation11 + $0x6f0] sm:$0xf0]  ;;  %v8352_v8 = vor.u32 %v10985_v63, %v8349_v0  ;;  %v8003_v63 = vld [vmem:[#allocation11 + $0x298] sm:$0xf] }
 0x1f2   : > { %v10817_v11 = vld [vmem:[#allocation11 + $0x14] sm:$0xf]  ;;  %v8544_v17 = vor.u32 %v11033_v5, %v8541_v6  ;;  %v10902_v0 = vld [vmem:[#allocation11 + $0x2b4] sm:$0xf0] }
 0x1f3   : > { %2913 = vmatpush.bf16.msrb.mxu2 %v7840_v13  ;;  %2891 = vmatpush.bf16.msrb.mxu0 %v8220_v25  ;;  %v7677_v12 = vld [vmem:[#allocation11 + $0x30] sm:$0xf0]  ;;  %v10926_v25 = vld [vmem:[#allocation11 + $0x374] sm:$0xf0] }
 0x1f4   : > { %2906 = vmatmul.bf16.vlgmr.msrb.gmra.mxu1 %v12383_v32  ;;  %v10977_v13 = vld [vmem:[#allocation11 + $0x514] sm:$0xf]  ;;  %v7680_v19 = vor.u32 %v10817_v11, %v7677_v12  ;;  %v8100_v31 = vor.u32 %v10926_v25, %v8099_v23  ;;  %v8643_v5 = vld [vmem:[#allocation11 + $0x798] sm:$0xf] }
 0x1f5   : > { %2928 = vmatpush.bf16.msrb.mxu3 %v8032_v21  ;;  %2950 = vmatpush.bf16.msra.mxu1 %v8672_v22  ;;  %v8317_v14 = vld [vmem:[#allocation11 + $0x530] sm:$0xf0]  ;;  %v11062_v6 = vld [vmem:[#allocation11 + $0x7b4] sm:$0xf0] }
 0x1f6   : > { %v8320_v20 = vor.u32 %v10977_v13, %v8317_v14  ;;  %v11025_v21 = vld [vmem:[#allocation11 + $0x694] sm:$0xf]  ;;  %v10846_v10 = vld [vmem:[#allocation11 + $0xf4] sm:$0xf0]  ;;  %v8004_v14 = vor.u32 %v10902_v0, %v8003_v63  ;;  %v8644_v15 = vor.u32 %v11062_v6, %v8643_v5 }
 0x1f7   : > { %2914 = vmatpush.bf16.msrb.mxu2 %v7808_v26  ;;  %2892 = vmatpush.bf16.msrb.mxu0 %v8188_v38  ;;  %v8509_v22 = vld [vmem:[#allocation11 + $0x6b0] sm:$0xf0]  ;;  %v10918_v38 = vld [vmem:[#allocation11 + $0x334] sm:$0xf0] }
 0x1f8   : > { %v10969_v26 = vld [vmem:[#allocation11 + $0x4d4] sm:$0xf]  ;;  %v8512_v30 = vor.u32 %v11025_v21, %v8509_v22  ;;  %v8419_v12 = vld [vmem:[#allocation11 + $0x5d8] sm:$0xf] }
 0x1f9   : > { %2929 = vmatpush.bf16.msrb.mxu3 %v8000_v36  ;;  %2951 = vmatpush.bf16.msra.mxu1 %v8640_v37  ;;  %v8285_v27 = vld [vmem:[#allocation11 + $0x4f0] sm:$0xf0]  ;;  %v8067_v36 = vld [vmem:[#allocation11 + $0x318] sm:$0xf]  ;;  %v7876_v37 = vor.u32 %v10870_v29, %v7875_v28 }
 0x1fa   : > { %2893 = vmatmul.bf16.vlgmr.msrb.gmra.mxu0 %v12387_v57  ;;  %v8288_v33 = vor.u32 %v10969_v26, %v8285_v27  ;;  %v11017_v34 = vld [vmem:[#allocation11 + $0x654] sm:$0xf]  ;;  %v8068_v46 = vor.u32 %v10918_v38, %v8067_v36  ;;  %v11006_v13 = vld [vmem:[#allocation11 + $0x5f4] sm:$0xf0] }
 0x1fb   : > { %2915 = vmatpush.bf16.msrb.mxu2 %v7776_v39  ;;  %2937 = vmatpush.bf16.msra.mxu0 %v8416_v44  ;;  %v8477_v35 = vld [vmem:[#allocation11 + $0x670] sm:$0xf0]  ;;  %v8420_v22 = vor.u32 %v11006_v13, %v8419_v12  ;;  %v11054_v23 = vld [vmem:[#allocation11 + $0x774] sm:$0xf0]  ;;  %v10922_v13 = vld [vmem:[#allocation11 + $0x35c] sm:$0xf] }
 0x1fc   : > { %v10961_v39 = vld [vmem:[#allocation11 + $0x494] sm:$0xf]  ;;  %v8480_v44 = vor.u32 %v11017_v34, %v8477_v35  ;;  %v10838_v25 = vld [vmem:[#allocation11 + $0xb4] sm:$0xf0] }
 0x1fd   : > { %2930 = vmatpush.bf16.msrb.mxu3 %v7968_v51  ;;  %2952 = vmatpush.bf16.msra.mxu1 %v8608_v53  ;;  %v8253_v40 = vld [vmem:[#allocation11 + $0x4b0] sm:$0xf0]  ;;  %v10910_v51 = vld [vmem:[#allocation11 + $0x2f4] sm:$0xf0] }
 0x1fe   : > { %v11009_v45 = vld [vmem:[#allocation11 + $0x614] sm:$0xf]  ;;  %v8256_v47 = vor.u32 %v10961_v39, %v8253_v40  ;;  %v8675_v53 = vld [vmem:[#allocation11 + $0x7d8] sm:$0xf]  ;;  %v8036_v61 = vor.u32 %v10910_v51, %v8035_v50  ;;  %v8168_v51 = vor.u32 %v10938_v41, %v8165_v42 }
 0x1ff   : > { %2916 = vmatpush.bf16.msrb.mxu2 %v7744_v54  ;;  %2938 = vmatpush.bf16.msra.mxu0 %v8384_v58  ;;  %v8445_v49 = vld [vmem:[#allocation11 + $0x630] sm:$0xf0]  ;;  %v11070_v54 = vld [vmem:[#allocation11 + $0x7f4] sm:$0xf0] }
 0x200   : > { %v10953_v55 = vld [vmem:[#allocation11 + $0x454] sm:$0xf]  ;;  %v10854_v58 = vld [vmem:[#allocation11 + $0x134] sm:$0xf0]  ;;  %v8448_v59 = vor.u32 %v11009_v45, %v8445_v49  ;;  %v8676_v62 = vor.u32 %v11070_v54, %v8675_v53 }
 0x201   : > { %2931 = vmatpush.bf16.msrb.mxu3 %v7936_v1  ;;  %2953 = vmatpush.bf16.msra.mxu1 %v8576_v3  ;;  %v8221_v56 = vld [vmem:[#allocation11 + $0x470] sm:$0xf0]  ;;  %v12407_v1 = vld [vmem:[#allocation13] sm:$0xff]  ;;  %v8387_v27 = vld [vmem:[#allocation11 + $0x598] sm:$0xf] }
 0x202   : > { %v8224_v3 = vor.u32 %v10953_v55, %v8221_v56  ;;  %v1355_v11 = vperm.slane %v12407_v1, 0  ;;  %v10998_v28 = vld [vmem:[#allocation11 + $0x5b4] sm:$0xf0] }
 0x203   : > { %2917 = vmatpush.bf16.msrb.mxu2 %v7712_v7  ;;  %2939 = vmatpush.bf16.msra.mxu0 %v8352_v8  ;;  %v10945_v7 = vld [vmem:[#allocation11 + $0x414] sm:$0xf]  ;;  %v10886_v35 = vld [vmem:[#allocation11 + $0x234] sm:$0xf0]  ;;  %v8388_v40 = vor.u32 %v10998_v28, %v8387_v27  ;;  %v10914_v27 = vld [vmem:[#allocation11 + $0x31c] sm:$0xf] }
 0x204   : > { %2932 = vmatmul.bf16.vlgmr.msrb.gmra.mxu3 %v12375_v43  ;;  %v8189_v8 = vld [vmem:[#allocation11 + $0x430] sm:$0xf0]  ;;  %v8579_v36 = vld [vmem:[#allocation11 + $0x718] sm:$0xf] }
 0x205   : > { %2976 = vmatpush.bf16.msra.mxu3 %v8164_v4  ;;  %2954 = vmatpush.bf16.msra.mxu1 %v8544_v17  ;;  %v7812_v4 = vor.u32 %v10854_v58, %v7811_v48  ;;  %v8192_v16 = vor.u32 %v10945_v7, %v8189_v8  ;;  %v7780_v17 = vor.u32 %v10846_v10, %v7779_v9  ;;  %v10830_v45 = vld [vmem:[#allocation11 + $0x74] sm:$0xf0]  ;;  %v10930_v48 = vld [vmem:[#allocation11 + $0x39c] sm:$0xf] }
 0x206   : > { %v11038_v53 = vld [vmem:[#allocation11 + $0x6f4] sm:$0xf0]  ;;  %v8133_v58 = vld [vmem:[#allocation11 + $0x3b8] sm:$0xf0] }
 0x207   : > { %2918 = vmatpush.bf16.msrb.mxu2 %v7680_v19  ;;  %2940 = vmatpush.bf16.msra.mxu0 %v8320_v20  ;;  %v2673_v60 = vpop.f32.mrf.mxu3  ;;  %v10894_v19 = vld [vmem:[#allocation11 + $0x274] sm:$0xf0]  ;;  %v8136_v7 = vor.u32 %v10930_v48, %v8133_v58  ;;  %v10898_v58 = vld [vmem:[#allocation11 + $0x29c] sm:$0xf] }
 0x208   : > { %v8611_v20 = vld [vmem:[#allocation11 + $0x758] sm:$0xf] }
 0x209   : > { %2977 = vmatpush.bf16.msra.mxu3 %v8132_v18  ;;  %2955 = vmatpush.bf16.msra.mxu1 %v8512_v30  ;;  %v7971_v18 = vld [vmem:[#allocation11 + $0x258] sm:$0xf] }
 0x20a   : > { %2919 = vmatmul.bf16.vlgmr.msrb.gmra.mxu2 %v12378_v2  ;;  %v7972_v30 = vor.u32 %v10894_v19, %v7971_v18  ;;  %v11030_v12 = vld [vmem:[#allocation11 + $0x6b4] sm:$0xf0]  ;;  %v10866_v19 = vld [vmem:[#allocation11 + $0x19c] sm:$0xf] }
 0x20b   : > { %2963 = vmatpush.bf16.msra.mxu2 %v7908_v24  ;;  %2941 = vmatpush.bf16.msra.mxu0 %v8288_v33  ;;  %v7747_v24 = vld [vmem:[#allocation11 + $0x98] sm:$0xf]  ;;  %v8612_v33 = vor.u32 %v11054_v23, %v8611_v20  ;;  %v7877_v20 = vld [vmem:[#allocation11 + $0x1b8] sm:$0xf0] }
 0x20c   : > { %v7748_v34 = vor.u32 %v10838_v25, %v7747_v24  ;;  %v10974_v18 = vld [vmem:[#allocation11 + $0x4f4] sm:$0xf0]  ;;  %v7880_v28 = vor.u32 %v10866_v19, %v7877_v20  ;;  %v11050_v19 = vld [vmem:[#allocation11 + $0x75c] sm:$0xf] }
 0x20d   : > { %2978 = vmatpush.bf16.msra.mxu3 %v8100_v31  ;;  %2956 = vmatpush.bf16.msra.mxu1 %v8480_v44  ;;  %v2660_v21 = vpop.f32.mrf.mxu2  ;;  %v7939_v31 = vld [vmem:[#allocation11 + $0x218] sm:$0xf] }
 0x20e   : > { %v2661_v26 = vadd.f32 %v2660_v21, %v1355_v11  ;;  %v7715_v44 = vld [vmem:[#allocation11 + $0x58] sm:$0xf]  ;;  %v7940_v49 = vor.u32 %v10886_v35, %v7939_v31  ;;  %v10858_v35 = vld [vmem:[#allocation11 + $0x15c] sm:$0xf] }
 0x20f   : > { %2964 = vmatpush.bf16.msra.mxu2 %v7876_v37  ;;  %2942 = vmatpush.bf16.msra.mxu0 %v8256_v47  ;;  %v2675_v29 = vpop.f32.mrf.mxu3  ;;  %v11046_v37 = vld [vmem:[#allocation11 + $0x734] sm:$0xf0]  ;;  %v7716_v55 = vor.u32 %v10830_v45, %v7715_v44  ;;  %v10906_v44 = vld [vmem:[#allocation11 + $0x2dc] sm:$0xf] }
 0x210   : > { %v2674_v38 = vadd.f32 %v2673_v60, %v2661_v26  ;;  %v10990_v47 = vld [vmem:[#allocation11 + $0x574] sm:$0xf0]  ;;  %v8580_v50 = vor.u32 %v11046_v37, %v8579_v36  ;;  %v8069_v29 = vld [vmem:[#allocation11 + $0x338] sm:$0xf0] }
 0x211   : > { %2979 = vmatpush.bf16.msra.mxu3 %v8068_v46  ;;  %2957 = vmatpush.bf16.msra.mxu1 %v8448_v59  ;;  %v2699_v39 = vpop.f32.mrf.mxu1  ;;  %v8355_v46 = vld [vmem:[#allocation11 + $0x558] sm:$0xf]  ;;  %v7845_v36 = vld [vmem:[#allocation11 + $0x178] sm:$0xf0] }
 0x212   : > { %v8356_v56 = vor.u32 %v10990_v47, %v8355_v46  ;;  %v7683_v59 = vld [vmem:[#allocation11 + $0x18] sm:$0xf]  ;;  %v8037_v45 = vld [vmem:[#allocation11 + $0x2f8] sm:$0xf0]  ;;  %v7848_v46 = vor.u32 %v10858_v35, %v7845_v36 }
 0x213   : > { %2965 = vmatpush.bf16.msra.mxu2 %v7844_v52  ;;  %2943 = vmatpush.bf16.msra.mxu0 %v8224_v3  ;;  %v8547_v52 = vld [vmem:[#allocation11 + $0x6d8] sm:$0xf]  ;;  %v10874_v3 = vld [vmem:[#allocation11 + $0x1dc] sm:$0xf] }
 0x214   : > { %2958 = vmatmul.bf16.vlgmr.msra.gmra.mxu1 %v12383_v32  ;;  %v10822_v60 = vld [vmem:[#allocation11 + $0x34] sm:$0xf0]  ;;  %v8548_v6 = vor.u32 %v11038_v53, %v8547_v52  ;;  %v11066_v47 = vld [vmem:[#allocation11 + $0x7dc] sm:$0xf] }
 0x215   : > { %2980 = vmatpush.bf16.msra.mxu3 %v8036_v61  ;;  %3002 = vmatpush.bf16.msrb.mxu1 %v8676_v62  ;;  %v2662_v54 = vpop.f32.mrf.mxu2  ;;  %v8323_v61 = vld [vmem:[#allocation11 + $0x518] sm:$0xf]  ;;  %v7684_v9 = vor.u32 %v10822_v60, %v7683_v59  ;;  %v10850_v52 = vld [vmem:[#allocation11 + $0x11c] sm:$0xf] }
 0x216   : > { %v10982_v62 = vld [vmem:[#allocation11 + $0x534] sm:$0xf0]  ;;  %v7813_v53 = vld [vmem:[#allocation11 + $0x138] sm:$0xf0] }
 0x217   : > { %2966 = vmatpush.bf16.msra.mxu2 %v7812_v4  ;;  %2944 = vmatpush.bf16.msra.mxu0 %v8192_v16  ;;  %v2686_v63 = vpop.f32.mrf.mxu0  ;;  %v12412_v0 = vpop.f32.mrf.mxu3  ;;  %v7909_v4 = vld [vmem:[#allocation11 + $0x1f8] sm:$0xf0]  ;;  %v8324_v10 = vor.u32 %v10982_v62, %v8323_v61  ;;  %v8515_v11 = vld [vmem:[#allocation11 + $0x698] sm:$0xf]  ;;  %v7816_v61 = vor.u32 %v10850_v52, %v7813_v53 }
 0x218   : > { %v2687_v5 = vadd.f32 %v2686_v63, %v2674_v38  ;;  %v8101_v16 = vld [vmem:[#allocation11 + $0x378] sm:$0xf0]  ;;  %v8516_v21 = vor.u32 %v11030_v12, %v8515_v11  ;;  %v8483_v25 = vld [vmem:[#allocation11 + $0x658] sm:$0xf] }
 0x219   : > { %2981 = vmatpush.bf16.msra.mxu3 %v8004_v14  ;;  %3003 = vmatpush.bf16.msrb.mxu1 %v8644_v15  ;;  %v2701_v8 = vpop.f32.mrf.mxu1  ;;  %v7912_v15 = vor.u32 %v10874_v3, %v7909_v4  ;;  %v8104_v23 = vor.u32 %v10922_v13, %v8101_v16  ;;  %v11022_v26 = vld [vmem:[#allocation11 + $0x674] sm:$0xf0]  ;;  %v8005_v59 = vld [vmem:[#allocation11 + $0x2b8] sm:$0xf0] }
 0x21a   : > { %2945 = vmatmul.bf16.vlgmr.msra.gmra.mxu0 %v12387_v57  ;;  %v12414_v14 = vadd.f32 %v2699_v39, %v2687_v5  ;;  %v10966_v31 = vld [vmem:[#allocation11 + $0x4b4] sm:$0xf0]  ;;  %v8484_v37 = vor.u32 %v11022_v26, %v8483_v25  ;;  %v11058_v62 = vld [vmem:[#allocation11 + $0x79c] sm:$0xf]  ;;  %v8008_v12 = vor.u32 %v10898_v58, %v8005_v59 }
 0x21b   : > { %2967 = vmatpush.bf16.msra.mxu2 %v7780_v17  ;;  %2989 = vmatpush.bf16.msrb.mxu0 %v8420_v22  ;;  %v8291_v17 = vld [vmem:[#allocation11 + $0x4d8] sm:$0xf]  ;;  %v8645_v63 = vld [vmem:[#allocation11 + $0x7b8] sm:$0xf0] }
 0x21c   : > { %v8292_v24 = vor.u32 %v10974_v18, %v8291_v17  ;;  %v8451_v38 = vld [vmem:[#allocation11 + $0x618] sm:$0xf]  ;;  %v7781_v8 = vld [vmem:[#allocation11 + $0xf8] sm:$0xf0]  ;;  %v8648_v13 = vor.u32 %v11058_v62, %v8645_v63  ;;  %v8907_v62 = vld [vmem:[%s12351_s19 + $0x1c0] sm:$0xf] }
 0x21d   : > { %2982 = vmatpush.bf16.msra.mxu3 %v7972_v30  ;;  %3004 = vmatpush.bf16.msrb.mxu1 %v8612_v33  ;;  %v12417_v22 = vpop.f32.mrf.mxu2  ;;  %v8259_v30 = vld [vmem:[#allocation11 + $0x498] sm:$0xf]  ;;  %v10890_v17 = vld [vmem:[#allocation11 + $0x25c] sm:$0xf]  ;;  %v11131_v63 = vld [vmem:[%s12351_s19 + $0x1dc] sm:$0xf0] }
 0x21e   : > { %v8260_v41 = vor.u32 %v10966_v31, %v8259_v30  ;;  %v11014_v42 = vld [vmem:[#allocation11 + $0x634] sm:$0xf0]  ;;  %v7973_v18 = vld [vmem:[#allocation11 + $0x278] sm:$0xf0] }
 0x21f   : > { %2968 = vmatpush.bf16.msra.mxu2 %v7748_v34  ;;  %2990 = vmatpush.bf16.msrb.mxu0 %v8388_v40  ;;  %v2688_v33 = vpop.f32.mrf.mxu0  ;;  %v2727_v34 = vpop.f32.mrf.mxu3  ;;  %v8072_v40 = vor.u32 %v10914_v27, %v8069_v29  ;;  %v8452_v54 = vor.u32 %v11014_v42, %v8451_v38  ;;  %v8195_v3 = vld [vmem:[#allocation11 + $0x418] sm:$0xf]  ;;  %v10994_v25 = vld [vmem:[#allocation11 + $0x59c] sm:$0xf]  ;;  %v7976_v27 = vor.u32 %v10890_v17, %v7973_v18 }
 0x220   : > { %v8389_v26 = vld [vmem:[#allocation11 + $0x5b8] sm:$0xf0] }
 0x221   : > { %2983 = vmatpush.bf16.msra.mxu3 %v7940_v49  ;;  %3005 = vmatpush.bf16.msrb.mxu1 %v8580_v50  ;;  %v12420_v39 = vpop.f32.mrf.mxu1  ;;  %v8677_v49 = vld [vmem:[#allocation11 + $0x7f8] sm:$0xf0]  ;;  %v8227_v50 = vld [vmem:[#allocation11 + $0x458] sm:$0xf]  ;;  %v8392_v38 = vor.u32 %v10994_v25, %v8389_v26 }
 0x222   : > { %v8680_v48 = vor.u32 %v11066_v47, %v8677_v49  ;;  %v7941_v33 = vld [vmem:[#allocation11 + $0x238] sm:$0xf0] }
 0x223   : > { %2969 = vmatpush.bf16.msra.mxu2 %v7716_v55  ;;  %2991 = vmatpush.bf16.msrb.mxu0 %v8356_v56  ;;  %v8040_v56 = vor.u32 %v10906_v44, %v8037_v45  ;;  %v11042_v34 = vld [vmem:[#allocation11 + $0x71c] sm:$0xf] }
 0x224   : > { %2984 = vmatmul.bf16.vlgmr.msra.gmra.mxu3 %v12375_v43  ;;  %v8581_v35 = vld [vmem:[#allocation11 + $0x738] sm:$0xf0] }
 0x225   : > { %3028 = vmatpush.bf16.msrb.mxu3 %v8168_v51  ;;  %3006 = vmatpush.bf16.msrb.mxu1 %v8548_v6  ;;  %v10958_v51 = vld [vmem:[#allocation11 + $0x474] sm:$0xf0]  ;;  %v2714_v55 = vpop.f32.mrf.mxu2  ;;  %v10826_v42 = vld [vmem:[#allocation11 + $0x5c] sm:$0xf] }
 0x226   : > { %v8228_v60 = vor.u32 %v10958_v51, %v8227_v50  ;;  %v10950_v6 = vld [vmem:[#allocation11 + $0x434] sm:$0xf0]  ;;  %v7717_v44 = vld [vmem:[#allocation11 + $0x78] sm:$0xf0]  ;;  %v8584_v50 = vor.u32 %v11042_v34, %v8581_v35  ;;  %v8843_v34 = vld [vmem:[%s12351_s19 + $0x140] sm:$0xf] }
 0x227   : > { %2970 = vmatpush.bf16.msra.mxu2 %v7684_v9  ;;  %2992 = vmatpush.bf16.msrb.mxu0 %v8324_v10  ;;  %v12422_v4 = vpop.f32.mrf.mxu0  ;;  %v12424_v5 = vpop.f32.mrf.mxu3  ;;  %v11002_v9 = vld [vmem:[#allocation11 + $0x5dc] sm:$0xf]  ;;  %v11115_v35 = vld [vmem:[%s12351_s19 + $0x15c] sm:$0xf0] }
 0x228   : > { %v8421_v10 = vld [vmem:[#allocation11 + $0x5f8] sm:$0xf0] }
 0x229   : > { %3029 = vmatpush.bf16.msrb.mxu3 %v8136_v7  ;;  %3007 = vmatpush.bf16.msrb.mxu1 %v8516_v21  ;;  %v10842_v7 = vld [vmem:[#allocation11 + $0xdc] sm:$0xf]  ;;  %v2753_v11 = vpop.f32.mrf.mxu1  ;;  %v8424_v20 = vor.u32 %v11002_v9, %v8421_v10 }
 0x22a   : > { %2971 = vmatmul.bf16.vlgmr.msra.gmra.mxu2 %v12378_v2  ;;  %v7784_v16 = vor.u32 %v10842_v7, %v7781_v8  ;;  %v8613_v21 = vld [vmem:[#allocation11 + $0x778] sm:$0xf0] }
 0x22b   : > { %3015 = vmatpush.bf16.msrb.mxu2 %v7912_v15  ;;  %2993 = vmatpush.bf16.msrb.mxu0 %v8292_v24  ;;  %v8196_v15 = vor.u32 %v10950_v6, %v8195_v3  ;;  %v7749_v24 = vld [vmem:[#allocation11 + $0xb8] sm:$0xf0]  ;;  %v8616_v30 = vor.u32 %v11050_v19, %v8613_v21  ;;  %v11123_v21 = vld [vmem:[%s12351_s19 + $0x19c] sm:$0xf0] }
 0x22c   : > { %v10986_v45 = vld [vmem:[#allocation11 + $0x55c] sm:$0xf] }
 0x22d   : > { %3030 = vmatpush.bf16.msrb.mxu3 %v8104_v23  ;;  %3008 = vmatpush.bf16.msrb.mxu1 %v8484_v37  ;;  %v10834_v23 = vld [vmem:[#allocation11 + $0x9c] sm:$0xf]  ;;  %v12427_v29 = vpop.f32.mrf.mxu2 }
 0x22e   : > { %v7752_v31 = vor.u32 %v10834_v23, %v7749_v24  ;;  %v11034_v52 = vld [vmem:[#allocation11 + $0x6dc] sm:$0xf] }
 0x22f   : > { %3016 = vmatpush.bf16.msrb.mxu2 %v7880_v28  ;;  %2994 = vmatpush.bf16.msrb.mxu0 %v8260_v41  ;;  %v10882_v28 = vld [vmem:[#allocation11 + $0x21c] sm:$0xf]  ;;  %v2740_v36 = vpop.f32.mrf.mxu0  ;;  %v2779_v37 = vpop.f32.mrf.mxu3  ;;  %v11195_v41 = vld [vmem:[%s12351_s19 + $0x3dc] sm:$0xf0] }
 0x230   : > { %v7944_v49 = vor.u32 %v10882_v28, %v7941_v33  ;;  %v8549_v53 = vld [vmem:[#allocation11 + $0x6f8] sm:$0xf0]  ;;  %v1356_v36 = vperm.slane %v12407_v1, 1 }
 0x231   : > { %3031 = vmatpush.bf16.msrb.mxu3 %v8072_v40  ;;  %3009 = vmatpush.bf16.msrb.mxu1 %v8452_v54  ;;  %v9163_v40 = vld [vmem:[%s12351_s19 + $0x3c0] sm:$0xf]  ;;  %v12432_v47 = vpop.f32.mrf.mxu1  ;;  %v7720_v54 = vor.u32 %v10826_v42, %v7717_v44  ;;  %v10818_v58 = vld [vmem:[#allocation11 + $0x1c] sm:$0xf]  ;;  %v8552_v6 = vor.u32 %v11034_v52, %v8549_v53 }
 0x232   : > { %v9164_v51 = vor.u32 %v11195_v41, %v9163_v40  ;;  %v7685_v59 = vld [vmem:[#allocation11 + $0x38] sm:$0xf0]  ;;  %v9035_v44 = vld [vmem:[%s12351_s19 + $0x2c0] sm:$0xf] }
 0x233   : > { %3017 = vmatpush.bf16.msrb.mxu2 %v7848_v46  ;;  %2995 = vmatpush.bf16.msrb.mxu0 %v8228_v60  ;;  %v8357_v46 = vld [vmem:[#allocation11 + $0x578] sm:$0xf0]  ;;  %v7688_v8 = vor.u32 %v10818_v58, %v7685_v59  ;;  %v8811_v53 = vld [vmem:[%s12351_s19 + $0x100] sm:$0xf] }
 0x234   : > { %3010 = vmatmul.bf16.vlgmr.msrb.gmra.mxu1 %v12383_v32  ;;  %v8360_v55 = vor.u32 %v10986_v45, %v8357_v46  ;;  %v10978_v60 = vld [vmem:[#allocation11 + $0x51c] sm:$0xf]  ;;  %v11163_v45 = vld [vmem:[%s12351_s19 + $0x2dc] sm:$0xf0] }
 0x235   : > { %3032 = vmatpush.bf16.msrb.mxu3 %v8040_v56  ;;  %3054 = vmatpush.bf16.msra.mxu1 %v8680_v48  ;;  %v9131_v56 = vld [vmem:[%s12351_s19 + $0x380] sm:$0xf]  ;;  %v2766_v3 = vpop.f32.mrf.mxu2  ;;  %v11026_v10 = vld [vmem:[#allocation11 + $0x69c] sm:$0xf] }
 0x236   : > { %v11187_v48 = vld [vmem:[%s12351_s19 + $0x39c] sm:$0xf0]  ;;  %v8517_v11 = vld [vmem:[#allocation11 + $0x6b8] sm:$0xf0] }
 0x237   : > { %3018 = vmatpush.bf16.msrb.mxu2 %v7816_v61  ;;  %2996 = vmatpush.bf16.msrb.mxu0 %v8196_v15  ;;  %v8325_v61 = vld [vmem:[#allocation11 + $0x538] sm:$0xf0]  ;;  %v9132_v7 = vor.u32 %v11187_v48, %v9131_v56  ;;  %v8908_v15 = vor.u32 %v11131_v63, %v8907_v62  ;;  %v8520_v23 = vor.u32 %v11026_v10, %v8517_v11  ;;  %v9003_v59 = vld [vmem:[%s12351_s19 + $0x280] sm:$0xf] }
 0x238   : > { %v8328_v9 = vor.u32 %v10978_v60, %v8325_v61  ;;  %v10970_v17 = vld [vmem:[#allocation11 + $0x4dc] sm:$0xf]  ;;  %v9036_v48 = vor.u32 %v11163_v45, %v9035_v44  ;;  %v11155_v60 = vld [vmem:[%s12351_s19 + $0x29c] sm:$0xf0] }
 0x239   : > { %3033 = vmatpush.bf16.msrb.mxu3 %v8008_v12  ;;  %3055 = vmatpush.bf16.msra.mxu1 %v8648_v13  ;;  %v9099_v12 = vld [vmem:[%s12351_s19 + $0x340] sm:$0xf]  ;;  %v12440_v13 = vpop.f32.mrf.mxu0  ;;  %v8293_v18 = vld [vmem:[#allocation11 + $0x4f8] sm:$0xf0]  ;;  %v2805_v19 = vpop.f32.mrf.mxu1 }
 0x23a   : > { %2997 = vmatmul.bf16.vlgmr.msrb.gmra.mxu0 %v12387_v57  ;;  %v11018_v25 = vld [vmem:[#allocation11 + $0x65c] sm:$0xf]  ;;  %v9643_v3 = vld [vmem:[%s12351_s19 + $0x780] sm:$0xf] }
 0x23b   : > { %3019 = vmatpush.bf16.msrb.mxu2 %v7784_v16  ;;  %3041 = vmatpush.bf16.msra.mxu0 %v8424_v20  ;;  %v11179_v16 = vld [vmem:[%s12351_s19 + $0x35c] sm:$0xf0]  ;;  %v8485_v26 = vld [vmem:[#allocation11 + $0x678] sm:$0xf0] }
 0x23c   : > { %v8875_v20 = vld [vmem:[%s12351_s19 + $0x180] sm:$0xf]  ;;  %v9100_v24 = vor.u32 %v11179_v16, %v9099_v12  ;;  %v8261_v33 = vld [vmem:[#allocation11 + $0x4b8] sm:$0xf0]  ;;  %v8488_v37 = vor.u32 %v11018_v25, %v8485_v26 }
 0x23d   : > { %3034 = vmatpush.bf16.msrb.mxu3 %v7976_v27  ;;  %3056 = vmatpush.bf16.msra.mxu1 %v8616_v30  ;;  %v9067_v27 = vld [vmem:[%s12351_s19 + $0x300] sm:$0xf]  ;;  %v8876_v28 = vor.u32 %v11123_v21, %v8875_v20  ;;  %v8453_v42 = vld [vmem:[#allocation11 + $0x638] sm:$0xf0] }
 0x23e   : > { %v11171_v30 = vld [vmem:[%s12351_s19 + $0x31c] sm:$0xf0]  ;;  %v10954_v52 = vld [vmem:[#allocation11 + $0x45c] sm:$0xf] }
 0x23f   : > { %3020 = vmatpush.bf16.msrb.mxu2 %v7752_v31  ;;  %3042 = vmatpush.bf16.msra.mxu0 %v8392_v38  ;;  %v10962_v31 = vld [vmem:[#allocation11 + $0x49c] sm:$0xf]  ;;  %v9068_v40 = vor.u32 %v11171_v30, %v9067_v27  ;;  %v9419_v11 = vld [vmem:[%s12351_s19 + $0x5c0] sm:$0xf] }
 0x240   : > { %v11010_v38 = vld [vmem:[#allocation11 + $0x61c] sm:$0xf]  ;;  %v8264_v41 = vor.u32 %v10962_v31, %v8261_v33  ;;  %v11259_v12 = vld [vmem:[%s12351_s19 + $0x5dc] sm:$0xf0] }
 0x241   : > { %3035 = vmatpush.bf16.msrb.mxu3 %v7944_v49  ;;  %3057 = vmatpush.bf16.msra.mxu1 %v8584_v50  ;;  %v2792_v46 = vpop.f32.mrf.mxu0  ;;  %v8844_v49 = vor.u32 %v11115_v35, %v8843_v34  ;;  %v9675_v50 = vld [vmem:[%s12351_s19 + $0x7c0] sm:$0xf]  ;;  %v8456_v56 = vor.u32 %v11010_v38, %v8453_v42 }
 0x242   : > { %v11147_v20 = vld [vmem:[%s12351_s19 + $0x25c] sm:$0xf0] }
 0x243   : > { %3021 = vmatpush.bf16.msrb.mxu2 %v7720_v54  ;;  %3043 = vmatpush.bf16.msra.mxu0 %v8360_v55  ;;  %v11107_v54 = vld [vmem:[%s12351_s19 + $0x11c] sm:$0xf0]  ;;  %v2713_v55 = vadd.f32 %v12417_v22, %v1356_v36  ;;  %v10946_v22 = vld [vmem:[#allocation11 + $0x41c] sm:$0xf] }
 0x244   : > { %3036 = vmatmul.bf16.vlgmr.msrb.gmra.mxu3 %v12375_v43  ;;  %v8296_v43 = vor.u32 %v10970_v17, %v8293_v18  ;;  %v8812_v63 = vor.u32 %v11107_v54, %v8811_v53  ;;  %v9611_v21 = vld [vmem:[%s12351_s19 + $0x740] sm:$0xf] }
 0x245   : > { %6186 = vmatpush.bf16.msra.mxu3 %v9164_v51  ;;  %3058 = vmatpush.bf16.msra.mxu1 %v8552_v6  ;;  %v11323_v51 = vld [vmem:[%s12351_s19 + $0x7dc] sm:$0xf0]  ;;  %v2726_v10 = vadd.f32 %v12412_v0, %v2713_v55 }
 0x246   : > { %v9676_v58 = vor.u32 %v11323_v51, %v9675_v50  ;;  %v11315_v6 = vld [vmem:[%s12351_s19 + $0x79c] sm:$0xf0] }
 0x247   : > { %3022 = vmatpush.bf16.msrb.mxu2 %v7688_v8  ;;  %3044 = vmatpush.bf16.msra.mxu0 %v8328_v9  ;;  %v12460_v61 = vpop.f32.mrf.mxu3  ;;  %v8779_v8 = vld [vmem:[%s12351_s19 + $0xc0] sm:$0xf]  ;;  %v9644_v16 = vor.u32 %v11315_v6, %v9643_v3  ;;  %v2739_v17 = vadd.f32 %v12422_v4, %v2726_v10 }
 0x248   : > { %v11099_v9 = vld [vmem:[%s12351_s19 + $0xdc] sm:$0xf0] }
 0x249   : > { %6187 = vmatpush.bf16.msra.mxu3 %v9132_v7  ;;  %3059 = vmatpush.bf16.msra.mxu1 %v8520_v23  ;;  %v8197_v7 = vld [vmem:[#allocation11 + $0x438] sm:$0xf0]  ;;  %v8780_v19 = vor.u32 %v11099_v9, %v8779_v8  ;;  %v8971_v0 = vld [vmem:[%s12351_s19 + $0x240] sm:$0xf]  ;;  %v9420_v23 = vor.u32 %v11259_v12, %v9419_v11  ;;  %v3067_v8 = vmax.f32 %v12414_v14, 0.0 }
 0x24a   : > { %3023 = vmatmul.bf16.vlgmr.msrb.gmra.mxu2 %v12378_v2  ;;  %v8229_v2 = vld [vmem:[#allocation11 + $0x478] sm:$0xf0]  ;;  %v8200_v18 = vor.u32 %v10946_v22, %v8197_v7  ;;  %v11091_v25 = vld [vmem:[%s12351_s19 + $0x9c] sm:$0xf0] }
 0x24b   : > { %6173 = vmatpush.bf16.msra.mxu2 %v8908_v15  ;;  %3045 = vmatpush.bf16.msra.mxu0 %v8296_v43  ;;  %v8232_v62 = vor.u32 %v10954_v52, %v8229_v2  ;;  %v9004_v15 = vor.u32 %v11155_v60, %v9003_v59  ;;  %v8747_v43 = vld [vmem:[%s12351_s19 + $0x80] sm:$0xf]  ;;  %v1357_v52 = vperm.slane %v12407_v1, 2 }
 0x24c   : > { %v9387_v27 = vld [vmem:[%s12351_s19 + $0x580] sm:$0xf]  ;;  %v8748_v34 = vor.u32 %v11091_v25, %v8747_v43 }
 0x24d   : > { %6188 = vmatpush.bf16.msra.mxu3 %v9100_v24  ;;  %3060 = vmatpush.bf16.msra.mxu1 %v8488_v37  ;;  %v11307_v24 = vld [vmem:[%s12351_s19 + $0x75c] sm:$0xf0]  ;;  %v2816_v26 = vpop.f32.mrf.mxu2  ;;  %v2765_v14 = vadd.f32 %v12427_v29, %v1357_v52 }
 0x24e   : > { %v11251_v4 = vld [vmem:[%s12351_s19 + $0x59c] sm:$0xf0]  ;;  %v9612_v31 = vor.u32 %v11307_v24, %v9611_v21 }
 0x24f   : > { %6174 = vmatpush.bf16.msra.mxu2 %v8876_v28  ;;  %3046 = vmatpush.bf16.msra.mxu0 %v8264_v41  ;;  %v8972_v28 = vor.u32 %v11147_v20, %v8971_v0  ;;  %v8939_v30 = vld [vmem:[%s12351_s19 + $0x200] sm:$0xf]  ;;  %v2831_v33 = vpop.f32.mrf.mxu3  ;;  %v9388_v38 = vor.u32 %v11251_v4, %v9387_v27  ;;  %v12519_v27 = vpack.c.bf16 %v3067_v8, %v3067_v8 }
 0x250   : > { %v11139_v35 = vld [vmem:[%s12351_s19 + $0x21c] sm:$0xf0]  ;;  %v2778_v33 = vadd.f32 %v12424_v5, %v2765_v14 }
 0x251   : > { %6189 = vmatpush.bf16.msra.mxu3 %v9068_v40  ;;  %3061 = vmatpush.bf16.msra.mxu1 %v8456_v56  ;;  %v9579_v36 = vld [vmem:[%s12351_s19 + $0x700] sm:$0xf]  ;;  %v12487_v44 = vpop.f32.mrf.mxu1  ;;  %v8940_v50 = vor.u32 %v11139_v35, %v8939_v30 }
 0x252   : > { %v11299_v37 = vld [vmem:[%s12351_s19 + $0x71c] sm:$0xf0] }
 0x253   : > { %6175 = vmatpush.bf16.msra.mxu2 %v8844_v49  ;;  %3047 = vmatpush.bf16.msra.mxu0 %v8232_v62  ;;  %v8715_v40 = vld [vmem:[%s12351_s19 + $0x40] sm:$0xf]  ;;  %v1358_v49 = vperm.slane %v12407_v1, 3  ;;  %v9580_v2 = vor.u32 %v11299_v37, %v9579_v36 }
 0x254   : > { %3062 = vmatmul.bf16.vlgmr.msra.gmra.mxu1 %v12383_v32  ;;  %v2752_v32 = vadd.f32 %v12420_v39, %v2739_v17  ;;  %v11083_v41 = vld [vmem:[%s12351_s19 + $0x5c] sm:$0xf0] }
 0x255   : > { %6190 = vmatpush.bf16.msra.mxu3 %v9036_v48  ;;  %6212 = vmatpush.bf16.msrb.mxu1 %v9676_v58  ;;  %v9355_v42 = vld [vmem:[%s12351_s19 + $0x540] sm:$0xf]  ;;  %v8716_v53 = vor.u32 %v11083_v41, %v8715_v40  ;;  %v2818_v60 = vpop.f32.mrf.mxu2  ;;  %v2817_v6 = vadd.f32 %v2816_v26, %v1358_v49  ;;  %v2791_v41 = vadd.f32 %v12440_v13, %v2778_v33 }
 0x256   : > { %v11243_v39 = vld [vmem:[%s12351_s19 + $0x55c] sm:$0xf0]  ;;  %v3068_v51 = vmax.f32 %v2752_v32, 0.0 }
 0x257   : > { %6176 = vmatpush.bf16.msra.mxu2 %v8812_v63  ;;  %3048 = vmatpush.bf16.msra.mxu0 %v8200_v18  ;;  %v10187_v45 = vld [vmem:[%s12351_s19 + $0xbc0] sm:$0xf]  ;;  %v9356_v56 = vor.u32 %v11243_v39, %v9355_v42  ;;  %v2842_v11 = vpop.f32.mrf.mxu0  ;;  %v2830_v43 = vadd.f32 %v12460_v61, %v2817_v6 }
 0x258   : > { %v11451_v46 = vld [vmem:[%s12351_s19 + $0xbdc] sm:$0xf0]  ;;  %v12506_v9 = vpack.c.bf16 %v3068_v51, %v3068_v51 }
 0x259   : > { %6191 = vmatpush.bf16.msra.mxu3 %v9004_v15  ;;  %6213 = vmatpush.bf16.msrb.mxu1 %v9644_v16  ;;  %v9547_v54 = vld [vmem:[%s12351_s19 + $0x6c0] sm:$0xf]  ;;  %v10188_v59 = vor.u32 %v11451_v46, %v10187_v45  ;;  %v2857_v0 = vpop.f32.mrf.mxu1  ;;  %v2843_v4 = vadd.f32 %v2842_v11, %v2830_v43 }
 0x25a   : > { %3049 = vmatmul.bf16.vlgmr.msra.gmra.mxu0 %v12387_v57  ;;  %v11291_v55 = vld [vmem:[%s12351_s19 + $0x6dc] sm:$0xf0] }
 0x25b   : > { %6177 = vmatpush.bf16.msra.mxu2 %v8780_v19  ;;  %6199 = vmatpush.bf16.msrb.mxu0 %v9420_v23  ;;  %v8683_v48 = vld [vmem:[%s12351_s19] sm:$0xf]  ;;  %v9548_v10 = vor.u32 %v11291_v55, %v9547_v54  ;;  %v2856_v39 = vadd.f32 %v12487_v44, %v2843_v4 }
 0x25c   : > { %v11075_v57 = vld [vmem:[%s12351_s19 + $0x1c] sm:$0xf0] }
 0x25d   : > { %6192 = vmatpush.bf16.msra.mxu3 %v8972_v28  ;;  %6214 = vmatpush.bf16.msrb.mxu1 %v9612_v31  ;;  %v9323_v58 = vld [vmem:[%s12351_s19 + $0x500] sm:$0xf]  ;;  %v8684_v12 = vor.u32 %v11075_v57, %v8683_v48  ;;  %v3070_v48 = vmax.f32 %v2856_v39, 0.0 }
 0x25e   : > { %v11235_v62 = vld [vmem:[%s12351_s19 + $0x51c] sm:$0xf0] }
 0x25f   : > { %6178 = vmatpush.bf16.msra.mxu2 %v8748_v34  ;;  %6200 = vmatpush.bf16.msrb.mxu0 %v9388_v38  ;;  %v9931_v63 = vld [vmem:[%s12351_s19 + $0x9c0] sm:$0xf]  ;;  %v9324_v15 = vor.u32 %v11235_v62, %v9323_v58  ;;  %v2844_v42 = vpop.f32.mrf.mxu0  ;;  %v12552_v11 = vpack.c.bf16 %v3070_v48, %v3070_v48  ;;  %v8877_v48 = vld [vmem:[%s12351_s19 + $0x1a0] sm:$0xf0] }
 0x260   : > { %v11387_v3 = vld [vmem:[%s12351_s19 + $0x9dc] sm:$0xf0] }
 0x261   : > { %6193 = vmatpush.bf16.msra.mxu3 %v8940_v50  ;;  %v10155_v22 = vld [vmem:[%s12351_s19 + $0xb80] sm:$0xf]  ;;  %6215 = vmatpush.bf16.msrb.mxu1 %v9580_v2  ;;  %v9932_v16 = vor.u32 %v11387_v3, %v9931_v63 }
 0x262   : > { %v11443_v7 = vld [vmem:[%s12351_s19 + $0xb9c] sm:$0xf0] }
 0x263   : > { %6179 = vmatpush.bf16.msra.mxu2 %v8716_v53  ;;  %6201 = vmatpush.bf16.msrb.mxu0 %v9356_v56  ;;  %v9515_v17 = vld [vmem:[%s12351_s19 + $0x680] sm:$0xf]  ;;  %v10156_v24 = vor.u32 %v11443_v7, %v10155_v22  ;;  %v2804_v56 = vadd.f32 %v12432_v47, %v2791_v41  ;;  %v11127_v41 = vld [vmem:[%s12351_s19 + $0x1c4] sm:$0xf] }
 0x264   : > { %v11283_v18 = vld [vmem:[%s12351_s19 + $0x69c] sm:$0xf0]  ;;  %6194 = vmatmul.bf16.vlgmr.msra.gmra.mxu3 %v12506_v9 }
 0x265   : > { %v9291_v19 = vld [vmem:[%s12351_s19 + $0x4c0] sm:$0xf]  ;;  %6238 = vmatpush.bf16.msrb.mxu3 %v10188_v59  ;;  %6216 = vmatpush.bf16.msrb.mxu1 %v9548_v10  ;;  %v9516_v29 = vor.u32 %v11283_v18, %v9515_v17  ;;  %v3069_v10 = vmax.f32 %v2804_v56, 0.0 }
 0x266   : > { %v11227_v20 = vld [vmem:[%s12351_s19 + $0x4dc] sm:$0xf0] }
 0x267   : > { %v9899_v21 = vld [vmem:[%s12351_s19 + $0x980] sm:$0xf]  ;;  %6180 = vmatpush.bf16.msra.mxu2 %v8684_v12  ;;  %6202 = vmatpush.bf16.msrb.mxu0 %v9324_v15  ;;  %v9292_v28 = vor.u32 %v11227_v20, %v9291_v19  ;;  %v12542_v57 = vpop.f32.mrf.mxu3 }
 0x268   : > { %v11379_v23 = vld [vmem:[%s12351_s19 + $0x99c] sm:$0xf0] }
 0x269   : > { %v10123_v25 = vld [vmem:[%s12351_s19 + $0xb40] sm:$0xf]  ;;  %v9900_v30 = vor.u32 %v11379_v23, %v9899_v21  ;;  %6239 = vmatpush.bf16.msrb.mxu3 %v10156_v24  ;;  %6217 = vmatpush.bf16.msrb.mxu1 %v9516_v29  ;;  %v1359_v24 = vperm.slane %v12407_v1, 4 }
 0x26a   : > { %v11435_v26 = vld [vmem:[%s12351_s19 + $0xb5c] sm:$0xf0]  ;;  %6181 = vmatmul.bf16.vlgmr.msra.gmra.mxu2 %v12519_v27 }
 0x26b   : > { %6225 = vmatpush.bf16.msrb.mxu2 %v9932_v16  ;;  %v9483_v32 = vld [vmem:[%s12351_s19 + $0x640] sm:$0xf]  ;;  %v10124_v37 = vor.u32 %v11435_v26, %v10123_v25  ;;  %6203 = vmatpush.bf16.msrb.mxu0 %v9292_v28  ;;  %v12562_v26 = vpack.c.bf16 %v3069_v10, %v3069_v10 }
 0x26c   : > { %v11275_v31 = vld [vmem:[%s12351_s19 + $0x65c] sm:$0xf0] }
 0x26d   : > { %v9259_v61 = vld [vmem:[%s12351_s19 + $0x480] sm:$0xf]  ;;  %v9484_v5 = vor.u32 %v11275_v31, %v9483_v32  ;;  %6240 = vmatpush.bf16.msrb.mxu3 %v10124_v37  ;;  %v2868_v0 = vpop.f32.mrf.mxu2 }
 0x26e   : > { %v11219_v34 = vld [vmem:[%s12351_s19 + $0x49c] sm:$0xf0] }
 0x26f   : > { %v9867_v35 = vld [vmem:[%s12351_s19 + $0x940] sm:$0xf]  ;;  %6226 = vmatpush.bf16.msrb.mxu2 %v9900_v30  ;;  %v9260_v45 = vor.u32 %v11219_v34, %v9259_v61  ;;  %6218 = vmatpush.bf16.msrb.mxu1 %v9484_v5  ;;  %v2883_v43 = vpop.f32.mrf.mxu3  ;;  %v11191_v34 = vld [vmem:[%s12351_s19 + $0x3c4] sm:$0xf] }
 0x270   : > { %v11371_v36 = vld [vmem:[%s12351_s19 + $0x95c] sm:$0xf0]  ;;  %v8813_v43 = vld [vmem:[%s12351_s19 + $0x120] sm:$0xf0] }
 0x271   : > { %v10091_v38 = vld [vmem:[%s12351_s19 + $0xb00] sm:$0xf]  ;;  %v9868_v46 = vor.u32 %v11371_v36, %v9867_v35  ;;  %6204 = vmatpush.bf16.msrb.mxu0 %v9260_v45  ;;  %v2907_v1 = vpop.f32.mrf.mxu1  ;;  %v9165_v35 = vld [vmem:[%s12351_s19 + $0x3e0] sm:$0xf0]  ;;  %v2869_v36 = vadd.f32 %v2868_v0, %v1359_v24 }
 0x272   : > { %v11427_v40 = vld [vmem:[%s12351_s19 + $0xb1c] sm:$0xf0]  ;;  %v8909_v45 = vld [vmem:[%s12351_s19 + $0x1e0] sm:$0xf0] }
 0x273   : > { %v9451_v49 = vld [vmem:[%s12351_s19 + $0x600] sm:$0xf]  ;;  %v10092_v13 = vor.u32 %v11427_v40, %v10091_v38  ;;  %6227 = vmatpush.bf16.msrb.mxu2 %v9868_v46  ;;  %v9168_v46 = vor.u32 %v11191_v34, %v9165_v35  ;;  %v11151_v34 = vld [vmem:[%s12351_s19 + $0x284] sm:$0xf] }
 0x274   : > { %v11267_v50 = vld [vmem:[%s12351_s19 + $0x61c] sm:$0xf0]  ;;  %v9005_v35 = vld [vmem:[%s12351_s19 + $0x2a0] sm:$0xf0] }
 0x275   : > { %v9227_v51 = vld [vmem:[%s12351_s19 + $0x440] sm:$0xf]  ;;  %v9452_v44 = vor.u32 %v11267_v50, %v9451_v49  ;;  %6241 = vmatpush.bf16.msrb.mxu3 %v10092_v13  ;;  %v2870_v39 = vpop.f32.mrf.mxu2 }
 0x276   : > { %v11211_v52 = vld [vmem:[%s12351_s19 + $0x45c] sm:$0xf0]  ;;  %v11255_v39 = vld [vmem:[%s12351_s19 + $0x5c4] sm:$0xf] }
 0x277   : > { %v9835_v2 = vld [vmem:[%s12351_s19 + $0x900] sm:$0xf]  ;;  %v9228_v58 = vor.u32 %v11211_v52, %v9227_v51  ;;  %6219 = vmatpush.bf16.msrb.mxu1 %v9452_v44  ;;  %v11183_v51 = vld [vmem:[%s12351_s19 + $0x384] sm:$0xf]  ;;  %v2894_v13 = vpop.f32.mrf.mxu0 }
 0x278   : > { %v11363_v53 = vld [vmem:[%s12351_s19 + $0x91c] sm:$0xf0]  ;;  %v9133_v52 = vld [vmem:[%s12351_s19 + $0x3a0] sm:$0xf0] }
 0x279   : > { %v10059_v54 = vld [vmem:[%s12351_s19 + $0xac0] sm:$0xf]  ;;  %v9836_v59 = vor.u32 %v11363_v53, %v9835_v2  ;;  %6205 = vmatpush.bf16.msrb.mxu0 %v9228_v58  ;;  %v2882_v2 = vadd.f32 %v12542_v57, %v2869_v36  ;;  %v9136_v58 = vor.u32 %v11183_v51, %v9133_v52  ;;  %v11175_v57 = vld [vmem:[%s12351_s19 + $0x344] sm:$0xf] }
 0x27a   : > { %v11419_v55 = vld [vmem:[%s12351_s19 + $0xadc] sm:$0xf0]  ;;  %6220 = vmatmul.bf16.vlgmr.msrb.gmra.mxu1 %v12552_v11  ;;  %v11087_v52 = vld [vmem:[%s12351_s19 + $0x84] sm:$0xf] }
 0x27b   : > { %v9195_v60 = vld [vmem:[%s12351_s19 + $0x400] sm:$0xf]  ;;  %v10060_v6 = vor.u32 %v11419_v55, %v10059_v54  ;;  %6228 = vmatpush.bf16.msrb.mxu2 %v9836_v59  ;;  %v8912_v54 = vor.u32 %v11127_v41, %v8909_v45  ;;  %v11119_v55 = vld [vmem:[%s12351_s19 + $0x184] sm:$0xf]  ;;  %v2895_v56 = vadd.f32 %v2894_v13, %v2882_v2 }
 0x27c   : > { %v11203_v62 = vld [vmem:[%s12351_s19 + $0x41c] sm:$0xf0]  ;;  %v9421_v45 = vld [vmem:[%s12351_s19 + $0x5e0] sm:$0xf0] }
 0x27d   : > { %v9803_v63 = vld [vmem:[%s12351_s19 + $0x8c0] sm:$0xf]  ;;  %v9196_v12 = vor.u32 %v11203_v62, %v9195_v60  ;;  %6242 = vmatpush.bf16.msrb.mxu3 %v10060_v6  ;;  %v2909_v62 = vpop.f32.mrf.mxu1  ;;  %v8880_v6 = vor.u32 %v11119_v55, %v8877_v48  ;;  %v8749_v2 = vld [vmem:[%s12351_s19 + $0xa0] sm:$0xf0] }
 0x27e   : > { %v11355_v3 = vld [vmem:[%s12351_s19 + $0x8dc] sm:$0xf0]  ;;  %v11143_v13 = vld [vmem:[%s12351_s19 + $0x244] sm:$0xf] }
 0x27f   : > { %v10027_v22 = vld [vmem:[%s12351_s19 + $0xa80] sm:$0xf]  ;;  %v9804_v15 = vor.u32 %v11355_v3, %v9803_v63  ;;  %6206 = vmatpush.bf16.msrb.mxu0 %v9196_v12  ;;  %v9101_v63 = vld [vmem:[%s12351_s19 + $0x360] sm:$0xf0]  ;;  %v2908_v3 = vadd.f32 %v2907_v1, %v2895_v56  ;;  %v2896_v0 = vpop.f32.mrf.mxu0 }
 0x280   : > { %v11411_v7 = vld [vmem:[%s12351_s19 + $0xa9c] sm:$0xf0]  ;;  %v9104_v10 = vor.u32 %v11175_v57, %v9101_v63  ;;  %v8781_v1 = vld [vmem:[%s12351_s19 + $0xe0] sm:$0xf0]  ;;  %v8752_v57 = vor.u32 %v11087_v52, %v8749_v2 }
 0x281   : > { %v10443_v47 = vld [vmem:[%s12351_s19 + $0xdc0] sm:$0xf]  ;;  %v10028_v18 = vor.u32 %v11411_v7, %v10027_v22  ;;  %6229 = vmatpush.bf16.msrb.mxu2 %v9804_v15  ;;  %v11111_v22 = vld [vmem:[%s12351_s19 + $0x144] sm:$0xf] }
 0x282   : > { %v11515_v8 = vld [vmem:[%s12351_s19 + $0xddc] sm:$0xf0]  ;;  %6207 = vmatmul.bf16.vlgmr.msrb.gmra.mxu0 %v12562_v26  ;;  %v8845_v7 = vld [vmem:[%s12351_s19 + $0x160] sm:$0xf0] }
 0x283   : > { %v9771_v16 = vld [vmem:[%s12351_s19 + $0x880] sm:$0xf]  ;;  %v10444_v14 = vor.u32 %v11515_v8, %v10443_v47  ;;  %6243 = vmatpush.bf16.msrb.mxu3 %v10028_v18  ;;  %v3071_v8 = vmax.f32 %v2908_v3, 0.0  ;;  %v8973_v55 = vld [vmem:[%s12351_s19 + $0x260] sm:$0xf0] }
 0x284   : > { %v11347_v17 = vld [vmem:[%s12351_s19 + $0x89c] sm:$0xf0]  ;;  %v9389_v56 = vld [vmem:[%s12351_s19 + $0x5a0] sm:$0xf0] }
 0x285   : > { %v9995_v19 = vld [vmem:[%s12351_s19 + $0xa40] sm:$0xf]  ;;  %v9772_v25 = vor.u32 %v11347_v17, %v9771_v16  ;;  %6251 = vmatpush.bf16.msra.mxu0 %v10444_v14  ;;  %v11167_v16 = vld [vmem:[%s12351_s19 + $0x304] sm:$0xf]  ;;  %v12594_v18 = vpack.c.bf16 %v3071_v8, %v3071_v8 }
 0x286   : > { %v11403_v20 = vld [vmem:[%s12351_s19 + $0xa5c] sm:$0xf0]  ;;  %v9069_v17 = vld [vmem:[%s12351_s19 + $0x320] sm:$0xf0] }
 0x287   : > { %v10411_v21 = vld [vmem:[%s12351_s19 + $0xd80] sm:$0xf]  ;;  %v9996_v28 = vor.u32 %v11403_v20, %v9995_v19  ;;  %6230 = vmatpush.bf16.msrb.mxu2 %v9772_v25  ;;  %v8848_v20 = vor.u32 %v11111_v22, %v8845_v7  ;;  %v9072_v25 = vor.u32 %v11167_v16, %v9069_v17  ;;  %v11079_v63 = vld [vmem:[%s12351_s19 + $0x44] sm:$0xf]  ;;  %v8976_v7 = vor.u32 %v11143_v13, %v8973_v55 }
 0x288   : > { %v11507_v23 = vld [vmem:[%s12351_s19 + $0xd9c] sm:$0xf0]  ;;  %v8717_v3 = vld [vmem:[%s12351_s19 + $0x60] sm:$0xf0] }
 0x289   : > { %v9739_v29 = vld [vmem:[%s12351_s19 + $0x840] sm:$0xf]  ;;  %v10412_v32 = vor.u32 %v11507_v23, %v10411_v21  ;;  %6244 = vmatpush.bf16.msrb.mxu3 %v9996_v28  ;;  %v11103_v21 = vld [vmem:[%s12351_s19 + $0x104] sm:$0xf]  ;;  %v8720_v0 = vor.u32 %v11079_v63, %v8717_v3 }
 0x28a   : > { %v11339_v4 = vld [vmem:[%s12351_s19 + $0x85c] sm:$0xf0]  ;;  %v11159_v28 = vld [vmem:[%s12351_s19 + $0x2c4] sm:$0xf] }
 0x28b   : > { %v9963_v30 = vld [vmem:[%s12351_s19 + $0xa00] sm:$0xf]  ;;  %v9740_v37 = vor.u32 %v11339_v4, %v9739_v29  ;;  %6252 = vmatpush.bf16.msra.mxu0 %v10412_v32  ;;  %v11095_v32 = vld [vmem:[%s12351_s19 + $0xc4] sm:$0xf] }
 0x28c   : > { %v11395_v31 = vld [vmem:[%s12351_s19 + $0xa1c] sm:$0xf0]  ;;  %v8941_v8 = vld [vmem:[%s12351_s19 + $0x220] sm:$0xf0] }
 0x28d   : > { %v10379_v61 = vld [vmem:[%s12351_s19 + $0xd40] sm:$0xf]  ;;  %v9964_v5 = vor.u32 %v11395_v31, %v9963_v30  ;;  %6231 = vmatpush.bf16.msrb.mxu2 %v9740_v37  ;;  %v9037_v30 = vld [vmem:[%s12351_s19 + $0x2e0] sm:$0xf0]  ;;  %v2920_v48 = vpop.f32.mrf.mxu2 }
 0x28e   : > { %v11499_v33 = vld [vmem:[%s12351_s19 + $0xd5c] sm:$0xf0]  ;;  %v10189_v52 = vld [vmem:[%s12351_s19 + $0xbe0] sm:$0xf0] }
 0x28f   : > { %v9707_v38 = vld [vmem:[%s12351_s19 + $0x800] sm:$0xf]  ;;  %v10380_v42 = vor.u32 %v11499_v33, %v10379_v61  ;;  %6245 = vmatpush.bf16.msrb.mxu3 %v9964_v5  ;;  %v8816_v33 = vor.u32 %v11103_v21, %v8813_v43  ;;  %v11071_v21 = vld [vmem:[%s12351_s19 + $0x4] sm:$0xf] }
 0x290   : > { %v11331_v40 = vld [vmem:[%s12351_s19 + $0x81c] sm:$0xf0]  ;;  %v11367_v2 = vld [vmem:[%s12351_s19 + $0x944] sm:$0xf] }
 0x291   : > { %v10347_v49 = vld [vmem:[%s12351_s19 + $0xd00] sm:$0xf]  ;;  %v9708_v53 = vor.u32 %v11331_v40, %v9707_v38  ;;  %6253 = vmatpush.bf16.msra.mxu0 %v10380_v42  ;;  %v12611_v38 = vpop.f32.mrf.mxu3  ;;  %v9040_v40 = vor.u32 %v11159_v28, %v9037_v30  ;;  %v9325_v28 = vld [vmem:[%s12351_s19 + $0x520] sm:$0xf0] }
 0x292   : > { %v11491_v50 = vld [vmem:[%s12351_s19 + $0xd1c] sm:$0xf0]  ;;  %v9869_v13 = vld [vmem:[%s12351_s19 + $0x960] sm:$0xf0] }
 0x293   : > { %v10348_v44 = vor.u32 %v11491_v50, %v10347_v49  ;;  %6290 = vmatpush.bf16.msra.mxu3 %v9168_v46  ;;  %v10315_v59 = vld [vmem:[%s12351_s19 + $0xcc0] sm:$0xf]  ;;  %6232 = vmatpush.bf16.msrb.mxu2 %v9708_v53  ;;  %v8784_v50 = vor.u32 %v11095_v32, %v8781_v1  ;;  %v9008_v53 = vor.u32 %v11151_v34, %v9005_v35  ;;  %v11375_v35 = vld [vmem:[%s12351_s19 + $0x984] sm:$0xf] }
 0x294   : > { %v11483_v60 = vld [vmem:[%s12351_s19 + $0xcdc] sm:$0xf0]  ;;  %v9261_v55 = vld [vmem:[%s12351_s19 + $0x4a0] sm:$0xf0]  ;;  %v9872_v3 = vor.u32 %v11367_v2, %v9869_v13 }
 0x295   : > { %6254 = vmatpush.bf16.msra.mxu0 %v10348_v44  ;;  %v10316_v47 = vor.u32 %v11483_v60, %v10315_v59  ;;  %v10283_v12 = vld [vmem:[%s12351_s19 + $0xc80] sm:$0xf]  ;;  %v11247_v44 = vld [vmem:[%s12351_s19 + $0x584] sm:$0xf]  ;;  %v12627_v60 = vld [vmem:[#allocation13] sm:$0xff]  ;;  %v2922_v30 = vpop.f32.mrf.mxu2 }
 0x296   : > { %v11475_v15 = vld [vmem:[%s12351_s19 + $0xc9c] sm:$0xf0]  ;;  %6233 = vmatmul.bf16.vlgmr.msrb.gmra.mxu2 %v12594_v18  ;;  %v1360_v62 = vperm.slane %v12627_v60, 5  ;;  %v9549_v13 = vld [vmem:[%s12351_s19 + $0x6e0] sm:$0xf0] }
 0x297   : > { %6277 = vmatpush.bf16.msra.mxu2 %v8912_v54  ;;  %6291 = vmatpush.bf16.msra.mxu3 %v9136_v58  ;;  %v10699_v19 = vld [vmem:[%s12351_s19 + $0xfc0] sm:$0xf]  ;;  %v10284_v23 = vor.u32 %v11475_v15, %v10283_v12  ;;  %v9424_v54 = vor.u32 %v11255_v39, %v9421_v45  ;;  %v11239_v12 = vld [vmem:[%s12351_s19 + $0x544] sm:$0xf] }
 0x298   : > { %v11579_v14 = vld [vmem:[%s12351_s19 + $0xfdc] sm:$0xf0]  ;;  %v9357_v15 = vld [vmem:[%s12351_s19 + $0x560] sm:$0xf0] }
 0x299   : > { %6255 = vmatpush.bf16.msra.mxu0 %v10316_v47  ;;  %v10700_v24 = vor.u32 %v11579_v14, %v10699_v19  ;;  %v10251_v29 = vld [vmem:[%s12351_s19 + $0xc40] sm:$0xf]  ;;  %v2935_v22 = vpop.f32.mrf.mxu3  ;;  %v11135_v47 = vld [vmem:[%s12351_s19 + $0x204] sm:$0xf]  ;;  %v2959_v14 = vpop.f32.mrf.mxu1 }
 0x29a   : > { %v11467_v4 = vld [vmem:[%s12351_s19 + $0xc5c] sm:$0xf0]  ;;  %v8944_v43 = vor.u32 %v11135_v47, %v8941_v8  ;;  %v9677_v47 = vld [vmem:[%s12351_s19 + $0x7e0] sm:$0xf0] }
 0x29b   : > { %6278 = vmatpush.bf16.msra.mxu2 %v8880_v6  ;;  %6292 = vmatpush.bf16.msra.mxu3 %v9104_v10  ;;  %v10667_v31 = vld [vmem:[%s12351_s19 + $0xf80] sm:$0xf]  ;;  %v10252_v36 = vor.u32 %v11467_v4, %v10251_v29  ;;  %v9392_v10 = vor.u32 %v11247_v44, %v9389_v56  ;;  %v9933_v29 = vld [vmem:[%s12351_s19 + $0x9e0] sm:$0xf0] }
 0x29c   : > { %6264 = vmatpush.bf16.msra.mxu1 %v10700_v24  ;;  %v11571_v61 = vld [vmem:[%s12351_s19 + $0xf9c] sm:$0xf0]  ;;  %v11383_v24 = vld [vmem:[%s12351_s19 + $0x9c4] sm:$0xf] }
 0x29d   : > { %6256 = vmatpush.bf16.msra.mxu0 %v10284_v23  ;;  %v10668_v37 = vor.u32 %v11571_v61, %v10667_v31  ;;  %v10219_v41 = vld [vmem:[%s12351_s19 + $0xc00] sm:$0xf]  ;;  %v8685_v23 = vld [vmem:[%s12351_s19 + $0x20] sm:$0xf0]  ;;  %v9936_v34 = vor.u32 %v11383_v24, %v9933_v29 }
 0x29e   : > { %v11459_v5 = vld [vmem:[%s12351_s19 + $0xc1c] sm:$0xf0]  ;;  %v11231_v4 = vld [vmem:[%s12351_s19 + $0x504] sm:$0xf]  ;;  %v8688_v61 = vor.u32 %v11071_v21, %v8685_v23 }
 0x29f   : > { %6279 = vmatpush.bf16.msra.mxu2 %v8848_v20  ;;  %6293 = vmatpush.bf16.msra.mxu3 %v9072_v25  ;;  %v10635_v42 = vld [vmem:[%s12351_s19 + $0xf40] sm:$0xf]  ;;  %v10220_v51 = vor.u32 %v11459_v5, %v10219_v41  ;;  %v2921_v20 = vadd.f32 %v2920_v48, %v1360_v62  ;;  %v9360_v25 = vor.u32 %v11239_v12, %v9357_v15  ;;  %v11223_v41 = vld [vmem:[%s12351_s19 + $0x4c4] sm:$0xf] }
 0x2a0   : > { %6265 = vmatpush.bf16.msra.mxu1 %v10668_v37  ;;  %v11563_v46 = vld [vmem:[%s12351_s19 + $0xf5c] sm:$0xf0]  ;;  %v2946_v37 = vpop.f32.mrf.mxu0  ;;  %v9293_v5 = vld [vmem:[%s12351_s19 + $0x4e0] sm:$0xf0] }
 0x2a1   : > { %v10636_v49 = vor.u32 %v11563_v46, %v10635_v42  ;;  %6257 = vmatpush.bf16.msra.mxu0 %v10252_v36  ;;  %v10603_v58 = vld [vmem:[%s12351_s19 + $0xf00] sm:$0xf]  ;;  %v2934_v1 = vadd.f32 %v12611_v38, %v2921_v20  ;;  %v9328_v36 = vor.u32 %v11231_v4, %v9325_v28  ;;  %v2961_v38 = vpop.f32.mrf.mxu1  ;;  %v10157_v62 = vld [vmem:[%s12351_s19 + $0xba0] sm:$0xf0] }
 0x2a2   : > { %v11555_v59 = vld [vmem:[%s12351_s19 + $0xf1c] sm:$0xf0]  ;;  %v11207_v12 = vld [vmem:[%s12351_s19 + $0x444] sm:$0xf] }
 0x2a3   : > { %6280 = vmatpush.bf16.msra.mxu2 %v8816_v33  ;;  %6294 = vmatpush.bf16.msra.mxu3 %v9040_v40  ;;  %v10604_v6 = vor.u32 %v11555_v59, %v10603_v58  ;;  %v10571_v16 = vld [vmem:[%s12351_s19 + $0xec0] sm:$0xf]  ;;  %v9901_v40 = vld [vmem:[%s12351_s19 + $0x9a0] sm:$0xf0]  ;;  %v2947_v42 = vadd.f32 %v2946_v37, %v2934_v1 }
 0x2a4   : > { %6266 = vmatpush.bf16.msra.mxu1 %v10636_v49  ;;  %v11547_v17 = vld [vmem:[%s12351_s19 + $0xedc] sm:$0xf0]  ;;  %v11439_v59 = vld [vmem:[%s12351_s19 + $0xb84] sm:$0xf] }
 0x2a5   : > { %6258 = vmatpush.bf16.msra.mxu0 %v10220_v51  ;;  %v10572_v19 = vor.u32 %v11547_v17, %v10571_v16  ;;  %v10539_v32 = vld [vmem:[%s12351_s19 + $0xe80] sm:$0xf]  ;;  %v2960_v49 = vadd.f32 %v2959_v14, %v2947_v42  ;;  %v11447_v51 = vld [vmem:[%s12351_s19 + $0xbc4] sm:$0xf]  ;;  %v10160_v17 = vor.u32 %v11439_v59, %v10157_v62 }
 0x2a6   : > { %v11539_v31 = vld [vmem:[%s12351_s19 + $0xe9c] sm:$0xf0]  ;;  %v10192_v58 = vor.u32 %v11447_v51, %v10189_v52  ;;  %v9229_v15 = vld [vmem:[%s12351_s19 + $0x460] sm:$0xf0]  ;;  %v1361_v51 = vperm.slane %v12627_v60, 6 }
 0x2a7   : > { %6281 = vmatpush.bf16.msra.mxu2 %v8784_v50  ;;  %6295 = vmatpush.bf16.msra.mxu3 %v9008_v53  ;;  %v10540_v33 = vor.u32 %v11539_v31, %v10539_v32  ;;  %v10507_v39 = vld [vmem:[%s12351_s19 + $0xe40] sm:$0xf]  ;;  %v9904_v50 = vor.u32 %v11375_v35, %v9901_v40  ;;  %v9296_v53 = vor.u32 %v11223_v41, %v9293_v5  ;;  %v3072_v44 = vmax.f32 %v2960_v49, 0.0  ;;  %v11311_v14 = vld [vmem:[%s12351_s19 + $0x784] sm:$0xf]  ;;  %v2985_v30 = vpop.f32.mrf.mxu3 }
 0x2a8   : > { %6267 = vmatpush.bf16.msra.mxu1 %v10604_v6  ;;  %v11531_v45 = vld [vmem:[%s12351_s19 + $0xe5c] sm:$0xf0]  ;;  %v11359_v6 = vld [vmem:[%s12351_s19 + $0x904] sm:$0xf]  ;;  %v2948_v8 = vpop.f32.mrf.mxu0 }
 0x2a9   : > { %6303 = vmatpush.bf16.msrb.mxu0 %v9424_v54  ;;  %v10508_v46 = vor.u32 %v11531_v45, %v10507_v39  ;;  %v11215_v54 = vld [vmem:[%s12351_s19 + $0x484] sm:$0xf]  ;;  %v10475_v56 = vld [vmem:[%s12351_s19 + $0xe00] sm:$0xf]  ;;  %v12664_v63 = vpack.c.bf16 %v3072_v44, %v3072_v44 }
 0x2aa   : > { %v11523_v48 = vld [vmem:[%s12351_s19 + $0xe1c] sm:$0xf0]  ;;  %v9264_v22 = vor.u32 %v11215_v54, %v9261_v55  ;;  %v10125_v21 = vld [vmem:[%s12351_s19 + $0xb60] sm:$0xf0] }
 0x2ab   : > { %6282 = vmatpush.bf16.msra.mxu2 %v8752_v57  ;;  %6296 = vmatpush.bf16.msra.mxu3 %v8976_v7  ;;  %v10476_v57 = vor.u32 %v11523_v48, %v10475_v56  ;;  %v11319_v7 = vld [vmem:[%s12351_s19 + $0x7c4] sm:$0xf] }
 0x2ac   : > { %6268 = vmatpush.bf16.msra.mxu1 %v10572_v19  ;;  %v9680_v16 = vor.u32 %v11319_v7, %v9677_v47  ;;  %6246 = vmatmul.bf16.vlgmr.msrb.gmra.mxu3 %v12664_v63  ;;  %v11431_v19 = vld [vmem:[%s12351_s19 + $0xb44] sm:$0xf] }
 0x2ad   : > { %6304 = vmatpush.bf16.msrb.mxu0 %v9392_v10  ;;  %v9837_v10 = vld [vmem:[%s12351_s19 + $0x920] sm:$0xf0]  ;;  %v10128_v31 = vor.u32 %v11431_v19, %v10125_v21  ;;  %v2972_v42 = vpop.f32.mrf.mxu2  ;;  %v8883_v19 = vld [vmem:[%s12351_s19 + $0x188] sm:$0xf] }
 0x2ae   : > { %v9840_v20 = vor.u32 %v11359_v6, %v9837_v10  ;;  %v11351_v23 = vld [vmem:[%s12351_s19 + $0x8c4] sm:$0xf]  ;;  %v2973_v62 = vadd.f32 %v2972_v42, %v1361_v51  ;;  %v11108_v51 = vld [vmem:[%s12351_s19 + $0x124] sm:$0xf0] }
 0x2af   : > { %6283 = vmatpush.bf16.msra.mxu2 %v8720_v0  ;;  %6297 = vmatpush.bf16.msra.mxu3 %v8944_v43  ;;  %v9645_v0 = vld [vmem:[%s12351_s19 + $0x7a0] sm:$0xf0]  ;;  %v9232_v43 = vor.u32 %v11207_v12, %v9229_v15  ;;  %v2987_v52 = vpop.f32.mrf.mxu3 }
 0x2b0   : > { %6269 = vmatpush.bf16.msra.mxu1 %v10540_v33  ;;  %v9805_v24 = vld [vmem:[%s12351_s19 + $0x8e0] sm:$0xf0] }
 0x2b1   : > { %6305 = vmatpush.bf16.msrb.mxu0 %v9360_v25  ;;  %v9648_v25 = vor.u32 %v11311_v14, %v9645_v0  ;;  %v11199_v29 = vld [vmem:[%s12351_s19 + $0x404] sm:$0xf]  ;;  %v9808_v33 = vor.u32 %v11351_v23, %v9805_v24  ;;  %v3011_v48 = vpop.f32.mrf.mxu1  ;;  %v11124_v14 = vld [vmem:[%s12351_s19 + $0x1a4] sm:$0xf0] }
 0x2b2   : > { %v9197_v4 = vld [vmem:[%s12351_s19 + $0x420] sm:$0xf0] }
 0x2b3   : > { %6284 = vmatpush.bf16.msra.mxu2 %v8688_v61  ;;  %6342 = vmatpush.bf16.msrb.mxu3 %v10192_v58  ;;  %v11303_v28 = vld [vmem:[%s12351_s19 + $0x744] sm:$0xf]  ;;  %v9200_v35 = vor.u32 %v11199_v29, %v9197_v4 }
 0x2b4   : > { %6270 = vmatpush.bf16.msra.mxu1 %v10508_v46  ;;  %v9613_v32 = vld [vmem:[%s12351_s19 + $0x760] sm:$0xf0] }
 0x2b5   : > { %6306 = vmatpush.bf16.msrb.mxu0 %v9328_v36  ;;  %v9616_v61 = vor.u32 %v11303_v28, %v9613_v32  ;;  %v11423_v1 = vld [vmem:[%s12351_s19 + $0xb04] sm:$0xf]  ;;  %v2974_v47 = vpop.f32.mrf.mxu2  ;;  %v8884_v28 = vor.u32 %v11124_v14, %v8883_v19  ;;  %v9171_v32 = vld [vmem:[%s12351_s19 + $0x3c8] sm:$0xf] }
 0x2b6   : > { %6285 = vmatmul.bf16.vlgmr.msra.gmra.mxu2 %v12519_v27  ;;  %v11343_v36 = vld [vmem:[%s12351_s19 + $0x884] sm:$0xf]  ;;  %v11172_v47 = vld [vmem:[%s12351_s19 + $0x324] sm:$0xf0] }
 0x2b7   : > { %6329 = vmatpush.bf16.msrb.mxu2 %v9936_v34  ;;  %6343 = vmatpush.bf16.msrb.mxu3 %v10160_v17  ;;  %v10093_v34 = vld [vmem:[%s12351_s19 + $0xb20] sm:$0xf0]  ;;  %v2986_v17 = vadd.f32 %v2985_v30, %v2973_v62  ;;  %v2998_v0 = vpop.f32.mrf.mxu0  ;;  %v9043_v14 = vld [vmem:[%s12351_s19 + $0x2c8] sm:$0xf] }
 0x2b8   : > { %6271 = vmatpush.bf16.msra.mxu1 %v10476_v57  ;;  %v9773_v37 = vld [vmem:[%s12351_s19 + $0x8a0] sm:$0xf0]  ;;  %v10096_v40 = vor.u32 %v11423_v1, %v10093_v34  ;;  %v8915_v57 = vld [vmem:[%s12351_s19 + $0x1c8] sm:$0xf] }
 0x2b9   : > { %6307 = vmatpush.bf16.msrb.mxu0 %v9296_v53  ;;  %v11295_v41 = vld [vmem:[%s12351_s19 + $0x704] sm:$0xf]  ;;  %v9776_v39 = vor.u32 %v11343_v36, %v9773_v37  ;;  %v2999_v24 = vadd.f32 %v2998_v0, %v2986_v17  ;;  %v3013_v4 = vpop.f32.mrf.mxu1  ;;  %v8851_v1 = vld [vmem:[%s12351_s19 + $0x148] sm:$0xf] }
 0x2ba   : > { %v9581_v5 = vld [vmem:[%s12351_s19 + $0x720] sm:$0xf0]  ;;  %v11116_v34 = vld [vmem:[%s12351_s19 + $0x164] sm:$0xf0] }
 0x2bb   : > { %6330 = vmatpush.bf16.msrb.mxu2 %v9904_v50  ;;  %6344 = vmatpush.bf16.msrb.mxu3 %v10128_v31  ;;  %v11415_v45 = vld [vmem:[%s12351_s19 + $0xac4] sm:$0xf]  ;;  %v9584_v46 = vor.u32 %v11295_v41, %v9581_v5  ;;  %v11196_v31 = vld [vmem:[%s12351_s19 + $0x3e4] sm:$0xf0]  ;;  %v8852_v42 = vor.u32 %v11116_v34, %v8851_v1 }
 0x2bc   : > { %6316 = vmatpush.bf16.msrb.mxu1 %v9680_v16  ;;  %v10061_v38 = vld [vmem:[%s12351_s19 + $0xae0] sm:$0xf0]  ;;  %6298 = vmatmul.bf16.vlgmr.msra.gmra.mxu3 %v12506_v9  ;;  %v9172_v41 = vor.u32 %v11196_v31, %v9171_v32  ;;  %v11164_v0 = vld [vmem:[%s12351_s19 + $0x2e4] sm:$0xf0] }
 0x2bd   : > { %6308 = vmatpush.bf16.msrb.mxu0 %v9264_v22  ;;  %v11335_v49 = vld [vmem:[%s12351_s19 + $0x844] sm:$0xf]  ;;  %v10064_v2 = vor.u32 %v11415_v45, %v10061_v38  ;;  %v9139_v45 = vld [vmem:[%s12351_s19 + $0x388] sm:$0xf] }
 0x2be   : > { %v9741_v50 = vld [vmem:[%s12351_s19 + $0x860] sm:$0xf0]  ;;  %v11188_v38 = vld [vmem:[%s12351_s19 + $0x3a4] sm:$0xf0] }
 0x2bf   : > { %6331 = vmatpush.bf16.msrb.mxu2 %v9872_v3  ;;  %6345 = vmatpush.bf16.msrb.mxu3 %v10096_v40  ;;  %v11287_v53 = vld [vmem:[%s12351_s19 + $0x6c4] sm:$0xf]  ;;  %v9744_v54 = vor.u32 %v11335_v49, %v9741_v50  ;;  %v11132_v3 = vld [vmem:[%s12351_s19 + $0x1e4] sm:$0xf0] }
 0x2c0   : > { %6317 = vmatpush.bf16.msrb.mxu1 %v9648_v25  ;;  %v11407_v55 = vld [vmem:[%s12351_s19 + $0xa84] sm:$0xf]  ;;  %v9552_v56 = vor.u32 %v11287_v53, %v9549_v13  ;;  %v8916_v16 = vor.u32 %v11132_v3, %v8915_v57  ;;  %v8819_v50 = vld [vmem:[%s12351_s19 + $0x108] sm:$0xf]  ;;  %v9140_v53 = vor.u32 %v11188_v38, %v9139_v45 }
 0x2c1   : > { %6309 = vmatpush.bf16.msrb.mxu0 %v9232_v43  ;;  %v10029_v44 = vld [vmem:[%s12351_s19 + $0xaa0] sm:$0xf0]  ;;  %v9011_v32 = vld [vmem:[%s12351_s19 + $0x288] sm:$0xf] }
 0x2c2   : > { %v11327_v58 = vld [vmem:[%s12351_s19 + $0x804] sm:$0xf]  ;;  %v10032_v6 = vor.u32 %v11407_v55, %v10029_v44  ;;  %v9107_v44 = vld [vmem:[%s12351_s19 + $0x348] sm:$0xf] }
 0x2c3   : > { %6332 = vmatpush.bf16.msrb.mxu2 %v9840_v20  ;;  %v9709_v59 = vld [vmem:[%s12351_s19 + $0x820] sm:$0xf0]  ;;  %6346 = vmatpush.bf16.msrb.mxu3 %v10064_v2  ;;  %v3000_v2 = vpop.f32.mrf.mxu0  ;;  %v11156_v31 = vld [vmem:[%s12351_s19 + $0x2a4] sm:$0xf0] }
 0x2c4   : > { %6318 = vmatpush.bf16.msrb.mxu1 %v9616_v61  ;;  %v11279_v22 = vld [vmem:[%s12351_s19 + $0x684] sm:$0xf]  ;;  %v9712_v8 = vor.u32 %v11327_v58, %v9709_v59  ;;  %v3012_v61 = vadd.f32 %v3011_v48, %v2999_v24  ;;  %v8787_v58 = vld [vmem:[%s12351_s19 + $0xc8] sm:$0xf] }
 0x2c5   : > { %6310 = vmatpush.bf16.msrb.mxu0 %v9200_v35  ;;  %v9517_v7 = vld [vmem:[%s12351_s19 + $0x6a0] sm:$0xf0]  ;;  %v11100_v59 = vld [vmem:[%s12351_s19 + $0xe4] sm:$0xf0] }
 0x2c6   : > { %v11399_v10 = vld [vmem:[%s12351_s19 + $0xa44] sm:$0xf]  ;;  %v9520_v15 = vor.u32 %v11279_v22, %v9517_v7  ;;  %v3073_v40 = vmax.f32 %v3012_v61, 0.0  ;;  %v9075_v7 = vld [vmem:[%s12351_s19 + $0x308] sm:$0xf] }
 0x2c7   : > { %6333 = vmatpush.bf16.msrb.mxu2 %v9808_v33  ;;  %v9997_v12 = vld [vmem:[%s12351_s19 + $0xa60] sm:$0xf0]  ;;  %6347 = vmatpush.bf16.msrb.mxu3 %v10032_v6  ;;  %v3037_v62 = vpop.f32.mrf.mxu3  ;;  %v8788_v6 = vor.u32 %v11100_v59, %v8787_v58  ;;  %v11084_v24 = vld [vmem:[%s12351_s19 + $0x64] sm:$0xf0] }
 0x2c8   : > { %6319 = vmatpush.bf16.msrb.mxu1 %v9584_v46  ;;  %v10000_v20 = vor.u32 %v11399_v10, %v9997_v12  ;;  %v11271_v21 = vld [vmem:[%s12351_s19 + $0x644] sm:$0xf]  ;;  %v12725_v46 = vpack.c.bf16 %v3073_v40, %v3073_v40  ;;  %v8755_v10 = vld [vmem:[%s12351_s19 + $0x88] sm:$0xf] }
 0x2c9   : > { %v9485_v23 = vld [vmem:[%s12351_s19 + $0x660] sm:$0xf0]  ;;  %v11092_v12 = vld [vmem:[%s12351_s19 + $0xa4] sm:$0xf0] }
 0x2ca   : > { %v11391_v43 = vld [vmem:[%s12351_s19 + $0xa04] sm:$0xf]  ;;  %v9488_v29 = vor.u32 %v11271_v21, %v9485_v23  ;;  %6259 = vmatmul.bf16.vlgmr.msra.gmra.mxu0 %v12725_v46  ;;  %v8756_v17 = vor.u32 %v11092_v12, %v8755_v10  ;;  %v8723_v23 = vld [vmem:[%s12351_s19 + $0x48] sm:$0xf] }
 0x2cb   : > { %6334 = vmatpush.bf16.msrb.mxu2 %v9776_v39  ;;  %v9965_v25 = vld [vmem:[%s12351_s19 + $0xa20] sm:$0xf0]  ;;  %6348 = vmatpush.bf16.msrb.mxu3 %v10000_v20  ;;  %v11076_v1 = vld [vmem:[%s12351_s19 + $0x24] sm:$0xf0] }
 0x2cc   : > { %6320 = vmatpush.bf16.msrb.mxu1 %v9552_v56  ;;  %v11511_v30 = vld [vmem:[%s12351_s19 + $0xdc4] sm:$0xf]  ;;  %v9968_v35 = vor.u32 %v11391_v43, %v9965_v25  ;;  %v11180_v56 = vld [vmem:[%s12351_s19 + $0x364] sm:$0xf0]  ;;  %v1362_v43 = vperm.slane %v12627_v60, 7 }
 0x2cd   : > { %v10445_v33 = vld [vmem:[%s12351_s19 + $0xde0] sm:$0xf0]  ;;  %v9108_v57 = vor.u32 %v11180_v56, %v9107_v44  ;;  %v3024_v20 = vpop.f32.mrf.mxu2  ;;  %v9939_v60 = vld [vmem:[%s12351_s19 + $0x9c8] sm:$0xf] }
 0x2ce   : > { %v11263_v36 = vld [vmem:[%s12351_s19 + $0x604] sm:$0xf]  ;;  %v10448_v5 = vor.u32 %v11511_v30, %v10445_v33  ;;  %v8691_v33 = vld [vmem:[%s12351_s19 + $0x8] sm:$0xf] }
 0x2cf   : > { %6335 = vmatpush.bf16.msrb.mxu2 %v9744_v54  ;;  %v9453_v37 = vld [vmem:[%s12351_s19 + $0x620] sm:$0xf0]  ;;  %6349 = vmatpush.bf16.msrb.mxu3 %v9968_v35  ;;  %v8820_v54 = vor.u32 %v11108_v51, %v8819_v50  ;;  %v3039_v25 = vpop.f32.mrf.mxu3  ;;  %v11388_v35 = vld [vmem:[%s12351_s19 + $0x9e4] sm:$0xf0] }
 0x2d0   : > { %6321 = vmatpush.bf16.msrb.mxu1 %v9520_v15  ;;  %v11503_v39 = vld [vmem:[%s12351_s19 + $0xd84] sm:$0xf]  ;;  %v9456_v52 = vor.u32 %v11263_v36, %v9453_v37  ;;  %6355 = vmatpush.bf16.msra.mxu0 %v10448_v5  ;;  %v9076_v15 = vor.u32 %v11172_v47, %v9075_v7  ;;  %v3025_v36 = vadd.f32 %v3024_v20, %v1362_v43  ;;  %v8979_v5 = vld [vmem:[%s12351_s19 + $0x248] sm:$0xf] }
 0x2d1   : > { %v10413_v49 = vld [vmem:[%s12351_s19 + $0xda0] sm:$0xf0]  ;;  %v3063_v34 = vpop.f32.mrf.mxu1  ;;  %v9012_v37 = vor.u32 %v11156_v31, %v9011_v32  ;;  %v9940_v45 = vor.u32 %v11388_v35, %v9939_v60  ;;  %v9907_v50 = vld [vmem:[%s12351_s19 + $0x988] sm:$0xf] }
 0x2d2   : > { %v10416_v13 = vor.u32 %v11503_v39, %v10413_v49  ;;  %v11495_v55 = vld [vmem:[%s12351_s19 + $0xd44] sm:$0xf]  ;;  %6350 = vmatmul.bf16.vlgmr.msrb.gmra.mxu3 %v12664_v63  ;;  %v11380_v51 = vld [vmem:[%s12351_s19 + $0x9a4] sm:$0xf0] }
 0x2d3   : > { %6336 = vmatpush.bf16.msrb.mxu2 %v9712_v8  ;;  %6394 = vmatpush.bf16.msra.mxu3 %v9172_v41  ;;  %v10381_v48 = vld [vmem:[%s12351_s19 + $0xd60] sm:$0xf0]  ;;  %v8692_v41 = vor.u32 %v11076_v1, %v8691_v33  ;;  %v11140_v44 = vld [vmem:[%s12351_s19 + $0x224] sm:$0xf0] }
 0x2d4   : > { %6322 = vmatpush.bf16.msrb.mxu1 %v9488_v29  ;;  %6356 = vmatpush.bf16.msra.mxu0 %v10416_v13  ;;  %v10384_v3 = vor.u32 %v11495_v55, %v10381_v48  ;;  %v11487_v22 = vld [vmem:[%s12351_s19 + $0xd04] sm:$0xf]  ;;  %v9044_v29 = vor.u32 %v11164_v0, %v9043_v14  ;;  %v8947_v55 = vld [vmem:[%s12351_s19 + $0x208] sm:$0xf]  ;;  %v9908_v48 = vor.u32 %v11380_v51, %v9907_v50 }
 0x2d5   : > { %v10349_v8 = vld [vmem:[%s12351_s19 + $0xd20] sm:$0xf0]  ;;  %v3026_v39 = vpop.f32.mrf.mxu2  ;;  %v10195_v59 = vld [vmem:[%s12351_s19 + $0xbc8] sm:$0xf]  ;;  %v8948_v47 = vor.u32 %v11140_v44, %v8947_v55 }
 0x2d6   : > { %6337 = vmatmul.bf16.vlgmr.msrb.gmra.mxu2 %v12594_v18  ;;  %v11479_v19 = vld [vmem:[%s12351_s19 + $0xcc4] sm:$0xf]  ;;  %v9875_v10 = vld [vmem:[%s12351_s19 + $0x948] sm:$0xf] }
 0x2d7   : > { %6381 = vmatpush.bf16.msra.mxu2 %v8916_v16  ;;  %6395 = vmatpush.bf16.msra.mxu3 %v9140_v53  ;;  %v10352_v16 = vor.u32 %v11487_v22, %v10349_v8  ;;  %v10317_v21 = vld [vmem:[%s12351_s19 + $0xce0] sm:$0xf0]  ;;  %v3050_v53 = vpop.f32.mrf.mxu0  ;;  %v11260_v22 = vld [vmem:[%s12351_s19 + $0x5e4] sm:$0xf0] }
 0x2d8   : > { %6323 = vmatpush.bf16.msrb.mxu1 %v9456_v52  ;;  %6357 = vmatpush.bf16.msra.mxu0 %v10384_v3  ;;  %v10320_v4 = vor.u32 %v11479_v19, %v10317_v21  ;;  %v11471_v30 = vld [vmem:[%s12351_s19 + $0xc84] sm:$0xf]  ;;  %v3038_v52 = vadd.f32 %v3037_v62, %v3025_v36  ;;  %v11452_v62 = vld [vmem:[%s12351_s19 + $0xbe4] sm:$0xf0] }
 0x2d9   : > { %v10285_v61 = vld [vmem:[%s12351_s19 + $0xca0] sm:$0xf0]  ;;  %v11372_v12 = vld [vmem:[%s12351_s19 + $0x964] sm:$0xf0] }
 0x2da   : > { %6311 = vmatmul.bf16.vlgmr.msrb.gmra.mxu0 %v12562_v26  ;;  %v10288_v40 = vor.u32 %v11471_v30, %v10285_v61  ;;  %v11463_v38 = vld [vmem:[%s12351_s19 + $0xc44] sm:$0xf]  ;;  %v3051_v56 = vadd.f32 %v3050_v53, %v3038_v52  ;;  %v10163_v14 = vld [vmem:[%s12351_s19 + $0xb88] sm:$0xf]  ;;  %v9876_v21 = vor.u32 %v11372_v12, %v9875_v10 }
 0x2db   : > { %6382 = vmatpush.bf16.msra.mxu2 %v8884_v28  ;;  %6396 = vmatpush.bf16.msra.mxu3 %v9108_v57  ;;  %v8724_v28 = vor.u32 %v11084_v24, %v8723_v23  ;;  %v10253_v49 = vld [vmem:[%s12351_s19 + $0xc60] sm:$0xf0]  ;;  %v3065_v57 = vpop.f32.mrf.mxu1  ;;  %v11444_v0 = vld [vmem:[%s12351_s19 + $0xba4] sm:$0xf0] }
 0x2dc   : > { %6358 = vmatpush.bf16.msra.mxu0 %v10352_v16  ;;  %v10256_v13 = vor.u32 %v11463_v38, %v10253_v49  ;;  %v10221_v58 = vld [vmem:[%s12351_s19 + $0xc20] sm:$0xf0]  ;;  %v3064_v7 = vadd.f32 %v3063_v34, %v3051_v56  ;;  %v10196_v16 = vor.u32 %v11452_v62, %v10195_v59  ;;  %v9395_v24 = vld [vmem:[%s12351_s19 + $0x588] sm:$0xf]  ;;  %v10164_v32 = vor.u32 %v11444_v0, %v10163_v14 }
 0x2dd   : > { %v11575_v3 = vld [vmem:[%s12351_s19 + $0xfc4] sm:$0xf]  ;;  %v11252_v43 = vld [vmem:[%s12351_s19 + $0x5a4] sm:$0xf0] }
 0x2de   : > { %v10701_v8 = vld [vmem:[%s12351_s19 + $0xfe0] sm:$0xf0]  ;;  %v9396_v31 = vor.u32 %v11252_v43, %v9395_v24  ;;  %v10131_v33 = vld [vmem:[%s12351_s19 + $0xb48] sm:$0xf] }
 0x2df   : > { %6383 = vmatpush.bf16.msra.mxu2 %v8852_v42  ;;  %6397 = vmatpush.bf16.msra.mxu3 %v9076_v15  ;;  %v11148_v42 = vld [vmem:[%s12351_s19 + $0x264] sm:$0xf0]  ;;  %v10704_v20 = vor.u32 %v11575_v3, %v10701_v8  ;;  %v11567_v23 = vld [vmem:[%s12351_s19 + $0xf84] sm:$0xf]  ;;  %v3052_v30 = vpop.f32.mrf.mxu0 }
 0x2e0   : > { %6359 = vmatpush.bf16.msra.mxu0 %v10320_v4  ;;  %v8980_v2 = vor.u32 %v11148_v42, %v8979_v5  ;;  %v9843_v4 = vld [vmem:[%s12351_s19 + $0x908] sm:$0xf]  ;;  %v11559_v61 = vld [vmem:[%s12351_s19 + $0xf44] sm:$0xf] }
 0x2e1   : > { %v11436_v1 = vld [vmem:[%s12351_s19 + $0xb64] sm:$0xf0]  ;;  %v10573_v8 = vld [vmem:[%s12351_s19 + $0xee0] sm:$0xf0] }
 0x2e2   : > { %v9363_v35 = vld [vmem:[%s12351_s19 + $0x548] sm:$0xf]  ;;  %v10132_v42 = vor.u32 %v11436_v1, %v10131_v33 }
 0x2e3   : > { %6384 = vmatpush.bf16.msra.mxu2 %v8820_v54  ;;  %6398 = vmatpush.bf16.msra.mxu3 %v9044_v29  ;;  %v11455_v54 = vld [vmem:[%s12351_s19 + $0xc04] sm:$0xf]  ;;  %v11244_v36 = vld [vmem:[%s12351_s19 + $0x564] sm:$0xf0] }
 0x2e4   : > { %6360 = vmatpush.bf16.msra.mxu0 %v10288_v40  ;;  %v10224_v15 = vor.u32 %v11455_v54, %v10221_v58  ;;  %v10669_v29 = vld [vmem:[%s12351_s19 + $0xfa0] sm:$0xf0]  ;;  %v11356_v5 = vld [vmem:[%s12351_s19 + $0x8e4] sm:$0xf0] }
 0x2e5   : > { %v10672_v34 = vor.u32 %v11567_v23, %v10669_v29  ;;  %v10637_v40 = vld [vmem:[%s12351_s19 + $0xf60] sm:$0xf0]  ;;  %v10099_v49 = vld [vmem:[%s12351_s19 + $0xb08] sm:$0xf] }
 0x2e6   : > { %v11428_v50 = vld [vmem:[%s12351_s19 + $0xb24] sm:$0xf0]  ;;  %v10640_v51 = vor.u32 %v11559_v61, %v10637_v40  ;;  %v10605_v54 = vld [vmem:[%s12351_s19 + $0xf20] sm:$0xf0]  ;;  %v8917_v61 = vld [vmem:[%s12351_s19 + $0x1e8] sm:$0xf0] }
 0x2e7   : > { %6385 = vmatpush.bf16.msra.mxu2 %v8788_v6  ;;  %6399 = vmatpush.bf16.msra.mxu3 %v9012_v37  ;;  %v9427_v6 = vld [vmem:[%s12351_s19 + $0x5c8] sm:$0xf]  ;;  %v6195_v39 = vpop.f32.mrf.mxu3  ;;  %v10100_v56 = vor.u32 %v11428_v50, %v10099_v49  ;;  %v11535_v23 = vld [vmem:[%s12351_s19 + $0xe84] sm:$0xf] }
 0x2e8   : > { %6361 = vmatpush.bf16.msra.mxu0 %v10256_v13  ;;  %v9428_v19 = vor.u32 %v11260_v22, %v9427_v6  ;;  %v3595_v37 = vld [vmem:[%s12798_s21] sm:$0xff] }
 0x2e9   : > { %v3597_v38 = vperm.slane %v3595_v37, 0  ;;  %v9331_v53 = vld [vmem:[%s12351_s19 + $0x508] sm:$0xf]  ;;  %v11543_v6 = vld [vmem:[%s12351_s19 + $0xec4] sm:$0xf] }
 0x2ea   : > { %v11236_v13 = vld [vmem:[%s12351_s19 + $0x524] sm:$0xf0]  ;;  %v10541_v29 = vld [vmem:[%s12351_s19 + $0xea0] sm:$0xf0] }
 0x2eb   : > { %6386 = vmatpush.bf16.msra.mxu2 %v8756_v17  ;;  %6400 = vmatpush.bf16.msra.mxu3 %v8980_v2  ;;  %v3074_v17 = vmax.f32 %v3064_v7, 0.0  ;;  %v11551_v2 = vld [vmem:[%s12351_s19 + $0xf04] sm:$0xf]  ;;  %v9779_v55 = vld [vmem:[%s12351_s19 + $0x888] sm:$0xf] }
 0x2ec   : > { %6362 = vmatpush.bf16.msra.mxu0 %v10224_v15  ;;  %v11348_v44 = vld [vmem:[%s12351_s19 + $0x8a4] sm:$0xf0]  ;;  %v10608_v57 = vor.u32 %v11551_v2, %v10605_v54 }
 0x2ed   : > { %v12785_v25 = vpack.c.bf16 %v3074_v17, %v3074_v17  ;;  %v10067_v58 = vld [vmem:[%s12351_s19 + $0xac8] sm:$0xf]  ;;  %v6182_v62 = vpop.f32.mrf.mxu2  ;;  %v9780_v3 = vor.u32 %v11348_v44, %v9779_v55 }
 0x2ee   : > { %v11420_v59 = vld [vmem:[%s12351_s19 + $0xae4] sm:$0xf0] }
 0x2ef   : > { %6387 = vmatpush.bf16.msra.mxu2 %v8724_v28  ;;  %6401 = vmatpush.bf16.msra.mxu3 %v8948_v47  ;;  %v11364_v28 = vld [vmem:[%s12351_s19 + $0x924] sm:$0xf0]  ;;  %v6183_v47 = vadd.f32 %v6182_v62, %v3597_v38  ;;  %v10068_v15 = vor.u32 %v11420_v59, %v10067_v58  ;;  %v8885_v38 = vld [vmem:[%s12351_s19 + $0x1a8] sm:$0xf0] }
 0x2f0   : > { %6272 = vmatmul.bf16.vlgmr.msra.gmra.mxu1 %v12785_v25  ;;  %6407 = vmatpush.bf16.msrb.mxu0 %v9428_v19  ;;  %v9844_v60 = vor.u32 %v11364_v28, %v9843_v4  ;;  %v9299_v22 = vld [vmem:[%s12351_s19 + $0x4c8] sm:$0xf] }
 0x2f1   : > { %6368 = vmatpush.bf16.msra.mxu1 %v10704_v20  ;;  %6363 = vmatmul.bf16.vlgmr.msra.gmra.mxu0 %v12725_v46  ;;  %v11228_v7 = vld [vmem:[%s12351_s19 + $0x4e4] sm:$0xf0]  ;;  %v6196_v19 = vadd.f32 %v6195_v39, %v6183_v47  ;;  %v10576_v20 = vor.u32 %v11543_v6, %v10573_v8  ;;  %v8853_v47 = vld [vmem:[%s12351_s19 + $0x168] sm:$0xf0] }
 0x2f2   : > { %6402 = vmatmul.bf16.vlgmr.msra.gmra.mxu3 %v12506_v9  ;;  %v9747_v10 = vld [vmem:[%s12351_s19 + $0x848] sm:$0xf]  ;;  %v9300_v17 = vor.u32 %v11228_v7, %v9299_v22  ;;  %v11112_v7 = vld [vmem:[%s12351_s19 + $0x14c] sm:$0xf] }
 0x2f3   : > { %6388 = vmatpush.bf16.msra.mxu2 %v8692_v41  ;;  %6446 = vmatpush.bf16.msrb.mxu3 %v10196_v16  ;;  %v9811_v41 = vld [vmem:[%s12351_s19 + $0x8c8] sm:$0xf]  ;;  %v6197_v16 = vpop.f32.mrf.mxu3 }
 0x2f4   : > { %6408 = vmatpush.bf16.msrb.mxu0 %v9396_v31  ;;  %v9812_v52 = vor.u32 %v11356_v5, %v9811_v41  ;;  %v11340_v12 = vld [vmem:[%s12351_s19 + $0x864] sm:$0xf0]  ;;  %v11128_v31 = vld [vmem:[%s12351_s19 + $0x1cc] sm:$0xf]  ;;  %v11527_v5 = vld [vmem:[%s12351_s19 + $0xe44] sm:$0xf] }
 0x2f5   : > { %6369 = vmatpush.bf16.msra.mxu1 %v10672_v34  ;;  %v10035_v14 = vld [vmem:[%s12351_s19 + $0xa88] sm:$0xf]  ;;  %v8920_v41 = vor.u32 %v11128_v31, %v8917_v61  ;;  %v9109_v31 = vld [vmem:[%s12351_s19 + $0x368] sm:$0xf0] }
 0x2f6   : > { %6389 = vmatmul.bf16.vlgmr.msra.gmra.mxu2 %v12519_v27  ;;  %v11412_v0 = vld [vmem:[%s12351_s19 + $0xaa4] sm:$0xf0] }
 0x2f7   : > { %6433 = vmatpush.bf16.msrb.mxu2 %v9940_v45  ;;  %6447 = vmatpush.bf16.msrb.mxu3 %v10164_v32  ;;  %v9364_v45 = vor.u32 %v11244_v36, %v9363_v35  ;;  %v9267_v24 = vld [vmem:[%s12351_s19 + $0x488] sm:$0xf]  ;;  %v6221_v30 = vpop.f32.mrf.mxu1  ;;  %v10036_v32 = vor.u32 %v11412_v0, %v10035_v14  ;;  %v10544_v35 = vor.u32 %v11535_v23, %v10541_v29  ;;  %v8821_v29 = vld [vmem:[%s12351_s19 + $0x128] sm:$0xf0] }
 0x2f8   : > { %v11220_v43 = vld [vmem:[%s12351_s19 + $0x4a4] sm:$0xf0]  ;;  %v8856_v0 = vor.u32 %v11112_v7, %v8853_v47  ;;  %v11152_v47 = vld [vmem:[%s12351_s19 + $0x28c] sm:$0xf] }
 0x2f9   : > { %6409 = vmatpush.bf16.msrb.mxu0 %v9364_v45  ;;  %6370 = vmatpush.bf16.msra.mxu1 %v10640_v51  ;;  %v9715_v4 = vld [vmem:[%s12351_s19 + $0x808] sm:$0xf]  ;;  %v9268_v33 = vor.u32 %v11220_v43, %v9267_v24  ;;  %v11120_v45 = vld [vmem:[%s12351_s19 + $0x18c] sm:$0xf]  ;;  %v11519_v51 = vld [vmem:[%s12351_s19 + $0xe04] sm:$0xf] }
 0x2fa   : > { %v11332_v28 = vld [vmem:[%s12351_s19 + $0x824] sm:$0xf0]  ;;  %v8888_v58 = vor.u32 %v11120_v45, %v8885_v38  ;;  %v11104_v43 = vld [vmem:[%s12351_s19 + $0x10c] sm:$0xf] }
 0x2fb   : > { %6434 = vmatpush.bf16.msrb.mxu2 %v9908_v48  ;;  %6448 = vmatpush.bf16.msrb.mxu3 %v10132_v42  ;;  %v9332_v48 = vor.u32 %v11236_v13, %v9331_v53  ;;  %v10003_v1 = vld [vmem:[%s12351_s19 + $0xa48] sm:$0xf]  ;;  %v9716_v36 = vor.u32 %v11332_v28, %v9715_v4  ;;  %v10509_v42 = vld [vmem:[%s12351_s19 + $0xe60] sm:$0xf0] }
 0x2fc   : > { %v11404_v34 = vld [vmem:[%s12351_s19 + $0xa64] sm:$0xf0]  ;;  %v10512_v55 = vor.u32 %v11527_v5, %v10509_v42  ;;  %v11168_v5 = vld [vmem:[%s12351_s19 + $0x30c] sm:$0xf] }
 0x2fd   : > { %6410 = vmatpush.bf16.msrb.mxu0 %v9332_v48  ;;  %6371 = vmatpush.bf16.msra.mxu1 %v10608_v57  ;;  %v9235_v37 = vld [vmem:[%s12351_s19 + $0x448] sm:$0xf]  ;;  %v10004_v39 = vor.u32 %v11404_v34, %v10003_v1  ;;  %v9173_v48 = vld [vmem:[%s12351_s19 + $0x3e8] sm:$0xf0] }
 0x2fe   : > { %v11212_v40 = vld [vmem:[%s12351_s19 + $0x464] sm:$0xf0]  ;;  %v9077_v42 = vld [vmem:[%s12351_s19 + $0x328] sm:$0xf0] }
 0x2ff   : > { %6435 = vmatpush.bf16.msrb.mxu2 %v9876_v21  ;;  %6449 = vmatpush.bf16.msrb.mxu3 %v10100_v56  ;;  %v9748_v21 = vor.u32 %v11340_v12, %v9747_v10  ;;  %v6208_v49 = vpop.f32.mrf.mxu0  ;;  %v9236_v50 = vor.u32 %v11212_v40, %v9235_v37  ;;  %v9203_v2 = vld [vmem:[%s12351_s19 + $0x408] sm:$0xf]  ;;  %v11192_v56 = vld [vmem:[%s12351_s19 + $0x3cc] sm:$0xf] }
 0x300   : > { %6324 = vmatmul.bf16.vlgmr.msrb.gmra.mxu1 %v12552_v11  ;;  %v9971_v53 = vld [vmem:[%s12351_s19 + $0xa08] sm:$0xf]  ;;  %v6209_v54 = vadd.f32 %v6208_v49, %v6196_v19  ;;  %v9176_v12 = vor.u32 %v11192_v56, %v9173_v48  ;;  %v9141_v19 = vld [vmem:[%s12351_s19 + $0x3a8] sm:$0xf0] }
 0x301   : > { %6411 = vmatpush.bf16.msrb.mxu0 %v9300_v17  ;;  %6372 = vmatpush.bf16.msra.mxu1 %v10576_v20  ;;  %v11396_v13 = vld [vmem:[%s12351_s19 + $0xa24] sm:$0xf0]  ;;  %v11184_v17 = vld [vmem:[%s12351_s19 + $0x38c] sm:$0xf] }
 0x302   : > { %v11204_v44 = vld [vmem:[%s12351_s19 + $0x424] sm:$0xf0]  ;;  %v9972_v6 = vor.u32 %v11396_v13, %v9971_v53  ;;  %v12855_v8 = vadd.f32 %v6221_v30, %v6209_v54  ;;  %v9144_v28 = vor.u32 %v11184_v17, %v9141_v19  ;;  %v8789_v37 = vld [vmem:[%s12351_s19 + $0xe8] sm:$0xf0]  ;;  %v9080_v53 = vor.u32 %v11168_v5, %v9077_v42 }
 0x303   : > { %6436 = vmatpush.bf16.msrb.mxu2 %v9844_v60  ;;  %6450 = vmatpush.bf16.msrb.mxu3 %v10068_v15  ;;  %v6184_v60 = vpop.f32.mrf.mxu2  ;;  %v9683_v59 = vld [vmem:[%s12351_s19 + $0x7c8] sm:$0xf]  ;;  %v9204_v10 = vor.u32 %v11204_v44, %v9203_v2  ;;  %v8757_v2 = vld [vmem:[%s12351_s19 + $0xa8] sm:$0xf0] }
 0x304   : > { %v10451_v62 = vld [vmem:[%s12351_s19 + $0xdc8] sm:$0xf]  ;;  %v11160_v54 = vld [vmem:[%s12351_s19 + $0x2cc] sm:$0xf] }
 0x305   : > { %6412 = vmatpush.bf16.msrb.mxu0 %v9268_v33  ;;  %6373 = vmatpush.bf16.msra.mxu1 %v10544_v35  ;;  %v11516_v57 = vld [vmem:[%s12351_s19 + $0xde4] sm:$0xf0]  ;;  %v8824_v33 = vor.u32 %v11104_v43, %v8821_v29  ;;  %v9941_v43 = vld [vmem:[%s12351_s19 + $0x9e8] sm:$0xf0] }
 0x306   : > { %v11324_v22 = vld [vmem:[%s12351_s19 + $0x7e4] sm:$0xf0]  ;;  %v10452_v16 = vor.u32 %v11516_v57, %v10451_v62  ;;  %v11080_v57 = vld [vmem:[%s12351_s19 + $0x4c] sm:$0xf] }
 0x307   : > { %6437 = vmatpush.bf16.msrb.mxu2 %v9812_v52  ;;  %6451 = vmatpush.bf16.msrb.mxu3 %v10036_v32  ;;  %v10477_v52 = vld [vmem:[%s12351_s19 + $0xe20] sm:$0xf0]  ;;  %v9684_v14 = vor.u32 %v11324_v22, %v9683_v59  ;;  %v9651_v20 = vld [vmem:[%s12351_s19 + $0x788] sm:$0xf]  ;;  %v6210_v4 = vpop.f32.mrf.mxu0  ;;  %v11176_v32 = vld [vmem:[%s12351_s19 + $0x34c] sm:$0xf] }
 0x308   : > { %v10480_v15 = vor.u32 %v11519_v51, %v10477_v52  ;;  %v11508_v23 = vld [vmem:[%s12351_s19 + $0xda4] sm:$0xf0]  ;;  %v9112_v40 = vor.u32 %v11176_v32, %v9109_v31  ;;  %v11088_v52 = vld [vmem:[%s12351_s19 + $0x8c] sm:$0xf] }
 0x309   : > { %6413 = vmatpush.bf16.msrb.mxu0 %v9236_v50  ;;  %6374 = vmatpush.bf16.msra.mxu1 %v10512_v55  ;;  %v11316_v24 = vld [vmem:[%s12351_s19 + $0x7a4] sm:$0xf0]  ;;  %v9045_v55 = vld [vmem:[%s12351_s19 + $0x2e8] sm:$0xf0]  ;;  %v8760_v56 = vor.u32 %v11088_v52, %v8757_v2 }
 0x30a   : > { %v9652_v61 = vor.u32 %v11316_v24, %v9651_v20  ;;  %v9619_v1 = vld [vmem:[%s12351_s19 + $0x748] sm:$0xf]  ;;  %v11072_v20 = vld [vmem:[%s12351_s19 + $0xc] sm:$0xf] }
 0x30b   : > { %6438 = vmatpush.bf16.msrb.mxu2 %v9780_v3  ;;  %v6223_v3 = vpop.f32.mrf.mxu1  ;;  %6452 = vmatpush.bf16.msrb.mxu3 %v10004_v39  ;;  %v10387_v34 = vld [vmem:[%s12351_s19 + $0xd48] sm:$0xf]  ;;  %v11384_v24 = vld [vmem:[%s12351_s19 + $0x9cc] sm:$0xf] }
 0x30c   : > { %v11500_v60 = vld [vmem:[%s12351_s19 + $0xd64] sm:$0xf0]  ;;  %v8725_v3 = vld [vmem:[%s12351_s19 + $0x68] sm:$0xf0] }
 0x30d   : > { %6414 = vmatpush.bf16.msrb.mxu0 %v9204_v10  ;;  %6375 = vmatpush.bf16.msra.mxu1 %v10480_v15  ;;  %v11308_v35 = vld [vmem:[%s12351_s19 + $0x764] sm:$0xf0]  ;;  %v9013_v10 = vld [vmem:[%s12351_s19 + $0x2a8] sm:$0xf0] }
 0x30e   : > { %v9620_v39 = vor.u32 %v11308_v35, %v9619_v1  ;;  %v9587_v38 = vld [vmem:[%s12351_s19 + $0x708] sm:$0xf]  ;;  %v11144_v29 = vld [vmem:[%s12351_s19 + $0x24c] sm:$0xf] }
 0x30f   : > { %6439 = vmatpush.bf16.msrb.mxu2 %v9748_v21  ;;  %v10419_v21 = vld [vmem:[%s12351_s19 + $0xd88] sm:$0xf]  ;;  %6453 = vmatpush.bf16.msrb.mxu3 %v9972_v6  ;;  %v9048_v6 = vor.u32 %v11160_v54, %v9045_v55  ;;  %v8981_v4 = vld [vmem:[%s12351_s19 + $0x268] sm:$0xf0] }
 0x310   : > { %v10420_v30 = vor.u32 %v11508_v23, %v10419_v21  ;;  %6415 = vmatmul.bf16.vlgmr.msrb.gmra.mxu0 %v12562_v26  ;;  %6376 = vmatmul.bf16.vlgmr.msra.gmra.mxu1 %v12785_v25  ;;  %v10355_v49 = vld [vmem:[%s12351_s19 + $0xd08] sm:$0xf]  ;;  %v8693_v21 = vld [vmem:[%s12351_s19 + $0x28] sm:$0xf0]  ;;  %v9016_v23 = vor.u32 %v11152_v47, %v9013_v10 }
 0x311   : > { %6459 = vmatpush.bf16.msra.mxu0 %v10452_v16  ;;  %6420 = vmatpush.bf16.msrb.mxu1 %v9684_v14  ;;  %v11492_v50 = vld [vmem:[%s12351_s19 + $0xd24] sm:$0xf0]  ;;  %v8728_v16 = vor.u32 %v11080_v57, %v8725_v3  ;;  %v9909_v35 = vld [vmem:[%s12351_s19 + $0x9a8] sm:$0xf0] }
 0x312   : > { %6454 = vmatmul.bf16.vlgmr.msrb.gmra.mxu3 %v12664_v63  ;;  %v11300_v51 = vld [vmem:[%s12351_s19 + $0x724] sm:$0xf0]  ;;  %v10356_v13 = vor.u32 %v11492_v50, %v10355_v49  ;;  %v11136_v42 = vld [vmem:[%s12351_s19 + $0x20c] sm:$0xf] }
 0x313   : > { %6440 = vmatpush.bf16.msrb.mxu2 %v9716_v36  ;;  %6498 = vmatpush.bf16.msra.mxu3 %v9176_v12  ;;  %v11096_v36 = vld [vmem:[%s12351_s19 + $0xcc] sm:$0xf]  ;;  %v9588_v44 = vor.u32 %v11300_v51, %v9587_v38  ;;  %v9555_v48 = vld [vmem:[%s12351_s19 + $0x6c8] sm:$0xf] }
 0x314   : > { %v8792_v45 = vor.u32 %v11096_v36, %v8789_v37  ;;  %v11484_v59 = vld [vmem:[%s12351_s19 + $0xce4] sm:$0xf0]  ;;  %v11448_v49 = vld [vmem:[%s12351_s19 + $0xbcc] sm:$0xf] }
 0x315   : > { %6460 = vmatpush.bf16.msra.mxu0 %v10420_v30  ;;  %6421 = vmatpush.bf16.msrb.mxu1 %v9652_v61  ;;  %v11292_v62 = vld [vmem:[%s12351_s19 + $0x6e4] sm:$0xf0]  ;;  %v8696_v30 = vor.u32 %v11072_v20, %v8693_v21  ;;  %v9944_v61 = vor.u32 %v11384_v24, %v9941_v43  ;;  %v10197_v50 = vld [vmem:[%s12351_s19 + $0xbe8] sm:$0xf0] }
 0x316   : > { %6441 = vmatmul.bf16.vlgmr.msrb.gmra.mxu2 %v12594_v18  ;;  %v9556_v15 = vor.u32 %v11292_v62, %v9555_v48  ;;  %v9523_v17 = vld [vmem:[%s12351_s19 + $0x688] sm:$0xf]  ;;  %v11256_v2 = vld [vmem:[%s12351_s19 + $0x5cc] sm:$0xf]  ;;  %v10200_v48 = vor.u32 %v11448_v49, %v10197_v50 }
 0x317   : > { %6485 = vmatpush.bf16.msra.mxu2 %v8920_v41  ;;  %6499 = vmatpush.bf16.msra.mxu3 %v9144_v28  ;;  %v10388_v41 = vor.u32 %v11500_v60, %v10387_v34  ;;  %v10291_v19 = vld [vmem:[%s12351_s19 + $0xc88] sm:$0xf]  ;;  %v8984_v34 = vor.u32 %v11144_v29, %v8981_v4  ;;  %v11376_v60 = vld [vmem:[%s12351_s19 + $0x98c] sm:$0xf] }
 0x318   : > { %v11476_v14 = vld [vmem:[%s12351_s19 + $0xca4] sm:$0xf0]  ;;  %v9912_v51 = vor.u32 %v11376_v60, %v9909_v35  ;;  %v11368_v55 = vld [vmem:[%s12351_s19 + $0x94c] sm:$0xf] }
 0x319   : > { %6461 = vmatpush.bf16.msra.mxu0 %v10388_v41  ;;  %6422 = vmatpush.bf16.msrb.mxu1 %v9620_v39  ;;  %v6234_v22 = vpop.f32.mrf.mxu2  ;;  %v10259_v32 = vld [vmem:[%s12351_s19 + $0xc48] sm:$0xf]  ;;  %v8949_v39 = vld [vmem:[%s12351_s19 + $0x228] sm:$0xf0] }
 0x31a   : > { %v12896_v12 = vadd.f32 %v6234_v22, %v12855_v8  ;;  %v10292_v8 = vor.u32 %v11476_v14, %v10291_v19  ;;  %v11468_v31 = vld [vmem:[%s12351_s19 + $0xc64] sm:$0xf0]  ;;  %v11440_v62 = vld [vmem:[%s12351_s19 + $0xb8c] sm:$0xf] }
 0x31b   : > { %6486 = vmatpush.bf16.msra.mxu2 %v8888_v58  ;;  %6500 = vmatpush.bf16.msra.mxu3 %v9112_v40  ;;  %v10323_v58 = vld [vmem:[%s12351_s19 + $0xcc8] sm:$0xf]  ;;  %v10260_v37 = vor.u32 %v11468_v31, %v10259_v32  ;;  %v10165_v57 = vld [vmem:[%s12351_s19 + $0xba8] sm:$0xf0] }
 0x31c   : > { %v10324_v7 = vor.u32 %v11484_v59, %v10323_v58  ;;  %v11276_v1 = vld [vmem:[%s12351_s19 + $0x664] sm:$0xf0]  ;;  %v9397_v47 = vld [vmem:[%s12351_s19 + $0x5a8] sm:$0xf0] }
 0x31d   : > { %6462 = vmatpush.bf16.msra.mxu0 %v10356_v13  ;;  %6423 = vmatpush.bf16.msrb.mxu1 %v9588_v44  ;;  %v9459_v40 = vld [vmem:[%s12351_s19 + $0x608] sm:$0xf]  ;;  %v8952_v13 = vor.u32 %v11136_v42, %v8949_v39  ;;  %v9877_v44 = vld [vmem:[%s12351_s19 + $0x968] sm:$0xf0] }
 0x31e   : > { %v11268_v41 = vld [vmem:[%s12351_s19 + $0x624] sm:$0xf0]  ;;  %v11432_v14 = vld [vmem:[%s12351_s19 + $0xb4c] sm:$0xf] }
 0x31f   : > { %6487 = vmatpush.bf16.msra.mxu2 %v8856_v0  ;;  %6501 = vmatpush.bf16.msra.mxu3 %v9080_v53  ;;  %v11284_v0 = vld [vmem:[%s12351_s19 + $0x6a4] sm:$0xf0]  ;;  %v9429_v53 = vld [vmem:[%s12351_s19 + $0x5e8] sm:$0xf0]  ;;  %v9460_v58 = vor.u32 %v11268_v41, %v9459_v40 }
 0x320   : > { %v9524_v28 = vor.u32 %v11284_v0, %v9523_v17  ;;  %v10227_v5 = vld [vmem:[%s12351_s19 + $0xc08] sm:$0xf]  ;;  %v9432_v59 = vor.u32 %v11256_v2, %v9429_v53  ;;  %v10168_v17 = vor.u32 %v11440_v62, %v10165_v57  ;;  %v10133_v0 = vld [vmem:[%s12351_s19 + $0xb68] sm:$0xf0] }
 0x321   : > { %6463 = vmatpush.bf16.msra.mxu0 %v10324_v7  ;;  %6424 = vmatpush.bf16.msrb.mxu1 %v9556_v15  ;;  %v6236_v36 = vpop.f32.mrf.mxu2  ;;  %v11460_v38 = vld [vmem:[%s12351_s19 + $0xc24] sm:$0xf0]  ;;  %v11248_v7 = vld [vmem:[%s12351_s19 + $0x58c] sm:$0xf] }
 0x322   : > { %v10707_v52 = vld [vmem:[%s12351_s19 + $0xfc8] sm:$0xf]  ;;  %v11360_v15 = vld [vmem:[%s12351_s19 + $0x90c] sm:$0xf]  ;;  %v9400_v19 = vor.u32 %v11248_v7, %v9397_v47  ;;  %v8923_v47 = vld [vmem:[%s12351_s19 + $0x1d0] sm:$0xf] }
 0x323   : > { %6488 = vmatpush.bf16.msra.mxu2 %v8824_v33  ;;  %6502 = vmatpush.bf16.msra.mxu3 %v9048_v6  ;;  %v9491_v33 = vld [vmem:[%s12351_s19 + $0x648] sm:$0xf]  ;;  %v9880_v6 = vor.u32 %v11368_v55, %v9877_v44  ;;  %v11240_v24 = vld [vmem:[%s12351_s19 + $0x54c] sm:$0xf] }
 0x324   : > { %v11580_v54 = vld [vmem:[%s12351_s19 + $0xfe4] sm:$0xf0]  ;;  %v9365_v43 = vld [vmem:[%s12351_s19 + $0x568] sm:$0xf0] }
 0x325   : > { %6464 = vmatpush.bf16.msra.mxu0 %v10292_v8  ;;  %6425 = vmatpush.bf16.msrb.mxu1 %v9524_v28  ;;  %v10708_v3 = vor.u32 %v11580_v54, %v10707_v52  ;;  %v10675_v22 = vld [vmem:[%s12351_s19 + $0xf88] sm:$0xf]  ;;  %v11352_v29 = vld [vmem:[%s12351_s19 + $0x8cc] sm:$0xf]  ;;  %v10136_v28 = vor.u32 %v11432_v14, %v10133_v0 }
 0x326   : > { %v11572_v10 = vld [vmem:[%s12351_s19 + $0xfa4] sm:$0xf0]  ;;  %v9813_v4 = vld [vmem:[%s12351_s19 + $0x8e8] sm:$0xf0] }
 0x327   : > { %6489 = vmatpush.bf16.msra.mxu2 %v8792_v45  ;;  %6503 = vmatpush.bf16.msra.mxu3 %v9016_v23  ;;  %v9492_v45 = vor.u32 %v11276_v1, %v9491_v33  ;;  %v10676_v20 = vor.u32 %v11572_v10, %v10675_v22  ;;  %v10643_v23 = vld [vmem:[%s12351_s19 + $0xf48] sm:$0xf]  ;;  %v11424_v32 = vld [vmem:[%s12351_s19 + $0xb0c] sm:$0xf]  ;;  %v9816_v33 = vor.u32 %v11352_v29, %v9813_v4  ;;  %v11133_v10 = vld [vmem:[%s12351_s19 + $0x1ec] sm:$0xf0] }
 0x328   : > { %v11564_v8 = vld [vmem:[%s12351_s19 + $0xf64] sm:$0xf0]  ;;  %v10101_v31 = vld [vmem:[%s12351_s19 + $0xb28] sm:$0xf0]  ;;  %v8891_v29 = vld [vmem:[%s12351_s19 + $0x190] sm:$0xf] }
 0x329   : > { %6465 = vmatpush.bf16.msra.mxu0 %v10260_v37  ;;  %6426 = vmatpush.bf16.msrb.mxu1 %v9492_v45  ;;  %v10611_v1 = vld [vmem:[%s12351_s19 + $0xf08] sm:$0xf]  ;;  %v9333_v60 = vld [vmem:[%s12351_s19 + $0x528] sm:$0xf0]  ;;  %v10104_v40 = vor.u32 %v11424_v32, %v10101_v31  ;;  %v11125_v4 = vld [vmem:[%s12351_s19 + $0x1ac] sm:$0xf0] }
 0x32a   : > { %v11556_v35 = vld [vmem:[%s12351_s19 + $0xf24] sm:$0xf0]  ;;  %v11344_v36 = vld [vmem:[%s12351_s19 + $0x88c] sm:$0xf] }
 0x32b   : > { %6490 = vmatpush.bf16.msra.mxu2 %v8760_v56  ;;  %6504 = vmatpush.bf16.msra.mxu3 %v8984_v34  ;;  %v10228_v56 = vor.u32 %v11460_v38, %v10227_v5  ;;  %v11232_v34 = vld [vmem:[%s12351_s19 + $0x50c] sm:$0xf]  ;;  %v10612_v45 = vor.u32 %v11556_v35, %v10611_v1  ;;  %v10579_v49 = vld [vmem:[%s12351_s19 + $0xec8] sm:$0xf]  ;;  %v9179_v35 = vld [vmem:[%s12351_s19 + $0x3d0] sm:$0xf] }
 0x32c   : > { %v9781_v37 = vld [vmem:[%s12351_s19 + $0x8a8] sm:$0xf0]  ;;  %v9336_v41 = vor.u32 %v11232_v34, %v9333_v60  ;;  %v11548_v52 = vld [vmem:[%s12351_s19 + $0xee4] sm:$0xf0] }
 0x32d   : > { %6466 = vmatpush.bf16.msra.mxu0 %v10228_v56  ;;  %6427 = vmatpush.bf16.msrb.mxu1 %v9460_v58  ;;  %v11416_v5 = vld [vmem:[%s12351_s19 + $0xacc] sm:$0xf]  ;;  %v9784_v38 = vor.u32 %v11344_v36, %v9781_v37  ;;  %v11524_v32 = vld [vmem:[%s12351_s19 + $0xe24] sm:$0xf0]  ;;  %v11197_v36 = vld [vmem:[%s12351_s19 + $0x3ec] sm:$0xf0]  ;;  %v8892_v37 = vor.u32 %v11125_v4, %v8891_v29 }
 0x32e   : > { %v10069_v42 = vld [vmem:[%s12351_s19 + $0xae8] sm:$0xf0] }
 0x32f   : > { %6491 = vmatpush.bf16.msra.mxu2 %v8728_v16  ;;  %6505 = vmatpush.bf16.msra.mxu3 %v8952_v13  ;;  %v9845_v16 = vld [vmem:[%s12351_s19 + $0x928] sm:$0xf0]  ;;  %v10072_v13 = vor.u32 %v11416_v5, %v10069_v42  ;;  %v12968_v56 = vpop.f32.mrf.mxu3 }
 0x330   : > { %v9848_v21 = vor.u32 %v11360_v15, %v9845_v16  ;;  %6467 = vmatmul.bf16.vlgmr.msra.gmra.mxu0 %v12725_v46  ;;  %6428 = vmatmul.bf16.vlgmr.msrb.gmra.mxu1 %v12552_v11  ;;  %v11224_v50 = vld [vmem:[%s12351_s19 + $0x4cc] sm:$0xf] }
 0x331   : > { %6511 = vmatpush.bf16.msrb.mxu0 %v9432_v59  ;;  %6472 = vmatpush.bf16.msra.mxu1 %v10708_v3  ;;  %v11336_v2 = vld [vmem:[%s12351_s19 + $0x84c] sm:$0xf]  ;;  %v10547_v59 = vld [vmem:[%s12351_s19 + $0xe88] sm:$0xf] }
 0x332   : > { %6506 = vmatmul.bf16.vlgmr.msra.gmra.mxu3 %v12506_v9  ;;  %v9749_v53 = vld [vmem:[%s12351_s19 + $0x868] sm:$0xf0]  ;;  %v11540_v3 = vld [vmem:[%s12351_s19 + $0xea4] sm:$0xf0] }
 0x333   : > { %6492 = vmatpush.bf16.msra.mxu2 %v8696_v30  ;;  %6550 = vmatpush.bf16.msrb.mxu3 %v10200_v48  ;;  %v9368_v30 = vor.u32 %v11240_v24, %v9365_v43  ;;  %v11408_v55 = vld [vmem:[%s12351_s19 + $0xa8c] sm:$0xf]  ;;  %v10580_v48 = vor.u32 %v11548_v52, %v10579_v49  ;;  %v9752_v58 = vor.u32 %v11336_v2, %v9749_v53  ;;  %v10515_v24 = vld [vmem:[%s12351_s19 + $0xe48] sm:$0xf]  ;;  %v11117_v49 = vld [vmem:[%s12351_s19 + $0x16c] sm:$0xf0] }
 0x334   : > { %v10037_v44 = vld [vmem:[%s12351_s19 + $0xaa8] sm:$0xf0]  ;;  %v10548_v14 = vor.u32 %v11540_v3, %v10547_v59  ;;  %v11532_v43 = vld [vmem:[%s12351_s19 + $0xe64] sm:$0xf0]  ;;  %v9147_v53 = vld [vmem:[%s12351_s19 + $0x390] sm:$0xf] }
 0x335   : > { %6512 = vmatpush.bf16.msrb.mxu0 %v9400_v19  ;;  %6473 = vmatpush.bf16.msra.mxu1 %v10676_v20  ;;  %v11216_v62 = vld [vmem:[%s12351_s19 + $0x48c] sm:$0xf]  ;;  %v10040_v7 = vor.u32 %v11408_v55, %v10037_v44  ;;  %v10516_v34 = vor.u32 %v11532_v43, %v10515_v24  ;;  %v9083_v24 = vld [vmem:[%s12351_s19 + $0x310] sm:$0xf] }
 0x336   : > { %6493 = vmatmul.bf16.vlgmr.msra.gmra.mxu2 %v12519_v27  ;;  %v9269_v57 = vld [vmem:[%s12351_s19 + $0x4a8] sm:$0xf0]  ;;  %v11173_v43 = vld [vmem:[%s12351_s19 + $0x32c] sm:$0xf0] }
 0x337   : > { %6537 = vmatpush.bf16.msrb.mxu2 %v9944_v61  ;;  %6551 = vmatpush.bf16.msrb.mxu3 %v10168_v17  ;;  %v10644_v61 = vor.u32 %v11564_v8, %v10643_v23  ;;  %v9717_v22 = vld [vmem:[%s12351_s19 + $0x828] sm:$0xf0]  ;;  %v9272_v15 = vor.u32 %v11216_v62, %v9269_v57  ;;  %v8924_v23 = vor.u32 %v11133_v10, %v8923_v47  ;;  %v6249_v1 = vpop.f32.mrf.mxu3  ;;  %v8827_v62 = vld [vmem:[%s12351_s19 + $0x110] sm:$0xf] }
 0x338   : > { %v11400_v16 = vld [vmem:[%s12351_s19 + $0xa4c] sm:$0xf]  ;;  %v11109_v57 = vld [vmem:[%s12351_s19 + $0x12c] sm:$0xf0] }
 0x339   : > { %6513 = vmatpush.bf16.msrb.mxu0 %v9368_v30  ;;  %6474 = vmatpush.bf16.msra.mxu1 %v10644_v61  ;;  %v12958_v39 = vpop.f32.mrf.mxu2  ;;  %v10005_v17 = vld [vmem:[%s12351_s19 + $0xa68] sm:$0xf0]  ;;  %v10483_v30 = vld [vmem:[%s12351_s19 + $0xe08] sm:$0xf]  ;;  %v11181_v47 = vld [vmem:[%s12351_s19 + $0x36c] sm:$0xf0] }
 0x33a   : > { %v11208_v20 = vld [vmem:[%s12351_s19 + $0x44c] sm:$0xf]  ;;  %v10008_v8 = vor.u32 %v11400_v16, %v10005_v17  ;;  %v10484_v52 = vor.u32 %v11524_v32, %v10483_v30 }
 0x33b   : > { %6538 = vmatpush.bf16.msrb.mxu2 %v9912_v51  ;;  %6552 = vmatpush.bf16.msrb.mxu3 %v10136_v28  ;;  %v9301_v51 = vld [vmem:[%s12351_s19 + $0x4e8] sm:$0xf0] }
 0x33c   : > { %v9304_v54 = vor.u32 %v11224_v50, %v9301_v51  ;;  %v11200_v31 = vld [vmem:[%s12351_s19 + $0x40c] sm:$0xf]  ;;  %v9180_v51 = vor.u32 %v11197_v36, %v9179_v35  ;;  %v9051_v35 = vld [vmem:[%s12351_s19 + $0x2d0] sm:$0xf] }
 0x33d   : > { %6514 = vmatpush.bf16.msrb.mxu0 %v9336_v41  ;;  %6475 = vmatpush.bf16.msra.mxu1 %v10612_v45  ;;  %v11392_v61 = vld [vmem:[%s12351_s19 + $0xa0c] sm:$0xf]  ;;  %v11165_v36 = vld [vmem:[%s12351_s19 + $0x2ec] sm:$0xf0] }
 0x33e   : > { %v9205_v60 = vld [vmem:[%s12351_s19 + $0x428] sm:$0xf0] }
 0x33f   : > { %6539 = vmatpush.bf16.msrb.mxu2 %v9880_v6  ;;  %6553 = vmatpush.bf16.msrb.mxu3 %v10104_v40  ;;  %v11328_v6 = vld [vmem:[%s12351_s19 + $0x80c] sm:$0xf]  ;;  %v9208_v50 = vor.u32 %v11200_v31, %v9205_v60  ;;  %v8763_v31 = vld [vmem:[%s12351_s19 + $0x90] sm:$0xf] }
 0x340   : > { %v9720_v0 = vor.u32 %v11328_v6, %v9717_v22  ;;  %v11320_v40 = vld [vmem:[%s12351_s19 + $0x7cc] sm:$0xf]  ;;  %v13009_v6 = vpop.f32.mrf.mxu3 }
 0x341   : > { %6515 = vmatpush.bf16.msrb.mxu0 %v9304_v54  ;;  %6476 = vmatpush.bf16.msra.mxu1 %v10580_v48  ;;  %v6288_v19 = vpop.f32.mrf.mxu2  ;;  %v11512_v41 = vld [vmem:[%s12351_s19 + $0xdcc] sm:$0xf] }
 0x342   : > { %v10453_v5 = vld [vmem:[%s12351_s19 + $0xde8] sm:$0xf0] }
 0x343   : > { %6540 = vmatpush.bf16.msrb.mxu2 %v9848_v21  ;;  %6554 = vmatpush.bf16.msrb.mxu3 %v10072_v13  ;;  %v9237_v21 = vld [vmem:[%s12351_s19 + $0x468] sm:$0xf0]  ;;  %v10456_v2 = vor.u32 %v11512_v41, %v10453_v5  ;;  %v11189_v13 = vld [vmem:[%s12351_s19 + $0x3ac] sm:$0xf0] }
 0x344   : > { %v9240_v28 = vor.u32 %v11208_v20, %v9237_v21  ;;  %v9685_v45 = vld [vmem:[%s12351_s19 + $0x7e8] sm:$0xf0]  ;;  %v9148_v3 = vor.u32 %v11189_v13, %v9147_v53  ;;  %v11101_v20 = vld [vmem:[%s12351_s19 + $0xec] sm:$0xf0] }
 0x345   : > { %6516 = vmatpush.bf16.msrb.mxu0 %v9272_v15  ;;  %6477 = vmatpush.bf16.msra.mxu1 %v10548_v14  ;;  %v9688_v54 = vor.u32 %v11320_v40, %v9685_v45  ;;  %v11312_v44 = vld [vmem:[%s12351_s19 + $0x78c] sm:$0xf]  ;;  %v8828_v15 = vor.u32 %v11109_v57, %v8827_v62  ;;  %v11157_v53 = vld [vmem:[%s12351_s19 + $0x2ac] sm:$0xf0] }
 0x346   : > { %v11504_v48 = vld [vmem:[%s12351_s19 + $0xd8c] sm:$0xf]  ;;  %v11077_v62 = vld [vmem:[%s12351_s19 + $0x2c] sm:$0xf0] }
 0x347   : > { %6541 = vmatpush.bf16.msrb.mxu2 %v9816_v33  ;;  %6555 = vmatpush.bf16.msrb.mxu3 %v10040_v7  ;;  %v9973_v33 = vld [vmem:[%s12351_s19 + $0xa28] sm:$0xf0]  ;;  %v9115_v7 = vld [vmem:[%s12351_s19 + $0x350] sm:$0xf]  ;;  %v13030_v1 = vpop.f32.mrf.mxu0 }
 0x348   : > { %v9976_v42 = vor.u32 %v11392_v61, %v9973_v33  ;;  %v9653_v59 = vld [vmem:[%s12351_s19 + $0x7a8] sm:$0xf0]  ;;  %v9116_v21 = vor.u32 %v11181_v47, %v9115_v7  ;;  %v11093_v61 = vld [vmem:[%s12351_s19 + $0xac] sm:$0xf0]  ;;  %v9084_v33 = vor.u32 %v11173_v43, %v9083_v24 }
 0x349   : > { %6517 = vmatpush.bf16.msrb.mxu0 %v9240_v28  ;;  %6478 = vmatpush.bf16.msra.mxu1 %v10516_v34  ;;  %v9656_v10 = vor.u32 %v11312_v44, %v9653_v59  ;;  %v11304_v16 = vld [vmem:[%s12351_s19 + $0x74c] sm:$0xf]  ;;  %v6301_v34 = vpop.f32.mrf.mxu3  ;;  %v8764_v41 = vor.u32 %v11093_v61, %v8763_v31  ;;  %v8699_v59 = vld [vmem:[%s12351_s19 + $0x10] sm:$0xf] }
 0x34a   : > { %v11496_v17 = vld [vmem:[%s12351_s19 + $0xd4c] sm:$0xf]  ;;  %v8955_v31 = vld [vmem:[%s12351_s19 + $0x210] sm:$0xf] }
 0x34b   : > { %6542 = vmatpush.bf16.msrb.mxu2 %v9784_v38  ;;  %6556 = vmatpush.bf16.msrb.mxu3 %v10008_v8  ;;  %v8859_v38 = vld [vmem:[%s12351_s19 + $0x150] sm:$0xf]  ;;  %v10389_v19 = vld [vmem:[%s12351_s19 + $0xd68] sm:$0xf0] }
 0x34c   : > { %v8860_v55 = vor.u32 %v11117_v49, %v8859_v38  ;;  %v9621_v14 = vld [vmem:[%s12351_s19 + $0x768] sm:$0xf0]  ;;  %v8731_v49 = vld [vmem:[%s12351_s19 + $0x50] sm:$0xf] }
 0x34d   : > { %6518 = vmatpush.bf16.msrb.mxu0 %v9208_v50  ;;  %6479 = vmatpush.bf16.msra.mxu1 %v10484_v52  ;;  %v9624_v8 = vor.u32 %v11304_v16, %v9621_v14  ;;  %v11296_v4 = vld [vmem:[%s12351_s19 + $0x70c] sm:$0xf]  ;;  %v11085_v50 = vld [vmem:[%s12351_s19 + $0x6c] sm:$0xf0]  ;;  %v8700_v14 = vor.u32 %v11077_v62, %v8699_v59 }
 0x34e   : > { %v11488_v28 = vld [vmem:[%s12351_s19 + $0xd0c] sm:$0xf]  ;;  %v11149_v16 = vld [vmem:[%s12351_s19 + $0x26c] sm:$0xf0] }
 0x34f   : > { %6543 = vmatpush.bf16.msrb.mxu2 %v9752_v58  ;;  %v10421_v58 = vld [vmem:[%s12351_s19 + $0xda8] sm:$0xf0]  ;;  %6557 = vmatpush.bf16.msrb.mxu3 %v9976_v42  ;;  %v6262_v7 = vpop.f32.mrf.mxu0  ;;  %v11141_v61 = vld [vmem:[%s12351_s19 + $0x22c] sm:$0xf0] }
 0x350   : > { %v10424_v22 = vor.u32 %v11504_v48, %v10421_v58  ;;  %6519 = vmatmul.bf16.vlgmr.msrb.gmra.mxu0 %v12562_v26  ;;  %6480 = vmatmul.bf16.vlgmr.msra.gmra.mxu1 %v12785_v25  ;;  %v10357_v30 = vld [vmem:[%s12351_s19 + $0xd28] sm:$0xf0]  ;;  %v9403_v59 = vld [vmem:[%s12351_s19 + $0x590] sm:$0xf] }
 0x351   : > { %6563 = vmatpush.bf16.msra.mxu0 %v10456_v2  ;;  %6524 = vmatpush.bf16.msrb.mxu1 %v9688_v54  ;;  %v9589_v32 = vld [vmem:[%s12351_s19 + $0x728] sm:$0xf0]  ;;  %v10360_v60 = vor.u32 %v11488_v28, %v10357_v30  ;;  %v9019_v2 = vld [vmem:[%s12351_s19 + $0x290] sm:$0xf]  ;;  %v8732_v54 = vor.u32 %v11085_v50, %v8731_v49 }
 0x352   : > { %6558 = vmatmul.bf16.vlgmr.msrb.gmra.mxu3 %v12664_v63  ;;  %v9592_v40 = vor.u32 %v11296_v4, %v9589_v32  ;;  %v11288_v5 = vld [vmem:[%s12351_s19 + $0x6cc] sm:$0xf]  ;;  %v9020_v57 = vor.u32 %v11157_v53, %v9019_v2  ;;  %v11373_v49 = vld [vmem:[%s12351_s19 + $0x96c] sm:$0xf0] }
 0x353   : > { %6544 = vmatpush.bf16.msrb.mxu2 %v9720_v0  ;;  %6602 = vmatpush.bf16.msra.mxu3 %v9180_v51  ;;  %v8795_v0 = vld [vmem:[%s12351_s19 + $0xd0] sm:$0xf]  ;;  %v11480_v42 = vld [vmem:[%s12351_s19 + $0xccc] sm:$0xf]  ;;  %v9052_v51 = vor.u32 %v11165_v36, %v9051_v35 }
 0x354   : > { %v8796_v29 = vor.u32 %v11101_v20, %v8795_v0  ;;  %v10325_v45 = vld [vmem:[%s12351_s19 + $0xce8] sm:$0xf0]  ;;  %v11453_v35 = vld [vmem:[%s12351_s19 + $0xbec] sm:$0xf0] }
 0x355   : > { %6564 = vmatpush.bf16.msra.mxu0 %v10424_v22  ;;  %6525 = vmatpush.bf16.msrb.mxu1 %v9656_v10  ;;  %v9557_v38 = vld [vmem:[%s12351_s19 + $0x6e8] sm:$0xf0]  ;;  %v10328_v52 = vor.u32 %v11480_v42, %v10325_v45  ;;  %v11389_v22 = vld [vmem:[%s12351_s19 + $0x9ec] sm:$0xf0]  ;;  %v13052_v47 = vpop.f32.mrf.mxu3  ;;  %v8956_v42 = vor.u32 %v11141_v61, %v8955_v31 }
 0x356   : > { %6545 = vmatmul.bf16.vlgmr.msrb.gmra.mxu2 %v12594_v18  ;;  %v9560_v13 = vor.u32 %v11288_v5, %v9557_v38  ;;  %v11472_v44 = vld [vmem:[%s12351_s19 + $0xc8c] sm:$0xf]  ;;  %v11261_v5 = vld [vmem:[%s12351_s19 + $0x5ec] sm:$0xf0] }
 0x357   : > { %6589 = vmatpush.bf16.msra.mxu2 %v8924_v23  ;;  %6603 = vmatpush.bf16.msra.mxu3 %v9148_v3  ;;  %v10392_v23 = vor.u32 %v11496_v17, %v10389_v19  ;;  %v10293_v48 = vld [vmem:[%s12351_s19 + $0xca8] sm:$0xf0]  ;;  %v9947_v3 = vld [vmem:[%s12351_s19 + $0x9d0] sm:$0xf]  ;;  %v13077_v50 = vpop.f32.mrf.mxu0 }
 0x358   : > { %v9525_v58 = vld [vmem:[%s12351_s19 + $0x6a8] sm:$0xf0]  ;;  %v10296_v10 = vor.u32 %v11472_v44, %v10293_v48  ;;  %v9883_v38 = vld [vmem:[%s12351_s19 + $0x950] sm:$0xf] }
 0x359   : > { %6565 = vmatpush.bf16.msra.mxu0 %v10392_v23  ;;  %6526 = vmatpush.bf16.msrb.mxu1 %v9624_v8  ;;  %v11464_v0 = vld [vmem:[%s12351_s19 + $0xc4c] sm:$0xf]  ;;  %v9915_v8 = vld [vmem:[%s12351_s19 + $0x990] sm:$0xf]  ;;  %v9884_v48 = vor.u32 %v11373_v49, %v9883_v38 }
 0x35a   : > { %v10261_v20 = vld [vmem:[%s12351_s19 + $0xc68] sm:$0xf0]  ;;  %v11253_v62 = vld [vmem:[%s12351_s19 + $0x5ac] sm:$0xf0] }
 0x35b   : > { %6590 = vmatpush.bf16.msra.mxu2 %v8892_v37  ;;  %6604 = vmatpush.bf16.msra.mxu3 %v9116_v21  ;;  %v13034_v37 = vpop.f32.mrf.mxu2  ;;  %v9948_v21 = vor.u32 %v11389_v22, %v9947_v3  ;;  %v11272_v23 = vld [vmem:[%s12351_s19 + $0x64c] sm:$0xf]  ;;  %v10264_v4 = vor.u32 %v11464_v0, %v10261_v20  ;;  %v9851_v3 = vld [vmem:[%s12351_s19 + $0x910] sm:$0xf] }
 0x35c   : > { %v9493_v24 = vld [vmem:[%s12351_s19 + $0x668] sm:$0xf0]  ;;  %v11365_v22 = vld [vmem:[%s12351_s19 + $0x92c] sm:$0xf0] }
 0x35d   : > { %6566 = vmatpush.bf16.msra.mxu0 %v10360_v60  ;;  %6527 = vmatpush.bf16.msrb.mxu1 %v9592_v40  ;;  %v11264_v28 = vld [vmem:[%s12351_s19 + $0x60c] sm:$0xf]  ;;  %v10203_v60 = vld [vmem:[%s12351_s19 + $0xbd0] sm:$0xf] }
 0x35e   : > { %v9461_v30 = vld [vmem:[%s12351_s19 + $0x628] sm:$0xf0]  ;;  %v10204_v2 = vor.u32 %v11453_v35, %v10203_v60  ;;  %v9371_v0 = vld [vmem:[%s12351_s19 + $0x550] sm:$0xf] }
 0x35f   : > { %6591 = vmatpush.bf16.msra.mxu2 %v8860_v55  ;;  %6605 = vmatpush.bf16.msra.mxu3 %v9084_v33  ;;  %v11280_v55 = vld [vmem:[%s12351_s19 + $0x68c] sm:$0xf]  ;;  %v9496_v33 = vor.u32 %v11272_v23, %v9493_v24  ;;  %v9464_v53 = vor.u32 %v11264_v28, %v9461_v30  ;;  %v11245_v20 = vld [vmem:[%s12351_s19 + $0x56c] sm:$0xf0] }
 0x360   : > { %v9528_v19 = vor.u32 %v11280_v55, %v9525_v58  ;;  %v11456_v32 = vld [vmem:[%s12351_s19 + $0xc0c] sm:$0xf]  ;;  %v11445_v55 = vld [vmem:[%s12351_s19 + $0xbac] sm:$0xf0] }
 0x361   : > { %6567 = vmatpush.bf16.msra.mxu0 %v10328_v52  ;;  %6528 = vmatpush.bf16.msrb.mxu1 %v9560_v13  ;;  %v10229_v34 = vld [vmem:[%s12351_s19 + $0xc28] sm:$0xf0]  ;;  %v9819_v23 = vld [vmem:[%s12351_s19 + $0x8d0] sm:$0xf] }
 0x362   : > { %v11576_v40 = vld [vmem:[%s12351_s19 + $0xfcc] sm:$0xf]  ;;  %v10232_v52 = vor.u32 %v11456_v32, %v10229_v34  ;;  %v11357_v24 = vld [vmem:[%s12351_s19 + $0x8ec] sm:$0xf0]  ;;  %v6248_v34 = vadd.f32 %v12968_v56, %v12896_v12 }
 0x363   : > { %6592 = vmatpush.bf16.msra.mxu2 %v8828_v15  ;;  %6606 = vmatpush.bf16.msra.mxu3 %v9052_v51  ;;  %v8987_v15 = vld [vmem:[%s12351_s19 + $0x250] sm:$0xf]  ;;  %v6340_v17 = vpop.f32.mrf.mxu2  ;;  %v10709_v45 = vld [vmem:[%s12351_s19 + $0xfe8] sm:$0xf0]  ;;  %v6353_v51 = vpop.f32.mrf.mxu3  ;;  %v9820_v32 = vor.u32 %v11357_v24, %v9819_v23 }
 0x364   : > { %v8988_v43 = vor.u32 %v11149_v16, %v8987_v15  ;;  %v10712_v44 = vor.u32 %v11576_v40, %v10709_v45  ;;  %v11568_v58 = vld [vmem:[%s12351_s19 + $0xf8c] sm:$0xf]  ;;  %v10139_v15 = vld [vmem:[%s12351_s19 + $0xb50] sm:$0xf] }
 0x365   : > { %6568 = vmatpush.bf16.msra.mxu0 %v10296_v10  ;;  %6529 = vmatpush.bf16.msrb.mxu1 %v9528_v19  ;;  %v9404_v10 = vor.u32 %v11253_v62, %v9403_v59  ;;  %v11437_v16 = vld [vmem:[%s12351_s19 + $0xb6c] sm:$0xf0]  ;;  %v9852_v19 = vor.u32 %v11365_v22, %v9851_v3  ;;  %v11552_v31 = vld [vmem:[%s12351_s19 + $0xf0c] sm:$0xf] }
 0x366   : > { %v11429_v28 = vld [vmem:[%s12351_s19 + $0xb2c] sm:$0xf0]  ;;  %v10613_v60 = vld [vmem:[%s12351_s19 + $0xf28] sm:$0xf0] }
 0x367   : > { %6593 = vmatpush.bf16.msra.mxu2 %v8796_v29  ;;  %6607 = vmatpush.bf16.msra.mxu3 %v9020_v57  ;;  %v11381_v29 = vld [vmem:[%s12351_s19 + $0x9ac] sm:$0xf0]  ;;  %v10677_v57 = vld [vmem:[%s12351_s19 + $0xfa8] sm:$0xf0]  ;;  %v10616_v38 = vor.u32 %v11552_v31, %v10613_v60 }
 0x368   : > { %v9916_v36 = vor.u32 %v11381_v29, %v9915_v8  ;;  %v10680_v17 = vor.u32 %v11568_v58, %v10677_v57  ;;  %v10140_v8 = vor.u32 %v11437_v16, %v10139_v15  ;;  %v9372_v29 = vor.u32 %v11245_v20, %v9371_v0  ;;  %v9339_v61 = vld [vmem:[%s12351_s19 + $0x510] sm:$0xf]  ;;  %v11544_v51 = vld [vmem:[%s12351_s19 + $0xecc] sm:$0xf]  ;;  %v11129_v20 = vld [vmem:[%s12351_s19 + $0x1d4] sm:$0xf] }
 0x369   : > { %6569 = vmatpush.bf16.msra.mxu0 %v10264_v4  ;;  %6530 = vmatpush.bf16.msrb.mxu1 %v9496_v33  ;;  %v10107_v4 = vld [vmem:[%s12351_s19 + $0xb10] sm:$0xf] }
 0x36a   : > { %v11237_v33 = vld [vmem:[%s12351_s19 + $0x52c] sm:$0xf0]  ;;  %v10108_v40 = vor.u32 %v11429_v28, %v10107_v4 }
 0x36b   : > { %6594 = vmatpush.bf16.msra.mxu2 %v8764_v41  ;;  %v9435_v41 = vld [vmem:[%s12351_s19 + $0x5d0] sm:$0xf]  ;;  %6608 = vmatpush.bf16.msra.mxu3 %v8988_v43  ;;  %v6314_v43 = vpop.f32.mrf.mxu0 }
 0x36c   : > { %v9436_v13 = vor.u32 %v11261_v5, %v9435_v41  ;;  %v9787_v35 = vld [vmem:[%s12351_s19 + $0x890] sm:$0xf]  ;;  %v6261_v41 = vadd.f32 %v13030_v1, %v6248_v34  ;;  %v9340_v5 = vor.u32 %v11237_v33, %v9339_v61  ;;  %v10581_v1 = vld [vmem:[%s12351_s19 + $0xee8] sm:$0xf0] }
 0x36d   : > { %6570 = vmatpush.bf16.msra.mxu0 %v10232_v52  ;;  %6531 = vmatpush.bf16.msrb.mxu1 %v9464_v53  ;;  %v11421_v45 = vld [vmem:[%s12351_s19 + $0xaec] sm:$0xf0]  ;;  %v6273_v12 = vpop.f32.mrf.mxu1  ;;  %v10584_v22 = vor.u32 %v11544_v51, %v10581_v1 }
 0x36e   : > { %v9307_v52 = vld [vmem:[%s12351_s19 + $0x4d0] sm:$0xf]  ;;  %v6274_v53 = vadd.f32 %v6273_v12, %v6261_v41 }
 0x36f   : > { %6595 = vmatpush.bf16.msra.mxu2 %v8732_v54  ;;  %v10171_v54 = vld [vmem:[%s12351_s19 + $0xb90] sm:$0xf]  ;;  %6609 = vmatpush.bf16.msra.mxu3 %v8956_v42 }
 0x370   : > { %v10172_v7 = vor.u32 %v11445_v55, %v10171_v54  ;;  %6571 = vmatmul.bf16.vlgmr.msra.gmra.mxu0 %v12725_v46  ;;  %6532 = vmatmul.bf16.vlgmr.msrb.gmra.mxu1 %v12552_v11  ;;  %v10075_v42 = vld [vmem:[%s12351_s19 + $0xad0] sm:$0xf]  ;;  %v13118_v55 = vld [vmem:[%s12798_s21] sm:$0xff]  ;;  %v10729_v59 = vmul.f32 -1.442695, %v6274_v53 }
 0x371   : > { %6615 = vmatpush.bf16.msrb.mxu0 %v9436_v13  ;;  %6576 = vmatpush.bf16.msra.mxu1 %v10712_v44  ;;  %v9755_v13 = vld [vmem:[%s12351_s19 + $0x850] sm:$0xf]  ;;  %v3599_v44 = vperm.slane %v13118_v55, 2  ;;  %v10076_v58 = vor.u32 %v11421_v45, %v10075_v42  ;;  %v3598_v61 = vperm.slane %v13118_v55, 1  ;;  %v8893_v42 = vld [vmem:[%s12351_s19 + $0x1b0] sm:$0xf0] }
 0x372   : > { %6610 = vmatmul.bf16.vlgmr.msra.gmra.mxu3 %v12506_v9  ;;  %v11341_v54 = vld [vmem:[%s12351_s19 + $0x86c] sm:$0xf0]  ;;  %11713 = vpow2.f32 %v10729_v59 }
 0x373   : > { %6596 = vmatpush.bf16.msra.mxu2 %v8700_v14  ;;  %6654 = vmatpush.bf16.msrb.mxu3 %v10204_v2  ;;  %v11560_v14 = vld [vmem:[%s12351_s19 + $0xf4c] sm:$0xf]  ;;  %v11229_v2 = vld [vmem:[%s12351_s19 + $0x4ec] sm:$0xf0] }
 0x374   : > { %v9308_v62 = vor.u32 %v11229_v2, %v9307_v52  ;;  %v10043_v57 = vld [vmem:[%s12351_s19 + $0xa90] sm:$0xf] }
 0x375   : > { %6616 = vmatpush.bf16.msrb.mxu0 %v9404_v10  ;;  %6577 = vmatpush.bf16.msra.mxu1 %v10680_v17  ;;  %v11413_v3 = vld [vmem:[%s12351_s19 + $0xaac] sm:$0xf0]  ;;  %v11536_v10 = vld [vmem:[%s12351_s19 + $0xe8c] sm:$0xf]  ;;  %v6403_v4 = vpop.f32.mrf.mxu3 }
 0x376   : > { %6597 = vmatmul.bf16.vlgmr.msra.gmra.mxu2 %v12519_v27  ;;  %v9275_v15 = vld [vmem:[%s12351_s19 + $0x490] sm:$0xf]  ;;  %v10549_v17 = vld [vmem:[%s12351_s19 + $0xea8] sm:$0xf0]  ;;  %v10044_v0 = vor.u32 %v11413_v3, %v10043_v57 }
 0x377   : > { %6641 = vmatpush.bf16.msrb.mxu2 %v9948_v21  ;;  %v10645_v21 = vld [vmem:[%s12351_s19 + $0xf68] sm:$0xf0]  ;;  %6655 = vmatpush.bf16.msrb.mxu3 %v10172_v7  ;;  %v9756_v7 = vor.u32 %v11341_v54, %v9755_v13  ;;  %v11221_v16 = vld [vmem:[%s12351_s19 + $0x4ac] sm:$0xf0]  ;;  %v10552_v28 = vor.u32 %v11536_v10, %v10549_v17  ;;  %v11193_v13 = vld [vmem:[%s12351_s19 + $0x3d4] sm:$0xf] }
 0x378   : > { %v10648_v30 = vor.u32 %v11560_v14, %v10645_v21  ;;  %v11333_v14 = vld [vmem:[%s12351_s19 + $0x82c] sm:$0xf0]  ;;  %v8925_v21 = vld [vmem:[%s12351_s19 + $0x1f0] sm:$0xf0]  ;;  %v9276_v24 = vor.u32 %v11221_v16, %v9275_v15  ;;  %v11714_v12 = vpop.eup %11713 }
 0x379   : > { %6617 = vmatpush.bf16.msrb.mxu0 %v9372_v29  ;;  %v6390_v56 = vpop.f32.mrf.mxu2  ;;  %v10011_v43 = vld [vmem:[%s12351_s19 + $0xa50] sm:$0xf]  ;;  %v6275_v29 = vpop.f32.mrf.mxu1  ;;  %v8928_v60 = vor.u32 %v11129_v20, %v8925_v21  ;;  %v13150_v53 = vadd.f32 1.0, %v11714_v12  ;;  %v9181_v54 = vld [vmem:[%s12351_s19 + $0x3f0] sm:$0xf0] }
 0x37a   : > { %6578 = vmatpush.bf16.msra.mxu1 %v10648_v30  ;;  %v6391_v23 = vadd.f32 %v6390_v56, %v3599_v44  ;;  %v11213_v31 = vld [vmem:[%s12351_s19 + $0x46c] sm:$0xf0]  ;;  %v6287_v44 = vadd.f32 %v12958_v39, %v3598_v61  ;;  %v8861_v10 = vld [vmem:[%s12351_s19 + $0x170] sm:$0xf0]  ;;  %v9184_v16 = vor.u32 %v11193_v13, %v9181_v54 }
 0x37b   : > { %6642 = vmatpush.bf16.msrb.mxu2 %v9916_v36  ;;  %v11349_v36 = vld [vmem:[%s12351_s19 + $0x8ac] sm:$0xf0]  ;;  %6656 = vmatpush.bf16.msrb.mxu3 %v10140_v8  ;;  %11715 = vrcp.f32 %v13150_v53  ;;  %v11185_v20 = vld [vmem:[%s12351_s19 + $0x394] sm:$0xf]  ;;  %vm7042_vm2 = vweird.f32 %v13150_v53 }
 0x37c   : > { %v9788_v49 = vor.u32 %v11349_v36, %v9787_v35  ;;  %v11405_v8 = vld [vmem:[%s12351_s19 + $0xa6c] sm:$0xf0]  ;;  %v13138_v33 = vadd.f32 %v6403_v4, %v6391_v23  ;;  %v11528_v35 = vld [vmem:[%s12351_s19 + $0xe4c] sm:$0xf]  ;;  %v6300_v15 = vadd.f32 %v13009_v6, %v6287_v44  ;;  %v9149_v21 = vld [vmem:[%s12351_s19 + $0x3b0] sm:$0xf0] }
 0x37d   : > { %6618 = vmatpush.bf16.msrb.mxu0 %v9340_v5  ;;  %v10517_v36 = vld [vmem:[%s12351_s19 + $0xe68] sm:$0xf0]  ;;  %v10012_v41 = vor.u32 %v11405_v8, %v10011_v43  ;;  %v11121_v5 = vld [vmem:[%s12351_s19 + $0x194] sm:$0xf]  ;;  %v9211_v45 = vld [vmem:[%s12351_s19 + $0x410] sm:$0xf] }
 0x37e   : > { %6579 = vmatpush.bf16.msra.mxu1 %v10616_v38  ;;  %v11520_v38 = vld [vmem:[%s12351_s19 + $0xe0c] sm:$0xf]  ;;  %v11205_v51 = vld [vmem:[%s12351_s19 + $0x42c] sm:$0xf0]  ;;  %v10520_v1 = vor.u32 %v11528_v35, %v10517_v36  ;;  %v6313_v6 = vadd.f32 %v13077_v50, %v6300_v15  ;;  %v9152_v50 = vor.u32 %v11185_v20, %v9149_v21  ;;  %v9117_v35 = vld [vmem:[%s12351_s19 + $0x370] sm:$0xf0] }
 0x37f   : > { %6643 = vmatpush.bf16.msrb.mxu2 %v9884_v48  ;;  %v13121_v48 = vpop.f32.mrf.mxu0  ;;  %6657 = vmatpush.bf16.msrb.mxu3 %v10108_v40  ;;  %v9979_v52 = vld [vmem:[%s12351_s19 + $0xa10] sm:$0xf]  ;;  %v9212_v39 = vor.u32 %v11205_v51, %v9211_v45  ;;  %v11097_v12 = vld [vmem:[%s12351_s19 + $0xd4] sm:$0xf] }
 0x380   : > { %v11397_v2 = vld [vmem:[%s12351_s19 + $0xa2c] sm:$0xf0]  ;;  %v11169_v44 = vld [vmem:[%s12351_s19 + $0x314] sm:$0xf] }
 0x381   : > { %6619 = vmatpush.bf16.msrb.mxu0 %v9308_v62  ;;  %v6392_v34 = vpop.f32.mrf.mxu2  ;;  %v9691_v59 = vld [vmem:[%s12351_s19 + $0x7d0] sm:$0xf]  ;;  %v9980_v3 = vor.u32 %v11397_v2, %v9979_v52  ;;  %v6325_v17 = vpop.f32.mrf.mxu1  ;;  %v7048_v52 = vand.u32 2147483648, %v13150_v53  ;;  %v9053_v20 = vld [vmem:[%s12351_s19 + $0x2f0] sm:$0xf0] }
 0x382   : > { %6580 = vmatpush.bf16.msra.mxu1 %v10584_v22  ;;  %v10459_v62 = vld [vmem:[%s12351_s19 + $0xdd0] sm:$0xf] }
 0x383   : > { %6644 = vmatpush.bf16.msrb.mxu2 %v9852_v19  ;;  %v9723_v19 = vld [vmem:[%s12351_s19 + $0x810] sm:$0xf]  ;;  %6658 = vmatpush.bf16.msrb.mxu3 %v10076_v58  ;;  %v8896_v58 = vor.u32 %v11121_v5, %v8893_v42 }
 0x384   : > { %v9724_v30 = vor.u32 %v11333_v14, %v9723_v19  ;;  %v11517_v57 = vld [vmem:[%s12351_s19 + $0xdec] sm:$0xf0]  ;;  %v6405_v19 = vpop.f32.mrf.mxu3 }
 0x385   : > { %6620 = vmatpush.bf16.msrb.mxu0 %v9276_v24  ;;  %v11325_v22 = vld [vmem:[%s12351_s19 + $0x7ec] sm:$0xf0]  ;;  %v7049_v19 = vor.u32 1.1754944e-38, %v7048_v52 }
 0x386   : > { %6581 = vmatpush.bf16.msra.mxu1 %v10552_v28  ;;  %v9692_v23 = vor.u32 %v11325_v22, %v9691_v59  ;;  %v9659_v43 = vld [vmem:[%s12351_s19 + $0x790] sm:$0xf]  ;;  %v11105_v28 = vld [vmem:[%s12351_s19 + $0x114] sm:$0xf]  ;;  %v7046_v59 = vand.u32 2147483647, %v13150_v53 }
 0x387   : > { %6645 = vmatpush.bf16.msrb.mxu2 %v9820_v32  ;;  %v9243_v32 = vld [vmem:[%s12351_s19 + $0x450] sm:$0xf]  ;;  %v6366_v40 = vpop.f32.mrf.mxu0  ;;  %6659 = vmatpush.bf16.msrb.mxu3 %v10044_v0  ;;  %v10460_v0 = vor.u32 %v11517_v57, %v10459_v62 }
 0x388   : > { %v9244_v56 = vor.u32 %v11213_v31, %v9243_v32  ;;  %v10427_v8 = vld [vmem:[%s12351_s19 + $0xd90] sm:$0xf]  ;;  %v6326_v32 = vadd.f32 %v6325_v17, %v6313_v6  ;;  %v13173_v31 = vpop.eup %11715  ;;  %vm7047_vm4 = vcmp.eq.f32.partialorder %v7046_v59, 8.507059e+37 }
 0x389   : > { %v11509_v29 = vld [vmem:[%s12351_s19 + $0xdac] sm:$0xf0]  ;;  %v7038_v36 = vmul.f32 %v13173_v31, %v13150_v53  ;;  %v6327_v2 = vpop.f32.mrf.mxu1  ;;  %vm7043_vm1 = vweird.f32 %v13173_v31  ;;  %v11161_v53 = vld [vmem:[%s12351_s19 + $0x2d4] sm:$0xf] }
 0x38a   : > { %6621 = vmatpush.bf16.msrb.mxu0 %v9244_v56  ;;  %6582 = vmatpush.bf16.msra.mxu1 %v10520_v1  ;;  %v11317_v4 = vld [vmem:[%s12351_s19 + $0x7ac] sm:$0xf0]  ;;  %v10428_v61 = vor.u32 %v11509_v29, %v10427_v8  ;;  %v8797_v56 = vld [vmem:[%s12351_s19 + $0xf0] sm:$0xf0]  ;;  %vm13207_vm3 = vmor %vm7042_vm2, %vm7043_vm1 }
 0x38b   : > { %6646 = vmatpush.bf16.msrb.mxu2 %v9788_v49  ;;  %v10485_v49 = vld [vmem:[%s12351_s19 + $0xe28] sm:$0xf0]  ;;  %6660 = vmatpush.bf16.msrb.mxu3 %v10012_v41  ;;  %v9627_v34 = vld [vmem:[%s12351_s19 + $0x750] sm:$0xf]  ;;  %v9660_v40 = vor.u32 %v11317_v4, %v9659_v43  ;;  %v8800_v62 = vor.u32 %v11097_v12, %v8797_v56  ;;  %v11081_v4 = vld [vmem:[%s12351_s19 + $0x54] sm:$0xf] }
 0x38c   : > { %v10488_v14 = vor.u32 %v11520_v38, %v10485_v49  ;;  %v11309_v5 = vld [vmem:[%s12351_s19 + $0x76c] sm:$0xf0]  ;;  %v7039_v38 = vsub.f32 1.0, %v7038_v36  ;;  %v6339_v49 = vadd.f32 %v13034_v37, %v6326_v32  ;;  %v8701_v12 = vld [vmem:[%s12351_s19 + $0x30] sm:$0xf0] }
 0x38d   : > { %v10395_v42 = vld [vmem:[%s12351_s19 + $0xd50] sm:$0xf]  ;;  %v9628_v1 = vor.u32 %v11309_v5, %v9627_v34  ;;  %v11153_v34 = vld [vmem:[%s12351_s19 + $0x294] sm:$0xf] }
 0x38e   : > { %6622 = vmatpush.bf16.msrb.mxu0 %v9212_v39  ;;  %6583 = vmatpush.bf16.msra.mxu1 %v10488_v14  ;;  %v11501_v45 = vld [vmem:[%s12351_s19 + $0xd6c] sm:$0xf0]  ;;  %v7040_v37 = vmul.f32 %v13173_v31, %v7039_v38  ;;  %v6352_v39 = vadd.f32 %v13052_v47, %v6339_v49  ;;  %v11385_v49 = vld [vmem:[%s12351_s19 + $0x9d4] sm:$0xf] }
 0x38f   : > { %6647 = vmatpush.bf16.msrb.mxu2 %v9756_v7  ;;  %v11113_v7 = vld [vmem:[%s12351_s19 + $0x154] sm:$0xf]  ;;  %6661 = vmatpush.bf16.msrb.mxu3 %v9980_v3  ;;  %v10396_v13 = vor.u32 %v11501_v45, %v10395_v42  ;;  %v9595_v54 = vld [vmem:[%s12351_s19 + $0x710] sm:$0xf] }
 0x390   : > { %v8864_v24 = vor.u32 %v11113_v7, %v8861_v10  ;;  %v10363_v57 = vld [vmem:[%s12351_s19 + $0xd10] sm:$0xf]  ;;  %v11089_v7 = vld [vmem:[%s12351_s19 + $0x94] sm:$0xf]  ;;  %v7041_v15 = vadd.f32 %v13173_v31, %v7040_v37  ;;  %v6365_v32 = vadd.f32 %v13121_v48, %v6352_v39 }
 0x391   : > { %6623 = vmatmul.bf16.vlgmr.msrb.gmra.mxu0 %v12562_v26  ;;  %6584 = vmatmul.bf16.vlgmr.msra.gmra.mxu1 %v12785_v25  ;;  %v11493_v3 = vld [vmem:[%s12351_s19 + $0xd2c] sm:$0xf0]  ;;  %v8765_v10 = vld [vmem:[%s12351_s19 + $0xb0] sm:$0xf0] }
 0x392   : > { %6667 = vmatpush.bf16.msra.mxu0 %v10460_v0  ;;  %6628 = vmatpush.bf16.msrb.mxu1 %v9692_v23  ;;  %v11301_v22 = vld [vmem:[%s12351_s19 + $0x72c] sm:$0xf0]  ;;  %v10364_v14 = vor.u32 %v11493_v3, %v10363_v57  ;;  %v7045_v47 = vsel %vm13207_vm3, %v13173_v31, %v7041_v15  ;;  %v8768_v6 = vor.u32 %v11089_v7, %v8765_v10  ;;  %v6377_v31 = vpop.f32.mrf.mxu1  ;;  %v11073_v45 = vld [vmem:[%s12351_s19 + $0x14] sm:$0xf] }
 0x393   : > { %6648 = vmatpush.bf16.msrb.mxu2 %v9724_v30  ;;  %v8829_v30 = vld [vmem:[%s12351_s19 + $0x130] sm:$0xf0]  ;;  %6706 = vmatpush.bf16.msra.mxu3 %v9184_v16  ;;  %v9563_v0 = vld [vmem:[%s12351_s19 + $0x6d0] sm:$0xf]  ;;  %v9596_v21 = vor.u32 %v11301_v22, %v9595_v54  ;;  %v7050_v43 = vsel %vm7047_vm4, %v7049_v19, %v7045_v47 }
 0x394   : > { %v8832_v41 = vor.u32 %v11105_v28, %v8829_v30  ;;  %6662 = vmatmul.bf16.vlgmr.msrb.gmra.mxu3 %v12664_v63  ;;  %v10331_v23 = vld [vmem:[%s12351_s19 + $0xcd0] sm:$0xf]  ;;  %v8733_v28 = vld [vmem:[%s12351_s19 + $0x70] sm:$0xf0]  ;;  %7157 = vst [vmem:[%s13226_s24] sm:$0xff] %v7050_v43  ;;  %v13229_v30 = vpop.f32.mrf.mxu0 }
 0x395   : > { %v11293_v29 = vld [vmem:[%s12351_s19 + $0x6ec] sm:$0xf0]  ;;  %v11145_v2 = vld [vmem:[%s12351_s19 + $0x254] sm:$0xf] }
 0x396   : > { %6649 = vmatmul.bf16.vlgmr.msrb.gmra.mxu2 %v12594_v18  ;;  %6668 = vmatpush.bf16.msra.mxu0 %v10428_v61  ;;  %v9564_v36 = vor.u32 %v11293_v29, %v9563_v0  ;;  %v9531_v48 = vld [vmem:[%s12351_s19 + $0x690] sm:$0xf]  ;;  %v11377_v10 = vld [vmem:[%s12351_s19 + $0x994] sm:$0xf] }
 0x397   : > { %6693 = vmatpush.bf16.msra.mxu2 %v8928_v60  ;;  %v11177_v60 = vld [vmem:[%s12351_s19 + $0x354] sm:$0xf]  ;;  %6707 = vmatpush.bf16.msra.mxu3 %v9152_v50  ;;  %v9056_v50 = vor.u32 %v11161_v53, %v9053_v20  ;;  %v11477_v5 = vld [vmem:[%s12351_s19 + $0xcac] sm:$0xf0] }
 0x398   : > { %v9120_v51 = vor.u32 %v11177_v60, %v9117_v35  ;;  %6629 = vmatpush.bf16.msrb.mxu1 %v9660_v40  ;;  %v9021_v60 = vld [vmem:[%s12351_s19 + $0x2b0] sm:$0xf0]  ;;  %v6378_v35 = vadd.f32 %v6377_v31, %v6365_v32  ;;  %v8736_v40 = vor.u32 %v11081_v4, %v8733_v28  ;;  %v11285_v42 = vld [vmem:[%s12351_s19 + $0x6ac] sm:$0xf0] }
 0x399   : > { %v13219_v8 = vpop.f32.mrf.mxu2  ;;  %v9024_v38 = vor.u32 %v11153_v34, %v9021_v60  ;;  %v9532_v54 = vor.u32 %v11285_v42, %v9531_v48  ;;  %v11469_v37 = vld [vmem:[%s12351_s19 + $0xc6c] sm:$0xf0]  ;;  %v9917_v15 = vld [vmem:[%s12351_s19 + $0x9b0] sm:$0xf0] }
 0x39a   : > { %6669 = vmatpush.bf16.msra.mxu0 %v10396_v13  ;;  %v10730_v56 = vmul.f32 -1.442695, %v6378_v35  ;;  %v13244_v13 = vpop.f32.mrf.mxu3  ;;  %v9499_v57 = vld [vmem:[%s12351_s19 + $0x650] sm:$0xf]  ;;  %v6379_v39 = vpop.f32.mrf.mxu1  ;;  %v11137_v0 = vld [vmem:[%s12351_s19 + $0x214] sm:$0xf] }
 0x39b   : > { %6694 = vmatpush.bf16.msra.mxu2 %v8896_v58  ;;  %v9085_v58 = vld [vmem:[%s12351_s19 + $0x330] sm:$0xf0]  ;;  %6708 = vmatpush.bf16.msra.mxu3 %v9120_v51  ;;  %v11277_v3 = vld [vmem:[%s12351_s19 + $0x66c] sm:$0xf0] }
 0x39c   : > { %v9088_v16 = vor.u32 %v11169_v44, %v9085_v58  ;;  %6630 = vmatpush.bf16.msrb.mxu1 %v9628_v1  ;;  %v9949_v51 = vld [vmem:[%s12351_s19 + $0x9f0] sm:$0xf0]  ;;  %11717 = vpow2.f32 %v10730_v56  ;;  %v8704_v44 = vor.u32 %v11073_v45, %v8701_v12  ;;  %v10267_v58 = vld [vmem:[%s12351_s19 + $0xc50] sm:$0xf]  ;;  %v6418_v22 = vpop.f32.mrf.mxu0  ;;  %v9500_v20 = vor.u32 %v11277_v3, %v9499_v57 }
 0x39d   : > { %v8989_v1 = vld [vmem:[%s12351_s19 + $0x270] sm:$0xf0]  ;;  %v9467_v17 = vld [vmem:[%s12351_s19 + $0x610] sm:$0xf] }
 0x39e   : > { %6670 = vmatpush.bf16.msra.mxu0 %v10364_v14  ;;  %v8992_v7 = vor.u32 %v11145_v2, %v8989_v1  ;;  %v11269_v19 = vld [vmem:[%s12351_s19 + $0x62c] sm:$0xf0]  ;;  %v8957_v53 = vld [vmem:[%s12351_s19 + $0x230] sm:$0xf0] }
 0x39f   : > { %6695 = vmatpush.bf16.msra.mxu2 %v8864_v24  ;;  %v11485_v24 = vld [vmem:[%s12351_s19 + $0xcec] sm:$0xf0]  ;;  %6709 = vmatpush.bf16.msra.mxu3 %v9088_v16  ;;  %v10268_v16 = vor.u32 %v11469_v37, %v10267_v58  ;;  %v11257_v43 = vld [vmem:[%s12351_s19 + $0x5d4] sm:$0xf]  ;;  %v8960_v28 = vor.u32 %v11137_v0, %v8957_v53 }
 0x3a0   : > { %v10332_v61 = vor.u32 %v11485_v24, %v10331_v23  ;;  %6631 = vmatpush.bf16.msrb.mxu1 %v9596_v21  ;;  %v10235_v14 = vld [vmem:[%s12351_s19 + $0xc10] sm:$0xf]  ;;  %v11449_v21 = vld [vmem:[%s12351_s19 + $0xbd4] sm:$0xf]  ;;  %v9920_v23 = vor.u32 %v11377_v10, %v9917_v15 }
 0x3a1   : > { %v6444_v59 = vpop.f32.mrf.mxu2  ;;  %v11461_v47 = vld [vmem:[%s12351_s19 + $0xc2c] sm:$0xf0]  ;;  %v9437_v29 = vld [vmem:[%s12351_s19 + $0x5f0] sm:$0xf0] }
 0x3a2   : > { %6671 = vmatpush.bf16.msra.mxu0 %v10332_v61  ;;  %v10715_v24 = vld [vmem:[%s12351_s19 + $0xfd0] sm:$0xf]  ;;  %v11718_v4 = vpop.eup %11717  ;;  %v9885_v31 = vld [vmem:[%s12351_s19 + $0x970] sm:$0xf0]  ;;  %v10236_v34 = vor.u32 %v11461_v47, %v10235_v14  ;;  %v6457_v35 = vpop.f32.mrf.mxu3 }
 0x3a3   : > { %6696 = vmatpush.bf16.msra.mxu2 %v8832_v41  ;;  %v10299_v41 = vld [vmem:[%s12351_s19 + $0xc90] sm:$0xf]  ;;  %6710 = vmatpush.bf16.msra.mxu3 %v9056_v50  ;;  %v11369_v50 = vld [vmem:[%s12351_s19 + $0x954] sm:$0xf]  ;;  %v13266_v61 = vadd.f32 1.0, %v11718_v4 }
 0x3a4   : > { %v10300_v52 = vor.u32 %v11477_v5, %v10299_v41  ;;  %6632 = vmatpush.bf16.msrb.mxu1 %v9564_v36  ;;  %v11581_v32 = vld [vmem:[%s12351_s19 + $0xfec] sm:$0xf0]  ;;  %v9468_v36 = vor.u32 %v11269_v19, %v9467_v17  ;;  %v11441_v48 = vld [vmem:[%s12351_s19 + $0xb94] sm:$0xf]  ;;  %v9888_v42 = vor.u32 %v11369_v50, %v9885_v31 }
 0x3a5   : > { %v10173_v41 = vld [vmem:[%s12351_s19 + $0xbb0] sm:$0xf0]  ;;  %11719 = vrcp.f32 %v13266_v61  ;;  %v10716_v5 = vor.u32 %v11581_v32, %v10715_v24  ;;  %v10683_v45 = vld [vmem:[%s12351_s19 + $0xf90] sm:$0xf]  ;;  %v7063_v24 = vand.u32 2147483648, %v13266_v61  ;;  %vm7057_vm6 = vweird.f32 %v13266_v61 }
 0x3a6   : > { %6672 = vmatpush.bf16.msra.mxu0 %v10300_v52  ;;  %v11249_v12 = vld [vmem:[%s12351_s19 + $0x594] sm:$0xf]  ;;  %v10176_v52 = vor.u32 %v11441_v48, %v10173_v41  ;;  %v10651_v37 = vld [vmem:[%s12351_s19 + $0xf50] sm:$0xf]  ;;  %v7061_v4 = vand.u32 2147483647, %v13266_v61 }
 0x3a7   : > { %6697 = vmatpush.bf16.msra.mxu2 %v8800_v62  ;;  %v9952_v62 = vor.u32 %v11385_v49, %v9949_v51  ;;  %6711 = vmatpush.bf16.msra.mxu3 %v9024_v38  ;;  %v9405_v56 = vld [vmem:[%s12351_s19 + $0x5b0] sm:$0xf0]  ;;  %v11573_v38 = vld [vmem:[%s12351_s19 + $0xfac] sm:$0xf0] }
 0x3a8   : > { %6633 = vmatpush.bf16.msrb.mxu1 %v9532_v54  ;;  %v11361_v49 = vld [vmem:[%s12351_s19 + $0x914] sm:$0xf]  ;;  %v9408_v2 = vor.u32 %v11249_v12, %v9405_v56  ;;  %v11565_v57 = vld [vmem:[%s12351_s19 + $0xf6c] sm:$0xf0]  ;;  %vm7062_vm8 = vcmp.eq.f32.partialorder %v7061_v4, 8.507059e+37 }
 0x3a9   : > { %v9853_v51 = vld [vmem:[%s12351_s19 + $0x930] sm:$0xf0]  ;;  %v10652_v14 = vor.u32 %v11565_v57, %v10651_v37  ;;  %v11557_v53 = vld [vmem:[%s12351_s19 + $0xf2c] sm:$0xf0]  ;;  %v11126_v4 = vld [vmem:[%s12351_s19 + $0x1b4] sm:$0xf0] }
 0x3aa   : > { %6673 = vmatpush.bf16.msra.mxu0 %v10268_v16  ;;  %v11433_v1 = vld [vmem:[%s12351_s19 + $0xb54] sm:$0xf]  ;;  %v9856_v58 = vor.u32 %v11361_v49, %v9853_v51  ;;  %v10619_v16 = vld [vmem:[%s12351_s19 + $0xf10] sm:$0xf] }
 0x3ab   : > { %6698 = vmatpush.bf16.msra.mxu2 %v8768_v6  ;;  %v10205_v6 = vld [vmem:[%s12351_s19 + $0xbf0] sm:$0xf0]  ;;  %6712 = vmatpush.bf16.msra.mxu3 %v8992_v7  ;;  %v11720_v7 = vpop.eup %11719  ;;  %v10620_v31 = vor.u32 %v11557_v53, %v10619_v16  ;;  %v11549_v41 = vld [vmem:[%s12351_s19 + $0xeec] sm:$0xf0] }
 0x3ac   : > { %v10208_v60 = vor.u32 %v11449_v21, %v10205_v6  ;;  %6634 = vmatpush.bf16.msrb.mxu1 %v9500_v20  ;;  %v10141_v54 = vld [vmem:[%s12351_s19 + $0xb70] sm:$0xf0]  ;;  %v7053_v15 = vmul.f32 %v11720_v7, %v13266_v61  ;;  %vm7058_vm5 = vweird.f32 %v11720_v7  ;;  %v3600_v61 = vperm.slane %v13118_v55, 3  ;;  %v11541_v37 = vld [vmem:[%s12351_s19 + $0xeac] sm:$0xf0] }
 0x3ad   : > { %v11241_v59 = vld [vmem:[%s12351_s19 + $0x554] sm:$0xf]  ;;  %v10144_v10 = vor.u32 %v11433_v1, %v10141_v54  ;;  %vm7059_vm7 = vmor %vm7057_vm6, %vm7058_vm5  ;;  %v13310_v12 = vpop.f32.mrf.mxu0  ;;  %v13313_v49 = vpop.f32.mrf.mxu1 }
 0x3ae   : > { %6674 = vmatpush.bf16.msra.mxu0 %v10236_v34  ;;  %v11353_v3 = vld [vmem:[%s12351_s19 + $0x8d4] sm:$0xf]  ;;  %v7054_v21 = vsub.f32 1.0, %v7053_v15 }
 0x3af   : > { %6699 = vmatpush.bf16.msra.mxu2 %v8736_v40  ;;  %v9440_v40 = vor.u32 %v11257_v43, %v9437_v29  ;;  %6713 = vmatpush.bf16.msra.mxu3 %v8960_v28  ;;  %v9821_v22 = vld [vmem:[%s12351_s19 + $0x8f0] sm:$0xf0] }
 0x3b0   : > { %6635 = vmatpush.bf16.msrb.mxu1 %v9468_v36  ;;  %v11425_v17 = vld [vmem:[%s12351_s19 + $0xb14] sm:$0xf]  ;;  %v9824_v0 = vor.u32 %v11353_v3, %v9821_v22  ;;  %v7055_v29 = vmul.f32 %v11720_v7, %v7054_v21  ;;  %v8931_v22 = vld [vmem:[%s12351_s19 + $0x1d8] sm:$0xf] }
 0x3b1   : > { %6675 = vmatmul.bf16.vlgmr.msra.gmra.mxu0 %v12725_v46  ;;  %v10109_v19 = vld [vmem:[%s12351_s19 + $0xb30] sm:$0xf0] }
 0x3b2   : > { %6719 = vmatpush.bf16.msrb.mxu0 %v9440_v40  ;;  %6714 = vmatmul.bf16.vlgmr.msra.gmra.mxu3 %v12506_v9  ;;  %v11233_v20 = vld [vmem:[%s12351_s19 + $0x514] sm:$0xf]  ;;  %v10112_v43 = vor.u32 %v11425_v17, %v10109_v19  ;;  %v7056_v40 = vadd.f32 %v11720_v7, %v7055_v29  ;;  %v8899_v29 = vld [vmem:[%s12351_s19 + $0x198] sm:$0xf] }
 0x3b3   : > { %6700 = vmatpush.bf16.msra.mxu2 %v8704_v44  ;;  %6758 = vmatpush.bf16.msrb.mxu3 %v10208_v60  ;;  %v10684_v44 = vor.u32 %v11573_v38, %v10683_v45  ;;  %v9341_v47 = vld [vmem:[%s12351_s19 + $0x530] sm:$0xf0]  ;;  %v10587_v60 = vld [vmem:[%s12351_s19 + $0xed0] sm:$0xf]  ;;  %v7064_v45 = vor.u32 1.1754944e-38, %v7063_v24 }
 0x3b4   : > { %6680 = vmatpush.bf16.msra.mxu1 %v10716_v5  ;;  %v11345_v6 = vld [vmem:[%s12351_s19 + $0x894] sm:$0xf]  ;;  %v9344_v28 = vor.u32 %v11233_v20, %v9341_v47  ;;  %v7060_v38 = vsel %vm7059_vm7, %v11720_v7, %v7056_v40  ;;  %v11134_v7 = vld [vmem:[%s12351_s19 + $0x1f4] sm:$0xf0] }
 0x3b5   : > { %6636 = vmatmul.bf16.vlgmr.msrb.gmra.mxu1 %v12552_v11  ;;  %v11417_v32 = vld [vmem:[%s12351_s19 + $0xad4] sm:$0xf]  ;;  %v7065_v54 = vsel %vm7062_vm8, %v7064_v45, %v7060_v38  ;;  %v6507_v17 = vpop.f32.mrf.mxu3  ;;  %v8932_v21 = vor.u32 %v11134_v7, %v8931_v22  ;;  %v6470_v24 = vpop.f32.mrf.mxu0 }
 0x3b6   : > { %6701 = vmatmul.bf16.vlgmr.msra.gmra.mxu2 %v12519_v27  ;;  %6720 = vmatpush.bf16.msrb.mxu0 %v9408_v2  ;;  %v10077_v50 = vld [vmem:[%s12351_s19 + $0xaf0] sm:$0xf0]  ;;  %7158 = vst [vmem:[%s13226_s24 + $0x8] sm:$0xff] %v7065_v54 }
 0x3b7   : > { %6745 = vmatpush.bf16.msrb.mxu2 %v9952_v62  ;;  %v9373_v62 = vld [vmem:[%s12351_s19 + $0x570] sm:$0xf0]  ;;  %6759 = vmatpush.bf16.msrb.mxu3 %v10176_v52  ;;  %v10080_v56 = vor.u32 %v11417_v32, %v10077_v50  ;;  %v10555_v52 = vld [vmem:[%s12351_s19 + $0xe90] sm:$0xf] }
 0x3b8   : > { %v9376_v39 = vor.u32 %v11241_v59, %v9373_v62  ;;  %6681 = vmatpush.bf16.msra.mxu1 %v10684_v44  ;;  %v11225_v35 = vld [vmem:[%s12351_s19 + $0x4d4] sm:$0xf]  ;;  %v10588_v44 = vor.u32 %v11549_v41, %v10587_v60  ;;  %v10556_v19 = vor.u32 %v11541_v37, %v10555_v52  ;;  %v10491_v50 = vld [vmem:[%s12351_s19 + $0xe10] sm:$0xf]  ;;  %v11198_v41 = vld [vmem:[%s12351_s19 + $0x3f4] sm:$0xf0] }
 0x3b9   : > { %v9309_v36 = vld [vmem:[%s12351_s19 + $0x4f0] sm:$0xf0]  ;;  %v6494_v48 = vpop.f32.mrf.mxu2  ;;  %v11118_v52 = vld [vmem:[%s12351_s19 + $0x174] sm:$0xf0] }
 0x3ba   : > { %6721 = vmatpush.bf16.msrb.mxu0 %v9376_v39  ;;  %v11337_v5 = vld [vmem:[%s12351_s19 + $0x854] sm:$0xf]  ;;  %v9312_v51 = vor.u32 %v11225_v35, %v9309_v36  ;;  %v9155_v37 = vld [vmem:[%s12351_s19 + $0x398] sm:$0xf] }
 0x3bb   : > { %6746 = vmatpush.bf16.msrb.mxu2 %v9920_v23  ;;  %v9789_v23 = vld [vmem:[%s12351_s19 + $0x8b0] sm:$0xf0]  ;;  %6760 = vmatpush.bf16.msrb.mxu3 %v10144_v10  ;;  %v6495_v10 = vadd.f32 %v6494_v48, %v3600_v61  ;;  %v9187_v48 = vld [vmem:[%s12351_s19 + $0x3d8] sm:$0xf] }
 0x3bc   : > { %6682 = vmatpush.bf16.msra.mxu1 %v10652_v14  ;;  %v9792_v34 = vor.u32 %v11345_v6, %v9789_v23  ;;  %v11409_v2 = vld [vmem:[%s12351_s19 + $0xa94] sm:$0xf]  ;;  %v10523_v6 = vld [vmem:[%s12351_s19 + $0xe50] sm:$0xf] }
 0x3bd   : > { %v10045_v1 = vld [vmem:[%s12351_s19 + $0xab0] sm:$0xf0]  ;;  %v13330_v20 = vadd.f32 %v6507_v17, %v6495_v10  ;;  %v11533_v23 = vld [vmem:[%s12351_s19 + $0xe6c] sm:$0xf0]  ;;  %v6509_v54 = vpop.f32.mrf.mxu3  ;;  %v9123_v17 = vld [vmem:[%s12351_s19 + $0x358] sm:$0xf] }
 0x3be   : > { %6722 = vmatpush.bf16.msrb.mxu0 %v9344_v28  ;;  %v11217_v55 = vld [vmem:[%s12351_s19 + $0x494] sm:$0xf]  ;;  %v10048_v3 = vor.u32 %v11409_v2, %v10045_v1  ;;  %v6431_v28 = vpop.f32.mrf.mxu1  ;;  %v10524_v36 = vor.u32 %v11533_v23, %v10523_v6  ;;  %v9188_v1 = vor.u32 %v11198_v41, %v9187_v48  ;;  %v8803_v6 = vld [vmem:[%s12351_s19 + $0xd8] sm:$0xf] }
 0x3bf   : > { %6747 = vmatpush.bf16.msrb.mxu2 %v9888_v42  ;;  %v9757_v42 = vld [vmem:[%s12351_s19 + $0x870] sm:$0xf0]  ;;  %6761 = vmatpush.bf16.msrb.mxu3 %v10112_v43  ;;  %v11102_v23 = vld [vmem:[%s12351_s19 + $0xf4] sm:$0xf0] }
 0x3c0   : > { %6683 = vmatpush.bf16.msra.mxu1 %v10620_v31  ;;  %v9277_v59 = vld [vmem:[%s12351_s19 + $0x4b0] sm:$0xf0]  ;;  %v11525_v31 = vld [vmem:[%s12351_s19 + $0xe2c] sm:$0xf0]  ;;  %v11174_v28 = vld [vmem:[%s12351_s19 + $0x334] sm:$0xf0] }
 0x3c1   : > { %v11329_v62 = vld [vmem:[%s12351_s19 + $0x814] sm:$0xf]  ;;  %v9280_v15 = vor.u32 %v11217_v55, %v9277_v59  ;;  %v6496_v47 = vpop.f32.mrf.mxu2  ;;  %v11190_v55 = vld [vmem:[%s12351_s19 + $0x3b4] sm:$0xf0]  ;;  %v6417_v59 = vadd.f32 %v13229_v30, %v13138_v33 }
 0x3c2   : > { %v9725_v57 = vld [vmem:[%s12351_s19 + $0x830] sm:$0xf0]  ;;  %6723 = vmatpush.bf16.msrb.mxu0 %v9312_v51  ;;  %v8867_v51 = vld [vmem:[%s12351_s19 + $0x158] sm:$0xf]  ;;  %v9156_v33 = vor.u32 %v11190_v55, %v9155_v37 }
 0x3c3   : > { %6748 = vmatpush.bf16.msrb.mxu2 %v9856_v58  ;;  %v9760_v58 = vor.u32 %v11337_v5, %v9757_v42  ;;  %6762 = vmatpush.bf16.msrb.mxu3 %v10080_v56  ;;  %v11401_v39 = vld [vmem:[%s12351_s19 + $0xa54] sm:$0xf]  ;;  %v9728_v14 = vor.u32 %v11329_v62, %v9725_v57  ;;  %v8900_v5 = vor.u32 %v11126_v4, %v8899_v29  ;;  %v9091_v4 = vld [vmem:[%s12351_s19 + $0x318] sm:$0xf] }
 0x3c4   : > { %v10013_v16 = vld [vmem:[%s12351_s19 + $0xa70] sm:$0xf0]  ;;  %6684 = vmatpush.bf16.msra.mxu1 %v10588_v44  ;;  %v10492_v44 = vor.u32 %v11525_v31, %v10491_v50  ;;  %v8868_v57 = vor.u32 %v11118_v52, %v8867_v51  ;;  %v8804_v50 = vor.u32 %v11102_v23, %v8803_v6  ;;  %v9092_v48 = vor.u32 %v11174_v28, %v9091_v4 }
 0x3c5   : > { %v9245_v53 = vld [vmem:[%s12351_s19 + $0x470] sm:$0xf0]  ;;  %v10016_v43 = vor.u32 %v11401_v39, %v10013_v16  ;;  %v11110_v39 = vld [vmem:[%s12351_s19 + $0x134] sm:$0xf0]  ;;  %v6430_v16 = vadd.f32 %v13313_v49, %v6417_v59 }
 0x3c6   : > { %6724 = vmatpush.bf16.msrb.mxu0 %v9280_v15  ;;  %v11393_v60 = vld [vmem:[%s12351_s19 + $0xa14] sm:$0xf]  ;;  %v8835_v15 = vld [vmem:[%s12351_s19 + $0x118] sm:$0xf] }
 0x3c7   : > { %6749 = vmatpush.bf16.msrb.mxu2 %v9824_v0  ;;  %v11209_v0 = vld [vmem:[%s12351_s19 + $0x454] sm:$0xf]  ;;  %6763 = vmatpush.bf16.msrb.mxu3 %v10048_v3  ;;  %v6443_v24 = vadd.f32 %v13219_v8, %v6430_v16  ;;  %v9027_v59 = vld [vmem:[%s12351_s19 + $0x298] sm:$0xf] }
 0x3c8   : > { %v9248_v32 = vor.u32 %v11209_v0, %v9245_v53  ;;  %v9981_v35 = vld [vmem:[%s12351_s19 + $0xa30] sm:$0xf0]  ;;  %6685 = vmatpush.bf16.msra.mxu1 %v10556_v19  ;;  %v11182_v19 = vld [vmem:[%s12351_s19 + $0x374] sm:$0xf0]  ;;  %v8836_v0 = vor.u32 %v11110_v39, %v8835_v15 }
 0x3c9   : > { %v9213_v40 = vld [vmem:[%s12351_s19 + $0x430] sm:$0xf0]  ;;  %v9984_v38 = vor.u32 %v11393_v60, %v9981_v35  ;;  %v8771_v35 = vld [vmem:[%s12351_s19 + $0x98] sm:$0xf] }
 0x3ca   : > { %v11321_v42 = vld [vmem:[%s12351_s19 + $0x7d4] sm:$0xf]  ;;  %6725 = vmatpush.bf16.msrb.mxu0 %v9248_v32  ;;  %v8707_v39 = vld [vmem:[%s12351_s19 + $0x18] sm:$0xf] }
 0x3cb   : > { %6750 = vmatpush.bf16.msrb.mxu2 %v9792_v34  ;;  %v11201_v34 = vld [vmem:[%s12351_s19 + $0x414] sm:$0xf]  ;;  %6764 = vmatpush.bf16.msrb.mxu3 %v10016_v43  ;;  %v9124_v43 = vor.u32 %v11182_v19, %v9123_v17  ;;  %v11078_v16 = vld [vmem:[%s12351_s19 + $0x34] sm:$0xf0] }
 0x3cc   : > { %v11513_v45 = vld [vmem:[%s12351_s19 + $0xdd4] sm:$0xf]  ;;  %v9216_v2 = vor.u32 %v11201_v34, %v9213_v40  ;;  %6686 = vmatpush.bf16.msra.mxu1 %v10524_v36  ;;  %v11094_v36 = vld [vmem:[%s12351_s19 + $0xb4] sm:$0xf0]  ;;  %v6456_v40 = vadd.f32 %v13244_v13, %v6443_v24 }
 0x3cd   : > { %v10461_v56 = vld [vmem:[%s12351_s19 + $0xdf0] sm:$0xf0]  ;;  %v6481_v37 = vpop.f32.mrf.mxu1  ;;  %v9955_v17 = vld [vmem:[%s12351_s19 + $0x9d8] sm:$0xf] }
 0x3ce   : > { %v9693_v61 = vld [vmem:[%s12351_s19 + $0x7f0] sm:$0xf0]  ;;  %6726 = vmatpush.bf16.msrb.mxu0 %v9216_v2  ;;  %v8739_v2 = vld [vmem:[%s12351_s19 + $0x58] sm:$0xf]  ;;  %v6469_v54 = vadd.f32 %v13310_v12, %v6456_v40 }
 0x3cf   : > { %6751 = vmatpush.bf16.msrb.mxu2 %v9760_v58  ;;  %v10464_v58 = vor.u32 %v11513_v45, %v10461_v56  ;;  %v9696_v62 = vor.u32 %v11321_v42, %v9693_v61  ;;  %v11313_v3 = vld [vmem:[%s12351_s19 + $0x794] sm:$0xf]  ;;  %6765 = vmatpush.bf16.msrb.mxu3 %v9984_v38  ;;  %v11166_v42 = vld [vmem:[%s12351_s19 + $0x2f4] sm:$0xf0]  ;;  %v8772_v56 = vor.u32 %v11094_v36, %v8771_v35 }
 0x3d0   : > { %v11505_v22 = vld [vmem:[%s12351_s19 + $0xd94] sm:$0xf]  ;;  %6687 = vmatpush.bf16.msra.mxu1 %v10492_v44  ;;  %v13394_v44 = vpop.f32.mrf.mxu0  ;;  %v11390_v19 = vld [vmem:[%s12351_s19 + $0x9f4] sm:$0xf0] }
 0x3d1   : > { %v10429_v7 = vld [vmem:[%s12351_s19 + $0xdb0] sm:$0xf0]  ;;  %6727 = vmatmul.bf16.vlgmr.msrb.gmra.mxu0 %v12562_v26  ;;  %v8963_v40 = vld [vmem:[%s12351_s19 + $0x218] sm:$0xf] }
 0x3d2   : > { %v9661_v10 = vld [vmem:[%s12351_s19 + $0x7b0] sm:$0xf0]  ;;  %6771 = vmatpush.bf16.msra.mxu0 %v10464_v58  ;;  %v10432_v30 = vor.u32 %v11505_v22, %v10429_v7  ;;  %6766 = vmatmul.bf16.vlgmr.msrb.gmra.mxu3 %v12664_v63 }
 0x3d3   : > { %6752 = vmatpush.bf16.msrb.mxu2 %v9728_v14  ;;  %6810 = vmatpush.bf16.msra.mxu3 %v9188_v1  ;;  %v9664_v14 = vor.u32 %v11313_v3, %v9661_v10  ;;  %v11305_v53 = vld [vmem:[%s12351_s19 + $0x754] sm:$0xf]  ;;  %v11086_v1 = vld [vmem:[%s12351_s19 + $0x74] sm:$0xf0] }
 0x3d4   : > { %6732 = vmatpush.bf16.msrb.mxu1 %v9696_v62  ;;  %v11497_v47 = vld [vmem:[%s12351_s19 + $0xd54] sm:$0xf]  ;;  %v11158_v62 = vld [vmem:[%s12351_s19 + $0x2b4] sm:$0xf0]  ;;  %v8740_v3 = vor.u32 %v11086_v1, %v8739_v2 }
 0x3d5   : > { %v10397_v49 = vld [vmem:[%s12351_s19 + $0xd70] sm:$0xf0]  ;;  %6688 = vmatmul.bf16.vlgmr.msra.gmra.mxu1 %v12785_v25 }
 0x3d6   : > { %6753 = vmatmul.bf16.vlgmr.msrb.gmra.mxu2 %v12594_v18  ;;  %6772 = vmatpush.bf16.msra.mxu0 %v10432_v30  ;;  %v10400_v29 = vor.u32 %v11497_v47, %v10397_v49  ;;  %v11297_v31 = vld [vmem:[%s12351_s19 + $0x714] sm:$0xf]  ;;  %v9028_v30 = vor.u32 %v11158_v62, %v9027_v59  ;;  %v13408_v47 = vpop.f32.mrf.mxu3 }
 0x3d7   : > { %6797 = vmatpush.bf16.msra.mxu2 %v8932_v21  ;;  %v9629_v21 = vld [vmem:[%s12351_s19 + $0x770] sm:$0xf0]  ;;  %6811 = vmatpush.bf16.msra.mxu3 %v9156_v33 }
 0x3d8   : > { %6733 = vmatpush.bf16.msrb.mxu1 %v9664_v14  ;;  %v9632_v32 = vor.u32 %v11305_v53, %v9629_v21  ;;  %v11489_v34 = vld [vmem:[%s12351_s19 + $0xd14] sm:$0xf]  ;;  %v11150_v53 = vld [vmem:[%s12351_s19 + $0x274] sm:$0xf0]  ;;  %v8708_v21 = vor.u32 %v11078_v16, %v8707_v39  ;;  %v6522_v28 = vpop.f32.mrf.mxu0 }
 0x3d9   : > { %v10365_v8 = vld [vmem:[%s12351_s19 + $0xd30] sm:$0xf0]  ;;  %v13388_v52 = vpop.f32.mrf.mxu2  ;;  %v9411_v39 = vld [vmem:[%s12351_s19 + $0x598] sm:$0xf] }
 0x3da   : > { %v9597_v60 = vld [vmem:[%s12351_s19 + $0x730] sm:$0xf0]  ;;  %6773 = vmatpush.bf16.msra.mxu0 %v10400_v29  ;;  %v10368_v41 = vor.u32 %v11489_v34, %v10365_v8  ;;  %v6483_v34 = vpop.f32.mrf.mxu1  ;;  %v11254_v16 = vld [vmem:[%s12351_s19 + $0x5b4] sm:$0xf0] }
 0x3db   : > { %6798 = vmatpush.bf16.msra.mxu2 %v8900_v5  ;;  %6812 = vmatpush.bf16.msra.mxu3 %v9124_v43  ;;  %v9059_v5 = vld [vmem:[%s12351_s19 + $0x2d8] sm:$0xf]  ;;  %v9600_v45 = vor.u32 %v11297_v31, %v9597_v60  ;;  %v11289_v38 = vld [vmem:[%s12351_s19 + $0x6d4] sm:$0xf]  ;;  %v9956_v43 = vor.u32 %v11390_v19, %v9955_v17 }
 0x3dc   : > { %6734 = vmatpush.bf16.msrb.mxu1 %v9632_v32  ;;  %v11481_v61 = vld [vmem:[%s12351_s19 + $0xcd4] sm:$0xf]  ;;  %v9060_v58 = vor.u32 %v11166_v42, %v9059_v5  ;;  %v11382_v31 = vld [vmem:[%s12351_s19 + $0x9b4] sm:$0xf0] }
 0x3dd   : > { %v10333_v51 = vld [vmem:[%s12351_s19 + $0xcf0] sm:$0xf0]  ;;  %v10211_v42 = vld [vmem:[%s12351_s19 + $0xbd8] sm:$0xf] }
 0x3de   : > { %v9565_v13 = vld [vmem:[%s12351_s19 + $0x6f0] sm:$0xf0]  ;;  %6774 = vmatpush.bf16.msra.mxu0 %v10368_v41  ;;  %v10336_v55 = vor.u32 %v11481_v61, %v10333_v51  ;;  %v9443_v61 = vld [vmem:[%s12351_s19 + $0x5d8] sm:$0xf]  ;;  %v6561_v62 = vpop.f32.mrf.mxu3 }
 0x3df   : > { %6799 = vmatpush.bf16.msra.mxu2 %v8868_v57  ;;  %6813 = vmatpush.bf16.msra.mxu3 %v9092_v48  ;;  %v6482_v57 = vadd.f32 %v6481_v37, %v6469_v54  ;;  %v9568_v12 = vor.u32 %v11289_v38, %v9565_v13  ;;  %v11281_v22 = vld [vmem:[%s12351_s19 + $0x694] sm:$0xf]  ;;  %v11142_v48 = vld [vmem:[%s12351_s19 + $0x234] sm:$0xf0] }
 0x3e0   : > { %6735 = vmatpush.bf16.msrb.mxu1 %v9600_v45  ;;  %v11473_v7 = vld [vmem:[%s12351_s19 + $0xc94] sm:$0xf]  ;;  %v11454_v45 = vld [vmem:[%s12351_s19 + $0xbf4] sm:$0xf0]  ;;  %v8964_v2 = vor.u32 %v11142_v48, %v8963_v40 }
 0x3e1   : > { %v10301_v10 = vld [vmem:[%s12351_s19 + $0xcb0] sm:$0xf0]  ;;  %v10731_v33 = vmul.f32 -1.442695, %v6482_v57  ;;  %v6548_v24 = vpop.f32.mrf.mxu2  ;;  %v11262_v51 = vld [vmem:[%s12351_s19 + $0x5f4] sm:$0xf0]  ;;  %v10212_v59 = vor.u32 %v11454_v45, %v10211_v42 }
 0x3e2   : > { %v9533_v15 = vld [vmem:[%s12351_s19 + $0x6b0] sm:$0xf0]  ;;  %6775 = vmatpush.bf16.msra.mxu0 %v10336_v55  ;;  %v10304_v14 = vor.u32 %v11473_v7, %v10301_v10  ;;  %v9891_v54 = vld [vmem:[%s12351_s19 + $0x958] sm:$0xf] }
 0x3e3   : > { %6800 = vmatpush.bf16.msra.mxu2 %v8836_v0  ;;  %6814 = vmatpush.bf16.msra.mxu3 %v9060_v58  ;;  %v8995_v0 = vld [vmem:[%s12351_s19 + $0x258] sm:$0xf]  ;;  %11721 = vpow2.f32 %v10731_v33  ;;  %v9536_v49 = vor.u32 %v11281_v22, %v9533_v15  ;;  %v11465_v6 = vld [vmem:[%s12351_s19 + $0xc54] sm:$0xf] }
 0x3e4   : > { %6736 = vmatpush.bf16.msrb.mxu1 %v9568_v12  ;;  %v10269_v23 = vld [vmem:[%s12351_s19 + $0xc70] sm:$0xf0]  ;;  %v8996_v32 = vor.u32 %v11150_v53, %v8995_v0  ;;  %v11374_v58 = vld [vmem:[%s12351_s19 + $0x974] sm:$0xf0]  ;;  %v9444_v12 = vor.u32 %v11262_v51, %v9443_v61 }
 0x3e5   : > { %v11273_v29 = vld [vmem:[%s12351_s19 + $0x654] sm:$0xf]  ;;  %v10272_v8 = vor.u32 %v11465_v6, %v10269_v23  ;;  %v11446_v22 = vld [vmem:[%s12351_s19 + $0xbb4] sm:$0xf0]  ;;  %v9892_v10 = vor.u32 %v11374_v58, %v9891_v54 }
 0x3e6   : > { %v9501_v4 = vld [vmem:[%s12351_s19 + $0x670] sm:$0xf0]  ;;  %6776 = vmatpush.bf16.msra.mxu0 %v10304_v14  ;;  %v11366_v17 = vld [vmem:[%s12351_s19 + $0x934] sm:$0xf0]  ;;  %v9412_v14 = vor.u32 %v11254_v16, %v9411_v39 }
 0x3e7   : > { %6801 = vmatpush.bf16.msra.mxu2 %v8804_v50  ;;  %6815 = vmatpush.bf16.msra.mxu3 %v9028_v30  ;;  %v9923_v50 = vld [vmem:[%s12351_s19 + $0x998] sm:$0xf]  ;;  %v11265_v60 = vld [vmem:[%s12351_s19 + $0x614] sm:$0xf]  ;;  %v9504_v41 = vor.u32 %v11273_v29, %v9501_v4 }
 0x3e8   : > { %v9469_v35 = vld [vmem:[%s12351_s19 + $0x630] sm:$0xf0]  ;;  %6737 = vmatpush.bf16.msrb.mxu1 %v9536_v49  ;;  %v9859_v30 = vld [vmem:[%s12351_s19 + $0x918] sm:$0xf] }
 0x3e9   : > { %v11457_v36 = vld [vmem:[%s12351_s19 + $0xc14] sm:$0xf]  ;;  %v11722_v13 = vpop.eup %11721  ;;  %v9472_v57 = vor.u32 %v11265_v60, %v9469_v35  ;;  %v10147_v0 = vld [vmem:[%s12351_s19 + $0xb58] sm:$0xf] }
 0x3ea   : > { %v10237_v5 = vld [vmem:[%s12351_s19 + $0xc30] sm:$0xf0]  ;;  %v13430_v37 = vadd.f32 1.0, %v11722_v13  ;;  %6777 = vmatpush.bf16.msra.mxu0 %v10272_v8  ;;  %v11438_v53 = vld [vmem:[%s12351_s19 + $0xb74] sm:$0xf0] }
 0x3eb   : > { %6802 = vmatpush.bf16.msra.mxu2 %v8772_v56  ;;  %v9924_v56 = vor.u32 %v11382_v31, %v9923_v50  ;;  %v11577_v38 = vld [vmem:[%s12351_s19 + $0xfd4] sm:$0xf]  ;;  %6816 = vmatpush.bf16.msra.mxu3 %v8996_v32  ;;  %v10240_v55 = vor.u32 %v11457_v36, %v10237_v5  ;;  %v9379_v23 = vld [vmem:[%s12351_s19 + $0x558] sm:$0xf]  ;;  %v10148_v32 = vor.u32 %v11438_v53, %v10147_v0 }
 0x3ec   : > { %v10717_v1 = vld [vmem:[%s12351_s19 + $0xff0] sm:$0xf0]  ;;  %6738 = vmatpush.bf16.msrb.mxu1 %v9504_v41  ;;  %11723 = vrcp.f32 %v13430_v37  ;;  %v11246_v24 = vld [vmem:[%s12351_s19 + $0x574] sm:$0xf0]  ;;  %v7076_v51 = vand.u32 2147483647, %v13430_v37  ;;  %vm7072_vm10 = vweird.f32 %v13430_v37 }
 0x3ed   : > { %v10720_v7 = vor.u32 %v11577_v38, %v10717_v1  ;;  %v11569_v15 = vld [vmem:[%s12351_s19 + $0xf94] sm:$0xf]  ;;  %v9827_v29 = vld [vmem:[%s12351_s19 + $0x8d8] sm:$0xf]  ;;  %v9380_v31 = vor.u32 %v11246_v24, %v9379_v23  ;;  %v13478_v39 = vpop.f32.mrf.mxu0 }
 0x3ee   : > { %v10685_v33 = vld [vmem:[%s12351_s19 + $0xfb0] sm:$0xf0]  ;;  %6778 = vmatpush.bf16.msra.mxu0 %v10240_v55  ;;  %v11358_v4 = vld [vmem:[%s12351_s19 + $0x8f4] sm:$0xf0]  ;;  %vm7077_vm12 = vcmp.eq.f32.partialorder %v7076_v51, 8.507059e+37 }
 0x3ef   : > { %6803 = vmatpush.bf16.msra.mxu2 %v8740_v3  ;;  %v10179_v3 = vld [vmem:[%s12351_s19 + $0xb98] sm:$0xf]  ;;  %6817 = vmatpush.bf16.msra.mxu3 %v8964_v2  ;;  %v10688_v49 = vor.u32 %v11569_v15, %v10685_v33  ;;  %v11561_v6 = vld [vmem:[%s12351_s19 + $0xf54] sm:$0xf]  ;;  %v9828_v36 = vor.u32 %v11358_v4, %v9827_v29  ;;  %v13483_v33 = vld [vmem:[%s12798_s21] sm:$0xff] }
 0x3f0   : > { %v10180_v19 = vor.u32 %v11446_v22, %v10179_v3  ;;  %6739 = vmatpush.bf16.msrb.mxu1 %v9472_v57  ;;  %v11553_v34 = vld [vmem:[%s12351_s19 + $0xf14] sm:$0xf]  ;;  %v10115_v8 = vld [vmem:[%s12351_s19 + $0xb18] sm:$0xf] }
 0x3f1   : > { %6779 = vmatmul.bf16.vlgmr.msra.gmra.mxu0 %v12725_v46  ;;  %v11430_v60 = vld [vmem:[%s12351_s19 + $0xb34] sm:$0xf0]  ;;  %v10621_v40 = vld [vmem:[%s12351_s19 + $0xf30] sm:$0xf0] }
 0x3f2   : > { %6823 = vmatpush.bf16.msrb.mxu0 %v9444_v12  ;;  %6818 = vmatmul.bf16.vlgmr.msra.gmra.mxu3 %v12506_v9  ;;  %v11724_v28 = vpop.eup %11723  ;;  %v9347_v48 = vld [vmem:[%s12351_s19 + $0x518] sm:$0xf]  ;;  %v10116_v38 = vor.u32 %v11430_v60, %v10115_v8  ;;  %v10624_v54 = vor.u32 %v11553_v34, %v10621_v40  ;;  %v11545_v55 = vld [vmem:[%s12351_s19 + $0xed4] sm:$0xf] }
 0x3f3   : > { %6804 = vmatpush.bf16.msra.mxu2 %v8708_v21  ;;  %6862 = vmatpush.bf16.msrb.mxu3 %v10212_v59  ;;  %v9860_v21 = vor.u32 %v11366_v17, %v9859_v30  ;;  %v7068_v50 = vmul.f32 %v11724_v28, %v13430_v37  ;;  %v11238_v41 = vld [vmem:[%s12351_s19 + $0x534] sm:$0xf0]  ;;  %vm7073_vm9 = vweird.f32 %v11724_v28  ;;  %v10589_v3 = vld [vmem:[%s12351_s19 + $0xef0] sm:$0xf0]  ;;  %v3601_v30 = vperm.slane %v13483_v33, 4  ;;  %v13486_v17 = vpop.f32.mrf.mxu1 }
 0x3f4   : > { %6784 = vmatpush.bf16.msra.mxu1 %v10720_v7  ;;  %v9795_v42 = vld [vmem:[%s12351_s19 + $0x898] sm:$0xf]  ;;  %v9348_v13 = vor.u32 %v11238_v41, %v9347_v48  ;;  %vm13474_vm11 = vmor %vm7072_vm10, %vm7073_vm9  ;;  %v10557_v23 = vld [vmem:[%s12351_s19 + $0xeb0] sm:$0xf0] }
 0x3f5   : > { %6740 = vmatmul.bf16.vlgmr.msrb.gmra.mxu1 %v12552_v11  ;;  %v7069_v5 = vsub.f32 1.0, %v7068_v50  ;;  %v11350_v45 = vld [vmem:[%s12351_s19 + $0x8b4] sm:$0xf0]  ;;  %v8933_v50 = vld [vmem:[%s12351_s19 + $0x1f8] sm:$0xf0] }
 0x3f6   : > { %6805 = vmatmul.bf16.vlgmr.msra.gmra.mxu2 %v12519_v27  ;;  %6824 = vmatpush.bf16.msrb.mxu0 %v9412_v14  ;;  %v10083_v2 = vld [vmem:[%s12351_s19 + $0xad8] sm:$0xf]  ;;  %v9796_v58 = vor.u32 %v11350_v45, %v9795_v42  ;;  %v11537_v14 = vld [vmem:[%s12351_s19 + $0xe94] sm:$0xf] }
 0x3f7   : > { %6849 = vmatpush.bf16.msrb.mxu2 %v9956_v43  ;;  %v10653_v43 = vld [vmem:[%s12351_s19 + $0xf70] sm:$0xf0]  ;;  %6863 = vmatpush.bf16.msrb.mxu3 %v10180_v19  ;;  %v7070_v61 = vmul.f32 %v11724_v28, %v7069_v5  ;;  %v11422_v1 = vld [vmem:[%s12351_s19 + $0xaf4] sm:$0xf0] }
 0x3f8   : > { %6785 = vmatpush.bf16.msra.mxu1 %v10688_v49  ;;  %v10656_v35 = vor.u32 %v11561_v6, %v10653_v43  ;;  %v9315_v59 = vld [vmem:[%s12351_s19 + $0x4d8] sm:$0xf]  ;;  %v10084_v16 = vor.u32 %v11422_v1, %v10083_v2  ;;  %v8901_v2 = vld [vmem:[%s12351_s19 + $0x1b8] sm:$0xf0] }
 0x3f9   : > { %v11230_v62 = vld [vmem:[%s12351_s19 + $0x4f4] sm:$0xf0]  ;;  %v7071_v57 = vadd.f32 %v11724_v28, %v7070_v61  ;;  %v6598_v12 = vpop.f32.mrf.mxu2  ;;  %v6574_v61 = vpop.f32.mrf.mxu0 }
 0x3fa   : > { %6825 = vmatpush.bf16.msrb.mxu0 %v9380_v31  ;;  %v9763_v22 = vld [vmem:[%s12351_s19 + $0x858] sm:$0xf]  ;;  %v9316_v19 = vor.u32 %v11230_v62, %v9315_v59  ;;  %v6599_v31 = vadd.f32 %v6598_v12, %v3601_v30  ;;  %v8805_v61 = vld [vmem:[%s12351_s19 + $0xf8] sm:$0xf0] }
 0x3fb   : > { %6850 = vmatpush.bf16.msrb.mxu2 %v9924_v56  ;;  %v7078_v56 = vand.u32 2147483648, %v13430_v37  ;;  %6864 = vmatpush.bf16.msrb.mxu3 %v10148_v32  ;;  %v11342_v7 = vld [vmem:[%s12351_s19 + $0x874] sm:$0xf0]  ;;  %v7075_v37 = vsel %vm13474_vm11, %v11724_v28, %v7071_v57  ;;  %v11130_v32 = vld [vmem:[%s12351_s19 + $0x1dc] sm:$0xf]  ;;  %v6535_v1 = vpop.f32.mrf.mxu1 }
 0x3fc   : > { %6786 = vmatpush.bf16.msra.mxu1 %v10656_v35  ;;  %v10051_v0 = vld [vmem:[%s12351_s19 + $0xa98] sm:$0xf]  ;;  %v9764_v6 = vor.u32 %v11342_v7, %v9763_v22  ;;  %v6611_v35 = vpop.f32.mrf.mxu3  ;;  %v8936_v45 = vor.u32 %v11130_v32, %v8933_v50  ;;  %v11194_v22 = vld [vmem:[%s12351_s19 + $0x3dc] sm:$0xf] }
 0x3fd   : > { %v7079_v15 = vor.u32 1.1754944e-38, %v7078_v56  ;;  %v11414_v53 = vld [vmem:[%s12351_s19 + $0xab4] sm:$0xf0]  ;;  %v13503_v5 = vadd.f32 %v6611_v35, %v6599_v31  ;;  %v11529_v56 = vld [vmem:[%s12351_s19 + $0xe54] sm:$0xf] }
 0x3fe   : > { %6826 = vmatpush.bf16.msrb.mxu0 %v9348_v13  ;;  %v9283_v24 = vld [vmem:[%s12351_s19 + $0x498] sm:$0xf]  ;;  %v10052_v28 = vor.u32 %v11414_v53, %v10051_v0  ;;  %v11122_v13 = vld [vmem:[%s12351_s19 + $0x19c] sm:$0xf] }
 0x3ff   : > { %6851 = vmatpush.bf16.msrb.mxu2 %v9892_v10  ;;  %6865 = vmatpush.bf16.msrb.mxu3 %v10116_v38  ;;  %v7080_v49 = vsel %vm7077_vm12, %v7079_v15, %v7075_v37  ;;  %v11222_v43 = vld [vmem:[%s12351_s19 + $0x4b4] sm:$0xf0]  ;;  %v10525_v38 = vld [vmem:[%s12351_s19 + $0xe70] sm:$0xf0]  ;;  %v9189_v7 = vld [vmem:[%s12351_s19 + $0x3f8] sm:$0xf0]  ;;  %v8904_v10 = vor.u32 %v11122_v13, %v8901_v2 }
 0x400   : > { %6787 = vmatpush.bf16.msra.mxu1 %v10624_v54  ;;  %7159 = vst [vmem:[%s13226_s24 + $0x10] sm:$0xff] %v7080_v49  ;;  %v9731_v29 = vld [vmem:[%s12351_s19 + $0x818] sm:$0xf]  ;;  %v9284_v34 = vor.u32 %v11222_v43, %v9283_v24  ;;  %v10528_v12 = vor.u32 %v11529_v56, %v10525_v38  ;;  %v8869_v0 = vld [vmem:[%s12351_s19 + $0x178] sm:$0xf0]  ;;  %v9192_v49 = vor.u32 %v11194_v22, %v9189_v7 }
 0x401   : > { %v11334_v4 = vld [vmem:[%s12351_s19 + $0x834] sm:$0xf0]  ;;  %v6600_v42 = vpop.f32.mrf.mxu2  ;;  %v11186_v24 = vld [vmem:[%s12351_s19 + $0x39c] sm:$0xf] }
 0x402   : > { %6827 = vmatpush.bf16.msrb.mxu0 %v9316_v19  ;;  %v10019_v8 = vld [vmem:[%s12351_s19 + $0xa58] sm:$0xf]  ;;  %v9732_v40 = vor.u32 %v11334_v4, %v9731_v29  ;;  %v9157_v43 = vld [vmem:[%s12351_s19 + $0x3b8] sm:$0xf0]  ;;  %v6521_v29 = vadd.f32 %v13394_v44, %v13330_v20 }
 0x403   : > { %6852 = vmatpush.bf16.msrb.mxu2 %v9860_v21  ;;  %v10592_v21 = vor.u32 %v11545_v55, %v10589_v3  ;;  %6866 = vmatpush.bf16.msrb.mxu3 %v10084_v16  ;;  %v11406_v60 = vld [vmem:[%s12351_s19 + $0xa74] sm:$0xf0]  ;;  %v10493_v55 = vld [vmem:[%s12351_s19 + $0xe30] sm:$0xf0]  ;;  %v9160_v20 = vor.u32 %v11186_v24, %v9157_v43  ;;  %v11098_v38 = vld [vmem:[%s12351_s19 + $0xdc] sm:$0xf] }
 0x404   : > { %v9251_v48 = vld [vmem:[%s12351_s19 + $0x458] sm:$0xf]  ;;  %v10020_v51 = vor.u32 %v11406_v60, %v10019_v8  ;;  %v11106_v8 = vld [vmem:[%s12351_s19 + $0x11c] sm:$0xf]  ;;  %v6534_v35 = vadd.f32 %v13486_v17, %v6521_v29 }
 0x405   : > { %6788 = vmatpush.bf16.msra.mxu1 %v10592_v21  ;;  %v11214_v41 = vld [vmem:[%s12351_s19 + $0x474] sm:$0xf0]  ;;  %v6613_v21 = vpop.f32.mrf.mxu3  ;;  %v8837_v60 = vld [vmem:[%s12351_s19 + $0x138] sm:$0xf0] }
 0x406   : > { %6828 = vmatpush.bf16.msrb.mxu0 %v9284_v34  ;;  %v9252_v54 = vor.u32 %v11214_v41, %v9251_v48  ;;  %v9219_v59 = vld [vmem:[%s12351_s19 + $0x418] sm:$0xf]  ;;  %v8840_v41 = vor.u32 %v11106_v8, %v8837_v60  ;;  %v11170_v1 = vld [vmem:[%s12351_s19 + $0x31c] sm:$0xf] }
 0x407   : > { %6853 = vmatpush.bf16.msrb.mxu2 %v9828_v36  ;;  %v10560_v36 = vor.u32 %v11537_v14, %v10557_v23  ;;  %6867 = vmatpush.bf16.msrb.mxu3 %v10052_v28  ;;  %v9987_v62 = vld [vmem:[%s12351_s19 + $0xa18] sm:$0xf]  ;;  %v11114_v14 = vld [vmem:[%s12351_s19 + $0x15c] sm:$0xf] }
 0x408   : > { %v11398_v57 = vld [vmem:[%s12351_s19 + $0xa34] sm:$0xf0]  ;;  %v8872_v28 = vor.u32 %v11114_v14, %v8869_v0  ;;  %v8741_v21 = vld [vmem:[%s12351_s19 + $0x78] sm:$0xf0] }
 0x409   : > { %6789 = vmatpush.bf16.msra.mxu1 %v10560_v36  ;;  %v11206_v3 = vld [vmem:[%s12351_s19 + $0x434] sm:$0xf0]  ;;  %v9988_v30 = vor.u32 %v11398_v57, %v9987_v62  ;;  %v11178_v36 = vld [vmem:[%s12351_s19 + $0x35c] sm:$0xf] }
 0x40a   : > { %v9699_v15 = vld [vmem:[%s12351_s19 + $0x7d8] sm:$0xf]  ;;  %6829 = vmatpush.bf16.msrb.mxu0 %v9252_v54  ;;  %v9220_v53 = vor.u32 %v11206_v3, %v9219_v59  ;;  %v9093_v54 = vld [vmem:[%s12351_s19 + $0x338] sm:$0xf0] }
 0x40b   : > { %6854 = vmatpush.bf16.msrb.mxu2 %v9796_v58  ;;  %v11521_v58 = vld [vmem:[%s12351_s19 + $0xe14] sm:$0xf]  ;;  %v10467_v16 = vld [vmem:[%s12351_s19 + $0xdd8] sm:$0xf]  ;;  %6868 = vmatpush.bf16.msrb.mxu3 %v10020_v51  ;;  %v6547_v51 = vadd.f32 %v13388_v52, %v6534_v35  ;;  %v8773_v3 = vld [vmem:[%s12351_s19 + $0xb8] sm:$0xf0]  ;;  %v9096_v7 = vor.u32 %v11170_v1, %v9093_v54 }
 0x40c   : > { %v11518_v37 = vld [vmem:[%s12351_s19 + $0xdf4] sm:$0xf0]  ;;  %v11074_v35 = vld [vmem:[%s12351_s19 + $0x1c] sm:$0xf] }
 0x40d   : > { %v11326_v19 = vld [vmem:[%s12351_s19 + $0x7f4] sm:$0xf0]  ;;  %6790 = vmatpush.bf16.msra.mxu1 %v10528_v12  ;;  %v10468_v23 = vor.u32 %v11518_v37, %v10467_v16  ;;  %v11090_v12 = vld [vmem:[%s12351_s19 + $0x9c] sm:$0xf]  ;;  %v6560_v22 = vadd.f32 %v13408_v47, %v6547_v51 }
 0x40e   : > { %v9700_v4 = vor.u32 %v11326_v19, %v9699_v15  ;;  %v9667_v32 = vld [vmem:[%s12351_s19 + $0x798] sm:$0xf]  ;;  %6830 = vmatpush.bf16.msrb.mxu0 %v9220_v53  ;;  %v11162_v15 = vld [vmem:[%s12351_s19 + $0x2dc] sm:$0xf]  ;;  %v6585_v43 = vpop.f32.mrf.mxu1 }
 0x40f   : > { %6855 = vmatpush.bf16.msrb.mxu2 %v9764_v6  ;;  %v10496_v6 = vor.u32 %v11521_v58, %v10493_v55  ;;  %v10435_v50 = vld [vmem:[%s12351_s19 + $0xd98] sm:$0xf]  ;;  %6869 = vmatpush.bf16.msrb.mxu3 %v9988_v30  ;;  %v8808_v55 = vor.u32 %v11098_v38, %v8805_v61  ;;  %v9061_v16 = vld [vmem:[%s12351_s19 + $0x2f8] sm:$0xf0]  ;;  %v8776_v30 = vor.u32 %v11090_v12, %v8773_v3 }
 0x410   : > { %v11510_v31 = vld [vmem:[%s12351_s19 + $0xdb4] sm:$0xf0]  ;;  %v9064_v24 = vor.u32 %v11162_v15, %v9061_v16 }
 0x411   : > { %v11318_v34 = vld [vmem:[%s12351_s19 + $0x7b4] sm:$0xf0]  ;;  %6791 = vmatpush.bf16.msra.mxu1 %v10496_v6  ;;  %v10436_v44 = vor.u32 %v11510_v31, %v10435_v50  ;;  %6831 = vmatmul.bf16.vlgmr.msrb.gmra.mxu0 %v12562_v26  ;;  %v6573_v6 = vadd.f32 %v13478_v39, %v6560_v22 }
 0x412   : > { %6875 = vmatpush.bf16.msra.mxu0 %v10468_v23  ;;  %v9668_v48 = vor.u32 %v11318_v34, %v9667_v32  ;;  %v9635_v42 = vld [vmem:[%s12351_s19 + $0x758] sm:$0xf]  ;;  %6870 = vmatmul.bf16.vlgmr.msrb.gmra.mxu3 %v12664_v63  ;;  %v13567_v23 = vpop.f32.mrf.mxu0 }
 0x413   : > { %6856 = vmatpush.bf16.msrb.mxu2 %v9732_v40  ;;  %6914 = vmatpush.bf16.msra.mxu3 %v9192_v49  ;;  %v9125_v40 = vld [vmem:[%s12351_s19 + $0x378] sm:$0xf0]  ;;  %v11502_v17 = vld [vmem:[%s12351_s19 + $0xd74] sm:$0xf0]  ;;  %v6586_v32 = vadd.f32 %v6585_v43, %v6573_v6 }
 0x414   : > { %v11310_v56 = vld [vmem:[%s12351_s19 + $0x774] sm:$0xf0]  ;;  %6792 = vmatmul.bf16.vlgmr.msra.gmra.mxu1 %v12785_v25  ;;  %v9128_v13 = vor.u32 %v11178_v36, %v9125_v40  ;;  %v11082_v49 = vld [vmem:[%s12351_s19 + $0x5c] sm:$0xf] }
 0x415   : > { %6836 = vmatpush.bf16.msrb.mxu1 %v9700_v4  ;;  %v9636_v58 = vor.u32 %v11310_v56, %v9635_v42  ;;  %v9603_v59 = vld [vmem:[%s12351_s19 + $0x718] sm:$0xf]  ;;  %v11154_v4 = vld [vmem:[%s12351_s19 + $0x29c] sm:$0xf]  ;;  %v8744_v50 = vor.u32 %v11082_v49, %v8741_v21 }
 0x416   : > { %6857 = vmatmul.bf16.vlgmr.msrb.gmra.mxu2 %v12594_v18  ;;  %6876 = vmatpush.bf16.msra.mxu0 %v10436_v44  ;;  %v10371_v62 = vld [vmem:[%s12351_s19 + $0xd18] sm:$0xf]  ;;  %v10732_v44 = vmul.f32 -1.442695, %v6586_v32  ;;  %v11386_v40 = vld [vmem:[%s12351_s19 + $0x9dc] sm:$0xf] }
 0x417   : > { %6901 = vmatpush.bf16.msra.mxu2 %v8936_v45  ;;  %v10403_v45 = vld [vmem:[%s12351_s19 + $0xd58] sm:$0xf]  ;;  %6915 = vmatpush.bf16.msra.mxu3 %v9160_v20  ;;  %v8709_v20 = vld [vmem:[%s12351_s19 + $0x38] sm:$0xf0] }
 0x418   : > { %v10404_v2 = vor.u32 %v11502_v17, %v10403_v45  ;;  %v11494_v52 = vld [vmem:[%s12351_s19 + $0xd34] sm:$0xf0]  ;;  %v11146_v42 = vld [vmem:[%s12351_s19 + $0x25c] sm:$0xf]  ;;  %11725 = vpow2.f32 %v10732_v44  ;;  %v13581_v17 = vpop.f32.mrf.mxu3  ;;  %v8712_v38 = vor.u32 %v11074_v35, %v8709_v20 }
 0x419   : > { %6837 = vmatpush.bf16.msrb.mxu1 %v9668_v48  ;;  %v11302_v57 = vld [vmem:[%s12351_s19 + $0x734] sm:$0xf0]  ;;  %v13561_v53 = vpop.f32.mrf.mxu2  ;;  %v9957_v48 = vld [vmem:[%s12351_s19 + $0x9f8] sm:$0xf0] }
 0x41a   : > { %6877 = vmatpush.bf16.msra.mxu0 %v10404_v2  ;;  %v9604_v37 = vor.u32 %v11302_v57, %v9603_v59  ;;  %v9571_v19 = vld [vmem:[%s12351_s19 + $0x6d8] sm:$0xf]  ;;  %v8997_v45 = vld [vmem:[%s12351_s19 + $0x278] sm:$0xf0]  ;;  %v9960_v2 = vor.u32 %v11386_v40, %v9957_v48 }
 0x41b   : > { %6902 = vmatpush.bf16.msra.mxu2 %v8904_v10  ;;  %6916 = vmatpush.bf16.msra.mxu3 %v9128_v13  ;;  %v10372_v10 = vor.u32 %v11494_v52, %v10371_v62  ;;  %v10339_v14 = vld [vmem:[%s12351_s19 + $0xcd8] sm:$0xf]  ;;  %v11378_v59 = vld [vmem:[%s12351_s19 + $0x99c] sm:$0xf]  ;;  %v6587_v52 = vpop.f32.mrf.mxu1 }
 0x41c   : > { %v11486_v0 = vld [vmem:[%s12351_s19 + $0xcf4] sm:$0xf0]  ;;  %v9925_v62 = vld [vmem:[%s12351_s19 + $0x9b8] sm:$0xf0] }
 0x41d   : > { %6838 = vmatpush.bf16.msrb.mxu1 %v9636_v58  ;;  %v11294_v47 = vld [vmem:[%s12351_s19 + $0x6f4] sm:$0xf0]  ;;  %v10340_v29 = vor.u32 %v11486_v0, %v10339_v14  ;;  %v6626_v58 = vpop.f32.mrf.mxu0  ;;  %v11258_v0 = vld [vmem:[%s12351_s19 + $0x5dc] sm:$0xf] }
 0x41e   : > { %6878 = vmatpush.bf16.msra.mxu0 %v10372_v10  ;;  %v9572_v39 = vor.u32 %v11294_v47, %v9571_v19  ;;  %v9539_v31 = vld [vmem:[%s12351_s19 + $0x698] sm:$0xf]  ;;  %v8965_v10 = vld [vmem:[%s12351_s19 + $0x238] sm:$0xf0]  ;;  %v9928_v19 = vor.u32 %v11378_v59, %v9925_v62  ;;  %v11726_v49 = vpop.eup %11725 }
 0x41f   : > { %6903 = vmatpush.bf16.msra.mxu2 %v8872_v28  ;;  %6917 = vmatpush.bf16.msra.mxu3 %v9096_v7  ;;  %v9029_v28 = vld [vmem:[%s12351_s19 + $0x2b8] sm:$0xf0]  ;;  %v10307_v34 = vld [vmem:[%s12351_s19 + $0xc98] sm:$0xf] }
 0x420   : > { %v11478_v8 = vld [vmem:[%s12351_s19 + $0xcb4] sm:$0xf0]  ;;  %v9032_v36 = vor.u32 %v11154_v4, %v9029_v28  ;;  %v11138_v7 = vld [vmem:[%s12351_s19 + $0x21c] sm:$0xf]  ;;  %v6665_v32 = vpop.f32.mrf.mxu3 }
 0x421   : > { %6839 = vmatpush.bf16.msrb.mxu1 %v9604_v37  ;;  %v11286_v60 = vld [vmem:[%s12351_s19 + $0x6b4] sm:$0xf0]  ;;  %v6652_v13 = vpop.f32.mrf.mxu2  ;;  %v11450_v37 = vld [vmem:[%s12351_s19 + $0xbdc] sm:$0xf]  ;;  %v8968_v21 = vor.u32 %v11138_v7, %v8965_v10 }
 0x422   : > { %6879 = vmatpush.bf16.msra.mxu0 %v10340_v29  ;;  %v9540_v56 = vor.u32 %v11286_v60, %v9539_v31  ;;  %v10275_v61 = vld [vmem:[%s12351_s19 + $0xc58] sm:$0xf]  ;;  %v9445_v47 = vld [vmem:[%s12351_s19 + $0x5f8] sm:$0xf0]  ;;  %v13603_v29 = vadd.f32 1.0, %v11726_v49 }
 0x423   : > { %6904 = vmatpush.bf16.msra.mxu2 %v8840_v41  ;;  %6918 = vmatpush.bf16.msra.mxu3 %v9064_v24  ;;  %v10308_v41 = vor.u32 %v11478_v8, %v10307_v34  ;;  %v11470_v51 = vld [vmem:[%s12351_s19 + $0xc74] sm:$0xf0]  ;;  %v11370_v24 = vld [vmem:[%s12351_s19 + $0x95c] sm:$0xf] }
 0x424   : > { %v9507_v1 = vld [vmem:[%s12351_s19 + $0x658] sm:$0xf]  ;;  %v10276_v57 = vor.u32 %v11470_v51, %v10275_v61  ;;  %v9893_v43 = vld [vmem:[%s12351_s19 + $0x978] sm:$0xf0]  ;;  %11727 = vrcp.f32 %v13603_v29  ;;  %vm7087_vm14 = vweird.f32 %v13603_v29 }
 0x425   : > { %6840 = vmatpush.bf16.msrb.mxu1 %v9572_v39  ;;  %v11278_v54 = vld [vmem:[%s12351_s19 + $0x674] sm:$0xf0]  ;;  %v11442_v31 = vld [vmem:[%s12351_s19 + $0xb9c] sm:$0xf]  ;;  %v9896_v60 = vor.u32 %v11370_v24, %v9893_v43 }
 0x426   : > { %6880 = vmatpush.bf16.msra.mxu0 %v10308_v41  ;;  %v9475_v12 = vld [vmem:[%s12351_s19 + $0x618] sm:$0xf]  ;;  %v9508_v15 = vor.u32 %v11278_v54, %v9507_v1  ;;  %v10181_v34 = vld [vmem:[%s12351_s19 + $0xbb8] sm:$0xf0] }
 0x427   : > { %6905 = vmatpush.bf16.msra.mxu2 %v8808_v55  ;;  %6919 = vmatpush.bf16.msra.mxu3 %v9032_v36  ;;  %v9000_v55 = vor.u32 %v11146_v42, %v8997_v45  ;;  %v11270_v3 = vld [vmem:[%s12351_s19 + $0x634] sm:$0xf0]  ;;  %v9413_v20 = vld [vmem:[%s12351_s19 + $0x5b8] sm:$0xf0]  ;;  %v10184_v48 = vor.u32 %v11442_v31, %v10181_v34 }
 0x428   : > { %v10243_v22 = vld [vmem:[%s12351_s19 + $0xc18] sm:$0xf]  ;;  %v9476_v39 = vor.u32 %v11270_v3, %v9475_v12  ;;  %v11362_v36 = vld [vmem:[%s12351_s19 + $0x91c] sm:$0xf] }
 0x429   : > { %6841 = vmatpush.bf16.msrb.mxu1 %v9540_v56  ;;  %v11462_v16 = vld [vmem:[%s12351_s19 + $0xc34] sm:$0xf0]  ;;  %v9861_v40 = vld [vmem:[%s12351_s19 + $0x938] sm:$0xf0] }
 0x42a   : > { %v10723_v14 = vld [vmem:[%s12351_s19 + $0xfd8] sm:$0xf]  ;;  %6881 = vmatpush.bf16.msra.mxu0 %v10276_v57  ;;  %v10244_v4 = vor.u32 %v11462_v16, %v10243_v22  ;;  %v11434_v42 = vld [vmem:[%s12351_s19 + $0xb5c] sm:$0xf]  ;;  %v11728_v58 = vpop.eup %11727 }
 0x42b   : > { %6906 = vmatpush.bf16.msra.mxu2 %v8776_v30  ;;  %v10213_v30 = vld [vmem:[%s12351_s19 + $0xbf8] sm:$0xf0]  ;;  %6920 = vmatpush.bf16.msra.mxu3 %v9000_v55  ;;  %v11582_v6 = vld [vmem:[%s12351_s19 + $0xff4] sm:$0xf0]  ;;  %v7083_v59 = vmul.f32 %v11728_v58, %v13603_v29  ;;  %vm7088_vm13 = vweird.f32 %v11728_v58 }
 0x42c   : > { %v10216_v28 = vor.u32 %v11450_v37, %v10213_v30  ;;  %v10724_v8 = vor.u32 %v11582_v6, %v10723_v14  ;;  %v10691_v35 = vld [vmem:[%s12351_s19 + $0xf98] sm:$0xf]  ;;  %v10149_v45 = vld [vmem:[%s12351_s19 + $0xb78] sm:$0xf0]  ;;  %v7093_v30 = vand.u32 2147483648, %v13603_v29  ;;  %vm7089_vm15 = vmor %vm7087_vm14, %vm7088_vm13 }
 0x42d   : > { %6842 = vmatpush.bf16.msrb.mxu1 %v9508_v15  ;;  %v11574_v44 = vld [vmem:[%s12351_s19 + $0xfb4] sm:$0xf0]  ;;  %v11242_v51 = vld [vmem:[%s12351_s19 + $0x55c] sm:$0xf]  ;;  %v10152_v55 = vor.u32 %v11434_v42, %v10149_v45  ;;  %v7084_v15 = vsub.f32 1.0, %v7083_v59 }
 0x42e   : > { %6882 = vmatpush.bf16.msra.mxu0 %v10244_v4  ;;  %v10692_v56 = vor.u32 %v11574_v44, %v10691_v35  ;;  %v10659_v61 = vld [vmem:[%s12351_s19 + $0xf58] sm:$0xf]  ;;  %v9381_v13 = vld [vmem:[%s12351_s19 + $0x578] sm:$0xf0] }
 0x42f   : > { %6907 = vmatpush.bf16.msra.mxu2 %v8744_v50  ;;  %v9448_v50 = vor.u32 %v11258_v0, %v9445_v47  ;;  %6921 = vmatpush.bf16.msra.mxu3 %v8968_v21  ;;  %v11354_v1 = vld [vmem:[%s12351_s19 + $0x8dc] sm:$0xf]  ;;  %v9384_v62 = vor.u32 %v11242_v51, %v9381_v13  ;;  %v10627_v52 = vld [vmem:[%s12351_s19 + $0xf18] sm:$0xf]  ;;  %v7085_v14 = vmul.f32 %v11728_v58, %v7084_v15  ;;  %v7091_v0 = vand.u32 2147483647, %v13603_v29 }
 0x430   : > { %v9829_v54 = vld [vmem:[%s12351_s19 + $0x8f8] sm:$0xf0]  ;;  %v11558_v22 = vld [vmem:[%s12351_s19 + $0xf34] sm:$0xf0]  ;;  %v3602_v29 = vperm.slane %v13483_v33, 5 }
 0x431   : > { %6843 = vmatpush.bf16.msrb.mxu1 %v9476_v39  ;;  %6883 = vmatmul.bf16.vlgmr.msra.gmra.mxu0 %v12725_v46  ;;  %v11426_v57 = vld [vmem:[%s12351_s19 + $0xb1c] sm:$0xf]  ;;  %v9832_v3 = vor.u32 %v11354_v1, %v9829_v54  ;;  %v10628_v6 = vor.u32 %v11558_v22, %v10627_v52  ;;  %v10595_v43 = vld [vmem:[%s12351_s19 + $0xed8] sm:$0xf]  ;;  %v7086_v32 = vadd.f32 %v11728_v58, %v7085_v14  ;;  %vm7092_vm0 = vcmp.eq.f32.partialorder %v7091_v0, 8.507059e+37 }
 0x432   : > { %6927 = vmatpush.bf16.msrb.mxu0 %v9448_v50  ;;  %6922 = vmatmul.bf16.vlgmr.msra.gmra.mxu3 %v12506_v9  ;;  %v10117_v9 = vld [vmem:[%s12351_s19 + $0xb38] sm:$0xf0]  ;;  %v11550_v50 = vld [vmem:[%s12351_s19 + $0xef4] sm:$0xf0] }
 0x433   : > { %6908 = vmatpush.bf16.msra.mxu2 %v8712_v38  ;;  %6966 = vmatpush.bf16.msrb.mxu3 %v10216_v28  ;;  %v9864_v38 = vor.u32 %v11362_v36, %v9861_v40  ;;  %v11234_v7 = vld [vmem:[%s12351_s19 + $0x51c] sm:$0xf]  ;;  %v10563_v36 = vld [vmem:[%s12351_s19 + $0xe98] sm:$0xf]  ;;  %v10596_v42 = vor.u32 %v11550_v50, %v10595_v43 }
 0x434   : > { %6844 = vmatmul.bf16.vlgmr.msrb.gmra.mxu1 %v12552_v11  ;;  %v9349_v10 = vld [vmem:[%s12351_s19 + $0x538] sm:$0xf0]  ;;  %v10531_v22 = vld [vmem:[%s12351_s19 + $0xe58] sm:$0xf] }
 0x435   : > { %6888 = vmatpush.bf16.msra.mxu1 %v10724_v8  ;;  %v11346_v16 = vld [vmem:[%s12351_s19 + $0x89c] sm:$0xf]  ;;  %v9352_v47 = vor.u32 %v11234_v7, %v9349_v10  ;;  %v7094_v8 = vor.u32 1.1754944e-38, %v7093_v30  ;;  %v6715_v59 = vpop.f32.mrf.mxu3  ;;  %v11534_v7 = vld [vmem:[%s12351_s19 + $0xe74] sm:$0xf0] }
 0x436   : > { %6909 = vmatmul.bf16.vlgmr.msra.gmra.mxu2 %v12519_v27  ;;  %v11250_v27 = vld [vmem:[%s12351_s19 + $0x59c] sm:$0xf]  ;;  %v10532_v14 = vor.u32 %v11534_v7, %v10531_v22  ;;  %v10499_v0 = vld [vmem:[%s12351_s19 + $0xe18] sm:$0xf] }
 0x437   : > { %6953 = vmatpush.bf16.msrb.mxu2 %v9960_v2  ;;  %v9416_v41 = vor.u32 %v11250_v27, %v9413_v20  ;;  %v11566_v2 = vld [vmem:[%s12351_s19 + $0xf74] sm:$0xf0]  ;;  %6967 = vmatpush.bf16.msrb.mxu3 %v10184_v48  ;;  %v9797_v37 = vld [vmem:[%s12351_s19 + $0x8b8] sm:$0xf0]  ;;  %v7090_v27 = vsel %vm7089_vm15, %v11728_v58, %v7086_v32  ;;  %v13650_v20 = vpop.f32.mrf.mxu1 }
 0x438   : > { %v10660_v12 = vor.u32 %v11566_v2, %v10659_v61  ;;  %v11418_v49 = vld [vmem:[%s12351_s19 + $0xadc] sm:$0xf]  ;;  %v9800_v24 = vor.u32 %v11346_v16, %v9797_v37 }
 0x439   : > { %6928 = vmatpush.bf16.msrb.mxu0 %v9416_v41  ;;  %6889 = vmatpush.bf16.msra.mxu1 %v10692_v56  ;;  %v10085_v21 = vld [vmem:[%s12351_s19 + $0xaf8] sm:$0xf0]  ;;  %v6702_v39 = vpop.f32.mrf.mxu2  ;;  %v7095_v41 = vsel %vm7092_vm0, %v7094_v8, %v7090_v27  ;;  %v11542_v56 = vld [vmem:[%s12351_s19 + $0xeb4] sm:$0xf0] }
 0x43a   : > { %v11226_v4 = vld [vmem:[%s12351_s19 + $0x4dc] sm:$0xf]  ;;  %v10088_v35 = vor.u32 %v11418_v49, %v10085_v21  ;;  %7160 = vst [vmem:[%s13226_s24 + $0x18] sm:$0xff] %v7095_v41  ;;  %v6703_v1 = vadd.f32 %v6702_v39, %v3602_v29  ;;  %v11526_v21 = vld [vmem:[%s12351_s19 + $0xe34] sm:$0xf0] }
 0x43b   : > { %6954 = vmatpush.bf16.msrb.mxu2 %v9928_v19  ;;  %6968 = vmatpush.bf16.msrb.mxu3 %v10152_v55  ;;  %v10120_v19 = vor.u32 %v11426_v57, %v10117_v9  ;;  %v9317_v28 = vld [vmem:[%s12351_s19 + $0x4f8] sm:$0xf0]  ;;  %v10500_v50 = vor.u32 %v11526_v21, %v10499_v0 }
 0x43c   : > { %v11338_v31 = vld [vmem:[%s12351_s19 + $0x85c] sm:$0xf]  ;;  %v9320_v44 = vor.u32 %v11226_v4, %v9317_v28 }
 0x43d   : > { %6929 = vmatpush.bf16.msrb.mxu0 %v9384_v62  ;;  %6890 = vmatpush.bf16.msra.mxu1 %v10660_v12  ;;  %v9765_v34 = vld [vmem:[%s12351_s19 + $0x878] sm:$0xf0]  ;;  %v10564_v62 = vor.u32 %v11542_v56, %v10563_v36  ;;  %v13665_v12 = vadd.f32 %v6715_v59, %v6703_v1  ;;  %v6717_v39 = vpop.f32.mrf.mxu3 }
 0x43e   : > { %v11410_v40 = vld [vmem:[%s12351_s19 + $0xa9c] sm:$0xf]  ;;  %v9768_v45 = vor.u32 %v11338_v31, %v9765_v34  ;;  %v6625_v34 = vadd.f32 %v13567_v23, %v13503_v5 }
 0x43f   : > { %6955 = vmatpush.bf16.msrb.mxu2 %v9896_v60  ;;  %v13647_v60 = vpop.f32.mrf.mxu0  ;;  %6969 = vmatpush.bf16.msrb.mxu3 %v10120_v19  ;;  %v10053_v48 = vld [vmem:[%s12351_s19 + $0xab8] sm:$0xf0]  ;;  %v6639_v16 = vpop.f32.mrf.mxu1 }
 0x440   : > { %v9285_v61 = vld [vmem:[%s12351_s19 + $0x4b8] sm:$0xf0]  ;;  %v10056_v2 = vor.u32 %v11410_v40, %v10053_v48 }
 0x441   : > { %6930 = vmatpush.bf16.msrb.mxu0 %v9352_v47  ;;  %6891 = vmatpush.bf16.msra.mxu1 %v10628_v6  ;;  %v11330_v51 = vld [vmem:[%s12351_s19 + $0x81c] sm:$0xf] }
 0x442   : > { %v9733_v13 = vld [vmem:[%s12351_s19 + $0x838] sm:$0xf0] }
 0x443   : > { %6956 = vmatpush.bf16.msrb.mxu2 %v9864_v38  ;;  %v11218_v38 = vld [vmem:[%s12351_s19 + $0x49c] sm:$0xf]  ;;  %6970 = vmatpush.bf16.msrb.mxu3 %v10088_v35  ;;  %v9736_v52 = vor.u32 %v11330_v51, %v9733_v13 }
 0x444   : > { %v9288_v54 = vor.u32 %v11218_v38, %v9285_v61  ;;  %v11402_v58 = vld [vmem:[%s12351_s19 + $0xa5c] sm:$0xf] }
 0x445   : > { %6931 = vmatpush.bf16.msrb.mxu0 %v9320_v44  ;;  %v10021_v55 = vld [vmem:[%s12351_s19 + $0xa78] sm:$0xf0]  ;;  %6892 = vmatpush.bf16.msra.mxu1 %v10596_v42 }
 0x446   : > { %v11210_v57 = vld [vmem:[%s12351_s19 + $0x45c] sm:$0xf]  ;;  %v10024_v15 = vor.u32 %v11402_v58, %v10021_v55 }
 0x447   : > { %6957 = vmatpush.bf16.msrb.mxu2 %v9832_v3  ;;  %v9253_v9 = vld [vmem:[%s12351_s19 + $0x478] sm:$0xf0]  ;;  %v6704_v3 = vpop.f32.mrf.mxu2  ;;  %v6678_v10 = vpop.f32.mrf.mxu0  ;;  %6971 = vmatpush.bf16.msrb.mxu3 %v10056_v2 }
 0x448   : > { %v9256_v37 = vor.u32 %v11210_v57, %v9253_v9  ;;  %v11394_v30 = vld [vmem:[%s12351_s19 + $0xa1c] sm:$0xf] }
 0x449   : > { %6932 = vmatpush.bf16.msrb.mxu0 %v9288_v54  ;;  %v9989_v19 = vld [vmem:[%s12351_s19 + $0xa38] sm:$0xf0]  ;;  %6893 = vmatpush.bf16.msra.mxu1 %v10564_v62 }
 0x44a   : > { %v11202_v47 = vld [vmem:[%s12351_s19 + $0x41c] sm:$0xf]  ;;  %v9992_v43 = vor.u32 %v11394_v30, %v9989_v19 }
 0x44b   : > { %6958 = vmatpush.bf16.msrb.mxu2 %v9800_v24  ;;  %v9221_v49 = vld [vmem:[%s12351_s19 + $0x438] sm:$0xf0]  ;;  %6972 = vmatpush.bf16.msrb.mxu3 %v10024_v15 }
 0x44c   : > { %v11514_v6 = vld [vmem:[%s12351_s19 + $0xddc] sm:$0xf]  ;;  %v9224_v32 = vor.u32 %v11202_v47, %v9221_v49 }
 0x44d   : > { %v10469_v24 = vld [vmem:[%s12351_s19 + $0xdf8] sm:$0xf0]  ;;  %6933 = vmatpush.bf16.msrb.mxu0 %v9256_v37  ;;  %6894 = vmatpush.bf16.msra.mxu1 %v10532_v14 }
 0x44e   : > { %v11322_v4 = vld [vmem:[%s12351_s19 + $0x7dc] sm:$0xf]  ;;  %v10472_v31 = vor.u32 %v11514_v6, %v10469_v24 }
 0x44f   : > { %6959 = vmatpush.bf16.msrb.mxu2 %v9768_v45  ;;  %v9701_v28 = vld [vmem:[%s12351_s19 + $0x7f8] sm:$0xf0]  ;;  %6973 = vmatpush.bf16.msrb.mxu3 %v9992_v43  ;;  %v13707_v59 = vpop.f32.mrf.mxu0 }
 0x450   : > { %v9704_v8 = vor.u32 %v11322_v4, %v9701_v28  ;;  %v11506_v35 = vld [vmem:[%s12351_s19 + $0xd9c] sm:$0xf] }
 0x451   : > { %v10437_v27 = vld [vmem:[%s12351_s19 + $0xdb8] sm:$0xf0]  ;;  %6934 = vmatpush.bf16.msrb.mxu0 %v9224_v32  ;;  %6895 = vmatpush.bf16.msra.mxu1 %v10500_v50 }
 0x452   : > { %v11314_v29 = vld [vmem:[%s12351_s19 + $0x79c] sm:$0xf]  ;;  %v10440_v36 = vor.u32 %v11506_v35, %v10437_v27  ;;  %6974 = vmatmul.bf16.vlgmr.msrb.gmra.mxu3 %v12664_v63  ;;  %v6689_v62 = vpop.f32.mrf.mxu1 }
 0x453   : > { %6960 = vmatpush.bf16.msrb.mxu2 %v9736_v52  ;;  %v9669_v44 = vld [vmem:[%s12351_s19 + $0x7b8] sm:$0xf0] }
 0x454   : > { %v9672_v5 = vor.u32 %v11314_v29, %v9669_v44  ;;  %v11498_v23 = vld [vmem:[%s12351_s19 + $0xd5c] sm:$0xf]  ;;  %6935 = vmatmul.bf16.vlgmr.msrb.gmra.mxu0 %v12562_v26  ;;  %6896 = vmatmul.bf16.vlgmr.msra.gmra.mxu1 %v12785_v25 }
 0x455   : > { %6979 = vmatpush.bf16.msra.mxu0 %v10472_v31  ;;  %6940 = vmatpush.bf16.msrb.mxu1 %v9704_v8  ;;  %v10405_v40 = vld [vmem:[%s12351_s19 + $0xd78] sm:$0xf0] }
 0x456   : > { %6961 = vmatmul.bf16.vlgmr.msrb.gmra.mxu2 %v12594_v18  ;;  %v6638_v18 = vadd.f32 %v13650_v20, %v6625_v34  ;;  %v11306_v48 = vld [vmem:[%s12351_s19 + $0x75c] sm:$0xf]  ;;  %v10408_v42 = vor.u32 %v11498_v23, %v10405_v40 }
 0x457   : > { %v9637_v41 = vld [vmem:[%s12351_s19 + $0x778] sm:$0xf0]  ;;  %v6730_v47 = vpop.f32.mrf.mxu0 }
 0x458   : > { %v6651_v20 = vadd.f32 %v13561_v53, %v6638_v18  ;;  %v9640_v63 = vor.u32 %v11306_v48, %v9637_v41  ;;  %v11490_v45 = vld [vmem:[%s12351_s19 + $0xd1c] sm:$0xf] }
 0x459   : > { %6980 = vmatpush.bf16.msra.mxu0 %v10440_v36  ;;  %6941 = vmatpush.bf16.msrb.mxu1 %v9672_v5  ;;  %v10373_v56 = vld [vmem:[%s12351_s19 + $0xd38] sm:$0xf0]  ;;  %v13702_v1 = vpop.f32.mrf.mxu2 }
 0x45a   : > { %v11298_v38 = vld [vmem:[%s12351_s19 + $0x71c] sm:$0xf]  ;;  %v6664_v26 = vadd.f32 %v13581_v17, %v6651_v20  ;;  %v10376_v51 = vor.u32 %v11490_v45, %v10373_v56  ;;  %v6691_v49 = vpop.f32.mrf.mxu1 }
 0x45b   : > { %v9605_v61 = vld [vmem:[%s12351_s19 + $0x738] sm:$0xf0] }
 0x45c   : > { %v9608_v53 = vor.u32 %v11298_v38, %v9605_v61  ;;  %v11482_v13 = vld [vmem:[%s12351_s19 + $0xcdc] sm:$0xf]  ;;  %v6677_v55 = vadd.f32 %v13647_v60, %v6664_v26  ;;  %v13713_v60 = vpop.f32.mrf.mxu3 }
 0x45d   : > { %6981 = vmatpush.bf16.msra.mxu0 %v10408_v42  ;;  %6942 = vmatpush.bf16.msrb.mxu1 %v9640_v63  ;;  %v10341_v2 = vld [vmem:[%s12351_s19 + $0xcf8] sm:$0xf0] }
 0x45e   : > { %v11290_v54 = vld [vmem:[%s12351_s19 + $0x6dc] sm:$0xf]  ;;  %v10344_v17 = vor.u32 %v11482_v13, %v10341_v2  ;;  %v6690_v52 = vadd.f32 %v6689_v62, %v6677_v55  ;;  %v3603_v2 = vperm.slane %v13483_v33, 6 }
 0x45f   : > { %v9573_v58 = vld [vmem:[%s12351_s19 + $0x6f8] sm:$0xf0] }
 0x460   : > { %v9576_v57 = vor.u32 %v11290_v54, %v9573_v58  ;;  %v11474_v9 = vld [vmem:[%s12351_s19 + $0xc9c] sm:$0xf]  ;;  %v10733_v10 = vmul.f32 -1.442695, %v6690_v52 }
 0x461   : > { %6982 = vmatpush.bf16.msra.mxu0 %v10376_v51  ;;  %6943 = vmatpush.bf16.msrb.mxu1 %v9608_v53  ;;  %v10309_v3 = vld [vmem:[%s12351_s19 + $0xcb8] sm:$0xf0]  ;;  %v6756_v19 = vpop.f32.mrf.mxu2 }
 0x462   : > { %v11282_v22 = vld [vmem:[%s12351_s19 + $0x69c] sm:$0xf]  ;;  %v10312_v15 = vor.u32 %v11474_v9, %v10309_v3  ;;  %11729 = vpow2.f32 %v10733_v10 }
 0x463   : > { %v9541_v7 = vld [vmem:[%s12351_s19 + $0x6b8] sm:$0xf0] }
 0x464   : > { %v9544_v16 = vor.u32 %v11282_v22, %v9541_v7  ;;  %v11466_v37 = vld [vmem:[%s12351_s19 + $0xc5c] sm:$0xf]  ;;  %v6769_v8 = vpop.f32.mrf.mxu3 }
 0x465   : > { %6983 = vmatpush.bf16.msra.mxu0 %v10344_v17  ;;  %6944 = vmatpush.bf16.msrb.mxu1 %v9576_v57  ;;  %v10277_v30 = vld [vmem:[%s12351_s19 + $0xc78] sm:$0xf0] }
 0x466   : > { %v11274_v14 = vld [vmem:[%s12351_s19 + $0x65c] sm:$0xf]  ;;  %v10280_v21 = vor.u32 %v11466_v37, %v10277_v30 }
 0x467   : > { %v9509_v0 = vld [vmem:[%s12351_s19 + $0x678] sm:$0xf0] }
 0x468   : > { %v9512_v6 = vor.u32 %v11274_v14, %v9509_v0  ;;  %v11458_v24 = vld [vmem:[%s12351_s19 + $0xc1c] sm:$0xf]  ;;  %v11730_v32 = vpop.eup %11729  ;;  %v6729_v0 = vadd.f32 %v13707_v59, %v13665_v12 }
 0x469   : > { %6984 = vmatpush.bf16.msra.mxu0 %v10312_v15  ;;  %6945 = vmatpush.bf16.msrb.mxu1 %v9544_v16  ;;  %v10245_v43 = vld [vmem:[%s12351_s19 + $0xc38] sm:$0xf0]  ;;  %v7033_v31 = vadd.f32 1.0, %v11730_v32 }
 0x46a   : > { %v11266_v4 = vld [vmem:[%s12351_s19 + $0x61c] sm:$0xf]  ;;  %v10248_v34 = vor.u32 %v11458_v24, %v10245_v43 }
 0x46b   : > { %v9477_v28 = vld [vmem:[%s12351_s19 + $0x638] sm:$0xf0]  ;;  %11731 = vrcp.f32 %v7033_v31  ;;  %v7108_v63 = vand.u32 2147483648, %v7033_v31  ;;  %v7106_v56 = vand.u32 2147483647, %v7033_v31  ;;  %vm7102_vm2 = vweird.f32 %v7033_v31 }
 0x46c   : > { %v11578_v39 = vld [vmem:[%s12351_s19 + $0xfdc] sm:$0xf]  ;;  %v9480_v35 = vor.u32 %v11266_v4, %v9477_v28 }
 0x46d   : > { %v10725_v50 = vld [vmem:[%s12351_s19 + $0xff8] sm:$0xf0]  ;;  %6985 = vmatpush.bf16.msra.mxu0 %v10280_v21  ;;  %6946 = vmatpush.bf16.msrb.mxu1 %v9512_v6  ;;  %v7109_v51 = vor.u32 1.1754944e-38, %v7108_v63  ;;  %vm7107_vm4 = vcmp.eq.f32.partialorder %v7106_v56, 8.507059e+37 }
 0x46e   : > { %v10728_v27 = vor.u32 %v11578_v39, %v10725_v50  ;;  %v11570_v29 = vld [vmem:[%s12351_s19 + $0xf9c] sm:$0xf]  ;;  %v6780_v53 = vpop.f32.mrf.mxu0 }
 0x46f   : > { %v10693_v44 = vld [vmem:[%s12351_s19 + $0xfb8] sm:$0xf0] }
 0x470   : > { %v10696_v18 = vor.u32 %v11570_v29, %v10693_v44  ;;  %v11562_v36 = vld [vmem:[%s12351_s19 + $0xf5c] sm:$0xf] }
 0x471   : > { %6986 = vmatpush.bf16.msra.mxu0 %v10248_v34  ;;  %6947 = vmatpush.bf16.msrb.mxu1 %v9480_v35  ;;  %v10661_v5 = vld [vmem:[%s12351_s19 + $0xf78] sm:$0xf0]  ;;  %v11732_v23 = vpop.eup %11731 }
 0x472   : > { %v7098_v40 = vmul.f32 %v11732_v23, %v7033_v31  ;;  %v10664_v48 = vor.u32 %v11562_v36, %v10661_v5  ;;  %v11554_v20 = vld [vmem:[%s12351_s19 + $0xf1c] sm:$0xf]  ;;  %vm7103_vm1 = vweird.f32 %v11732_v23  ;;  %v6741_v54 = vpop.f32.mrf.mxu1 }
 0x473   : > { %v10629_v42 = vld [vmem:[%s12351_s19 + $0xf38] sm:$0xf0]  ;;  %vm7104_vm3 = vmor %vm7102_vm2, %vm7103_vm1  ;;  %v6742_v47 = vadd.f32 %v6741_v54, %v6729_v0 }
 0x474   : > { %6987 = vmatmul.bf16.vlgmr.msra.gmra.mxu0 %v12725_v46  ;;  %6948 = vmatmul.bf16.vlgmr.msrb.gmra.mxu1 %v12552_v11  ;;  %v7099_v41 = vsub.f32 1.0, %v7098_v40  ;;  %v10632_v38 = vor.u32 %v11554_v20, %v10629_v42  ;;  %v11546_v61 = vld [vmem:[%s12351_s19 + $0xedc] sm:$0xf]  ;;  %v11748_v40 = vld [vmem:[%s12798_s21] sm:$0xff] }
 0x475   : > { %6992 = vmatpush.bf16.msra.mxu1 %v10728_v27  ;;  %v10597_v26 = vld [vmem:[%s12351_s19 + $0xef8] sm:$0xf0]  ;;  %v6819_v57 = vpop.f32.mrf.mxu3  ;;  %v6755_v49 = vadd.f32 %v13702_v1, %v6742_v47 }
 0x476   : > { %v7100_v45 = vmul.f32 %v11732_v23, %v7099_v41  ;;  %v10600_v55 = vor.u32 %v11546_v61, %v10597_v26  ;;  %v11538_v62 = vld [vmem:[%s12351_s19 + $0xe9c] sm:$0xf]  ;;  %v6782_v15 = vpop.f32.mrf.mxu0 }
 0x477   : > { %v10565_v17 = vld [vmem:[%s12351_s19 + $0xeb8] sm:$0xf0]  ;;  %v6768_v21 = vadd.f32 %v13713_v60, %v6755_v49 }
 0x478   : > { %v7101_v46 = vadd.f32 %v11732_v23, %v7100_v45  ;;  %v10568_v9 = vor.u32 %v11538_v62, %v10565_v17  ;;  %v11530_v7 = vld [vmem:[%s12351_s19 + $0xe5c] sm:$0xf] }
 0x479   : > { %6993 = vmatpush.bf16.msra.mxu1 %v10696_v18  ;;  %v6806_v11 = vpop.f32.mrf.mxu2  ;;  %v10533_v10 = vld [vmem:[%s12351_s19 + $0xe78] sm:$0xf0]  ;;  %v6781_v24 = vadd.f32 %v6780_v53, %v6768_v21 }
 0x47a   : > { %v7105_v13 = vsel %vm7104_vm3, %v11732_v23, %v7101_v46  ;;  %v6807_v52 = vadd.f32 %v6806_v11, %v3603_v2  ;;  %v6743_v16 = vpop.f32.mrf.mxu1  ;;  %v10536_v33 = vor.u32 %v11530_v7, %v10533_v10  ;;  %v11522_v37 = vld [vmem:[%s12351_s19 + $0xe1c] sm:$0xf] }
 0x47b   : > { %v7110_v58 = vsel %vm7107_vm4, %v7109_v51, %v7105_v13  ;;  %v10501_v30 = vld [vmem:[%s12351_s19 + $0xe38] sm:$0xf0] }
 0x47c   : > { %7161 = vst [vmem:[%s13226_s24 + $0x20] sm:$0xff] %v7110_v58  ;;  %v6820_v3 = vadd.f32 %v6819_v57, %v6807_v52  ;;  %v10504_v14 = vor.u32 %v11522_v37, %v10501_v30 }
 0x47d   : > { %6994 = vmatpush.bf16.msra.mxu1 %v10664_v48  ;;  %v6821_v19 = vpop.f32.mrf.mxu3  ;;  %v3604_v48 = vperm.slane %v11748_v40, 7 }
 0x481   : > { %6995 = vmatpush.bf16.msra.mxu1 %v10632_v38  ;;  %v6808_v22 = vpop.f32.mrf.mxu2 }
 0x485   : > { %6996 = vmatpush.bf16.msra.mxu1 %v10600_v55 }
 0x489   : > { %6997 = vmatpush.bf16.msra.mxu1 %v10568_v9 }
 0x48d   : > { %6998 = vmatpush.bf16.msra.mxu1 %v10536_v33 }
 0x48e   : > { %v6832_v43 = vpop.f32.mrf.mxu0 }
 0x48f   : > { %v6833_v61 = vadd.f32 %v6832_v43, %v6820_v3 }
 0x491   : > { %6999 = vmatpush.bf16.msra.mxu1 %v10504_v14  ;;  %v6793_v4 = vpop.f32.mrf.mxu1 }
 0x492   : > { %v6794_v28 = vadd.f32 %v6793_v4, %v6781_v24 }
 0x494   : > { %7000 = vmatmul.bf16.vlgmr.msra.gmra.mxu1 %v12785_v25  ;;  %v10734_v32 = vmul.f32 -1.442695, %v6794_v28 }
 0x495   : > { %v6871_v39 = vpop.f32.mrf.mxu3 }
 0x496   : > { %11733 = vpow2.f32 %v10734_v32  ;;  %v6834_v31 = vpop.f32.mrf.mxu0 }
 0x499   : > { %v6858_v6 = vpop.f32.mrf.mxu2  ;;  %v6795_v34 = vpop.f32.mrf.mxu1 }
 0x49c   : > { %v11734_v12 = vpop.eup %11733 }
 0x49d   : > { %v7034_v59 = vadd.f32 1.0, %v11734_v12  ;;  %v6873_v8 = vpop.f32.mrf.mxu3 }
 0x49f   : > { %11735 = vrcp.f32 %v7034_v59  ;;  %v7123_v60 = vand.u32 2147483648, %v7034_v59  ;;  %v7121_v29 = vand.u32 2147483647, %v7034_v59  ;;  %vm7117_vm6 = vweird.f32 %v7034_v59 }
 0x4a1   : > { %v6860_v50 = vpop.f32.mrf.mxu2  ;;  %v7124_v36 = vor.u32 1.1754944e-38, %v7123_v60  ;;  %vm7122_vm8 = vcmp.eq.f32.partialorder %v7121_v29, 8.507059e+37 }
 0x4a5   : > { %v11736_v1 = vpop.eup %11735 }
 0x4a6   : > { %v7113_v25 = vmul.f32 %v11736_v1, %v7034_v59  ;;  %vm7118_vm5 = vweird.f32 %v11736_v1 }
 0x4a7   : > { %vm7119_vm7 = vmor %vm7117_vm6, %vm7118_vm5 }
 0x4a8   : > { %v7114_v35 = vsub.f32 1.0, %v7113_v25 }
 0x4aa   : > { %v7115_v27 = vmul.f32 %v11736_v1, %v7114_v35 }
 0x4ac   : > { %v7116_v44 = vadd.f32 %v11736_v1, %v7115_v27 }
 0x4ae   : > { %v6884_v5 = vpop.f32.mrf.mxu0  ;;  %v7120_v23 = vsel %vm7119_vm7, %v11736_v1, %v7116_v44 }
 0x4af   : > { %v7125_v20 = vsel %vm7122_vm8, %v7124_v36, %v7120_v23 }
 0x4b0   : > { %7162 = vst [vmem:[%s13226_s24 + $0x28] sm:$0xff] %v7125_v20 }
 0x4b1   : > { %v6845_v41 = vpop.f32.mrf.mxu1 }
 0x4b2   : > { %v6846_v26 = vadd.f32 %v6845_v41, %v6833_v61 }
 0x4b4   : > { %v6859_v51 = vadd.f32 %v6858_v6, %v6846_v26 }
 0x4b5   : > { %v6923_v63 = vpop.f32.mrf.mxu3 }
 0x4b6   : > { %v6886_v38 = vpop.f32.mrf.mxu0  ;;  %v6872_v53 = vadd.f32 %v6871_v39, %v6859_v51 }
 0x4b8   : > { %v6885_v2 = vadd.f32 %v6884_v5, %v6872_v53 }
 0x4b9   : > { %v6910_v18 = vpop.f32.mrf.mxu2  ;;  %v6847_v46 = vpop.f32.mrf.mxu1 }
 0x4ba   : > { %v6911_v42 = vadd.f32 %v6910_v18, %v3604_v48 }
 0x4bc   : > { %v6924_v45 = vadd.f32 %v6923_v63, %v6911_v42 }
 0x4bd   : > { %v6925_v11 = vpop.f32.mrf.mxu3 }
 0x4c1   : > { %v6912_v56 = vpop.f32.mrf.mxu2 }
 0x4d1   : > { %v6936_v54 = vpop.f32.mrf.mxu0  ;;  %v6897_v58 = vpop.f32.mrf.mxu1 }
 0x4d2   : > { %v6898_v55 = vadd.f32 %v6897_v58, %v6885_v2  ;;  %v6937_v43 = vadd.f32 %v6936_v54, %v6924_v45 }
 0x4d4   : > { %v10735_v62 = vmul.f32 -1.442695, %v6898_v55 }
 0x4d5   : > { %v6975_v17 = vpop.f32.mrf.mxu3 }
 0x4d6   : > { %11737 = vpow2.f32 %v10735_v62 }
 0x4d9   : > { %v6962_v13 = vpop.f32.mrf.mxu2  ;;  %v6938_v57 = vpop.f32.mrf.mxu0 }
 0x4da   : > { %v6899_v9 = vpop.f32.mrf.mxu1 }
 0x4dc   : > { %v11738_v22 = vpop.eup %11737 }
 0x4dd   : > { %v7035_v7 = vadd.f32 1.0, %v11738_v22  ;;  %v6977_v10 = vpop.f32.mrf.mxu3 }
 0x4df   : > { %11739 = vrcp.f32 %v7035_v7  ;;  %v7138_v33 = vand.u32 2147483648, %v7035_v7  ;;  %v7136_v30 = vand.u32 2147483647, %v7035_v7  ;;  %vm7132_vm10 = vweird.f32 %v7035_v7 }
 0x4e1   : > { %v6964_v52 = vpop.f32.mrf.mxu2  ;;  %v7139_v14 = vor.u32 1.1754944e-38, %v7138_v33  ;;  %vm7137_vm12 = vcmp.eq.f32.partialorder %v7136_v30, 8.507059e+37 }
 0x4e5   : > { %v11740_v15 = vpop.eup %11739 }
 0x4e6   : > { %v7128_v3 = vmul.f32 %v11740_v15, %v7035_v7  ;;  %vm7133_vm9 = vweird.f32 %v11740_v15 }
 0x4e7   : > { %vm7134_vm11 = vmor %vm7132_vm10, %vm7133_vm9 }
 0x4e8   : > { %v7129_v16 = vsub.f32 1.0, %v7128_v3 }
 0x4ea   : > { %v7130_v37 = vmul.f32 %v11740_v15, %v7129_v16 }
 0x4ec   : > { %v7131_v19 = vadd.f32 %v11740_v15, %v7130_v37 }
 0x4ee   : > { %v7135_v47 = vsel %vm7134_vm11, %v11740_v15, %v7131_v19 }
 0x4ef   : > { %v7140_v21 = vsel %vm7137_vm12, %v7139_v14, %v7135_v47 }
 0x4f0   : > { %7163 = vst [vmem:[%s13226_s24 + $0x30] sm:$0xff] %v7140_v21 }
 0x4f1   : > { %v6988_v0 = vpop.f32.mrf.mxu0  ;;  %v6949_v49 = vpop.f32.mrf.mxu1 }
 0x4f2   : > { %v6950_v4 = vadd.f32 %v6949_v49, %v6937_v43 }
 0x4f4   : > { %v6963_v28 = vadd.f32 %v6962_v13, %v6950_v4 }
 0x4f6   : > { %v6976_v32 = vadd.f32 %v6975_v17, %v6963_v28 }
 0x4f8   : > { %v6989_v39 = vadd.f32 %v6988_v0, %v6976_v32 }
 0x4f9   : > { %v6990_v6 = vpop.f32.mrf.mxu0  ;;  %v6951_v24 = vpop.f32.mrf.mxu1 }
 0x511   : > { %v7001_v50 = vpop.f32.mrf.mxu1 }
 0x512   : > { %v7002_v31 = vadd.f32 %v7001_v50, %v6989_v39 }
 0x514   : > { %v10736_v34 = vmul.f32 -1.442695, %v7002_v31 }
 0x516   : > { %11741 = vpow2.f32 %v10736_v34 }
 0x519   : > { %v7003_v12 = vpop.f32.mrf.mxu1 }
 0x51c   : > { %v11742_v59 = vpop.eup %11741 }
 0x51d   : > { %v7036_v8 = vadd.f32 1.0, %v11742_v59 }
 0x51f   : > { %11743 = vrcp.f32 %v7036_v8  ;;  %v7153_v60 = vand.u32 2147483648, %v7036_v8  ;;  %v7151_v29 = vand.u32 2147483647, %v7036_v8  ;;  %vm7147_vm14 = vweird.f32 %v7036_v8 }
 0x521   : > { %v7154_v18 = vor.u32 1.1754944e-38, %v7153_v60  ;;  %vm7152_vm0 = vcmp.eq.f32.partialorder %v7151_v29, 8.507059e+37 }
 0x525   : > { %v11744_v1 = vpop.eup %11743 }
 0x526   : > { %v7143_v25 = vmul.f32 %v11744_v1, %v7036_v8  ;;  %vm7148_vm13 = vweird.f32 %v11744_v1 }
 0x527   : > { %vm7149_vm15 = vmor %vm7147_vm14, %vm7148_vm13 }
 0x528   : > { %v7144_v35 = vsub.f32 1.0, %v7143_v25 }
 0x52a   : > { %v7145_v27 = vmul.f32 %v11744_v1, %v7144_v35 }
 0x52c   : > { %v7146_v44 = vadd.f32 %v11744_v1, %v7145_v27 }
 0x52e   : > { %v7150_v36 = vsel %vm7149_vm15, %v11744_v1, %v7146_v44 }
 0x52f   : > { %v7155_v5 = vsel %vm7152_vm0, %v7154_v18, %v7150_v36 }
 0x530   : > { %7164 = vst [vmem:[%s13226_s24 + $0x38] sm:$0xff] %v7155_v5 }
 0x531   : > { %12046 = shalt.err (!%p12043_p1)
}
 0x532   : > { %11616 = dma.vmem_to_hbm [thread:$0]  (%p12249_p13), %s7180_s14, 1024, %s7182_s1, %s7166_s16  }
 0x533 PF: > { %s13837_s18 = sld [smem:[#allocation24_spill]]  ;;  %p11666_p7 = scmp.ge.s32.totalorder %s12101_s12, 2 }
 0x535   : > { %p11648_p9 = pnand %p11666_p7, %p12255_p4 }
 0x537   : > { %p11649_p6 = pneg %p11648_p9 }
 0x539   : > { %s7193_s19 = sand.u32 1, %s13837_s18  }
 0x53a   : > { %s7194_s29 = scalar_lea.sflag [#allocation4], %s7193_s19 }
 0x53b   : > { %12084 = dma.done.wait (%p11649_p6), %s7194_s29, 1024  }
 0x53c   : > { %12086 = vsyncadd (%p11649_p6), %s7194_s29, 4294966272  ;;  %s13839_s12 = sld [smem:[#allocation25_spill]]  ;;  %s13841_s30 = smov %s12093_s10 }
 0x53d   : > { %s13840_s21 = sld [smem:[#allocation26_spill]]  ;;  %s13842_s10 = smov %s12097_s11 }
 0x542   : > { %p26_p3 = scmp.ge.s32.totalorder %s13839_s12, 6  }
 0x543   : > { %s13843_s11 = smov %s13840_s21 }
 0x544   :  { %28 = sbr.rel (!%p26_p3) target bundleno = 14 (0xe), region = 141 }
 0x549   :  { %7200 = vsyncpa [#allocation3], 1 }
 0x54a   :  { %7202 = vsyncpa [#allocation3 + $0x1], 1 }
 0x54b   :  { %7203 = vsyncpa [#allocation6], 1 }
 0x54c   :  { %7204 = vsyncpa [#allocation9], 1 }
 0x54d   :  { %7205 = vsyncpa [#allocation12], 1 }
 0x54e   :  { %7206 = vsyncpa [#allocation15], 1 }
 0x54f   :  { %7208 = vsyncpa [#allocation15 + $0x1], 1 }
 0x550   :  { %7209 = vsyncpa [#allocation4], 1 }
 0x551   :  { %7211 = vsyncpa [#allocation4 + $0x1], 1 }

</bundles_post_ra>
